<compile_context>
chip_gen: v7x
topology: tpu7x:2x2x1
jax: 0.10.0
libtpu: 0.0.40
codegen_flags: <defaults>
</compile_context>

<pallas_src>
import jax
import jax.numpy as jnp
from jax.experimental import pallas as pl
from jax.experimental.pallas import tpu as pltpu

BN_EPS = 1e-5
VECW = 896        # width of the packed parameter-vector slab (max padded dim)


# --------------------------------------------------------------------------
# Kernel
# --------------------------------------------------------------------------
def vae_kernel(x_ref, eps_ref,
               w_e1, w_e2, w_e3, w_h1, w_h2,
               w_d1, w_d2, w_d3_hbm, w_d4_hbm, w_d5_hbm,
               vec_ref,
               ml_ref, out_ref,
               d3_buf, d4_buf, d5_buf, dma_sem):
    """Fused VAE forward. Feature dims pre-padded to multiples of 128
    (except the 784-wide contraction dim of the first layer)."""

    # ---- start streaming the big decoder weights behind the encoder ----
    cp3 = pltpu.make_async_copy(w_d3_hbm, d3_buf, dma_sem.at[0])
    cp4 = pltpu.make_async_copy(w_d4_hbm, d4_buf, dma_sem.at[1])
    cp5 = pltpu.make_async_copy(w_d5_hbm, d5_buf, dma_sem.at[2])
    cp3.start()
    cp4.start()
    cp5.start()

    def vec(row, width):
        # one packed (1, width) f32 parameter vector (gamma / beta / bias)
        return vec_ref[row:row + 1, :width]

    def mm(h, w):
        # bf16 MXU matmul with f32 accumulation.
        return jnp.dot(h.astype(jnp.bfloat16), w,
                       preferred_element_type=jnp.float32)

    def bn_tanh(h, row, width):
        # Training-mode BatchNorm1d (biased batch variance) + Tanh, all f32.
        # One-pass stats (var = E[h^2] - mu^2, clamped), affine folded to FMA.
        g = vec(row, width)
        b = vec(row + 1, width)
        mu = jnp.mean(h, axis=0, keepdims=True)
        ex2 = jnp.mean(h * h, axis=0, keepdims=True)
        var = jnp.maximum(ex2 - mu * mu, 0.0)
        scale = g * jax.lax.rsqrt(var + BN_EPS)
        shift = b - mu * scale
        return jnp.tanh(h * scale + shift)

    # ---------------- encoder: 3 x (Linear -> BN -> Tanh) ----------------
    # (Linear bias omitted: exactly cancelled by the BN mean subtraction.)
    h = bn_tanh(mm(x_ref[...], w_e1[...]), 0, 512)     # 784      -> 400(512)
    h = bn_tanh(mm(h, w_e2[...]), 2, 256)              # 400(512) -> 196(256)
    h = bn_tanh(mm(h, w_e3[...]), 4, 128)              # 196(256) ->  48(128)

    # ------------- fused mean / log_var heads (one matmul chain) ---------
    h1 = bn_tanh(mm(h, w_h1[...]), 6, 128)             # 48 -> (16|16), padded 128
    # Second head layer is block-structured so that:
    #   mean    -> lanes [0:2)     of ml
    #   log_var -> lanes [128:130) of ml
    ml = mm(h1, w_h2[...]) + vec(8, 256)               # (B, 256), lane-dense
    ml_ref[...] = ml

    mean_p = ml[:, :128]                               # mean in cols 0:2, zeros elsewhere
    lv_p = ml[:, 128:]                                 # log_var in cols 0:2, zeros elsewhere

    # ---------- reparameterization: z = eps * exp(0.5*logvar) + mean -----
    # eps is zero outside cols 0:2 (wrapper invariant), so padded lanes of z
    # are exactly zero.
    z = eps_ref[...] * jnp.exp(0.5 * lv_p) + mean_p

    # -------- decoder: 4 x (Linear -> BN -> Tanh), Linear -> Sigmoid -----
    h = bn_tanh(mm(z, w_d1[...]), 9, 128)              #   2(128) ->  16(128)
    h = bn_tanh(mm(h, w_d2[...]), 11, 128)             #  16(128) ->  48(128)
    cp3.wait()
    h = bn_tanh(mm(h, d3_buf[...]), 13, 256)           #  48(128) -> 196(256)
    cp4.wait()
    h = bn_tanh(mm(h, d4_buf[...]), 15, 512)           # 196(256) -> 400(512)
    cp5.wait()
    logits = mm(h, d5_buf[...]) + vec(17, 896)         # 400(512) -> 784(896)
    # numerically stable sigmoid on the EUP: sigmoid(x) = 0.5*(tanh(x/2)+1)
    out_ref[...] = 0.5 * (jnp.tanh(0.5 * logits) + 1.0)


# --------------------------------------------------------------------------
# Parameter construction / packing
# --------------------------------------------------------------------------
def _pad2d(w, kp, np_):
    return jnp.pad(w.astype(jnp.float32),
                   ((0, kp - w.shape[0]), (0, np_ - w.shape[1])))


def _vec_row(v, width=VECW):
    v = jnp.asarray(v, jnp.float32).reshape(-1)
    return jnp.pad(v, (0, width - v.shape[0]))


def make_packed_params(key):
    """Deterministic synthetic parameters matching col333_vae, packed/padded.

    Returns 10 bf16 weight slabs + one f32 (18, 896) vector slab.
    """
    def lin_w(k, din, dout):
        return jax.random.normal(k, (din, dout), jnp.float32) / jnp.sqrt(float(din))

    ks = iter(jax.random.split(key, 16))

    # (in, out) weights (pre-transposed vs. PyTorch's (out, in))
    w_e1 = lin_w(next(ks), 784, 400)
    w_e2 = lin_w(next(ks), 400, 196)
    w_e3 = lin_w(next(ks), 196, 48)
    w_m1 = lin_w(next(ks), 48, 16)
    w_m2 = lin_w(next(ks), 16, 2)
    w_v1 = lin_w(next(ks), 48, 16)
    w_v2 = lin_w(next(ks), 16, 2)
    w_d1 = lin_w(next(ks), 2, 16)
    w_d2 = lin_w(next(ks), 16, 48)
    w_d3 = lin_w(next(ks), 48, 196)
    w_d4 = lin_w(next(ks), 196, 400)
    w_d5 = lin_w(next(ks), 400, 784)
    b_m2 = 0.01 * jax.random.normal(next(ks), (2,), jnp.float32)
    b_v2 = 0.01 * jax.random.normal(next(ks), (2,), jnp.float32)
    b_d5 = 0.01 * jax.random.normal(next(ks), (784,), jnp.float32)
    # NOTE: biases of Linears followed by BatchNorm are omitted on purpose
    # (exactly cancelled by the BN mean subtraction in training mode).

    ones = lambda d: jnp.ones((d,), jnp.float32)
    zeros = lambda d: jnp.zeros((d,), jnp.float32)

    # BN affine params (gamma, beta) for the 10 BN layers
    g_e = [ones(400), ones(196), ones(48)]
    be_e = [zeros(400), zeros(196), zeros(48)]
    g_h = jnp.concatenate([ones(16), ones(16)])       # fused mean|logvar head BN
    be_h = jnp.concatenate([zeros(16), zeros(16)])
    g_d = [ones(16), ones(48), ones(196), ones(400)]
    be_d = [zeros(16), zeros(48), zeros(196), zeros(400)]

    # ---- fused head weights ----
    w_h1 = jnp.concatenate([w_m1, w_v1], axis=1)                  # (48, 32)
    w_h2 = jnp.zeros((128, 256), jnp.float32)
    w_h2 = w_h2.at[0:16, 0:2].set(w_m2)                           # mean   -> lanes 0:2
    w_h2 = w_h2.at[16:32, 128:130].set(w_v2)                      # logvar -> lanes 128:130
    b_h2 = jnp.zeros((256,), jnp.float32)
    b_h2 = b_h2.at[0:2].set(b_m2).at[128:130].set(b_v2)

    weights_f32 = (
        _pad2d(w_e1, 784, 512),   # K-dim kept at 784 (no pad to 896)
        _pad2d(w_e2, 512, 256), _pad2d(w_e3, 256, 128),
        _pad2d(w_h1, 128, 128), w_h2,
        _pad2d(w_d1, 128, 128), _pad2d(w_d2, 128, 128), _pad2d(w_d3, 128, 256),
        _pad2d(w_d4, 256, 512), _pad2d(w_d5, 512, 896),
    )
    # bf16 weight storage: halves HBM->VMEM DMA and runs MXU at native rate.
    weights = tuple(w.astype(jnp.bfloat16) for w in weights_f32)

    rows = [
        _vec_row(g_e[0]), _vec_row(be_e[0]),    # 0, 1   enc1 BN  (width 512)
        _vec_row(g_e[1]), _vec_row(be_e[1]),    # 2, 3   enc2 BN  (width 256)
        _vec_row(g_e[2]), _vec_row(be_e[2]),    # 4, 5   enc3 BN  (width 128)
        _vec_row(g_h), _vec_row(be_h),          # 6, 7   fused head BN (width 128)
        _vec_row(b_h2),                         # 8      fused head bias (width 256)
        _vec_row(g_d[0]), _vec_row(be_d[0]),    # 9, 10  dec1 BN  (width 128)
        _vec_row(g_d[1]), _vec_row(be_d[1]),    # 11,12  dec2 BN  (width 128)
        _vec_row(g_d[2]), _vec_row(be_d[2]),    # 13,14  dec3 BN  (width 256)
        _vec_row(g_d[3]), _vec_row(be_d[3]),    # 15,16  dec4 BN  (width 512)
        _vec_row(b_d5),                         # 17     dec final bias (width 896)
    ]
    vec_slab = jnp.stack(rows, axis=0)          # (18, 896), f32

    return weights + (vec_slab,)


# --------------------------------------------------------------------------
# Wrapper
# --------------------------------------------------------------------------
@jax.jit
def vae_forward(x_nchw, eps, packed):
    B = x_nchw.shape[0]
    assert B % 8 == 0, "batch must be sublane-aligned (multiple of 8)"
    # v7x VMEM budget (64 MiB): f32 activations ~18 KB/example in this
    # no-grid design; keep B comfortably below ~1.5k per call.
    assert B <= 1024, "batch this large should be split across pallas_calls"

    x = x_nchw.reshape(B, 784).astype(jnp.float32)   # no lane-dim pad needed
    # eps MUST be zero beyond column 2: padded lanes of z rely on it.
    eps_p = jnp.pad(eps.astype(jnp.float32), ((0, 0), (0, 128 - 2)))

    vmem = pl.BlockSpec(memory_space=pltpu.MemorySpace.VMEM)
    hbm = pl.BlockSpec(memory_space=pl.ANY)

    in_specs = [
        vmem, vmem,                       # x, eps
        vmem, vmem, vmem,                 # w_e1, w_e2, w_e3
        vmem, vmem,                       # w_h1, w_h2
        vmem, vmem,                       # w_d1, w_d2
        hbm, hbm, hbm,                    # w_d3, w_d4, w_d5 (streamed in-kernel)
        vmem,                             # packed vector slab
    ]

    ml, dec = pl.pallas_call(
        vae_kernel,
        out_shape=(jax.ShapeDtypeStruct((B, 256), jnp.float32),   # mean|log_var packed
                   jax.ShapeDtypeStruct((B, 896), jnp.float32)),  # decoder out (padded)
        in_specs=in_specs,
        out_specs=(vmem, vmem),
        scratch_shapes=[
            pltpu.VMEM((128, 256), jnp.bfloat16),     # w_d3 staging
            pltpu.VMEM((256, 512), jnp.bfloat16),     # w_d4 staging
            pltpu.VMEM((512, 896), jnp.bfloat16),     # w_d5 staging
            pltpu.SemaphoreType.DMA((3,)),
        ],
        compiler_params=pltpu.CompilerParams(
            vmem_limit_bytes=32 * 1024 * 1024),
    )(x, eps_p, *packed)

    mean = ml[:, 0:2]
    log_var = ml[:, 128:130]
    out = dec[:, :784].reshape(B, 1, 28, 28)
    return mean, log_var, out


if __name__ == "__main__":
    key = jax.random.PRNGKey(0)
    kx, keps, kp = jax.random.split(key, 3)

    # 128 examples per call: fills the MXU rows (8/128 -> 128/128 on v5e,
    # half of 256 on v6e/v7x) and amortizes the weight DMA.
    B = 128
    x = jax.random.uniform(kx, (B, 1, 28, 28), jnp.float32)    # NCHW like PyTorch
    eps = jax.random.normal(keps, (B, 2), jnp.float32)          # reparam noise
    packed = make_packed_params(kp)

    mean, log_var, out = vae_forward(x, eps, packed)
    jax.block_until_ready((mean, log_var, out))

    assert mean.shape == (B, 2)
    assert log_var.shape == (B, 2)
    assert out.shape == (B, 1, 28, 28)
    assert bool(jnp.all(jnp.isfinite(mean)))
    assert bool(jnp.all(jnp.isfinite(log_var)))
    assert bool(jnp.all(jnp.isfinite(out)))
    assert bool(jnp.all((out >= 0.0) & (out <= 1.0)))
    print("KERNEL_OK")
</pallas_src>

<mosaic_0001>
module attributes {stable_mosaic.version = 11 : i64} {
  func.func @vae_kernel(%arg0: memref<128x784xf32, #tpu.memory_space<vmem>>, %arg1: memref<128x128xf32, #tpu.memory_space<vmem>>, %arg2: memref<784x512xbf16, #tpu.memory_space<vmem>>, %arg3: memref<512x256xbf16, #tpu.memory_space<vmem>>, %arg4: memref<256x128xbf16, #tpu.memory_space<vmem>>, %arg5: memref<128x128xbf16, #tpu.memory_space<vmem>>, %arg6: memref<128x256xbf16, #tpu.memory_space<vmem>>, %arg7: memref<128x128xbf16, #tpu.memory_space<vmem>>, %arg8: memref<128x128xbf16, #tpu.memory_space<vmem>>, %arg9: memref<128x256xbf16, #tpu.memory_space<any>>, %arg10: memref<256x512xbf16, #tpu.memory_space<any>>, %arg11: memref<512x896xbf16, #tpu.memory_space<any>>, %arg12: memref<18x896xf32, #tpu.memory_space<vmem>>, %arg13: memref<128x256xf32, #tpu.memory_space<vmem>>, %arg14: memref<128x896xf32, #tpu.memory_space<vmem>>, %arg15: memref<128x256xbf16, #tpu.memory_space<vmem>>, %arg16: memref<256x512xbf16, #tpu.memory_space<vmem>>, %arg17: memref<512x896xbf16, #tpu.memory_space<vmem>>, %arg18: memref<3x!tpu.dma_semaphore, #tpu.memory_space<semaphore_mem>>) attributes {dimension_semantics = [], scalar_prefetch = 0 : i64, scratch_operands = 4 : i64, tpu.core_type = #tpu.core_type<tc>} {
    %c0_i32 = arith.constant 0 : i32
    %0 = tpu.memref_slice %arg18[%c0_i32] : memref<3x!tpu.dma_semaphore, #tpu.memory_space<semaphore_mem>> -> memref<1x!tpu.dma_semaphore, #tpu.memory_space<semaphore_mem>>
    %1 = tpu.memref_squeeze %0 : memref<1x!tpu.dma_semaphore, #tpu.memory_space<semaphore_mem>> -> memref<!tpu.dma_semaphore, #tpu.memory_space<semaphore_mem>>
    tpu.enqueue_dma source(%arg9 : memref<128x256xbf16, #tpu.memory_space<any>>) target(%arg15 : memref<128x256xbf16, #tpu.memory_space<vmem>>) target_semaphore(%1 : memref<!tpu.dma_semaphore, #tpu.memory_space<semaphore_mem>>)
    %c1_i32 = arith.constant 1 : i32
    %2 = tpu.memref_slice %arg18[%c1_i32] : memref<3x!tpu.dma_semaphore, #tpu.memory_space<semaphore_mem>> -> memref<1x!tpu.dma_semaphore, #tpu.memory_space<semaphore_mem>>
    %3 = tpu.memref_squeeze %2 : memref<1x!tpu.dma_semaphore, #tpu.memory_space<semaphore_mem>> -> memref<!tpu.dma_semaphore, #tpu.memory_space<semaphore_mem>>
    tpu.enqueue_dma source(%arg10 : memref<256x512xbf16, #tpu.memory_space<any>>) target(%arg16 : memref<256x512xbf16, #tpu.memory_space<vmem>>) target_semaphore(%3 : memref<!tpu.dma_semaphore, #tpu.memory_space<semaphore_mem>>)
    %c2_i32 = arith.constant 2 : i32
    %4 = tpu.memref_slice %arg18[%c2_i32] : memref<3x!tpu.dma_semaphore, #tpu.memory_space<semaphore_mem>> -> memref<1x!tpu.dma_semaphore, #tpu.memory_space<semaphore_mem>>
    %5 = tpu.memref_squeeze %4 : memref<1x!tpu.dma_semaphore, #tpu.memory_space<semaphore_mem>> -> memref<!tpu.dma_semaphore, #tpu.memory_space<semaphore_mem>>
    tpu.enqueue_dma source(%arg11 : memref<512x896xbf16, #tpu.memory_space<any>>) target(%arg17 : memref<512x896xbf16, #tpu.memory_space<vmem>>) target_semaphore(%5 : memref<!tpu.dma_semaphore, #tpu.memory_space<semaphore_mem>>)
    %c0 = arith.constant 0 : index
    %c0_0 = arith.constant 0 : index
    %6 = vector.load %arg0[%c0, %c0_0] : memref<128x784xf32, #tpu.memory_space<vmem>>, vector<128x784xf32>
    %c0_1 = arith.constant 0 : index
    %c0_2 = arith.constant 0 : index
    %7 = vector.load %arg2[%c0_1, %c0_2] : memref<784x512xbf16, #tpu.memory_space<vmem>>, vector<784x512xbf16>
    %8 = arith.truncf %6 : vector<128x784xf32> to vector<128x784xbf16>
    %cst = arith.constant dense<0.000000e+00> : vector<128x512xf32>
    %9 = tpu.matmul %8, %7, %cst {dimension_numbers = #tpu.dot_dimension_numbers<[1], [0], [0], [1], [0, 0, 1, 1], [], []>} : vector<128x784xbf16>, vector<784x512xbf16>, vector<128x512xf32> -> vector<128x512xf32>
    %c0_3 = arith.constant 0 : index
    %c0_4 = arith.constant 0 : index
    %10 = vector.load %arg12[%c0_3, %c0_4] : memref<18x896xf32, #tpu.memory_space<vmem>>, vector<1x512xf32>
    %c1 = arith.constant 1 : index
    %c0_5 = arith.constant 0 : index
    %11 = vector.load %arg12[%c1, %c0_5] : memref<18x896xf32, #tpu.memory_space<vmem>>, vector<1x512xf32>
    %cst_6 = arith.constant dense<0.000000e+00> : vector<512xf32>
    %12 = vector.multi_reduction <add>, %9, %cst_6 [0] : vector<128x512xf32> to vector<512xf32>
    %13 = vector.shape_cast %12 : vector<512xf32> to vector<1x512xf32>
    %cst_7 = arith.constant 1.280000e+02 : f32
    %14 = vector.broadcast %cst_7 : f32 to vector<1x512xf32>
    %15 = arith.divf %13, %14 : vector<1x512xf32>
    %16 = arith.mulf %9, %9 : vector<128x512xf32>
    %cst_8 = arith.constant dense<0.000000e+00> : vector<512xf32>
    %17 = vector.multi_reduction <add>, %16, %cst_8 [0] : vector<128x512xf32> to vector<512xf32>
    %18 = vector.shape_cast %17 : vector<512xf32> to vector<1x512xf32>
    %cst_9 = arith.constant 1.280000e+02 : f32
    %19 = vector.broadcast %cst_9 : f32 to vector<1x512xf32>
    %20 = arith.divf %18, %19 : vector<1x512xf32>
    %21 = arith.mulf %15, %15 : vector<1x512xf32>
    %22 = arith.subf %20, %21 : vector<1x512xf32>
    %cst_10 = arith.constant 0.000000e+00 : f32
    %23 = vector.broadcast %cst_10 : f32 to vector<1x512xf32>
    %24 = arith.maximumf %22, %23 : vector<1x512xf32>
    %cst_11 = arith.constant 9.99999974E-6 : f32
    %25 = vector.broadcast %cst_11 : f32 to vector<1x512xf32>
    %26 = arith.addf %24, %25 : vector<1x512xf32>
    %27 = math.rsqrt %26 : vector<1x512xf32>
    %28 = arith.mulf %10, %27 : vector<1x512xf32>
    %29 = arith.mulf %15, %28 : vector<1x512xf32>
    %30 = arith.subf %11, %29 : vector<1x512xf32>
    %31 = vector.broadcast %28 : vector<1x512xf32> to vector<128x512xf32>
    %32 = arith.mulf %9, %31 : vector<128x512xf32>
    %33 = vector.broadcast %30 : vector<1x512xf32> to vector<128x512xf32>
    %34 = arith.addf %32, %33 : vector<128x512xf32>
    %35 = math.tanh %34 : vector<128x512xf32>
    %c0_12 = arith.constant 0 : index
    %c0_13 = arith.constant 0 : index
    %36 = vector.load %arg3[%c0_12, %c0_13] : memref<512x256xbf16, #tpu.memory_space<vmem>>, vector<512x256xbf16>
    %37 = arith.truncf %35 : vector<128x512xf32> to vector<128x512xbf16>
    %cst_14 = arith.constant dense<0.000000e+00> : vector<128x256xf32>
    %38 = tpu.matmul %37, %36, %cst_14 {dimension_numbers = #tpu.dot_dimension_numbers<[1], [0], [0], [1], [0, 0, 1, 1], [], []>} : vector<128x512xbf16>, vector<512x256xbf16>, vector<128x256xf32> -> vector<128x256xf32>
    %c2 = arith.constant 2 : index
    %c0_15 = arith.constant 0 : index
    %39 = vector.load %arg12[%c2, %c0_15] : memref<18x896xf32, #tpu.memory_space<vmem>>, vector<1x256xf32>
    %c3 = arith.constant 3 : index
    %c0_16 = arith.constant 0 : index
    %40 = vector.load %arg12[%c3, %c0_16] : memref<18x896xf32, #tpu.memory_space<vmem>>, vector<1x256xf32>
    %cst_17 = arith.constant dense<0.000000e+00> : vector<256xf32>
    %41 = vector.multi_reduction <add>, %38, %cst_17 [0] : vector<128x256xf32> to vector<256xf32>
    %42 = vector.shape_cast %41 : vector<256xf32> to vector<1x256xf32>
    %cst_18 = arith.constant 1.280000e+02 : f32
    %43 = vector.broadcast %cst_18 : f32 to vector<1x256xf32>
    %44 = arith.divf %42, %43 : vector<1x256xf32>
    %45 = arith.mulf %38, %38 : vector<128x256xf32>
    %cst_19 = arith.constant dense<0.000000e+00> : vector<256xf32>
    %46 = vector.multi_reduction <add>, %45, %cst_19 [0] : vector<128x256xf32> to vector<256xf32>
    %47 = vector.shape_cast %46 : vector<256xf32> to vector<1x256xf32>
    %cst_20 = arith.constant 1.280000e+02 : f32
    %48 = vector.broadcast %cst_20 : f32 to vector<1x256xf32>
    %49 = arith.divf %47, %48 : vector<1x256xf32>
    %50 = arith.mulf %44, %44 : vector<1x256xf32>
    %51 = arith.subf %49, %50 : vector<1x256xf32>
    %cst_21 = arith.constant 0.000000e+00 : f32
    %52 = vector.broadcast %cst_21 : f32 to vector<1x256xf32>
    %53 = arith.maximumf %51, %52 : vector<1x256xf32>
    %cst_22 = arith.constant 9.99999974E-6 : f32
    %54 = vector.broadcast %cst_22 : f32 to vector<1x256xf32>
    %55 = arith.addf %53, %54 : vector<1x256xf32>
    %56 = math.rsqrt %55 : vector<1x256xf32>
    %57 = arith.mulf %39, %56 : vector<1x256xf32>
    %58 = arith.mulf %44, %57 : vector<1x256xf32>
    %59 = arith.subf %40, %58 : vector<1x256xf32>
    %60 = vector.broadcast %57 : vector<1x256xf32> to vector<128x256xf32>
    %61 = arith.mulf %38, %60 : vector<128x256xf32>
    %62 = vector.broadcast %59 : vector<1x256xf32> to vector<128x256xf32>
    %63 = arith.addf %61, %62 : vector<128x256xf32>
    %64 = math.tanh %63 : vector<128x256xf32>
    %c0_23 = arith.constant 0 : index
    %c0_24 = arith.constant 0 : index
    %65 = vector.load %arg4[%c0_23, %c0_24] : memref<256x128xbf16, #tpu.memory_space<vmem>>, vector<256x128xbf16>
    %66 = arith.truncf %64 : vector<128x256xf32> to vector<128x256xbf16>
    %cst_25 = arith.constant dense<0.000000e+00> : vector<128x128xf32>
    %67 = tpu.matmul %66, %65, %cst_25 {dimension_numbers = #tpu.dot_dimension_numbers<[1], [0], [0], [1], [0, 0, 1, 1], [], []>} : vector<128x256xbf16>, vector<256x128xbf16>, vector<128x128xf32> -> vector<128x128xf32>
    %c4 = arith.constant 4 : index
    %c0_26 = arith.constant 0 : index
    %68 = vector.load %arg12[%c4, %c0_26] : memref<18x896xf32, #tpu.memory_space<vmem>>, vector<1x128xf32>
    %c5 = arith.constant 5 : index
    %c0_27 = arith.constant 0 : index
    %69 = vector.load %arg12[%c5, %c0_27] : memref<18x896xf32, #tpu.memory_space<vmem>>, vector<1x128xf32>
    %cst_28 = arith.constant dense<0.000000e+00> : vector<128xf32>
    %70 = vector.multi_reduction <add>, %67, %cst_28 [0] : vector<128x128xf32> to vector<128xf32>
    %71 = vector.shape_cast %70 : vector<128xf32> to vector<1x128xf32>
    %cst_29 = arith.constant 1.280000e+02 : f32
    %72 = vector.broadcast %cst_29 : f32 to vector<1x128xf32>
    %73 = arith.divf %71, %72 : vector<1x128xf32>
    %74 = arith.mulf %67, %67 : vector<128x128xf32>
    %cst_30 = arith.constant dense<0.000000e+00> : vector<128xf32>
    %75 = vector.multi_reduction <add>, %74, %cst_30 [0] : vector<128x128xf32> to vector<128xf32>
    %76 = vector.shape_cast %75 : vector<128xf32> to vector<1x128xf32>
    %cst_31 = arith.constant 1.280000e+02 : f32
    %77 = vector.broadcast %cst_31 : f32 to vector<1x128xf32>
    %78 = arith.divf %76, %77 : vector<1x128xf32>
    %79 = arith.mulf %73, %73 : vector<1x128xf32>
    %80 = arith.subf %78, %79 : vector<1x128xf32>
    %cst_32 = arith.constant 0.000000e+00 : f32
    %81 = vector.broadcast %cst_32 : f32 to vector<1x128xf32>
    %82 = arith.maximumf %80, %81 : vector<1x128xf32>
    %cst_33 = arith.constant 9.99999974E-6 : f32
    %83 = vector.broadcast %cst_33 : f32 to vector<1x128xf32>
    %84 = arith.addf %82, %83 : vector<1x128xf32>
    %85 = math.rsqrt %84 : vector<1x128xf32>
    %86 = arith.mulf %68, %85 : vector<1x128xf32>
    %87 = arith.mulf %73, %86 : vector<1x128xf32>
    %88 = arith.subf %69, %87 : vector<1x128xf32>
    %89 = vector.broadcast %86 : vector<1x128xf32> to vector<128x128xf32>
    %90 = arith.mulf %67, %89 : vector<128x128xf32>
    %91 = vector.broadcast %88 : vector<1x128xf32> to vector<128x128xf32>
    %92 = arith.addf %90, %91 : vector<128x128xf32>
    %93 = math.tanh %92 : vector<128x128xf32>
    %c0_34 = arith.constant 0 : index
    %c0_35 = arith.constant 0 : index
    %94 = vector.load %arg5[%c0_34, %c0_35] : memref<128x128xbf16, #tpu.memory_space<vmem>>, vector<128x128xbf16>
    %95 = arith.truncf %93 : vector<128x128xf32> to vector<128x128xbf16>
    %cst_36 = arith.constant dense<0.000000e+00> : vector<128x128xf32>
    %96 = tpu.matmul %95, %94, %cst_36 {dimension_numbers = #tpu.dot_dimension_numbers<[1], [0], [0], [1], [0, 0, 1, 1], [], []>} : vector<128x128xbf16>, vector<128x128xbf16>, vector<128x128xf32> -> vector<128x128xf32>
    %c6 = arith.constant 6 : index
    %c0_37 = arith.constant 0 : index
    %97 = vector.load %arg12[%c6, %c0_37] : memref<18x896xf32, #tpu.memory_space<vmem>>, vector<1x128xf32>
    %c7 = arith.constant 7 : index
    %c0_38 = arith.constant 0 : index
    %98 = vector.load %arg12[%c7, %c0_38] : memref<18x896xf32, #tpu.memory_space<vmem>>, vector<1x128xf32>
    %cst_39 = arith.constant dense<0.000000e+00> : vector<128xf32>
    %99 = vector.multi_reduction <add>, %96, %cst_39 [0] : vector<128x128xf32> to vector<128xf32>
    %100 = vector.shape_cast %99 : vector<128xf32> to vector<1x128xf32>
    %cst_40 = arith.constant 1.280000e+02 : f32
    %101 = vector.broadcast %cst_40 : f32 to vector<1x128xf32>
    %102 = arith.divf %100, %101 : vector<1x128xf32>
    %103 = arith.mulf %96, %96 : vector<128x128xf32>
    %cst_41 = arith.constant dense<0.000000e+00> : vector<128xf32>
    %104 = vector.multi_reduction <add>, %103, %cst_41 [0] : vector<128x128xf32> to vector<128xf32>
    %105 = vector.shape_cast %104 : vector<128xf32> to vector<1x128xf32>
    %cst_42 = arith.constant 1.280000e+02 : f32
    %106 = vector.broadcast %cst_42 : f32 to vector<1x128xf32>
    %107 = arith.divf %105, %106 : vector<1x128xf32>
    %108 = arith.mulf %102, %102 : vector<1x128xf32>
    %109 = arith.subf %107, %108 : vector<1x128xf32>
    %cst_43 = arith.constant 0.000000e+00 : f32
    %110 = vector.broadcast %cst_43 : f32 to vector<1x128xf32>
    %111 = arith.maximumf %109, %110 : vector<1x128xf32>
    %cst_44 = arith.constant 9.99999974E-6 : f32
    %112 = vector.broadcast %cst_44 : f32 to vector<1x128xf32>
    %113 = arith.addf %111, %112 : vector<1x128xf32>
    %114 = math.rsqrt %113 : vector<1x128xf32>
    %115 = arith.mulf %97, %114 : vector<1x128xf32>
    %116 = arith.mulf %102, %115 : vector<1x128xf32>
    %117 = arith.subf %98, %116 : vector<1x128xf32>
    %118 = vector.broadcast %115 : vector<1x128xf32> to vector<128x128xf32>
    %119 = arith.mulf %96, %118 : vector<128x128xf32>
    %120 = vector.broadcast %117 : vector<1x128xf32> to vector<128x128xf32>
    %121 = arith.addf %119, %120 : vector<128x128xf32>
    %122 = math.tanh %121 : vector<128x128xf32>
    %c0_45 = arith.constant 0 : index
    %c0_46 = arith.constant 0 : index
    %123 = vector.load %arg6[%c0_45, %c0_46] : memref<128x256xbf16, #tpu.memory_space<vmem>>, vector<128x256xbf16>
    %124 = arith.truncf %122 : vector<128x128xf32> to vector<128x128xbf16>
    %cst_47 = arith.constant dense<0.000000e+00> : vector<128x256xf32>
    %125 = tpu.matmul %124, %123, %cst_47 {dimension_numbers = #tpu.dot_dimension_numbers<[1], [0], [0], [1], [0, 0, 1, 1], [], []>} : vector<128x128xbf16>, vector<128x256xbf16>, vector<128x256xf32> -> vector<128x256xf32>
    %c8 = arith.constant 8 : index
    %c0_48 = arith.constant 0 : index
    %126 = vector.load %arg12[%c8, %c0_48] : memref<18x896xf32, #tpu.memory_space<vmem>>, vector<1x256xf32>
    %127 = vector.broadcast %126 : vector<1x256xf32> to vector<128x256xf32>
    %128 = arith.addf %125, %127 : vector<128x256xf32>
    %c0_49 = arith.constant 0 : index
    %c0_50 = arith.constant 0 : index
    %129 = vector.load %arg13[%c0_49, %c0_50] : memref<128x256xf32, #tpu.memory_space<vmem>>, vector<128x256xf32>
    tpu.vector_store %arg13[%c0_49, %c0_50], %128 {strides = array<i32>} : memref<128x256xf32, #tpu.memory_space<vmem>>, vector<128x256xf32>,
    %130 = vector.extract_strided_slice %128 {offsets = [0, 0], sizes = [128, 128], strides = [1, 1]} : vector<128x256xf32> to vector<128x128xf32>
    %131 = vector.extract_strided_slice %128 {offsets = [0, 128], sizes = [128, 128], strides = [1, 1]} : vector<128x256xf32> to vector<128x128xf32>
    %c0_51 = arith.constant 0 : index
    %c0_52 = arith.constant 0 : index
    %132 = vector.load %arg1[%c0_51, %c0_52] : memref<128x128xf32, #tpu.memory_space<vmem>>, vector<128x128xf32>
    %cst_53 = arith.constant 5.000000e-01 : f32
    %133 = vector.broadcast %cst_53 : f32 to vector<128x128xf32>
    %134 = arith.mulf %133, %131 : vector<128x128xf32>
    %135 = math.exp %134 : vector<128x128xf32>
    %136 = arith.mulf %132, %135 : vector<128x128xf32>
    %137 = arith.addf %136, %130 : vector<128x128xf32>
    %c0_54 = arith.constant 0 : index
    %c0_55 = arith.constant 0 : index
    %138 = vector.load %arg7[%c0_54, %c0_55] : memref<128x128xbf16, #tpu.memory_space<vmem>>, vector<128x128xbf16>
    %139 = arith.truncf %137 : vector<128x128xf32> to vector<128x128xbf16>
    %cst_56 = arith.constant dense<0.000000e+00> : vector<128x128xf32>
    %140 = tpu.matmul %139, %138, %cst_56 {dimension_numbers = #tpu.dot_dimension_numbers<[1], [0], [0], [1], [0, 0, 1, 1], [], []>} : vector<128x128xbf16>, vector<128x128xbf16>, vector<128x128xf32> -> vector<128x128xf32>
    %c9 = arith.constant 9 : index
    %c0_57 = arith.constant 0 : index
    %141 = vector.load %arg12[%c9, %c0_57] : memref<18x896xf32, #tpu.memory_space<vmem>>, vector<1x128xf32>
    %c10 = arith.constant 10 : index
    %c0_58 = arith.constant 0 : index
    %142 = vector.load %arg12[%c10, %c0_58] : memref<18x896xf32, #tpu.memory_space<vmem>>, vector<1x128xf32>
    %cst_59 = arith.constant dense<0.000000e+00> : vector<128xf32>
    %143 = vector.multi_reduction <add>, %140, %cst_59 [0] : vector<128x128xf32> to vector<128xf32>
    %144 = vector.shape_cast %143 : vector<128xf32> to vector<1x128xf32>
    %cst_60 = arith.constant 1.280000e+02 : f32
    %145 = vector.broadcast %cst_60 : f32 to vector<1x128xf32>
    %146 = arith.divf %144, %145 : vector<1x128xf32>
    %147 = arith.mulf %140, %140 : vector<128x128xf32>
    %cst_61 = arith.constant dense<0.000000e+00> : vector<128xf32>
    %148 = vector.multi_reduction <add>, %147, %cst_61 [0] : vector<128x128xf32> to vector<128xf32>
    %149 = vector.shape_cast %148 : vector<128xf32> to vector<1x128xf32>
    %cst_62 = arith.constant 1.280000e+02 : f32
    %150 = vector.broadcast %cst_62 : f32 to vector<1x128xf32>
    %151 = arith.divf %149, %150 : vector<1x128xf32>
    %152 = arith.mulf %146, %146 : vector<1x128xf32>
    %153 = arith.subf %151, %152 : vector<1x128xf32>
    %cst_63 = arith.constant 0.000000e+00 : f32
    %154 = vector.broadcast %cst_63 : f32 to vector<1x128xf32>
    %155 = arith.maximumf %153, %154 : vector<1x128xf32>
    %cst_64 = arith.constant 9.99999974E-6 : f32
    %156 = vector.broadcast %cst_64 : f32 to vector<1x128xf32>
    %157 = arith.addf %155, %156 : vector<1x128xf32>
    %158 = math.rsqrt %157 : vector<1x128xf32>
    %159 = arith.mulf %141, %158 : vector<1x128xf32>
    %160 = arith.mulf %146, %159 : vector<1x128xf32>
    %161 = arith.subf %142, %160 : vector<1x128xf32>
    %162 = vector.broadcast %159 : vector<1x128xf32> to vector<128x128xf32>
    %163 = arith.mulf %140, %162 : vector<128x128xf32>
    %164 = vector.broadcast %161 : vector<1x128xf32> to vector<128x128xf32>
    %165 = arith.addf %163, %164 : vector<128x128xf32>
    %166 = math.tanh %165 : vector<128x128xf32>
    %c0_65 = arith.constant 0 : index
    %c0_66 = arith.constant 0 : index
    %167 = vector.load %arg8[%c0_65, %c0_66] : memref<128x128xbf16, #tpu.memory_space<vmem>>, vector<128x128xbf16>
    %168 = arith.truncf %166 : vector<128x128xf32> to vector<128x128xbf16>
    %cst_67 = arith.constant dense<0.000000e+00> : vector<128x128xf32>
    %169 = tpu.matmul %168, %167, %cst_67 {dimension_numbers = #tpu.dot_dimension_numbers<[1], [0], [0], [1], [0, 0, 1, 1], [], []>} : vector<128x128xbf16>, vector<128x128xbf16>, vector<128x128xf32> -> vector<128x128xf32>
    %c11 = arith.constant 11 : index
    %c0_68 = arith.constant 0 : index
    %170 = vector.load %arg12[%c11, %c0_68] : memref<18x896xf32, #tpu.memory_space<vmem>>, vector<1x128xf32>
    %c12 = arith.constant 12 : index
    %c0_69 = arith.constant 0 : index
    %171 = vector.load %arg12[%c12, %c0_69] : memref<18x896xf32, #tpu.memory_space<vmem>>, vector<1x128xf32>
    %cst_70 = arith.constant dense<0.000000e+00> : vector<128xf32>
    %172 = vector.multi_reduction <add>, %169, %cst_70 [0] : vector<128x128xf32> to vector<128xf32>
    %173 = vector.shape_cast %172 : vector<128xf32> to vector<1x128xf32>
    %cst_71 = arith.constant 1.280000e+02 : f32
    %174 = vector.broadcast %cst_71 : f32 to vector<1x128xf32>
    %175 = arith.divf %173, %174 : vector<1x128xf32>
    %176 = arith.mulf %169, %169 : vector<128x128xf32>
    %cst_72 = arith.constant dense<0.000000e+00> : vector<128xf32>
    %177 = vector.multi_reduction <add>, %176, %cst_72 [0] : vector<128x128xf32> to vector<128xf32>
    %178 = vector.shape_cast %177 : vector<128xf32> to vector<1x128xf32>
    %cst_73 = arith.constant 1.280000e+02 : f32
    %179 = vector.broadcast %cst_73 : f32 to vector<1x128xf32>
    %180 = arith.divf %178, %179 : vector<1x128xf32>
    %181 = arith.mulf %175, %175 : vector<1x128xf32>
    %182 = arith.subf %180, %181 : vector<1x128xf32>
    %cst_74 = arith.constant 0.000000e+00 : f32
    %183 = vector.broadcast %cst_74 : f32 to vector<1x128xf32>
    %184 = arith.maximumf %182, %183 : vector<1x128xf32>
    %cst_75 = arith.constant 9.99999974E-6 : f32
    %185 = vector.broadcast %cst_75 : f32 to vector<1x128xf32>
    %186 = arith.addf %184, %185 : vector<1x128xf32>
    %187 = math.rsqrt %186 : vector<1x128xf32>
    %188 = arith.mulf %170, %187 : vector<1x128xf32>
    %189 = arith.mulf %175, %188 : vector<1x128xf32>
    %190 = arith.subf %171, %189 : vector<1x128xf32>
    %191 = vector.broadcast %188 : vector<1x128xf32> to vector<128x128xf32>
    %192 = arith.mulf %169, %191 : vector<128x128xf32>
    %193 = vector.broadcast %190 : vector<1x128xf32> to vector<128x128xf32>
    %194 = arith.addf %192, %193 : vector<128x128xf32>
    %195 = math.tanh %194 : vector<128x128xf32>
    %c0_i32_76 = arith.constant 0 : i32
    %196 = tpu.memref_slice %arg18[%c0_i32_76] : memref<3x!tpu.dma_semaphore, #tpu.memory_space<semaphore_mem>> -> memref<1x!tpu.dma_semaphore, #tpu.memory_space<semaphore_mem>>
    %197 = tpu.memref_squeeze %196 : memref<1x!tpu.dma_semaphore, #tpu.memory_space<semaphore_mem>> -> memref<!tpu.dma_semaphore, #tpu.memory_space<semaphore_mem>>
    tpu.wait_dma2 semaphore(%197 : memref<!tpu.dma_semaphore, #tpu.memory_space<semaphore_mem>>) src(%arg9 : memref<128x256xbf16, #tpu.memory_space<any>>) dst(%arg15 : memref<128x256xbf16, #tpu.memory_space<vmem>>)
    %c0_77 = arith.constant 0 : index
    %c0_78 = arith.constant 0 : index
    %198 = vector.load %arg15[%c0_77, %c0_78] : memref<128x256xbf16, #tpu.memory_space<vmem>>, vector<128x256xbf16>
    %199 = arith.truncf %195 : vector<128x128xf32> to vector<128x128xbf16>
    %cst_79 = arith.constant dense<0.000000e+00> : vector<128x256xf32>
    %200 = tpu.matmul %199, %198, %cst_79 {dimension_numbers = #tpu.dot_dimension_numbers<[1], [0], [0], [1], [0, 0, 1, 1], [], []>} : vector<128x128xbf16>, vector<128x256xbf16>, vector<128x256xf32> -> vector<128x256xf32>
    %c13 = arith.constant 13 : index
    %c0_80 = arith.constant 0 : index
    %201 = vector.load %arg12[%c13, %c0_80] : memref<18x896xf32, #tpu.memory_space<vmem>>, vector<1x256xf32>
    %c14 = arith.constant 14 : index
    %c0_81 = arith.constant 0 : index
    %202 = vector.load %arg12[%c14, %c0_81] : memref<18x896xf32, #tpu.memory_space<vmem>>, vector<1x256xf32>
    %cst_82 = arith.constant dense<0.000000e+00> : vector<256xf32>
    %203 = vector.multi_reduction <add>, %200, %cst_82 [0] : vector<128x256xf32> to vector<256xf32>
    %204 = vector.shape_cast %203 : vector<256xf32> to vector<1x256xf32>
    %cst_83 = arith.constant 1.280000e+02 : f32
    %205 = vector.broadcast %cst_83 : f32 to vector<1x256xf32>
    %206 = arith.divf %204, %205 : vector<1x256xf32>
    %207 = arith.mulf %200, %200 : vector<128x256xf32>
    %cst_84 = arith.constant dense<0.000000e+00> : vector<256xf32>
    %208 = vector.multi_reduction <add>, %207, %cst_84 [0] : vector<128x256xf32> to vector<256xf32>
    %209 = vector.shape_cast %208 : vector<256xf32> to vector<1x256xf32>
    %cst_85 = arith.constant 1.280000e+02 : f32
    %210 = vector.broadcast %cst_85 : f32 to vector<1x256xf32>
    %211 = arith.divf %209, %210 : vector<1x256xf32>
    %212 = arith.mulf %206, %206 : vector<1x256xf32>
    %213 = arith.subf %211, %212 : vector<1x256xf32>
    %cst_86 = arith.constant 0.000000e+00 : f32
    %214 = vector.broadcast %cst_86 : f32 to vector<1x256xf32>
    %215 = arith.maximumf %213, %214 : vector<1x256xf32>
    %cst_87 = arith.constant 9.99999974E-6 : f32
    %216 = vector.broadcast %cst_87 : f32 to vector<1x256xf32>
    %217 = arith.addf %215, %216 : vector<1x256xf32>
    %218 = math.rsqrt %217 : vector<1x256xf32>
    %219 = arith.mulf %201, %218 : vector<1x256xf32>
    %220 = arith.mulf %206, %219 : vector<1x256xf32>
    %221 = arith.subf %202, %220 : vector<1x256xf32>
    %222 = vector.broadcast %219 : vector<1x256xf32> to vector<128x256xf32>
    %223 = arith.mulf %200, %222 : vector<128x256xf32>
    %224 = vector.broadcast %221 : vector<1x256xf32> to vector<128x256xf32>
    %225 = arith.addf %223, %224 : vector<128x256xf32>
    %226 = math.tanh %225 : vector<128x256xf32>
    %c1_i32_88 = arith.constant 1 : i32
    %227 = tpu.memref_slice %arg18[%c1_i32_88] : memref<3x!tpu.dma_semaphore, #tpu.memory_space<semaphore_mem>> -> memref<1x!tpu.dma_semaphore, #tpu.memory_space<semaphore_mem>>
    %228 = tpu.memref_squeeze %227 : memref<1x!tpu.dma_semaphore, #tpu.memory_space<semaphore_mem>> -> memref<!tpu.dma_semaphore, #tpu.memory_space<semaphore_mem>>
    tpu.wait_dma2 semaphore(%228 : memref<!tpu.dma_semaphore, #tpu.memory_space<semaphore_mem>>) src(%arg10 : memref<256x512xbf16, #tpu.memory_space<any>>) dst(%arg16 : memref<256x512xbf16, #tpu.memory_space<vmem>>)
    %c0_89 = arith.constant 0 : index
    %c0_90 = arith.constant 0 : index
    %229 = vector.load %arg16[%c0_89, %c0_90] : memref<256x512xbf16, #tpu.memory_space<vmem>>, vector<256x512xbf16>
    %230 = arith.truncf %226 : vector<128x256xf32> to vector<128x256xbf16>
    %cst_91 = arith.constant dense<0.000000e+00> : vector<128x512xf32>
    %231 = tpu.matmul %230, %229, %cst_91 {dimension_numbers = #tpu.dot_dimension_numbers<[1], [0], [0], [1], [0, 0, 1, 1], [], []>} : vector<128x256xbf16>, vector<256x512xbf16>, vector<128x512xf32> -> vector<128x512xf32>
    %c15 = arith.constant 15 : index
    %c0_92 = arith.constant 0 : index
    %232 = vector.load %arg12[%c15, %c0_92] : memref<18x896xf32, #tpu.memory_space<vmem>>, vector<1x512xf32>
    %c16 = arith.constant 16 : index
    %c0_93 = arith.constant 0 : index
    %233 = vector.load %arg12[%c16, %c0_93] : memref<18x896xf32, #tpu.memory_space<vmem>>, vector<1x512xf32>
    %cst_94 = arith.constant dense<0.000000e+00> : vector<512xf32>
    %234 = vector.multi_reduction <add>, %231, %cst_94 [0] : vector<128x512xf32> to vector<512xf32>
    %235 = vector.shape_cast %234 : vector<512xf32> to vector<1x512xf32>
    %cst_95 = arith.constant 1.280000e+02 : f32
    %236 = vector.broadcast %cst_95 : f32 to vector<1x512xf32>
    %237 = arith.divf %235, %236 : vector<1x512xf32>
    %238 = arith.mulf %231, %231 : vector<128x512xf32>
    %cst_96 = arith.constant dense<0.000000e+00> : vector<512xf32>
    %239 = vector.multi_reduction <add>, %238, %cst_96 [0] : vector<128x512xf32> to vector<512xf32>
    %240 = vector.shape_cast %239 : vector<512xf32> to vector<1x512xf32>
    %cst_97 = arith.constant 1.280000e+02 : f32
    %241 = vector.broadcast %cst_97 : f32 to vector<1x512xf32>
    %242 = arith.divf %240, %241 : vector<1x512xf32>
    %243 = arith.mulf %237, %237 : vector<1x512xf32>
    %244 = arith.subf %242, %243 : vector<1x512xf32>
    %cst_98 = arith.constant 0.000000e+00 : f32
    %245 = vector.broadcast %cst_98 : f32 to vector<1x512xf32>
    %246 = arith.maximumf %244, %245 : vector<1x512xf32>
    %cst_99 = arith.constant 9.99999974E-6 : f32
    %247 = vector.broadcast %cst_99 : f32 to vector<1x512xf32>
    %248 = arith.addf %246, %247 : vector<1x512xf32>
    %249 = math.rsqrt %248 : vector<1x512xf32>
    %250 = arith.mulf %232, %249 : vector<1x512xf32>
    %251 = arith.mulf %237, %250 : vector<1x512xf32>
    %252 = arith.subf %233, %251 : vector<1x512xf32>
    %253 = vector.broadcast %250 : vector<1x512xf32> to vector<128x512xf32>
    %254 = arith.mulf %231, %253 : vector<128x512xf32>
    %255 = vector.broadcast %252 : vector<1x512xf32> to vector<128x512xf32>
    %256 = arith.addf %254, %255 : vector<128x512xf32>
    %257 = math.tanh %256 : vector<128x512xf32>
    %c2_i32_100 = arith.constant 2 : i32
    %258 = tpu.memref_slice %arg18[%c2_i32_100] : memref<3x!tpu.dma_semaphore, #tpu.memory_space<semaphore_mem>> -> memref<1x!tpu.dma_semaphore, #tpu.memory_space<semaphore_mem>>
    %259 = tpu.memref_squeeze %258 : memref<1x!tpu.dma_semaphore, #tpu.memory_space<semaphore_mem>> -> memref<!tpu.dma_semaphore, #tpu.memory_space<semaphore_mem>>
    tpu.wait_dma2 semaphore(%259 : memref<!tpu.dma_semaphore, #tpu.memory_space<semaphore_mem>>) src(%arg11 : memref<512x896xbf16, #tpu.memory_space<any>>) dst(%arg17 : memref<512x896xbf16, #tpu.memory_space<vmem>>)
    %c0_101 = arith.constant 0 : index
    %c0_102 = arith.constant 0 : index
    %260 = vector.load %arg17[%c0_101, %c0_102] : memref<512x896xbf16, #tpu.memory_space<vmem>>, vector<512x896xbf16>
    %261 = arith.truncf %257 : vector<128x512xf32> to vector<128x512xbf16>
    %cst_103 = arith.constant dense<0.000000e+00> : vector<128x896xf32>
    %262 = tpu.matmul %261, %260, %cst_103 {dimension_numbers = #tpu.dot_dimension_numbers<[1], [0], [0], [1], [0, 0, 1, 1], [], []>} : vector<128x512xbf16>, vector<512x896xbf16>, vector<128x896xf32> -> vector<128x896xf32>
    %c17 = arith.constant 17 : index
    %c0_104 = arith.constant 0 : index
    %263 = vector.load %arg12[%c17, %c0_104] : memref<18x896xf32, #tpu.memory_space<vmem>>, vector<1x896xf32>
    %264 = vector.broadcast %263 : vector<1x896xf32> to vector<128x896xf32>
    %265 = arith.addf %262, %264 : vector<128x896xf32>
    %cst_105 = arith.constant 5.000000e-01 : f32
    %266 = vector.broadcast %cst_105 : f32 to vector<128x896xf32>
    %267 = arith.mulf %266, %265 : vector<128x896xf32>
    %268 = math.tanh %267 : vector<128x896xf32>
    %cst_106 = arith.constant 1.000000e+00 : f32
    %269 = vector.broadcast %cst_106 : f32 to vector<128x896xf32>
    %270 = arith.addf %268, %269 : vector<128x896xf32>
    %cst_107 = arith.constant 5.000000e-01 : f32
    %271 = vector.broadcast %cst_107 : f32 to vector<128x896xf32>
    %272 = arith.mulf %271, %270 : vector<128x896xf32>
    %c0_108 = arith.constant 0 : index
    %c0_109 = arith.constant 0 : index
    %273 = vector.load %arg14[%c0_108, %c0_109] : memref<128x896xf32, #tpu.memory_space<vmem>>, vector<128x896xf32>
    tpu.vector_store %arg14[%c0_108, %c0_109], %272 {strides = array<i32>} : memref<128x896xf32, #tpu.memory_space<vmem>>, vector<128x896xf32>,
    return
  }
}

</mosaic_0001>

<bundles_post_ra>
// kernel: vae_forward.1
= control target key start
LH: loop header
LB: loop body
LE: loop exit
PB: predicated region body
PF: predicated region fallthrough
CT: control target
= control target key end

     0   :  { %20 = vsyncpa [#allocation7], 0  ;;  %s18658_s0 = inlined_call_operand.vmem [shape: f32[128,784], index: 0, kind: input, shape index: {}]   ;;  %s18659_s1 = inlined_call_operand.vmem [shape: f32[128,128], index: 1, kind: input, shape index: {}]   ;;  %s18660_s2 = inlined_call_operand.hbm [shape: bf16[784,512], index: 2, kind: input, shape index: {}]   ;;  %s18661_s3 = inlined_call_operand.hbm [shape: bf16[512,256], index: 3, kind: input, shape index: {}]   ;;  %s18662_s4 = inlined_call_operand.vmem [shape: bf16[256,128], index: 4, kind: input, shape index: {}]   ;;  %s18663_s5 = inlined_call_operand.hbm [shape: bf16[128,128], index: 5, kind: input, shape index: {}]   ;;  %s18664_s6 = inlined_call_operand.hbm [shape: bf16[128,256], index: 6, kind: input, shape index: {}]   ;;  %s18665_s7 = inlined_call_operand.hbm [shape: bf16[128,128], index: 7, kind: input, shape index: {}]   ;;  %s18666_s8 = inlined_call_operand.hbm [shape: bf16[128,128], index: 8, kind: input, shape index: {}]   ;;  %s18667_s9 = inlined_call_operand.hbm [shape: bf16[128,256], index: 9, kind: input, shape index: {}]   ;;  %s18668_s10 = inlined_call_operand.hbm [shape: bf16[256,512], index: 10, kind: input, shape index: {}]   ;;  %s18669_s11 = inlined_call_operand.vmem [shape: bf16[512,896], index: 11, kind: input, shape index: {}]   ;;  %s18670_s12 = inlined_call_operand.vmem [shape: f32[18,896], index: 12, kind: input, shape index: {}]   ;;  %s18671_s13 = inlined_call_operand.vmem [shape: f32[128,256], index: 13, kind: output, shape index: {0}]   ;;  %s18672_s14 = inlined_call_operand.vmem [shape: f32[128,896], index: 14, kind: output, shape index: {1}]  }
   0x1   :  { %21 = vsyncpa [#allocation9], 0 }
   0x2   :  { %22 = vsyncpa [#allocation12], 0 }
   0x3   :  { %23 = vsyncpa [#allocation15], 0  ;;  %s12987_s29 = smov [#allocation8]   ;;  %s12841_s17 = scalar_lea.hbm %s18661_s3, 8192 }
   0x4   :  { %s45_s30 = sshll.u32 %s12987_s29, 4  ;;  %p12842_p0 = scmp.ne.s32.totalorder %s18661_s3, %s12841_s17  ;;  %s46_s30 = int_to_ptr.vmem [resolvable:$true] %s45_s30 }
   0x5   :  { %p12845_p1 = scmp.lt.u32.totalorder %s12841_s17, %s18661_s3 }
   0x7   :  { %p12847_p2 = pnand %p12845_p1, %p12842_p0 }
   0x9   :  { %12850 = shalt.err (!%p12847_p2)
}
   0xa   :  { %s12851_s22 = scalar_lea.vmem %s46_s30, 8192  ;;  %p12856_p4 = scmp.lt.s32.totalorder %s46_s30, %s46_s30 }
   0xb   :  { %p12852_p3 = scmp.ne.s32.totalorder %s46_s30, %s12851_s22  ;;  %p12857_p5 = scmp.lt.s32.totalorder %s12851_s22, %s12851_s22 }
   0xd   :  { %p12858_p6 = por %p12857_p5, %p12856_p4 }
   0xf   :  { %p12859_p7 = pnand %p12858_p6, %p12852_p3 }
  0x11   :  { %12862 = shalt.err (!%p12859_p7)
}
  0x12   :  { %s12988_s23 = smov 128   ;;  %s12989_s24 = smov 8  }
  0x13   :  { %51 = dma.hbm_to_vmem [thread:$0]  %s18661_s3, 8192, %s46_s30, [#allocation9], %s12988_s23, %s12988_s23, %s12989_s24  }
  0x14   :  { %s12990_s27 = smov [#allocation11]   ;;  %s12991_s29 = smov [#allocation6]  }
  0x15   :  { %s71_s28 = sshll.u32 %s12990_s27, 4  ;;  %s33_s15 = sshll.u32 %s12991_s29, 4  ;;  %s72_s28 = int_to_ptr.vmem [resolvable:$true] %s71_s28  ;;  %s34_s15 = int_to_ptr.vmem [resolvable:$true] %s33_s15 }
  0x16   :  { %s12863_s18 = scalar_lea.hbm %s18664_s6, 2048 }
  0x17   :  { %p12864_p8 = scmp.ne.s32.totalorder %s18664_s6, %s12863_s18  ;;  %p12867_p9 = scmp.lt.u32.totalorder %s12863_s18, %s18664_s6 }
  0x19   :  { %p12869_p10 = pnand %p12867_p9, %p12864_p8 }
  0x1b   :  { %12872 = shalt.err (!%p12869_p10)
}
  0x1c   :  { %s12873_s3 = scalar_lea.vmem %s72_s28, 2048  ;;  %p12878_p12 = scmp.lt.s32.totalorder %s72_s28, %s72_s28 }
  0x1d   :  { %p12874_p11 = scmp.ne.s32.totalorder %s72_s28, %s12873_s3  ;;  %p12879_p13 = scmp.lt.s32.totalorder %s12873_s3, %s12873_s3 }
  0x1f   :  { %p12880_p0 = por %p12879_p13, %p12878_p12 }
  0x21   :  { %p12881_p1 = pnand %p12880_p0, %p12874_p11 }
  0x23   :  { %12884 = shalt.err (!%p12881_p1)
}
  0x24   :  { %77 = dma.hbm_to_vmem [thread:$0]  %s18664_s6, 2048, %s72_s28, [#allocation12], %s12988_s23, %s12988_s23, %s12989_s24  }
  0x25   :  { %s12885_s29 = scalar_lea.hbm %s18660_s2, 25088 }
  0x26   :  { %p12886_p2 = scmp.ne.s32.totalorder %s18660_s2, %s12885_s29  ;;  %p12889_p3 = scmp.lt.u32.totalorder %s12885_s29, %s18660_s2 }
  0x28   :  { %p12891_p4 = pnand %p12889_p3, %p12886_p2 }
  0x2a   :  { %12894 = shalt.err (!%p12891_p4)
}
  0x2b   :  { %s12895_s20 = scalar_lea.vmem %s34_s15, 25088  ;;  %p12900_p6 = scmp.lt.s32.totalorder %s34_s15, %s34_s15 }
  0x2c   :  { %p12896_p5 = scmp.ne.s32.totalorder %s34_s15, %s12895_s20  ;;  %p12901_p7 = scmp.lt.s32.totalorder %s12895_s20, %s12895_s20 }
  0x2e   :  { %p12902_p8 = por %p12901_p7, %p12900_p6 }
  0x30   :  { %p12903_p9 = pnand %p12902_p8, %p12896_p5 }
  0x32   :  { %12906 = shalt.err (!%p12903_p9)
}
  0x33   :  { %s12992_s6 = smov 256   ;;  %s12993_s24 = smov 16  }
  0x34   :  { %39 = dma.hbm_to_vmem [thread:$0]  %s18660_s2, 25088, %s34_s15, [#allocation7], %s12992_s6, %s12992_s6, %s12993_s24  }
  0x35   :  { %s12994_s22 = smov [#allocation10]   ;;  %s12907_s26 = scalar_lea.hbm %s18663_s5, 1024 }
  0x36   :  { %s59_s3 = sshll.u32 %s12994_s22, 4  ;;  %p12908_p10 = scmp.ne.s32.totalorder %s18663_s5, %s12907_s26  ;;  %s60_s3 = int_to_ptr.vmem [resolvable:$true] %s59_s3 }
  0x37   :  { %p12911_p11 = scmp.lt.u32.totalorder %s12907_s26, %s18663_s5 }
  0x39   :  { %p12913_p12 = pnand %p12911_p11, %p12908_p10 }
  0x3b   :  { %12916 = shalt.err (!%p12913_p12)
}
  0x3c   :  { %s12917_s18 = scalar_lea.vmem %s60_s3, 1024  ;;  %p12922_p0 = scmp.lt.s32.totalorder %s60_s3, %s60_s3 }
  0x3d   :  { %p12918_p13 = scmp.ne.s32.totalorder %s60_s3, %s12917_s18  ;;  %p12923_p1 = scmp.lt.s32.totalorder %s12917_s18, %s12917_s18 }
  0x3f   :  { %p12924_p2 = por %p12923_p1, %p12922_p0 }
  0x41   :  { %p12925_p3 = pnand %p12924_p2, %p12918_p13 }
  0x43   :  { %12928 = shalt.err (!%p12925_p3)
}
  0x44   :  { %s12995_s2 = smov 64   ;;  %s12996_s15 = smov 4  }
  0x45   :  { %65 = dma.hbm_to_vmem [thread:$0]  %s18663_s5, 1024, %s60_s3, [#allocation9], %s12995_s2, %s12995_s2, %s12996_s15  }
  0x46   :  { %s12997_s24 = smov [#allocation13]   ;;  %s12998_s21 = smov [#allocation14]  }
  0x47   :  { %s83_s28 = sshll.u32 %s12997_s24, 4  ;;  %s95_s22 = sshll.u32 %s12998_s21, 4  ;;  %s84_s28 = int_to_ptr.vmem [resolvable:$true] %s83_s28  ;;  %s13141_s22 = int_to_ptr.vmem [resolvable:$true] %s95_s22 }
  0x48   :  { %s12929_s26 = scalar_lea.hbm %s18665_s7, 1024 }
  0x49   :  { %p12930_p4 = scmp.ne.s32.totalorder %s18665_s7, %s12929_s26  ;;  %p12933_p5 = scmp.lt.u32.totalorder %s12929_s26, %s18665_s7 }
  0x4b   :  { %p12935_p6 = pnand %p12933_p5, %p12930_p4 }
  0x4d   :  { %12938 = shalt.err (!%p12935_p6)
}
  0x4e   :  { %s12939_s5 = scalar_lea.vmem %s84_s28, 1024  ;;  %p12944_p8 = scmp.lt.s32.totalorder %s84_s28, %s84_s28 }
  0x4f   :  { %p12940_p7 = scmp.ne.s32.totalorder %s84_s28, %s12939_s5  ;;  %p12945_p9 = scmp.lt.s32.totalorder %s12939_s5, %s12939_s5 }
  0x51   :  { %p12946_p10 = por %p12945_p9, %p12944_p8 }
  0x53   :  { %p12947_p11 = pnand %p12946_p10, %p12940_p7 }
  0x55   :  { %12950 = shalt.err (!%p12947_p11)
}
  0x56   :  { %89 = dma.hbm_to_vmem [thread:$0]  %s18665_s7, 1024, %s84_s28, [#allocation12], %s12995_s2, %s12995_s2, %s12996_s15  }
  0x57   :  { %s12951_s24 = scalar_lea.hbm %s18666_s8, 1024 }
  0x58   :  { %p12952_p12 = scmp.ne.s32.totalorder %s18666_s8, %s12951_s24  ;;  %p12955_p13 = scmp.lt.u32.totalorder %s12951_s24, %s18666_s8 }
  0x5a   :  { %p12957_p0 = pnand %p12955_p13, %p12952_p12 }
  0x5c   :  { %12960 = shalt.err (!%p12957_p0)
}
  0x5d   :  { %s12961_s27 = scalar_lea.vmem %s13141_s22, 1024  ;;  %p12966_p2 = scmp.lt.s32.totalorder %s13141_s22, %s13141_s22 }
  0x5e   :  { %p12962_p1 = scmp.ne.s32.totalorder %s13141_s22, %s12961_s27  ;;  %p12967_p3 = scmp.lt.s32.totalorder %s12961_s27, %s12961_s27 }
  0x60   :  { %p12968_p4 = por %p12967_p3, %p12966_p2 }
  0x62   :  { %p12969_p5 = pnand %p12968_p4, %p12962_p1 }
  0x64   :  { %12972 = shalt.err (!%p12969_p5)
}
  0x65   :  { %101 = dma.hbm_to_vmem [thread:$0]  %s18666_s8, 1024, %s13141_s22, [#allocation15], %s12995_s2, %s12995_s2, %s12996_s15  }
  0x66   :  { %12973 = dma.done.wait [#allocation7], 25088  }
  0x67   :  { %12974 = vsyncadd [#allocation7], 4294942208 }
  0x68   :  { %12975 = dma.done.wait [#allocation9], 9216  }
  0x69   :  { %12976 = vsyncadd [#allocation9], 4294958080 }
  0x6a   :  { %12977 = dma.done.wait [#allocation12], 3072  }
  0x6b   :  { %12978 = vsyncadd [#allocation12], 4294964224 }
  0x6c   :  { %12979 = dma.done.wait [#allocation15], 1024  }
  0x6d   :  { %12980 = vsyncadd [#allocation15], 4294966272  ;;  %s127_s29 = sld [smem:[#allocation0]]   ;;  %139 = sst [smem:[#allocation17]] %s12992_s6 }
  0x6e   :  { %141 = sst [smem:[#allocation17 + $0x1]] %s12992_s6  ;;  %s12999_s16 = smov [#allocation2]  }
  0x6f   :  { %s135_s17 = sshll.u32 %s12999_s16, 4  ;;  %145 = sst [smem:[#allocation17 + $0x3]] %s12995_s2  ;;  %s136_s17 = int_to_ptr.vmem [resolvable:$true] %s135_s17 }
  0x70   :  { %147 = sst [smem:[#allocation17 + $0x4]] %s12988_s23  ;;  %s13000_s5 = smov 2  }
  0x71   :  { %151 = sst [smem:[#allocation17 + $0x6]] %s12988_s23  ;;  %s13001_s3 = smov [#allocation5]  }
  0x72   :  { %153 = sst [smem:[#allocation17 + $0x7]] %s12995_s2  ;;  %s13002_s18 = smov [#allocation16]  }
  0x73   :  { %s10464_s8 = sshll.u32 %s127_s29, 26  ;;  %155 = sst [smem:[#allocation17 + $0x8]] %s12996_s15 }
  0x74   :  { %s10465_s22 = sadd.s32 134217728, %s10464_s8  ;;  %143 = sst [smem:[#allocation17 + $0x2]] %s13000_s5 }
  0x75   :  { %149 = sst [smem:[#allocation17 + $0x5]] %s13000_s5  ;;  %s13003_s24 = smov 512  }
  0x76   :  { %157 = dma.general %s18667_s9, 2048, %s136_s17, %s13001_s3, %s13002_s18, [#allocation17], %s10465_s22, 0  }
  0x77   :  { %174 = sst [smem:[#allocation19]] %s13003_s24  ;;  %s13004_s21 = smov [#allocation3]  }
  0x78   :  { %176 = sst [smem:[#allocation19 + $0x1]] %s13003_s24  ;;  %s170_s30 = sshll.u32 %s13004_s21, 4  ;;  %s171_s30 = int_to_ptr.vmem [resolvable:$true] %s170_s30 }
  0x79   :  { %178 = sst [smem:[#allocation19 + $0x2]] %s12996_s15  ;;  %s13005_s9 = smov [#allocation5 + $0x1]  }
  0x7a   :  { %180 = sst [smem:[#allocation19 + $0x3]] %s12995_s2  ;;  %s13006_s25 = smov [#allocation18]  }
  0x7b   :  { %182 = sst [smem:[#allocation19 + $0x4]] %s12988_s23 }
  0x7c   :  { %184 = sst [smem:[#allocation19 + $0x5]] %s13000_s5 }
  0x7d   :  { %186 = sst [smem:[#allocation19 + $0x6]] %s12992_s6 }
  0x7e   :  { %188 = sst [smem:[#allocation19 + $0x7]] %s12995_s2 }
  0x7f   :  { %190 = sst [smem:[#allocation19 + $0x8]] %s12996_s15 }
  0x80   :  { %192 = dma.general %s18668_s10, 8192, %s171_s30, %s13005_s9, %s13006_s25, [#allocation19], %s10465_s22, 0  }
  0x81   :  { %v211_v0 = vld [vmem:[%s18669_s11] sm:$0xf]  ;;  %v213_v1 = vld [vmem:[%s18669_s11 + $0x1c] sm:$0xf]  ;;  %v215_v2 = vld [vmem:[%s18669_s11 + $0x4] sm:$0xf] }
  0x82   :  { %212 = vst [vmem:[#allocation4] sm:$0xf] %v211_v0  ;;  %214 = vst [vmem:[#allocation4 + $0x4] sm:$0xf] %v213_v1  ;;  %v217_v3 = vld [vmem:[%s18669_s11 + $0x20] sm:$0xf] }
  0x83   :  { %216 = vst [vmem:[#allocation4 + $0x8] sm:$0xf] %v215_v2  ;;  %v219_v4 = vld [vmem:[%s18669_s11 + $0x8] sm:$0xf]  ;;  %v221_v5 = vld [vmem:[%s18669_s11 + $0x24] sm:$0xf] }
  0x84   :  { %218 = vst [vmem:[#allocation4 + $0xc] sm:$0xf] %v217_v3  ;;  %220 = vst [vmem:[#allocation4 + $0x10] sm:$0xf] %v219_v4  ;;  %v223_v6 = vld [vmem:[%s18669_s11 + $0xc] sm:$0xf] }
  0x85   :  { %222 = vst [vmem:[#allocation4 + $0x14] sm:$0xf] %v221_v5  ;;  %v225_v7 = vld [vmem:[%s18669_s11 + $0x28] sm:$0xf]  ;;  %v227_v8 = vld [vmem:[%s18669_s11 + $0x10] sm:$0xf] }
  0x86   :  { %224 = vst [vmem:[#allocation4 + $0x18] sm:$0xf] %v223_v6  ;;  %226 = vst [vmem:[#allocation4 + $0x1c] sm:$0xf] %v225_v7  ;;  %v229_v9 = vld [vmem:[%s18669_s11 + $0x2c] sm:$0xf] }
  0x87   :  { %228 = vst [vmem:[#allocation4 + $0x20] sm:$0xf] %v227_v8  ;;  %v231_v10 = vld [vmem:[%s18669_s11 + $0x14] sm:$0xf]  ;;  %v233_v11 = vld [vmem:[%s18669_s11 + $0x30] sm:$0xf] }
  0x88   :  { %230 = vst [vmem:[#allocation4 + $0x24] sm:$0xf] %v229_v9  ;;  %232 = vst [vmem:[#allocation4 + $0x28] sm:$0xf] %v231_v10  ;;  %v235_v12 = vld [vmem:[%s18669_s11 + $0x18] sm:$0xf] }
  0x89   :  { %234 = vst [vmem:[#allocation4 + $0x2c] sm:$0xf] %v233_v11  ;;  %v237_v13 = vld [vmem:[%s18669_s11 + $0x34] sm:$0xff]   ;;  %236 = vst [vmem:[#allocation4 + $0x30] sm:$0xf] %v235_v12  ;;  %v265_v26 = vld [vmem:[%s18669_s11 + $0x6c] sm:$0xff]  }
  0x8a   :  { %v241_v14 = vld [vmem:[%s18669_s11 + $0x54] sm:$0xf]  ;;  %238 = vst [vmem:[#allocation4 + $0x34] sm:$0xff] %v237_v13   ;;  %v243_v15 = vld [vmem:[%s18669_s11 + $0x3c] sm:$0xf]  ;;  %266 = vst [vmem:[#allocation4 + $0x6c] sm:$0xff] %v265_v26  }
  0x8b   :  { %242 = vst [vmem:[#allocation4 + $0x3c] sm:$0xf] %v241_v14  ;;  %v245_v16 = vld [vmem:[%s18669_s11 + $0x58] sm:$0xf]  ;;  %v247_v17 = vld [vmem:[%s18669_s11 + $0x40] sm:$0xf] }
  0x8c   :  { %244 = vst [vmem:[#allocation4 + $0x40] sm:$0xf] %v243_v15  ;;  %246 = vst [vmem:[#allocation4 + $0x44] sm:$0xf] %v245_v16  ;;  %v249_v18 = vld [vmem:[%s18669_s11 + $0x5c] sm:$0xf] }
  0x8d   :  { %248 = vst [vmem:[#allocation4 + $0x48] sm:$0xf] %v247_v17  ;;  %v251_v19 = vld [vmem:[%s18669_s11 + $0x44] sm:$0xf]  ;;  %v253_v20 = vld [vmem:[%s18669_s11 + $0x60] sm:$0xf] }
  0x8e   :  { %250 = vst [vmem:[#allocation4 + $0x4c] sm:$0xf] %v249_v18  ;;  %252 = vst [vmem:[#allocation4 + $0x50] sm:$0xf] %v251_v19  ;;  %v255_v21 = vld [vmem:[%s18669_s11 + $0x48] sm:$0xf] }
  0x8f   :  { %254 = vst [vmem:[#allocation4 + $0x54] sm:$0xf] %v253_v20  ;;  %v257_v22 = vld [vmem:[%s18669_s11 + $0x64] sm:$0xf]  ;;  %v259_v23 = vld [vmem:[%s18669_s11 + $0x4c] sm:$0xf] }
  0x90   :  { %256 = vst [vmem:[#allocation4 + $0x58] sm:$0xf] %v255_v21  ;;  %258 = vst [vmem:[#allocation4 + $0x5c] sm:$0xf] %v257_v22  ;;  %v261_v24 = vld [vmem:[%s18669_s11 + $0x68] sm:$0xf] }
  0x91   :  { %260 = vst [vmem:[#allocation4 + $0x60] sm:$0xf] %v259_v23  ;;  %v263_v25 = vld [vmem:[%s18669_s11 + $0x50] sm:$0xf]  ;;  %262 = vst [vmem:[#allocation4 + $0x64] sm:$0xf] %v261_v24 }
  0x92   :  { %264 = vst [vmem:[#allocation4 + $0x68] sm:$0xf] %v263_v25  ;;  %v269_v27 = vld [vmem:[%s18669_s11 + $0x8c] sm:$0xf]  ;;  %v271_v28 = vld [vmem:[%s18669_s11 + $0x74] sm:$0xf] }
  0x93   :  { %v273_v29 = vld [vmem:[%s18669_s11 + $0x90] sm:$0xf]  ;;  %270 = vst [vmem:[#allocation4 + $0x74] sm:$0xf] %v269_v27  ;;  %272 = vst [vmem:[#allocation4 + $0x78] sm:$0xf] %v271_v28 }
  0x94   :  { %274 = vst [vmem:[#allocation4 + $0x7c] sm:$0xf] %v273_v29  ;;  %v275_v30 = vld [vmem:[%s18669_s11 + $0x78] sm:$0xf]  ;;  %v277_v31 = vld [vmem:[%s18669_s11 + $0x94] sm:$0xf] }
  0x95   :  { %v279_v32 = vld [vmem:[%s18669_s11 + $0x7c] sm:$0xf]  ;;  %276 = vst [vmem:[#allocation4 + $0x80] sm:$0xf] %v275_v30  ;;  %278 = vst [vmem:[#allocation4 + $0x84] sm:$0xf] %v277_v31 }
  0x96   :  { %280 = vst [vmem:[#allocation4 + $0x88] sm:$0xf] %v279_v32  ;;  %v281_v33 = vld [vmem:[%s18669_s11 + $0x98] sm:$0xf]  ;;  %v283_v34 = vld [vmem:[%s18669_s11 + $0x80] sm:$0xf] }
  0x97   :  { %v285_v35 = vld [vmem:[%s18669_s11 + $0x9c] sm:$0xf]  ;;  %282 = vst [vmem:[#allocation4 + $0x8c] sm:$0xf] %v281_v33  ;;  %284 = vst [vmem:[#allocation4 + $0x90] sm:$0xf] %v283_v34 }
  0x98   :  { %286 = vst [vmem:[#allocation4 + $0x94] sm:$0xf] %v285_v35  ;;  %v287_v36 = vld [vmem:[%s18669_s11 + $0x84] sm:$0xf]  ;;  %v289_v37 = vld [vmem:[%s18669_s11 + $0xa0] sm:$0xf] }
  0x99   :  { %v291_v38 = vld [vmem:[%s18669_s11 + $0x88] sm:$0xf]  ;;  %288 = vst [vmem:[#allocation4 + $0x98] sm:$0xf] %v287_v36  ;;  %290 = vst [vmem:[#allocation4 + $0x9c] sm:$0xf] %v289_v37 }
  0x9a   :  { %292 = vst [vmem:[#allocation4 + $0xa0] sm:$0xf] %v291_v38  ;;  %v293_v39 = vld [vmem:[%s18669_s11 + $0xa4] sm:$0xff]   ;;  %v299_v41 = vld [vmem:[%s18669_s11 + $0xac] sm:$0xf]  ;;  %v321_v52 = vld [vmem:[%s18669_s11 + $0xdc] sm:$0xff]  }
  0x9b   :  { %v297_v40 = vld [vmem:[%s18669_s11 + $0xc4] sm:$0xf]  ;;  %294 = vst [vmem:[#allocation4 + $0xa4] sm:$0xff] %v293_v39   ;;  %300 = vst [vmem:[#allocation4 + $0xb0] sm:$0xf] %v299_v41  ;;  %v349_v1 = vld [vmem:[%s18669_s11 + $0x114] sm:$0xff]  }
  0x9c   :  { %298 = vst [vmem:[#allocation4 + $0xac] sm:$0xf] %v297_v40  ;;  %v301_v42 = vld [vmem:[%s18669_s11 + $0xc8] sm:$0xf]  ;;  %v303_v43 = vld [vmem:[%s18669_s11 + $0xb0] sm:$0xf] }
  0x9d   :  { %v305_v44 = vld [vmem:[%s18669_s11 + $0xcc] sm:$0xf]  ;;  %302 = vst [vmem:[#allocation4 + $0xb4] sm:$0xf] %v301_v42  ;;  %304 = vst [vmem:[#allocation4 + $0xb8] sm:$0xf] %v303_v43 }
  0x9e   :  { %306 = vst [vmem:[#allocation4 + $0xbc] sm:$0xf] %v305_v44  ;;  %v307_v45 = vld [vmem:[%s18669_s11 + $0xb4] sm:$0xf]  ;;  %v309_v46 = vld [vmem:[%s18669_s11 + $0xd0] sm:$0xf] }
  0x9f   :  { %v311_v47 = vld [vmem:[%s18669_s11 + $0xb8] sm:$0xf]  ;;  %308 = vst [vmem:[#allocation4 + $0xc0] sm:$0xf] %v307_v45  ;;  %310 = vst [vmem:[#allocation4 + $0xc4] sm:$0xf] %v309_v46 }
  0xa0   :  { %312 = vst [vmem:[#allocation4 + $0xc8] sm:$0xf] %v311_v47  ;;  %v313_v48 = vld [vmem:[%s18669_s11 + $0xd4] sm:$0xf]  ;;  %v315_v49 = vld [vmem:[%s18669_s11 + $0xbc] sm:$0xf] }
  0xa1   :  { %v317_v50 = vld [vmem:[%s18669_s11 + $0xd8] sm:$0xf]  ;;  %314 = vst [vmem:[#allocation4 + $0xcc] sm:$0xf] %v313_v48  ;;  %316 = vst [vmem:[#allocation4 + $0xd0] sm:$0xf] %v315_v49 }
  0xa2   :  { %318 = vst [vmem:[#allocation4 + $0xd4] sm:$0xf] %v317_v50  ;;  %v319_v51 = vld [vmem:[%s18669_s11 + $0xc0] sm:$0xf]  ;;  %v325_v53 = vld [vmem:[%s18669_s11 + $0xfc] sm:$0xf] }
  0xa3   :  { %320 = vst [vmem:[#allocation4 + $0xd8] sm:$0xf] %v319_v51  ;;  %322 = vst [vmem:[#allocation4 + $0xdc] sm:$0xff] %v321_v52   ;;  %v327_v54 = vld [vmem:[%s18669_s11 + $0xe4] sm:$0xf]  ;;  %v377_v14 = vld [vmem:[%s18669_s11 + $0x14c] sm:$0xff]  }
  0xa4   :  { %326 = vst [vmem:[#allocation4 + $0xe4] sm:$0xf] %v325_v53  ;;  %v329_v55 = vld [vmem:[%s18669_s11 + $0x100] sm:$0xf]  ;;  %v331_v56 = vld [vmem:[%s18669_s11 + $0xe8] sm:$0xf] }
  0xa5   :  { %328 = vst [vmem:[#allocation4 + $0xe8] sm:$0xf] %v327_v54  ;;  %330 = vst [vmem:[#allocation4 + $0xec] sm:$0xf] %v329_v55  ;;  %v333_v57 = vld [vmem:[%s18669_s11 + $0x104] sm:$0xf] }
  0xa6   :  { %332 = vst [vmem:[#allocation4 + $0xf0] sm:$0xf] %v331_v56  ;;  %v335_v58 = vld [vmem:[%s18669_s11 + $0xec] sm:$0xf]  ;;  %v337_v59 = vld [vmem:[%s18669_s11 + $0x108] sm:$0xf] }
  0xa7   :  { %334 = vst [vmem:[#allocation4 + $0xf4] sm:$0xf] %v333_v57  ;;  %336 = vst [vmem:[#allocation4 + $0xf8] sm:$0xf] %v335_v58  ;;  %v339_v60 = vld [vmem:[%s18669_s11 + $0xf0] sm:$0xf] }
  0xa8   :  { %338 = vst [vmem:[#allocation4 + $0xfc] sm:$0xf] %v337_v59  ;;  %v341_v61 = vld [vmem:[%s18669_s11 + $0x10c] sm:$0xf]  ;;  %v343_v62 = vld [vmem:[%s18669_s11 + $0xf4] sm:$0xf] }
  0xa9   :  { %340 = vst [vmem:[#allocation4 + $0x100] sm:$0xf] %v339_v60  ;;  %342 = vst [vmem:[#allocation4 + $0x104] sm:$0xf] %v341_v61  ;;  %v345_v63 = vld [vmem:[%s18669_s11 + $0x110] sm:$0xf] }
  0xaa   :  { %344 = vst [vmem:[#allocation4 + $0x108] sm:$0xf] %v343_v62  ;;  %v347_v0 = vld [vmem:[%s18669_s11 + $0xf8] sm:$0xf]  ;;  %346 = vst [vmem:[#allocation4 + $0x10c] sm:$0xf] %v345_v63 }
  0xab   :  { %348 = vst [vmem:[#allocation4 + $0x110] sm:$0xf] %v347_v0  ;;  %350 = vst [vmem:[#allocation4 + $0x114] sm:$0xff] %v349_v1   ;;  %v353_v2 = vld [vmem:[%s18669_s11 + $0x134] sm:$0xf]  ;;  %v405_v27 = vld [vmem:[%s18669_s11 + $0x184] sm:$0xff]  }
  0xac   :  { %v355_v3 = vld [vmem:[%s18669_s11 + $0x11c] sm:$0xf]  ;;  %v357_v4 = vld [vmem:[%s18669_s11 + $0x138] sm:$0xf]  ;;  %354 = vst [vmem:[#allocation4 + $0x11c] sm:$0xf] %v353_v2 }
  0xad   :  { %356 = vst [vmem:[#allocation4 + $0x120] sm:$0xf] %v355_v3  ;;  %358 = vst [vmem:[#allocation4 + $0x124] sm:$0xf] %v357_v4  ;;  %v359_v5 = vld [vmem:[%s18669_s11 + $0x120] sm:$0xf] }
  0xae   :  { %v361_v6 = vld [vmem:[%s18669_s11 + $0x13c] sm:$0xf]  ;;  %v363_v7 = vld [vmem:[%s18669_s11 + $0x124] sm:$0xf]  ;;  %360 = vst [vmem:[#allocation4 + $0x128] sm:$0xf] %v359_v5 }
  0xaf   :  { %362 = vst [vmem:[#allocation4 + $0x12c] sm:$0xf] %v361_v6  ;;  %364 = vst [vmem:[#allocation4 + $0x130] sm:$0xf] %v363_v7  ;;  %v365_v8 = vld [vmem:[%s18669_s11 + $0x140] sm:$0xf] }
  0xb0   :  { %v367_v9 = vld [vmem:[%s18669_s11 + $0x128] sm:$0xf]  ;;  %v369_v10 = vld [vmem:[%s18669_s11 + $0x144] sm:$0xf]  ;;  %366 = vst [vmem:[#allocation4 + $0x134] sm:$0xf] %v365_v8 }
  0xb1   :  { %368 = vst [vmem:[#allocation4 + $0x138] sm:$0xf] %v367_v9  ;;  %370 = vst [vmem:[#allocation4 + $0x13c] sm:$0xf] %v369_v10  ;;  %v371_v11 = vld [vmem:[%s18669_s11 + $0x12c] sm:$0xf] }
  0xb2   :  { %v373_v12 = vld [vmem:[%s18669_s11 + $0x148] sm:$0xf]  ;;  %v375_v13 = vld [vmem:[%s18669_s11 + $0x130] sm:$0xf]  ;;  %372 = vst [vmem:[#allocation4 + $0x140] sm:$0xf] %v371_v11 }
  0xb3   :  { %374 = vst [vmem:[#allocation4 + $0x144] sm:$0xf] %v373_v12  ;;  %376 = vst [vmem:[#allocation4 + $0x148] sm:$0xf] %v375_v13  ;;  %v381_v15 = vld [vmem:[%s18669_s11 + $0x16c] sm:$0xf] }
  0xb4   :  { %v383_v16 = vld [vmem:[%s18669_s11 + $0x154] sm:$0xf]  ;;  %378 = vst [vmem:[#allocation4 + $0x14c] sm:$0xff] %v377_v14   ;;  %382 = vst [vmem:[#allocation4 + $0x154] sm:$0xf] %v381_v15  ;;  %v433_v40 = vld [vmem:[%s18669_s11 + $0x1bc] sm:$0xff]  }
  0xb5   :  { %384 = vst [vmem:[#allocation4 + $0x158] sm:$0xf] %v383_v16  ;;  %v385_v17 = vld [vmem:[%s18669_s11 + $0x170] sm:$0xf]  ;;  %v387_v18 = vld [vmem:[%s18669_s11 + $0x158] sm:$0xf] }
  0xb6   :  { %v389_v19 = vld [vmem:[%s18669_s11 + $0x174] sm:$0xf]  ;;  %386 = vst [vmem:[#allocation4 + $0x15c] sm:$0xf] %v385_v17  ;;  %388 = vst [vmem:[#allocation4 + $0x160] sm:$0xf] %v387_v18 }
  0xb7   :  { %390 = vst [vmem:[#allocation4 + $0x164] sm:$0xf] %v389_v19  ;;  %v391_v20 = vld [vmem:[%s18669_s11 + $0x15c] sm:$0xf]  ;;  %v393_v21 = vld [vmem:[%s18669_s11 + $0x178] sm:$0xf] }
  0xb8   :  { %v395_v22 = vld [vmem:[%s18669_s11 + $0x160] sm:$0xf]  ;;  %392 = vst [vmem:[#allocation4 + $0x168] sm:$0xf] %v391_v20  ;;  %394 = vst [vmem:[#allocation4 + $0x16c] sm:$0xf] %v393_v21 }
  0xb9   :  { %396 = vst [vmem:[#allocation4 + $0x170] sm:$0xf] %v395_v22  ;;  %v397_v23 = vld [vmem:[%s18669_s11 + $0x17c] sm:$0xf]  ;;  %v399_v24 = vld [vmem:[%s18669_s11 + $0x164] sm:$0xf] }
  0xba   :  { %v401_v25 = vld [vmem:[%s18669_s11 + $0x180] sm:$0xf]  ;;  %398 = vst [vmem:[#allocation4 + $0x174] sm:$0xf] %v397_v23  ;;  %400 = vst [vmem:[#allocation4 + $0x178] sm:$0xf] %v399_v24 }
  0xbb   :  { %402 = vst [vmem:[#allocation4 + $0x17c] sm:$0xf] %v401_v25  ;;  %v403_v26 = vld [vmem:[%s18669_s11 + $0x168] sm:$0xf]  ;;  %v409_v28 = vld [vmem:[%s18669_s11 + $0x1a4] sm:$0xf] }
  0xbc   :  { %404 = vst [vmem:[#allocation4 + $0x180] sm:$0xf] %v403_v26  ;;  %406 = vst [vmem:[#allocation4 + $0x184] sm:$0xff] %v405_v27   ;;  %v411_v29 = vld [vmem:[%s18669_s11 + $0x18c] sm:$0xf]  ;;  %v461_v53 = vld [vmem:[%s18669_s11 + $0x1f4] sm:$0xff]  }
  0xbd   :  { %410 = vst [vmem:[#allocation4 + $0x18c] sm:$0xf] %v409_v28  ;;  %v413_v30 = vld [vmem:[%s18669_s11 + $0x1a8] sm:$0xf]  ;;  %v415_v31 = vld [vmem:[%s18669_s11 + $0x190] sm:$0xf] }
  0xbe   :  { %412 = vst [vmem:[#allocation4 + $0x190] sm:$0xf] %v411_v29  ;;  %414 = vst [vmem:[#allocation4 + $0x194] sm:$0xf] %v413_v30  ;;  %v417_v32 = vld [vmem:[%s18669_s11 + $0x1ac] sm:$0xf] }
  0xbf   :  { %416 = vst [vmem:[#allocation4 + $0x198] sm:$0xf] %v415_v31  ;;  %v419_v33 = vld [vmem:[%s18669_s11 + $0x194] sm:$0xf]  ;;  %v421_v34 = vld [vmem:[%s18669_s11 + $0x1b0] sm:$0xf] }
  0xc0   :  { %418 = vst [vmem:[#allocation4 + $0x19c] sm:$0xf] %v417_v32  ;;  %420 = vst [vmem:[#allocation4 + $0x1a0] sm:$0xf] %v419_v33  ;;  %v423_v35 = vld [vmem:[%s18669_s11 + $0x198] sm:$0xf] }
  0xc1   :  { %422 = vst [vmem:[#allocation4 + $0x1a4] sm:$0xf] %v421_v34  ;;  %v425_v36 = vld [vmem:[%s18669_s11 + $0x1b4] sm:$0xf]  ;;  %v427_v37 = vld [vmem:[%s18669_s11 + $0x19c] sm:$0xf] }
  0xc2   :  { %424 = vst [vmem:[#allocation4 + $0x1a8] sm:$0xf] %v423_v35  ;;  %426 = vst [vmem:[#allocation4 + $0x1ac] sm:$0xf] %v425_v36  ;;  %v429_v38 = vld [vmem:[%s18669_s11 + $0x1b8] sm:$0xf] }
  0xc3   :  { %428 = vst [vmem:[#allocation4 + $0x1b0] sm:$0xf] %v427_v37  ;;  %v431_v39 = vld [vmem:[%s18669_s11 + $0x1a0] sm:$0xf]  ;;  %430 = vst [vmem:[#allocation4 + $0x1b4] sm:$0xf] %v429_v38 }
  0xc4   :  { %432 = vst [vmem:[#allocation4 + $0x1b8] sm:$0xf] %v431_v39  ;;  %434 = vst [vmem:[#allocation4 + $0x1bc] sm:$0xff] %v433_v40   ;;  %v437_v41 = vld [vmem:[%s18669_s11 + $0x1dc] sm:$0xf]  ;;  %v489_v2 = vld [vmem:[%s18669_s11 + $0x22c] sm:$0xff]  }
  0xc5   :  { %v439_v42 = vld [vmem:[%s18669_s11 + $0x1c4] sm:$0xf]  ;;  %v441_v43 = vld [vmem:[%s18669_s11 + $0x1e0] sm:$0xf]  ;;  %438 = vst [vmem:[#allocation4 + $0x1c4] sm:$0xf] %v437_v41 }
  0xc6   :  { %440 = vst [vmem:[#allocation4 + $0x1c8] sm:$0xf] %v439_v42  ;;  %442 = vst [vmem:[#allocation4 + $0x1cc] sm:$0xf] %v441_v43  ;;  %v443_v44 = vld [vmem:[%s18669_s11 + $0x1c8] sm:$0xf] }
  0xc7   :  { %v445_v45 = vld [vmem:[%s18669_s11 + $0x1e4] sm:$0xf]  ;;  %v447_v46 = vld [vmem:[%s18669_s11 + $0x1cc] sm:$0xf]  ;;  %444 = vst [vmem:[#allocation4 + $0x1d0] sm:$0xf] %v443_v44 }
  0xc8   :  { %446 = vst [vmem:[#allocation4 + $0x1d4] sm:$0xf] %v445_v45  ;;  %448 = vst [vmem:[#allocation4 + $0x1d8] sm:$0xf] %v447_v46  ;;  %v449_v47 = vld [vmem:[%s18669_s11 + $0x1e8] sm:$0xf] }
  0xc9   :  { %v451_v48 = vld [vmem:[%s18669_s11 + $0x1d0] sm:$0xf]  ;;  %v453_v49 = vld [vmem:[%s18669_s11 + $0x1ec] sm:$0xf]  ;;  %450 = vst [vmem:[#allocation4 + $0x1dc] sm:$0xf] %v449_v47 }
  0xca   :  { %452 = vst [vmem:[#allocation4 + $0x1e0] sm:$0xf] %v451_v48  ;;  %454 = vst [vmem:[#allocation4 + $0x1e4] sm:$0xf] %v453_v49  ;;  %v455_v50 = vld [vmem:[%s18669_s11 + $0x1d4] sm:$0xf] }
  0xcb   :  { %v457_v51 = vld [vmem:[%s18669_s11 + $0x1f0] sm:$0xf]  ;;  %v459_v52 = vld [vmem:[%s18669_s11 + $0x1d8] sm:$0xf]  ;;  %456 = vst [vmem:[#allocation4 + $0x1e8] sm:$0xf] %v455_v50 }
  0xcc   :  { %458 = vst [vmem:[#allocation4 + $0x1ec] sm:$0xf] %v457_v51  ;;  %460 = vst [vmem:[#allocation4 + $0x1f0] sm:$0xf] %v459_v52  ;;  %v465_v54 = vld [vmem:[%s18669_s11 + $0x214] sm:$0xf] }
  0xcd   :  { %v467_v55 = vld [vmem:[%s18669_s11 + $0x1fc] sm:$0xf]  ;;  %462 = vst [vmem:[#allocation4 + $0x1f4] sm:$0xff] %v461_v53   ;;  %466 = vst [vmem:[#allocation4 + $0x1fc] sm:$0xf] %v465_v54  ;;  %v517_v15 = vld [vmem:[%s18669_s11 + $0x264] sm:$0xff]  }
  0xce   :  { %468 = vst [vmem:[#allocation4 + $0x200] sm:$0xf] %v467_v55  ;;  %v469_v56 = vld [vmem:[%s18669_s11 + $0x218] sm:$0xf]  ;;  %v471_v57 = vld [vmem:[%s18669_s11 + $0x200] sm:$0xf] }
  0xcf   :  { %v473_v58 = vld [vmem:[%s18669_s11 + $0x21c] sm:$0xf]  ;;  %470 = vst [vmem:[#allocation4 + $0x204] sm:$0xf] %v469_v56  ;;  %472 = vst [vmem:[#allocation4 + $0x208] sm:$0xf] %v471_v57 }
  0xd0   :  { %474 = vst [vmem:[#allocation4 + $0x20c] sm:$0xf] %v473_v58  ;;  %v475_v59 = vld [vmem:[%s18669_s11 + $0x204] sm:$0xf]  ;;  %v477_v60 = vld [vmem:[%s18669_s11 + $0x220] sm:$0xf] }
  0xd1   :  { %v479_v61 = vld [vmem:[%s18669_s11 + $0x208] sm:$0xf]  ;;  %476 = vst [vmem:[#allocation4 + $0x210] sm:$0xf] %v475_v59  ;;  %478 = vst [vmem:[#allocation4 + $0x214] sm:$0xf] %v477_v60 }
  0xd2   :  { %480 = vst [vmem:[#allocation4 + $0x218] sm:$0xf] %v479_v61  ;;  %v481_v62 = vld [vmem:[%s18669_s11 + $0x224] sm:$0xf]  ;;  %v483_v63 = vld [vmem:[%s18669_s11 + $0x20c] sm:$0xf] }
  0xd3   :  { %v485_v0 = vld [vmem:[%s18669_s11 + $0x228] sm:$0xf]  ;;  %482 = vst [vmem:[#allocation4 + $0x21c] sm:$0xf] %v481_v62  ;;  %484 = vst [vmem:[#allocation4 + $0x220] sm:$0xf] %v483_v63 }
  0xd4   :  { %486 = vst [vmem:[#allocation4 + $0x224] sm:$0xf] %v485_v0  ;;  %v487_v1 = vld [vmem:[%s18669_s11 + $0x210] sm:$0xf]  ;;  %v493_v3 = vld [vmem:[%s18669_s11 + $0x24c] sm:$0xf] }
  0xd5   :  { %488 = vst [vmem:[#allocation4 + $0x228] sm:$0xf] %v487_v1  ;;  %490 = vst [vmem:[#allocation4 + $0x22c] sm:$0xff] %v489_v2   ;;  %v495_v4 = vld [vmem:[%s18669_s11 + $0x234] sm:$0xf]  ;;  %v545_v28 = vld [vmem:[%s18669_s11 + $0x29c] sm:$0xff]  }
  0xd6   :  { %494 = vst [vmem:[#allocation4 + $0x234] sm:$0xf] %v493_v3  ;;  %v497_v5 = vld [vmem:[%s18669_s11 + $0x250] sm:$0xf]  ;;  %v499_v6 = vld [vmem:[%s18669_s11 + $0x238] sm:$0xf] }
  0xd7   :  { %496 = vst [vmem:[#allocation4 + $0x238] sm:$0xf] %v495_v4  ;;  %498 = vst [vmem:[#allocation4 + $0x23c] sm:$0xf] %v497_v5  ;;  %v501_v7 = vld [vmem:[%s18669_s11 + $0x254] sm:$0xf] }
  0xd8   :  { %500 = vst [vmem:[#allocation4 + $0x240] sm:$0xf] %v499_v6  ;;  %v503_v8 = vld [vmem:[%s18669_s11 + $0x23c] sm:$0xf]  ;;  %v505_v9 = vld [vmem:[%s18669_s11 + $0x258] sm:$0xf] }
  0xd9   :  { %502 = vst [vmem:[#allocation4 + $0x244] sm:$0xf] %v501_v7  ;;  %504 = vst [vmem:[#allocation4 + $0x248] sm:$0xf] %v503_v8  ;;  %v507_v10 = vld [vmem:[%s18669_s11 + $0x240] sm:$0xf] }
  0xda   :  { %506 = vst [vmem:[#allocation4 + $0x24c] sm:$0xf] %v505_v9  ;;  %v509_v11 = vld [vmem:[%s18669_s11 + $0x25c] sm:$0xf]  ;;  %v511_v12 = vld [vmem:[%s18669_s11 + $0x244] sm:$0xf] }
  0xdb   :  { %508 = vst [vmem:[#allocation4 + $0x250] sm:$0xf] %v507_v10  ;;  %510 = vst [vmem:[#allocation4 + $0x254] sm:$0xf] %v509_v11  ;;  %v513_v13 = vld [vmem:[%s18669_s11 + $0x260] sm:$0xf] }
  0xdc   :  { %512 = vst [vmem:[#allocation4 + $0x258] sm:$0xf] %v511_v12  ;;  %v515_v14 = vld [vmem:[%s18669_s11 + $0x248] sm:$0xf]  ;;  %514 = vst [vmem:[#allocation4 + $0x25c] sm:$0xf] %v513_v13 }
  0xdd   :  { %516 = vst [vmem:[#allocation4 + $0x260] sm:$0xf] %v515_v14  ;;  %518 = vst [vmem:[#allocation4 + $0x264] sm:$0xff] %v517_v15   ;;  %v521_v16 = vld [vmem:[%s18669_s11 + $0x284] sm:$0xf]  ;;  %v573_v41 = vld [vmem:[%s18669_s11 + $0x2d4] sm:$0xff]  }
  0xde   :  { %v523_v17 = vld [vmem:[%s18669_s11 + $0x26c] sm:$0xf]  ;;  %v525_v18 = vld [vmem:[%s18669_s11 + $0x288] sm:$0xf]  ;;  %522 = vst [vmem:[#allocation4 + $0x26c] sm:$0xf] %v521_v16 }
  0xdf   :  { %524 = vst [vmem:[#allocation4 + $0x270] sm:$0xf] %v523_v17  ;;  %526 = vst [vmem:[#allocation4 + $0x274] sm:$0xf] %v525_v18  ;;  %v527_v19 = vld [vmem:[%s18669_s11 + $0x270] sm:$0xf] }
  0xe0   :  { %v529_v20 = vld [vmem:[%s18669_s11 + $0x28c] sm:$0xf]  ;;  %v531_v21 = vld [vmem:[%s18669_s11 + $0x274] sm:$0xf]  ;;  %528 = vst [vmem:[#allocation4 + $0x278] sm:$0xf] %v527_v19 }
  0xe1   :  { %530 = vst [vmem:[#allocation4 + $0x27c] sm:$0xf] %v529_v20  ;;  %532 = vst [vmem:[#allocation4 + $0x280] sm:$0xf] %v531_v21  ;;  %v533_v22 = vld [vmem:[%s18669_s11 + $0x290] sm:$0xf] }
  0xe2   :  { %v535_v23 = vld [vmem:[%s18669_s11 + $0x278] sm:$0xf]  ;;  %v537_v24 = vld [vmem:[%s18669_s11 + $0x294] sm:$0xf]  ;;  %534 = vst [vmem:[#allocation4 + $0x284] sm:$0xf] %v533_v22 }
  0xe3   :  { %536 = vst [vmem:[#allocation4 + $0x288] sm:$0xf] %v535_v23  ;;  %538 = vst [vmem:[#allocation4 + $0x28c] sm:$0xf] %v537_v24  ;;  %v539_v25 = vld [vmem:[%s18669_s11 + $0x27c] sm:$0xf] }
  0xe4   :  { %v541_v26 = vld [vmem:[%s18669_s11 + $0x298] sm:$0xf]  ;;  %v543_v27 = vld [vmem:[%s18669_s11 + $0x280] sm:$0xf]  ;;  %540 = vst [vmem:[#allocation4 + $0x290] sm:$0xf] %v539_v25 }
  0xe5   :  { %542 = vst [vmem:[#allocation4 + $0x294] sm:$0xf] %v541_v26  ;;  %544 = vst [vmem:[#allocation4 + $0x298] sm:$0xf] %v543_v27  ;;  %v549_v29 = vld [vmem:[%s18669_s11 + $0x2bc] sm:$0xf] }
  0xe6   :  { %v551_v30 = vld [vmem:[%s18669_s11 + $0x2a4] sm:$0xf]  ;;  %546 = vst [vmem:[#allocation4 + $0x29c] sm:$0xff] %v545_v28   ;;  %550 = vst [vmem:[#allocation4 + $0x2a4] sm:$0xf] %v549_v29  ;;  %v601_v54 = vld [vmem:[%s18669_s11 + $0x30c] sm:$0xff]  }
  0xe7   :  { %552 = vst [vmem:[#allocation4 + $0x2a8] sm:$0xf] %v551_v30  ;;  %v553_v31 = vld [vmem:[%s18669_s11 + $0x2c0] sm:$0xf]  ;;  %v555_v32 = vld [vmem:[%s18669_s11 + $0x2a8] sm:$0xf] }
  0xe8   :  { %v557_v33 = vld [vmem:[%s18669_s11 + $0x2c4] sm:$0xf]  ;;  %554 = vst [vmem:[#allocation4 + $0x2ac] sm:$0xf] %v553_v31  ;;  %556 = vst [vmem:[#allocation4 + $0x2b0] sm:$0xf] %v555_v32 }
  0xe9   :  { %558 = vst [vmem:[#allocation4 + $0x2b4] sm:$0xf] %v557_v33  ;;  %v559_v34 = vld [vmem:[%s18669_s11 + $0x2ac] sm:$0xf]  ;;  %v561_v35 = vld [vmem:[%s18669_s11 + $0x2c8] sm:$0xf] }
  0xea   :  { %v563_v36 = vld [vmem:[%s18669_s11 + $0x2b0] sm:$0xf]  ;;  %560 = vst [vmem:[#allocation4 + $0x2b8] sm:$0xf] %v559_v34  ;;  %562 = vst [vmem:[#allocation4 + $0x2bc] sm:$0xf] %v561_v35 }
  0xeb   :  { %564 = vst [vmem:[#allocation4 + $0x2c0] sm:$0xf] %v563_v36  ;;  %v565_v37 = vld [vmem:[%s18669_s11 + $0x2cc] sm:$0xf]  ;;  %v567_v38 = vld [vmem:[%s18669_s11 + $0x2b4] sm:$0xf] }
  0xec   :  { %v569_v39 = vld [vmem:[%s18669_s11 + $0x2d0] sm:$0xf]  ;;  %566 = vst [vmem:[#allocation4 + $0x2c4] sm:$0xf] %v565_v37  ;;  %568 = vst [vmem:[#allocation4 + $0x2c8] sm:$0xf] %v567_v38 }
  0xed   :  { %570 = vst [vmem:[#allocation4 + $0x2cc] sm:$0xf] %v569_v39  ;;  %v571_v40 = vld [vmem:[%s18669_s11 + $0x2b8] sm:$0xf]  ;;  %v577_v42 = vld [vmem:[%s18669_s11 + $0x2f4] sm:$0xf] }
  0xee   :  { %572 = vst [vmem:[#allocation4 + $0x2d0] sm:$0xf] %v571_v40  ;;  %574 = vst [vmem:[#allocation4 + $0x2d4] sm:$0xff] %v573_v41   ;;  %v579_v43 = vld [vmem:[%s18669_s11 + $0x2dc] sm:$0xf]  ;;  %v629_v3 = vld [vmem:[%s18669_s11 + $0x344] sm:$0xff]  }
  0xef   :  { %578 = vst [vmem:[#allocation4 + $0x2dc] sm:$0xf] %v577_v42  ;;  %v581_v44 = vld [vmem:[%s18669_s11 + $0x2f8] sm:$0xf]  ;;  %v583_v45 = vld [vmem:[%s18669_s11 + $0x2e0] sm:$0xf] }
  0xf0   :  { %580 = vst [vmem:[#allocation4 + $0x2e0] sm:$0xf] %v579_v43  ;;  %582 = vst [vmem:[#allocation4 + $0x2e4] sm:$0xf] %v581_v44  ;;  %v585_v46 = vld [vmem:[%s18669_s11 + $0x2fc] sm:$0xf] }
  0xf1   :  { %584 = vst [vmem:[#allocation4 + $0x2e8] sm:$0xf] %v583_v45  ;;  %v587_v47 = vld [vmem:[%s18669_s11 + $0x2e4] sm:$0xf]  ;;  %v589_v48 = vld [vmem:[%s18669_s11 + $0x300] sm:$0xf] }
  0xf2   :  { %586 = vst [vmem:[#allocation4 + $0x2ec] sm:$0xf] %v585_v46  ;;  %588 = vst [vmem:[#allocation4 + $0x2f0] sm:$0xf] %v587_v47  ;;  %v591_v49 = vld [vmem:[%s18669_s11 + $0x2e8] sm:$0xf] }
  0xf3   :  { %590 = vst [vmem:[#allocation4 + $0x2f4] sm:$0xf] %v589_v48  ;;  %v593_v50 = vld [vmem:[%s18669_s11 + $0x304] sm:$0xf]  ;;  %v595_v51 = vld [vmem:[%s18669_s11 + $0x2ec] sm:$0xf] }
  0xf4   :  { %592 = vst [vmem:[#allocation4 + $0x2f8] sm:$0xf] %v591_v49  ;;  %594 = vst [vmem:[#allocation4 + $0x2fc] sm:$0xf] %v593_v50  ;;  %v597_v52 = vld [vmem:[%s18669_s11 + $0x308] sm:$0xf] }
  0xf5   :  { %596 = vst [vmem:[#allocation4 + $0x300] sm:$0xf] %v595_v51  ;;  %v599_v53 = vld [vmem:[%s18669_s11 + $0x2f0] sm:$0xf]  ;;  %598 = vst [vmem:[#allocation4 + $0x304] sm:$0xf] %v597_v52 }
  0xf6   :  { %600 = vst [vmem:[#allocation4 + $0x308] sm:$0xf] %v599_v53  ;;  %602 = vst [vmem:[#allocation4 + $0x30c] sm:$0xff] %v601_v54   ;;  %v605_v55 = vld [vmem:[%s18669_s11 + $0x32c] sm:$0xf]  ;;  %v657_v16 = vld [vmem:[%s18669_s11 + $0x37c] sm:$0xff]  }
  0xf7   :  { %v607_v56 = vld [vmem:[%s18669_s11 + $0x314] sm:$0xf]  ;;  %v609_v57 = vld [vmem:[%s18669_s11 + $0x330] sm:$0xf]  ;;  %606 = vst [vmem:[#allocation4 + $0x314] sm:$0xf] %v605_v55 }
  0xf8   :  { %608 = vst [vmem:[#allocation4 + $0x318] sm:$0xf] %v607_v56  ;;  %610 = vst [vmem:[#allocation4 + $0x31c] sm:$0xf] %v609_v57  ;;  %v611_v58 = vld [vmem:[%s18669_s11 + $0x318] sm:$0xf] }
  0xf9   :  { %v613_v59 = vld [vmem:[%s18669_s11 + $0x334] sm:$0xf]  ;;  %v615_v60 = vld [vmem:[%s18669_s11 + $0x31c] sm:$0xf]  ;;  %612 = vst [vmem:[#allocation4 + $0x320] sm:$0xf] %v611_v58 }
  0xfa   :  { %614 = vst [vmem:[#allocation4 + $0x324] sm:$0xf] %v613_v59  ;;  %616 = vst [vmem:[#allocation4 + $0x328] sm:$0xf] %v615_v60  ;;  %v617_v61 = vld [vmem:[%s18669_s11 + $0x338] sm:$0xf] }
  0xfb   :  { %v619_v62 = vld [vmem:[%s18669_s11 + $0x320] sm:$0xf]  ;;  %v621_v63 = vld [vmem:[%s18669_s11 + $0x33c] sm:$0xf]  ;;  %618 = vst [vmem:[#allocation4 + $0x32c] sm:$0xf] %v617_v61 }
  0xfc   :  { %620 = vst [vmem:[#allocation4 + $0x330] sm:$0xf] %v619_v62  ;;  %622 = vst [vmem:[#allocation4 + $0x334] sm:$0xf] %v621_v63  ;;  %v623_v0 = vld [vmem:[%s18669_s11 + $0x324] sm:$0xf] }
  0xfd   :  { %v625_v1 = vld [vmem:[%s18669_s11 + $0x340] sm:$0xf]  ;;  %v627_v2 = vld [vmem:[%s18669_s11 + $0x328] sm:$0xf]  ;;  %624 = vst [vmem:[#allocation4 + $0x338] sm:$0xf] %v623_v0 }
  0xfe   :  { %626 = vst [vmem:[#allocation4 + $0x33c] sm:$0xf] %v625_v1  ;;  %628 = vst [vmem:[#allocation4 + $0x340] sm:$0xf] %v627_v2  ;;  %v633_v4 = vld [vmem:[%s18669_s11 + $0x364] sm:$0xf] }
  0xff   :  { %v635_v5 = vld [vmem:[%s18669_s11 + $0x34c] sm:$0xf]  ;;  %630 = vst [vmem:[#allocation4 + $0x344] sm:$0xff] %v629_v3   ;;  %634 = vst [vmem:[#allocation4 + $0x34c] sm:$0xf] %v633_v4  ;;  %v685_v29 = vld [vmem:[%s18669_s11 + $0x3b4] sm:$0xff]  }
 0x100   :  { %636 = vst [vmem:[#allocation4 + $0x350] sm:$0xf] %v635_v5  ;;  %v637_v6 = vld [vmem:[%s18669_s11 + $0x368] sm:$0xf]  ;;  %v639_v7 = vld [vmem:[%s18669_s11 + $0x350] sm:$0xf] }
 0x101   :  { %v641_v8 = vld [vmem:[%s18669_s11 + $0x36c] sm:$0xf]  ;;  %638 = vst [vmem:[#allocation4 + $0x354] sm:$0xf] %v637_v6  ;;  %640 = vst [vmem:[#allocation4 + $0x358] sm:$0xf] %v639_v7 }
 0x102   :  { %642 = vst [vmem:[#allocation4 + $0x35c] sm:$0xf] %v641_v8  ;;  %v643_v9 = vld [vmem:[%s18669_s11 + $0x354] sm:$0xf]  ;;  %v645_v10 = vld [vmem:[%s18669_s11 + $0x370] sm:$0xf] }
 0x103   :  { %v647_v11 = vld [vmem:[%s18669_s11 + $0x358] sm:$0xf]  ;;  %644 = vst [vmem:[#allocation4 + $0x360] sm:$0xf] %v643_v9  ;;  %646 = vst [vmem:[#allocation4 + $0x364] sm:$0xf] %v645_v10 }
 0x104   :  { %648 = vst [vmem:[#allocation4 + $0x368] sm:$0xf] %v647_v11  ;;  %v649_v12 = vld [vmem:[%s18669_s11 + $0x374] sm:$0xf]  ;;  %v651_v13 = vld [vmem:[%s18669_s11 + $0x35c] sm:$0xf] }
 0x105   :  { %v653_v14 = vld [vmem:[%s18669_s11 + $0x378] sm:$0xf]  ;;  %650 = vst [vmem:[#allocation4 + $0x36c] sm:$0xf] %v649_v12  ;;  %652 = vst [vmem:[#allocation4 + $0x370] sm:$0xf] %v651_v13 }
 0x106   :  { %654 = vst [vmem:[#allocation4 + $0x374] sm:$0xf] %v653_v14  ;;  %v655_v15 = vld [vmem:[%s18669_s11 + $0x360] sm:$0xf]  ;;  %v661_v17 = vld [vmem:[%s18669_s11 + $0x39c] sm:$0xf] }
 0x107   :  { %656 = vst [vmem:[#allocation4 + $0x378] sm:$0xf] %v655_v15  ;;  %658 = vst [vmem:[#allocation4 + $0x37c] sm:$0xff] %v657_v16   ;;  %v663_v18 = vld [vmem:[%s18669_s11 + $0x384] sm:$0xf]  ;;  %v713_v42 = vld [vmem:[%s18669_s11 + $0x3ec] sm:$0xff]  }
 0x108   :  { %662 = vst [vmem:[#allocation4 + $0x384] sm:$0xf] %v661_v17  ;;  %v665_v19 = vld [vmem:[%s18669_s11 + $0x3a0] sm:$0xf]  ;;  %v667_v20 = vld [vmem:[%s18669_s11 + $0x388] sm:$0xf] }
 0x109   :  { %664 = vst [vmem:[#allocation4 + $0x388] sm:$0xf] %v663_v18  ;;  %666 = vst [vmem:[#allocation4 + $0x38c] sm:$0xf] %v665_v19  ;;  %v669_v21 = vld [vmem:[%s18669_s11 + $0x3a4] sm:$0xf] }
 0x10a   :  { %668 = vst [vmem:[#allocation4 + $0x390] sm:$0xf] %v667_v20  ;;  %v671_v22 = vld [vmem:[%s18669_s11 + $0x38c] sm:$0xf]  ;;  %v673_v23 = vld [vmem:[%s18669_s11 + $0x3a8] sm:$0xf] }
 0x10b   :  { %670 = vst [vmem:[#allocation4 + $0x394] sm:$0xf] %v669_v21  ;;  %672 = vst [vmem:[#allocation4 + $0x398] sm:$0xf] %v671_v22  ;;  %v675_v24 = vld [vmem:[%s18669_s11 + $0x390] sm:$0xf] }
 0x10c   :  { %674 = vst [vmem:[#allocation4 + $0x39c] sm:$0xf] %v673_v23  ;;  %v677_v25 = vld [vmem:[%s18669_s11 + $0x3ac] sm:$0xf]  ;;  %v679_v26 = vld [vmem:[%s18669_s11 + $0x394] sm:$0xf] }
 0x10d   :  { %676 = vst [vmem:[#allocation4 + $0x3a0] sm:$0xf] %v675_v24  ;;  %678 = vst [vmem:[#allocation4 + $0x3a4] sm:$0xf] %v677_v25  ;;  %v681_v27 = vld [vmem:[%s18669_s11 + $0x3b0] sm:$0xf] }
 0x10e   :  { %680 = vst [vmem:[#allocation4 + $0x3a8] sm:$0xf] %v679_v26  ;;  %v683_v28 = vld [vmem:[%s18669_s11 + $0x398] sm:$0xf]  ;;  %682 = vst [vmem:[#allocation4 + $0x3ac] sm:$0xf] %v681_v27 }
 0x10f   :  { %684 = vst [vmem:[#allocation4 + $0x3b0] sm:$0xf] %v683_v28  ;;  %686 = vst [vmem:[#allocation4 + $0x3b4] sm:$0xff] %v685_v29   ;;  %v689_v30 = vld [vmem:[%s18669_s11 + $0x3d4] sm:$0xf]  ;;  %v741_v55 = vld [vmem:[%s18669_s11 + $0x424] sm:$0xff]  }
 0x110   :  { %v691_v31 = vld [vmem:[%s18669_s11 + $0x3bc] sm:$0xf]  ;;  %v693_v32 = vld [vmem:[%s18669_s11 + $0x3d8] sm:$0xf]  ;;  %690 = vst [vmem:[#allocation4 + $0x3bc] sm:$0xf] %v689_v30 }
 0x111   :  { %692 = vst [vmem:[#allocation4 + $0x3c0] sm:$0xf] %v691_v31  ;;  %694 = vst [vmem:[#allocation4 + $0x3c4] sm:$0xf] %v693_v32  ;;  %v695_v33 = vld [vmem:[%s18669_s11 + $0x3c0] sm:$0xf] }
 0x112   :  { %v697_v34 = vld [vmem:[%s18669_s11 + $0x3dc] sm:$0xf]  ;;  %v699_v35 = vld [vmem:[%s18669_s11 + $0x3c4] sm:$0xf]  ;;  %696 = vst [vmem:[#allocation4 + $0x3c8] sm:$0xf] %v695_v33 }
 0x113   :  { %698 = vst [vmem:[#allocation4 + $0x3cc] sm:$0xf] %v697_v34  ;;  %700 = vst [vmem:[#allocation4 + $0x3d0] sm:$0xf] %v699_v35  ;;  %v701_v36 = vld [vmem:[%s18669_s11 + $0x3e0] sm:$0xf] }
 0x114   :  { %v703_v37 = vld [vmem:[%s18669_s11 + $0x3c8] sm:$0xf]  ;;  %v705_v38 = vld [vmem:[%s18669_s11 + $0x3e4] sm:$0xf]  ;;  %702 = vst [vmem:[#allocation4 + $0x3d4] sm:$0xf] %v701_v36 }
 0x115   :  { %704 = vst [vmem:[#allocation4 + $0x3d8] sm:$0xf] %v703_v37  ;;  %706 = vst [vmem:[#allocation4 + $0x3dc] sm:$0xf] %v705_v38  ;;  %v707_v39 = vld [vmem:[%s18669_s11 + $0x3cc] sm:$0xf] }
 0x116   :  { %v709_v40 = vld [vmem:[%s18669_s11 + $0x3e8] sm:$0xf]  ;;  %v711_v41 = vld [vmem:[%s18669_s11 + $0x3d0] sm:$0xf]  ;;  %708 = vst [vmem:[#allocation4 + $0x3e0] sm:$0xf] %v707_v39 }
 0x117   :  { %710 = vst [vmem:[#allocation4 + $0x3e4] sm:$0xf] %v709_v40  ;;  %712 = vst [vmem:[#allocation4 + $0x3e8] sm:$0xf] %v711_v41  ;;  %v717_v43 = vld [vmem:[%s18669_s11 + $0x40c] sm:$0xf] }
 0x118   :  { %v719_v44 = vld [vmem:[%s18669_s11 + $0x3f4] sm:$0xf]  ;;  %714 = vst [vmem:[#allocation4 + $0x3ec] sm:$0xff] %v713_v42   ;;  %718 = vst [vmem:[#allocation4 + $0x3f4] sm:$0xf] %v717_v43  ;;  %v769_v4 = vld [vmem:[%s18669_s11 + $0x45c] sm:$0xff]  }
 0x119   :  { %720 = vst [vmem:[#allocation4 + $0x3f8] sm:$0xf] %v719_v44  ;;  %v721_v45 = vld [vmem:[%s18669_s11 + $0x410] sm:$0xf]  ;;  %v723_v46 = vld [vmem:[%s18669_s11 + $0x3f8] sm:$0xf] }
 0x11a   :  { %v725_v47 = vld [vmem:[%s18669_s11 + $0x414] sm:$0xf]  ;;  %722 = vst [vmem:[#allocation4 + $0x3fc] sm:$0xf] %v721_v45  ;;  %724 = vst [vmem:[#allocation4 + $0x400] sm:$0xf] %v723_v46 }
 0x11b   :  { %726 = vst [vmem:[#allocation4 + $0x404] sm:$0xf] %v725_v47  ;;  %v727_v48 = vld [vmem:[%s18669_s11 + $0x3fc] sm:$0xf]  ;;  %v729_v49 = vld [vmem:[%s18669_s11 + $0x418] sm:$0xf] }
 0x11c   :  { %v731_v50 = vld [vmem:[%s18669_s11 + $0x400] sm:$0xf]  ;;  %728 = vst [vmem:[#allocation4 + $0x408] sm:$0xf] %v727_v48  ;;  %730 = vst [vmem:[#allocation4 + $0x40c] sm:$0xf] %v729_v49 }
 0x11d   :  { %732 = vst [vmem:[#allocation4 + $0x410] sm:$0xf] %v731_v50  ;;  %v733_v51 = vld [vmem:[%s18669_s11 + $0x41c] sm:$0xf]  ;;  %v735_v52 = vld [vmem:[%s18669_s11 + $0x404] sm:$0xf] }
 0x11e   :  { %v737_v53 = vld [vmem:[%s18669_s11 + $0x420] sm:$0xf]  ;;  %734 = vst [vmem:[#allocation4 + $0x414] sm:$0xf] %v733_v51  ;;  %736 = vst [vmem:[#allocation4 + $0x418] sm:$0xf] %v735_v52 }
 0x11f   :  { %738 = vst [vmem:[#allocation4 + $0x41c] sm:$0xf] %v737_v53  ;;  %v739_v54 = vld [vmem:[%s18669_s11 + $0x408] sm:$0xf]  ;;  %v745_v56 = vld [vmem:[%s18669_s11 + $0x444] sm:$0xf] }
 0x120   :  { %740 = vst [vmem:[#allocation4 + $0x420] sm:$0xf] %v739_v54  ;;  %742 = vst [vmem:[#allocation4 + $0x424] sm:$0xff] %v741_v55   ;;  %v747_v57 = vld [vmem:[%s18669_s11 + $0x42c] sm:$0xf]  ;;  %v797_v17 = vld [vmem:[%s18669_s11 + $0x494] sm:$0xff]  }
 0x121   :  { %746 = vst [vmem:[#allocation4 + $0x42c] sm:$0xf] %v745_v56  ;;  %v749_v58 = vld [vmem:[%s18669_s11 + $0x448] sm:$0xf]  ;;  %v751_v59 = vld [vmem:[%s18669_s11 + $0x430] sm:$0xf] }
 0x122   :  { %748 = vst [vmem:[#allocation4 + $0x430] sm:$0xf] %v747_v57  ;;  %750 = vst [vmem:[#allocation4 + $0x434] sm:$0xf] %v749_v58  ;;  %v753_v60 = vld [vmem:[%s18669_s11 + $0x44c] sm:$0xf] }
 0x123   :  { %752 = vst [vmem:[#allocation4 + $0x438] sm:$0xf] %v751_v59  ;;  %v755_v61 = vld [vmem:[%s18669_s11 + $0x434] sm:$0xf]  ;;  %v757_v62 = vld [vmem:[%s18669_s11 + $0x450] sm:$0xf] }
 0x124   :  { %754 = vst [vmem:[#allocation4 + $0x43c] sm:$0xf] %v753_v60  ;;  %756 = vst [vmem:[#allocation4 + $0x440] sm:$0xf] %v755_v61  ;;  %v759_v63 = vld [vmem:[%s18669_s11 + $0x438] sm:$0xf] }
 0x125   :  { %758 = vst [vmem:[#allocation4 + $0x444] sm:$0xf] %v757_v62  ;;  %v761_v0 = vld [vmem:[%s18669_s11 + $0x454] sm:$0xf]  ;;  %v763_v1 = vld [vmem:[%s18669_s11 + $0x43c] sm:$0xf] }
 0x126   :  { %760 = vst [vmem:[#allocation4 + $0x448] sm:$0xf] %v759_v63  ;;  %762 = vst [vmem:[#allocation4 + $0x44c] sm:$0xf] %v761_v0  ;;  %v765_v2 = vld [vmem:[%s18669_s11 + $0x458] sm:$0xf] }
 0x127   :  { %764 = vst [vmem:[#allocation4 + $0x450] sm:$0xf] %v763_v1  ;;  %v767_v3 = vld [vmem:[%s18669_s11 + $0x440] sm:$0xf]  ;;  %766 = vst [vmem:[#allocation4 + $0x454] sm:$0xf] %v765_v2 }
 0x128   :  { %768 = vst [vmem:[#allocation4 + $0x458] sm:$0xf] %v767_v3  ;;  %770 = vst [vmem:[#allocation4 + $0x45c] sm:$0xff] %v769_v4   ;;  %v773_v5 = vld [vmem:[%s18669_s11 + $0x47c] sm:$0xf]  ;;  %v825_v30 = vld [vmem:[%s18669_s11 + $0x4cc] sm:$0xff]  }
 0x129   :  { %v775_v6 = vld [vmem:[%s18669_s11 + $0x464] sm:$0xf]  ;;  %v777_v7 = vld [vmem:[%s18669_s11 + $0x480] sm:$0xf]  ;;  %774 = vst [vmem:[#allocation4 + $0x464] sm:$0xf] %v773_v5 }
 0x12a   :  { %776 = vst [vmem:[#allocation4 + $0x468] sm:$0xf] %v775_v6  ;;  %778 = vst [vmem:[#allocation4 + $0x46c] sm:$0xf] %v777_v7  ;;  %v779_v8 = vld [vmem:[%s18669_s11 + $0x468] sm:$0xf] }
 0x12b   :  { %v781_v9 = vld [vmem:[%s18669_s11 + $0x484] sm:$0xf]  ;;  %v783_v10 = vld [vmem:[%s18669_s11 + $0x46c] sm:$0xf]  ;;  %780 = vst [vmem:[#allocation4 + $0x470] sm:$0xf] %v779_v8 }
 0x12c   :  { %782 = vst [vmem:[#allocation4 + $0x474] sm:$0xf] %v781_v9  ;;  %784 = vst [vmem:[#allocation4 + $0x478] sm:$0xf] %v783_v10  ;;  %v785_v11 = vld [vmem:[%s18669_s11 + $0x488] sm:$0xf] }
 0x12d   :  { %v787_v12 = vld [vmem:[%s18669_s11 + $0x470] sm:$0xf]  ;;  %v789_v13 = vld [vmem:[%s18669_s11 + $0x48c] sm:$0xf]  ;;  %786 = vst [vmem:[#allocation4 + $0x47c] sm:$0xf] %v785_v11 }
 0x12e   :  { %788 = vst [vmem:[#allocation4 + $0x480] sm:$0xf] %v787_v12  ;;  %790 = vst [vmem:[#allocation4 + $0x484] sm:$0xf] %v789_v13  ;;  %v791_v14 = vld [vmem:[%s18669_s11 + $0x474] sm:$0xf] }
 0x12f   :  { %v793_v15 = vld [vmem:[%s18669_s11 + $0x490] sm:$0xf]  ;;  %v795_v16 = vld [vmem:[%s18669_s11 + $0x478] sm:$0xf]  ;;  %792 = vst [vmem:[#allocation4 + $0x488] sm:$0xf] %v791_v14 }
 0x130   :  { %794 = vst [vmem:[#allocation4 + $0x48c] sm:$0xf] %v793_v15  ;;  %796 = vst [vmem:[#allocation4 + $0x490] sm:$0xf] %v795_v16  ;;  %v801_v18 = vld [vmem:[%s18669_s11 + $0x4b4] sm:$0xf] }
 0x131   :  { %v803_v19 = vld [vmem:[%s18669_s11 + $0x49c] sm:$0xf]  ;;  %798 = vst [vmem:[#allocation4 + $0x494] sm:$0xff] %v797_v17   ;;  %802 = vst [vmem:[#allocation4 + $0x49c] sm:$0xf] %v801_v18  ;;  %v853_v43 = vld [vmem:[%s18669_s11 + $0x504] sm:$0xff]  }
 0x132   :  { %804 = vst [vmem:[#allocation4 + $0x4a0] sm:$0xf] %v803_v19  ;;  %v805_v20 = vld [vmem:[%s18669_s11 + $0x4b8] sm:$0xf]  ;;  %v807_v21 = vld [vmem:[%s18669_s11 + $0x4a0] sm:$0xf] }
 0x133   :  { %v809_v22 = vld [vmem:[%s18669_s11 + $0x4bc] sm:$0xf]  ;;  %806 = vst [vmem:[#allocation4 + $0x4a4] sm:$0xf] %v805_v20  ;;  %808 = vst [vmem:[#allocation4 + $0x4a8] sm:$0xf] %v807_v21 }
 0x134   :  { %810 = vst [vmem:[#allocation4 + $0x4ac] sm:$0xf] %v809_v22  ;;  %v811_v23 = vld [vmem:[%s18669_s11 + $0x4a4] sm:$0xf]  ;;  %v813_v24 = vld [vmem:[%s18669_s11 + $0x4c0] sm:$0xf] }
 0x135   :  { %v815_v25 = vld [vmem:[%s18669_s11 + $0x4a8] sm:$0xf]  ;;  %812 = vst [vmem:[#allocation4 + $0x4b0] sm:$0xf] %v811_v23  ;;  %814 = vst [vmem:[#allocation4 + $0x4b4] sm:$0xf] %v813_v24 }
 0x136   :  { %816 = vst [vmem:[#allocation4 + $0x4b8] sm:$0xf] %v815_v25  ;;  %v817_v26 = vld [vmem:[%s18669_s11 + $0x4c4] sm:$0xf]  ;;  %v819_v27 = vld [vmem:[%s18669_s11 + $0x4ac] sm:$0xf] }
 0x137   :  { %v821_v28 = vld [vmem:[%s18669_s11 + $0x4c8] sm:$0xf]  ;;  %818 = vst [vmem:[#allocation4 + $0x4bc] sm:$0xf] %v817_v26  ;;  %820 = vst [vmem:[#allocation4 + $0x4c0] sm:$0xf] %v819_v27 }
 0x138   :  { %822 = vst [vmem:[#allocation4 + $0x4c4] sm:$0xf] %v821_v28  ;;  %v823_v29 = vld [vmem:[%s18669_s11 + $0x4b0] sm:$0xf]  ;;  %v829_v31 = vld [vmem:[%s18669_s11 + $0x4ec] sm:$0xf] }
 0x139   :  { %824 = vst [vmem:[#allocation4 + $0x4c8] sm:$0xf] %v823_v29  ;;  %826 = vst [vmem:[#allocation4 + $0x4cc] sm:$0xff] %v825_v30   ;;  %v831_v32 = vld [vmem:[%s18669_s11 + $0x4d4] sm:$0xf]  ;;  %v881_v56 = vld [vmem:[%s18669_s11 + $0x53c] sm:$0xff]  }
 0x13a   :  { %830 = vst [vmem:[#allocation4 + $0x4d4] sm:$0xf] %v829_v31  ;;  %v833_v33 = vld [vmem:[%s18669_s11 + $0x4f0] sm:$0xf]  ;;  %v835_v34 = vld [vmem:[%s18669_s11 + $0x4d8] sm:$0xf] }
 0x13b   :  { %832 = vst [vmem:[#allocation4 + $0x4d8] sm:$0xf] %v831_v32  ;;  %834 = vst [vmem:[#allocation4 + $0x4dc] sm:$0xf] %v833_v33  ;;  %v837_v35 = vld [vmem:[%s18669_s11 + $0x4f4] sm:$0xf] }
 0x13c   :  { %836 = vst [vmem:[#allocation4 + $0x4e0] sm:$0xf] %v835_v34  ;;  %v839_v36 = vld [vmem:[%s18669_s11 + $0x4dc] sm:$0xf]  ;;  %v841_v37 = vld [vmem:[%s18669_s11 + $0x4f8] sm:$0xf] }
 0x13d   :  { %838 = vst [vmem:[#allocation4 + $0x4e4] sm:$0xf] %v837_v35  ;;  %840 = vst [vmem:[#allocation4 + $0x4e8] sm:$0xf] %v839_v36  ;;  %v843_v38 = vld [vmem:[%s18669_s11 + $0x4e0] sm:$0xf] }
 0x13e   :  { %842 = vst [vmem:[#allocation4 + $0x4ec] sm:$0xf] %v841_v37  ;;  %v845_v39 = vld [vmem:[%s18669_s11 + $0x4fc] sm:$0xf]  ;;  %v847_v40 = vld [vmem:[%s18669_s11 + $0x4e4] sm:$0xf] }
 0x13f   :  { %844 = vst [vmem:[#allocation4 + $0x4f0] sm:$0xf] %v843_v38  ;;  %846 = vst [vmem:[#allocation4 + $0x4f4] sm:$0xf] %v845_v39  ;;  %v849_v41 = vld [vmem:[%s18669_s11 + $0x500] sm:$0xf] }
 0x140   :  { %848 = vst [vmem:[#allocation4 + $0x4f8] sm:$0xf] %v847_v40  ;;  %v851_v42 = vld [vmem:[%s18669_s11 + $0x4e8] sm:$0xf]  ;;  %850 = vst [vmem:[#allocation4 + $0x4fc] sm:$0xf] %v849_v41 }
 0x141   :  { %852 = vst [vmem:[#allocation4 + $0x500] sm:$0xf] %v851_v42  ;;  %854 = vst [vmem:[#allocation4 + $0x504] sm:$0xff] %v853_v43   ;;  %v857_v44 = vld [vmem:[%s18669_s11 + $0x524] sm:$0xf]  ;;  %v909_v5 = vld [vmem:[%s18669_s11 + $0x574] sm:$0xff]  }
 0x142   :  { %v859_v45 = vld [vmem:[%s18669_s11 + $0x50c] sm:$0xf]  ;;  %v861_v46 = vld [vmem:[%s18669_s11 + $0x528] sm:$0xf]  ;;  %858 = vst [vmem:[#allocation4 + $0x50c] sm:$0xf] %v857_v44 }
 0x143   :  { %860 = vst [vmem:[#allocation4 + $0x510] sm:$0xf] %v859_v45  ;;  %862 = vst [vmem:[#allocation4 + $0x514] sm:$0xf] %v861_v46  ;;  %v863_v47 = vld [vmem:[%s18669_s11 + $0x510] sm:$0xf] }
 0x144   :  { %v865_v48 = vld [vmem:[%s18669_s11 + $0x52c] sm:$0xf]  ;;  %v867_v49 = vld [vmem:[%s18669_s11 + $0x514] sm:$0xf]  ;;  %864 = vst [vmem:[#allocation4 + $0x518] sm:$0xf] %v863_v47 }
 0x145   :  { %866 = vst [vmem:[#allocation4 + $0x51c] sm:$0xf] %v865_v48  ;;  %868 = vst [vmem:[#allocation4 + $0x520] sm:$0xf] %v867_v49  ;;  %v869_v50 = vld [vmem:[%s18669_s11 + $0x530] sm:$0xf] }
 0x146   :  { %v871_v51 = vld [vmem:[%s18669_s11 + $0x518] sm:$0xf]  ;;  %v873_v52 = vld [vmem:[%s18669_s11 + $0x534] sm:$0xf]  ;;  %870 = vst [vmem:[#allocation4 + $0x524] sm:$0xf] %v869_v50 }
 0x147   :  { %872 = vst [vmem:[#allocation4 + $0x528] sm:$0xf] %v871_v51  ;;  %874 = vst [vmem:[#allocation4 + $0x52c] sm:$0xf] %v873_v52  ;;  %v875_v53 = vld [vmem:[%s18669_s11 + $0x51c] sm:$0xf] }
 0x148   :  { %v877_v54 = vld [vmem:[%s18669_s11 + $0x538] sm:$0xf]  ;;  %v879_v55 = vld [vmem:[%s18669_s11 + $0x520] sm:$0xf]  ;;  %876 = vst [vmem:[#allocation4 + $0x530] sm:$0xf] %v875_v53 }
 0x149   :  { %878 = vst [vmem:[#allocation4 + $0x534] sm:$0xf] %v877_v54  ;;  %880 = vst [vmem:[#allocation4 + $0x538] sm:$0xf] %v879_v55  ;;  %v885_v57 = vld [vmem:[%s18669_s11 + $0x55c] sm:$0xf] }
 0x14a   :  { %v887_v58 = vld [vmem:[%s18669_s11 + $0x544] sm:$0xf]  ;;  %882 = vst [vmem:[#allocation4 + $0x53c] sm:$0xff] %v881_v56   ;;  %886 = vst [vmem:[#allocation4 + $0x544] sm:$0xf] %v885_v57  ;;  %v937_v18 = vld [vmem:[%s18669_s11 + $0x5ac] sm:$0xff]  }
 0x14b   :  { %888 = vst [vmem:[#allocation4 + $0x548] sm:$0xf] %v887_v58  ;;  %v889_v59 = vld [vmem:[%s18669_s11 + $0x560] sm:$0xf]  ;;  %v891_v60 = vld [vmem:[%s18669_s11 + $0x548] sm:$0xf] }
 0x14c   :  { %v893_v61 = vld [vmem:[%s18669_s11 + $0x564] sm:$0xf]  ;;  %890 = vst [vmem:[#allocation4 + $0x54c] sm:$0xf] %v889_v59  ;;  %892 = vst [vmem:[#allocation4 + $0x550] sm:$0xf] %v891_v60 }
 0x14d   :  { %894 = vst [vmem:[#allocation4 + $0x554] sm:$0xf] %v893_v61  ;;  %v895_v62 = vld [vmem:[%s18669_s11 + $0x54c] sm:$0xf]  ;;  %v897_v63 = vld [vmem:[%s18669_s11 + $0x568] sm:$0xf] }
 0x14e   :  { %v899_v0 = vld [vmem:[%s18669_s11 + $0x550] sm:$0xf]  ;;  %896 = vst [vmem:[#allocation4 + $0x558] sm:$0xf] %v895_v62  ;;  %898 = vst [vmem:[#allocation4 + $0x55c] sm:$0xf] %v897_v63 }
 0x14f   :  { %900 = vst [vmem:[#allocation4 + $0x560] sm:$0xf] %v899_v0  ;;  %v901_v1 = vld [vmem:[%s18669_s11 + $0x56c] sm:$0xf]  ;;  %v903_v2 = vld [vmem:[%s18669_s11 + $0x554] sm:$0xf] }
 0x150   :  { %v905_v3 = vld [vmem:[%s18669_s11 + $0x570] sm:$0xf]  ;;  %902 = vst [vmem:[#allocation4 + $0x564] sm:$0xf] %v901_v1  ;;  %904 = vst [vmem:[#allocation4 + $0x568] sm:$0xf] %v903_v2 }
 0x151   :  { %906 = vst [vmem:[#allocation4 + $0x56c] sm:$0xf] %v905_v3  ;;  %v907_v4 = vld [vmem:[%s18669_s11 + $0x558] sm:$0xf]  ;;  %v913_v6 = vld [vmem:[%s18669_s11 + $0x594] sm:$0xf] }
 0x152   :  { %908 = vst [vmem:[#allocation4 + $0x570] sm:$0xf] %v907_v4  ;;  %910 = vst [vmem:[#allocation4 + $0x574] sm:$0xff] %v909_v5   ;;  %v915_v7 = vld [vmem:[%s18669_s11 + $0x57c] sm:$0xf]  ;;  %v965_v31 = vld [vmem:[%s18669_s11 + $0x5e4] sm:$0xff]  }
 0x153   :  { %914 = vst [vmem:[#allocation4 + $0x57c] sm:$0xf] %v913_v6  ;;  %v917_v8 = vld [vmem:[%s18669_s11 + $0x598] sm:$0xf]  ;;  %v919_v9 = vld [vmem:[%s18669_s11 + $0x580] sm:$0xf] }
 0x154   :  { %916 = vst [vmem:[#allocation4 + $0x580] sm:$0xf] %v915_v7  ;;  %918 = vst [vmem:[#allocation4 + $0x584] sm:$0xf] %v917_v8  ;;  %v921_v10 = vld [vmem:[%s18669_s11 + $0x59c] sm:$0xf] }
 0x155   :  { %920 = vst [vmem:[#allocation4 + $0x588] sm:$0xf] %v919_v9  ;;  %v923_v11 = vld [vmem:[%s18669_s11 + $0x584] sm:$0xf]  ;;  %v925_v12 = vld [vmem:[%s18669_s11 + $0x5a0] sm:$0xf] }
 0x156   :  { %922 = vst [vmem:[#allocation4 + $0x58c] sm:$0xf] %v921_v10  ;;  %924 = vst [vmem:[#allocation4 + $0x590] sm:$0xf] %v923_v11  ;;  %v927_v13 = vld [vmem:[%s18669_s11 + $0x588] sm:$0xf] }
 0x157   :  { %926 = vst [vmem:[#allocation4 + $0x594] sm:$0xf] %v925_v12  ;;  %v929_v14 = vld [vmem:[%s18669_s11 + $0x5a4] sm:$0xf]  ;;  %v931_v15 = vld [vmem:[%s18669_s11 + $0x58c] sm:$0xf] }
 0x158   :  { %928 = vst [vmem:[#allocation4 + $0x598] sm:$0xf] %v927_v13  ;;  %930 = vst [vmem:[#allocation4 + $0x59c] sm:$0xf] %v929_v14  ;;  %v933_v16 = vld [vmem:[%s18669_s11 + $0x5a8] sm:$0xf] }
 0x159   :  { %932 = vst [vmem:[#allocation4 + $0x5a0] sm:$0xf] %v931_v15  ;;  %v935_v17 = vld [vmem:[%s18669_s11 + $0x590] sm:$0xf]  ;;  %934 = vst [vmem:[#allocation4 + $0x5a4] sm:$0xf] %v933_v16 }
 0x15a   :  { %936 = vst [vmem:[#allocation4 + $0x5a8] sm:$0xf] %v935_v17  ;;  %938 = vst [vmem:[#allocation4 + $0x5ac] sm:$0xff] %v937_v18   ;;  %v941_v19 = vld [vmem:[%s18669_s11 + $0x5cc] sm:$0xf]  ;;  %v993_v44 = vld [vmem:[%s18669_s11 + $0x61c] sm:$0xff]  }
 0x15b   :  { %v943_v20 = vld [vmem:[%s18669_s11 + $0x5b4] sm:$0xf]  ;;  %v945_v21 = vld [vmem:[%s18669_s11 + $0x5d0] sm:$0xf]  ;;  %942 = vst [vmem:[#allocation4 + $0x5b4] sm:$0xf] %v941_v19 }
 0x15c   :  { %944 = vst [vmem:[#allocation4 + $0x5b8] sm:$0xf] %v943_v20  ;;  %946 = vst [vmem:[#allocation4 + $0x5bc] sm:$0xf] %v945_v21  ;;  %v947_v22 = vld [vmem:[%s18669_s11 + $0x5b8] sm:$0xf] }
 0x15d   :  { %v949_v23 = vld [vmem:[%s18669_s11 + $0x5d4] sm:$0xf]  ;;  %v951_v24 = vld [vmem:[%s18669_s11 + $0x5bc] sm:$0xf]  ;;  %948 = vst [vmem:[#allocation4 + $0x5c0] sm:$0xf] %v947_v22 }
 0x15e   :  { %950 = vst [vmem:[#allocation4 + $0x5c4] sm:$0xf] %v949_v23  ;;  %952 = vst [vmem:[#allocation4 + $0x5c8] sm:$0xf] %v951_v24  ;;  %v953_v25 = vld [vmem:[%s18669_s11 + $0x5d8] sm:$0xf] }
 0x15f   :  { %v955_v26 = vld [vmem:[%s18669_s11 + $0x5c0] sm:$0xf]  ;;  %v957_v27 = vld [vmem:[%s18669_s11 + $0x5dc] sm:$0xf]  ;;  %954 = vst [vmem:[#allocation4 + $0x5cc] sm:$0xf] %v953_v25 }
 0x160   :  { %956 = vst [vmem:[#allocation4 + $0x5d0] sm:$0xf] %v955_v26  ;;  %958 = vst [vmem:[#allocation4 + $0x5d4] sm:$0xf] %v957_v27  ;;  %v959_v28 = vld [vmem:[%s18669_s11 + $0x5c4] sm:$0xf] }
 0x161   :  { %v961_v29 = vld [vmem:[%s18669_s11 + $0x5e0] sm:$0xf]  ;;  %v963_v30 = vld [vmem:[%s18669_s11 + $0x5c8] sm:$0xf]  ;;  %960 = vst [vmem:[#allocation4 + $0x5d8] sm:$0xf] %v959_v28 }
 0x162   :  { %962 = vst [vmem:[#allocation4 + $0x5dc] sm:$0xf] %v961_v29  ;;  %964 = vst [vmem:[#allocation4 + $0x5e0] sm:$0xf] %v963_v30  ;;  %v969_v32 = vld [vmem:[%s18669_s11 + $0x604] sm:$0xf] }
 0x163   :  { %v971_v33 = vld [vmem:[%s18669_s11 + $0x5ec] sm:$0xf]  ;;  %966 = vst [vmem:[#allocation4 + $0x5e4] sm:$0xff] %v965_v31   ;;  %970 = vst [vmem:[#allocation4 + $0x5ec] sm:$0xf] %v969_v32  ;;  %v1021_v57 = vld [vmem:[%s18669_s11 + $0x654] sm:$0xff]  }
 0x164   :  { %972 = vst [vmem:[#allocation4 + $0x5f0] sm:$0xf] %v971_v33  ;;  %v973_v34 = vld [vmem:[%s18669_s11 + $0x608] sm:$0xf]  ;;  %v975_v35 = vld [vmem:[%s18669_s11 + $0x5f0] sm:$0xf] }
 0x165   :  { %v977_v36 = vld [vmem:[%s18669_s11 + $0x60c] sm:$0xf]  ;;  %974 = vst [vmem:[#allocation4 + $0x5f4] sm:$0xf] %v973_v34  ;;  %976 = vst [vmem:[#allocation4 + $0x5f8] sm:$0xf] %v975_v35 }
 0x166   :  { %978 = vst [vmem:[#allocation4 + $0x5fc] sm:$0xf] %v977_v36  ;;  %v979_v37 = vld [vmem:[%s18669_s11 + $0x5f4] sm:$0xf]  ;;  %v981_v38 = vld [vmem:[%s18669_s11 + $0x610] sm:$0xf] }
 0x167   :  { %v983_v39 = vld [vmem:[%s18669_s11 + $0x5f8] sm:$0xf]  ;;  %980 = vst [vmem:[#allocation4 + $0x600] sm:$0xf] %v979_v37  ;;  %982 = vst [vmem:[#allocation4 + $0x604] sm:$0xf] %v981_v38 }
 0x168   :  { %984 = vst [vmem:[#allocation4 + $0x608] sm:$0xf] %v983_v39  ;;  %v985_v40 = vld [vmem:[%s18669_s11 + $0x614] sm:$0xf]  ;;  %v987_v41 = vld [vmem:[%s18669_s11 + $0x5fc] sm:$0xf] }
 0x169   :  { %v989_v42 = vld [vmem:[%s18669_s11 + $0x618] sm:$0xf]  ;;  %986 = vst [vmem:[#allocation4 + $0x60c] sm:$0xf] %v985_v40  ;;  %988 = vst [vmem:[#allocation4 + $0x610] sm:$0xf] %v987_v41 }
 0x16a   :  { %990 = vst [vmem:[#allocation4 + $0x614] sm:$0xf] %v989_v42  ;;  %v991_v43 = vld [vmem:[%s18669_s11 + $0x600] sm:$0xf]  ;;  %v997_v45 = vld [vmem:[%s18669_s11 + $0x63c] sm:$0xf] }
 0x16b   :  { %992 = vst [vmem:[#allocation4 + $0x618] sm:$0xf] %v991_v43  ;;  %994 = vst [vmem:[#allocation4 + $0x61c] sm:$0xff] %v993_v44   ;;  %v999_v46 = vld [vmem:[%s18669_s11 + $0x624] sm:$0xf]  ;;  %v1049_v6 = vld [vmem:[%s18669_s11 + $0x68c] sm:$0xff]  }
 0x16c   :  { %998 = vst [vmem:[#allocation4 + $0x624] sm:$0xf] %v997_v45  ;;  %v1001_v47 = vld [vmem:[%s18669_s11 + $0x640] sm:$0xf]  ;;  %v1003_v48 = vld [vmem:[%s18669_s11 + $0x628] sm:$0xf] }
 0x16d   :  { %1000 = vst [vmem:[#allocation4 + $0x628] sm:$0xf] %v999_v46  ;;  %1002 = vst [vmem:[#allocation4 + $0x62c] sm:$0xf] %v1001_v47  ;;  %v1005_v49 = vld [vmem:[%s18669_s11 + $0x644] sm:$0xf] }
 0x16e   :  { %1004 = vst [vmem:[#allocation4 + $0x630] sm:$0xf] %v1003_v48  ;;  %v1007_v50 = vld [vmem:[%s18669_s11 + $0x62c] sm:$0xf]  ;;  %v1009_v51 = vld [vmem:[%s18669_s11 + $0x648] sm:$0xf] }
 0x16f   :  { %1006 = vst [vmem:[#allocation4 + $0x634] sm:$0xf] %v1005_v49  ;;  %1008 = vst [vmem:[#allocation4 + $0x638] sm:$0xf] %v1007_v50  ;;  %v1011_v52 = vld [vmem:[%s18669_s11 + $0x630] sm:$0xf] }
 0x170   :  { %1010 = vst [vmem:[#allocation4 + $0x63c] sm:$0xf] %v1009_v51  ;;  %v1013_v53 = vld [vmem:[%s18669_s11 + $0x64c] sm:$0xf]  ;;  %v1015_v54 = vld [vmem:[%s18669_s11 + $0x634] sm:$0xf] }
 0x171   :  { %1012 = vst [vmem:[#allocation4 + $0x640] sm:$0xf] %v1011_v52  ;;  %1014 = vst [vmem:[#allocation4 + $0x644] sm:$0xf] %v1013_v53  ;;  %v1017_v55 = vld [vmem:[%s18669_s11 + $0x650] sm:$0xf] }
 0x172   :  { %1016 = vst [vmem:[#allocation4 + $0x648] sm:$0xf] %v1015_v54  ;;  %v1019_v56 = vld [vmem:[%s18669_s11 + $0x638] sm:$0xf]  ;;  %1018 = vst [vmem:[#allocation4 + $0x64c] sm:$0xf] %v1017_v55 }
 0x173   :  { %1020 = vst [vmem:[#allocation4 + $0x650] sm:$0xf] %v1019_v56  ;;  %1022 = vst [vmem:[#allocation4 + $0x654] sm:$0xff] %v1021_v57   ;;  %v1025_v58 = vld [vmem:[%s18669_s11 + $0x674] sm:$0xf]  ;;  %v1077_v19 = vld [vmem:[%s18669_s11 + $0x6c4] sm:$0xff]  }
 0x174   :  { %v1027_v59 = vld [vmem:[%s18669_s11 + $0x65c] sm:$0xf]  ;;  %v1029_v60 = vld [vmem:[%s18669_s11 + $0x678] sm:$0xf]  ;;  %1026 = vst [vmem:[#allocation4 + $0x65c] sm:$0xf] %v1025_v58 }
 0x175   :  { %1028 = vst [vmem:[#allocation4 + $0x660] sm:$0xf] %v1027_v59  ;;  %1030 = vst [vmem:[#allocation4 + $0x664] sm:$0xf] %v1029_v60  ;;  %v1031_v61 = vld [vmem:[%s18669_s11 + $0x660] sm:$0xf] }
 0x176   :  { %v1033_v62 = vld [vmem:[%s18669_s11 + $0x67c] sm:$0xf]  ;;  %v1035_v63 = vld [vmem:[%s18669_s11 + $0x664] sm:$0xf]  ;;  %1032 = vst [vmem:[#allocation4 + $0x668] sm:$0xf] %v1031_v61 }
 0x177   :  { %1034 = vst [vmem:[#allocation4 + $0x66c] sm:$0xf] %v1033_v62  ;;  %1036 = vst [vmem:[#allocation4 + $0x670] sm:$0xf] %v1035_v63  ;;  %v1037_v0 = vld [vmem:[%s18669_s11 + $0x680] sm:$0xf] }
 0x178   :  { %v1039_v1 = vld [vmem:[%s18669_s11 + $0x668] sm:$0xf]  ;;  %v1041_v2 = vld [vmem:[%s18669_s11 + $0x684] sm:$0xf]  ;;  %1038 = vst [vmem:[#allocation4 + $0x674] sm:$0xf] %v1037_v0 }
 0x179   :  { %1040 = vst [vmem:[#allocation4 + $0x678] sm:$0xf] %v1039_v1  ;;  %1042 = vst [vmem:[#allocation4 + $0x67c] sm:$0xf] %v1041_v2  ;;  %v1043_v3 = vld [vmem:[%s18669_s11 + $0x66c] sm:$0xf] }
 0x17a   :  { %v1045_v4 = vld [vmem:[%s18669_s11 + $0x688] sm:$0xf]  ;;  %v1047_v5 = vld [vmem:[%s18669_s11 + $0x670] sm:$0xf]  ;;  %1044 = vst [vmem:[#allocation4 + $0x680] sm:$0xf] %v1043_v3 }
 0x17b   :  { %1046 = vst [vmem:[#allocation4 + $0x684] sm:$0xf] %v1045_v4  ;;  %1048 = vst [vmem:[#allocation4 + $0x688] sm:$0xf] %v1047_v5  ;;  %v1053_v7 = vld [vmem:[%s18669_s11 + $0x6ac] sm:$0xf] }
 0x17c   :  { %v1055_v8 = vld [vmem:[%s18669_s11 + $0x694] sm:$0xf]  ;;  %1050 = vst [vmem:[#allocation4 + $0x68c] sm:$0xff] %v1049_v6   ;;  %1054 = vst [vmem:[#allocation4 + $0x694] sm:$0xf] %v1053_v7 }
 0x17d   :  { %1056 = vst [vmem:[#allocation4 + $0x698] sm:$0xf] %v1055_v8  ;;  %v1057_v9 = vld [vmem:[%s18669_s11 + $0x6b0] sm:$0xf]  ;;  %v1059_v10 = vld [vmem:[%s18669_s11 + $0x698] sm:$0xf] }
 0x17e   :  { %v1061_v11 = vld [vmem:[%s18669_s11 + $0x6b4] sm:$0xf]  ;;  %1058 = vst [vmem:[#allocation4 + $0x69c] sm:$0xf] %v1057_v9  ;;  %1060 = vst [vmem:[#allocation4 + $0x6a0] sm:$0xf] %v1059_v10 }
 0x17f   :  { %1062 = vst [vmem:[#allocation4 + $0x6a4] sm:$0xf] %v1061_v11  ;;  %v1063_v12 = vld [vmem:[%s18669_s11 + $0x69c] sm:$0xf]  ;;  %v1065_v13 = vld [vmem:[%s18669_s11 + $0x6b8] sm:$0xf] }
 0x180   :  { %v1067_v14 = vld [vmem:[%s18669_s11 + $0x6a0] sm:$0xf]  ;;  %1064 = vst [vmem:[#allocation4 + $0x6a8] sm:$0xf] %v1063_v12  ;;  %1066 = vst [vmem:[#allocation4 + $0x6ac] sm:$0xf] %v1065_v13 }
 0x181   :  { %1068 = vst [vmem:[#allocation4 + $0x6b0] sm:$0xf] %v1067_v14  ;;  %v1069_v15 = vld [vmem:[%s18669_s11 + $0x6bc] sm:$0xf]  ;;  %v1071_v16 = vld [vmem:[%s18669_s11 + $0x6a4] sm:$0xf] }
 0x182   :  { %v1073_v17 = vld [vmem:[%s18669_s11 + $0x6c0] sm:$0xf]  ;;  %1070 = vst [vmem:[#allocation4 + $0x6b4] sm:$0xf] %v1069_v15  ;;  %1072 = vst [vmem:[#allocation4 + $0x6b8] sm:$0xf] %v1071_v16 }
 0x183   :  { %1074 = vst [vmem:[#allocation4 + $0x6bc] sm:$0xf] %v1073_v17  ;;  %v1075_v18 = vld [vmem:[%s18669_s11 + $0x6a8] sm:$0xf]  ;;  %v1081_v20 = vld [vmem:[%s18669_s11 + $0x6e4] sm:$0xf] }
 0x184   :  { %1076 = vst [vmem:[#allocation4 + $0x6c0] sm:$0xf] %v1075_v18  ;;  %1078 = vst [vmem:[#allocation4 + $0x6c4] sm:$0xff] %v1077_v19   ;;  %v1083_v21 = vld [vmem:[%s18669_s11 + $0x6cc] sm:$0xf] }
 0x185   :  { %1082 = vst [vmem:[#allocation4 + $0x6cc] sm:$0xf] %v1081_v20  ;;  %v1085_v22 = vld [vmem:[%s18669_s11 + $0x6e8] sm:$0xf]  ;;  %v1087_v23 = vld [vmem:[%s18669_s11 + $0x6d0] sm:$0xf] }
 0x186   :  { %1084 = vst [vmem:[#allocation4 + $0x6d0] sm:$0xf] %v1083_v21  ;;  %1086 = vst [vmem:[#allocation4 + $0x6d4] sm:$0xf] %v1085_v22  ;;  %v1089_v24 = vld [vmem:[%s18669_s11 + $0x6ec] sm:$0xf] }
 0x187   :  { %1088 = vst [vmem:[#allocation4 + $0x6d8] sm:$0xf] %v1087_v23  ;;  %v1091_v25 = vld [vmem:[%s18669_s11 + $0x6d4] sm:$0xf]  ;;  %v1093_v26 = vld [vmem:[%s18669_s11 + $0x6f0] sm:$0xf] }
 0x188   :  { %1090 = vst [vmem:[#allocation4 + $0x6dc] sm:$0xf] %v1089_v24  ;;  %1092 = vst [vmem:[#allocation4 + $0x6e0] sm:$0xf] %v1091_v25  ;;  %v1095_v27 = vld [vmem:[%s18669_s11 + $0x6d8] sm:$0xf] }
 0x189   :  { %1094 = vst [vmem:[#allocation4 + $0x6e4] sm:$0xf] %v1093_v26  ;;  %v1097_v28 = vld [vmem:[%s18669_s11 + $0x6f4] sm:$0xf]  ;;  %v1099_v29 = vld [vmem:[%s18669_s11 + $0x6dc] sm:$0xf] }
 0x18a   :  { %1096 = vst [vmem:[#allocation4 + $0x6e8] sm:$0xf] %v1095_v27  ;;  %1098 = vst [vmem:[#allocation4 + $0x6ec] sm:$0xf] %v1097_v28  ;;  %v1101_v30 = vld [vmem:[%s18669_s11 + $0x6f8] sm:$0xf] }
 0x18b   :  { %1100 = vst [vmem:[#allocation4 + $0x6f0] sm:$0xf] %v1099_v29  ;;  %v1103_v31 = vld [vmem:[%s18669_s11 + $0x6e0] sm:$0xf]  ;;  %v1105_v32 = vld [vmem:[%s18669_s11 + $0x6fc] sm:$0xf] }
 0x18c   :  { %1102 = vst [vmem:[#allocation4 + $0x6f4] sm:$0xf] %v1101_v30  ;;  %1104 = vst [vmem:[#allocation4 + $0x6f8] sm:$0xf] %v1103_v31 }
 0x18d   :  { %1106 = vst [vmem:[#allocation4 + $0x6fc] sm:$0xf] %v1105_v32 }
 0x18e   :  { %2033 = vsyncadd [#allocation5 + $0x2], 28672  ;;  %v11587_v33 = vld [vmem:[#allocation6 + $0x4] ss:$16 sps:$4 sm:$0xff]   ;;  %v11589_v34 = vld [vmem:[#allocation6 + $0xc] ss:$16 sps:$4 sm:$0xff]  }
 0x18f   :  { %v11591_v35 = vld [vmem:[#allocation6] ss:$16 sps:$4 sm:$0xff]   ;;  %v11592_v36 = vld [vmem:[#allocation6 + $0x8] ss:$16 sps:$4 sm:$0xff]   ;;  %3403 = vmatprep.subr.bf16.mxu0 %v11587_v33  ;;  %v11593_v37 = vld [vmem:[#allocation6 + $0x24] ss:$16 sps:$4 sm:$0xff]   ;;  %3855 = vmatprep.subr.bf16.mxu1 %v11589_v34 }
 0x190   :  { %3404 = vmatpush1.bf16.msra.mxu0 %v11591_v35  ;;  %v11595_v38 = vld [vmem:[#allocation6 + $0x2c] ss:$16 sps:$4 sm:$0xff]   ;;  %3856 = vmatpush1.bf16.msra.mxu1 %v11592_v36  ;;  %v11597_v39 = vld [vmem:[#allocation6 + $0x20] ss:$16 sps:$4 sm:$0xff]   ;;  %v11598_v40 = vld [vmem:[#allocation6 + $0x28] ss:$16 sps:$4 sm:$0xff]  }
 0x191   :  { %3405 = vmatprep.subr.bf16.mxu0 %v11593_v37  ;;  %3857 = vmatprep.subr.bf16.mxu1 %v11595_v38  ;;  %v11599_v41 = vld [vmem:[#allocation6 + $0x44] ss:$16 sps:$4 sm:$0xff]   ;;  %v11601_v42 = vld [vmem:[#allocation6 + $0x4c] ss:$16 sps:$4 sm:$0xff]   ;;  %v11603_v43 = vld [vmem:[#allocation6 + $0x40] ss:$16 sps:$4 sm:$0xff]  }
 0x192   :  { %v11604_v44 = vld [vmem:[#allocation6 + $0x48] ss:$16 sps:$4 sm:$0xff]   ;;  %v11605_v45 = vld [vmem:[#allocation6 + $0x64] ss:$16 sps:$4 sm:$0xff]   ;;  %v11607_v46 = vld [vmem:[#allocation6 + $0x6c] ss:$16 sps:$4 sm:$0xff]  }
 0x193   :  { %v11609_v47 = vld [vmem:[#allocation6 + $0x60] ss:$16 sps:$4 sm:$0xff]   ;;  %v11610_v48 = vld [vmem:[#allocation6 + $0x68] ss:$16 sps:$4 sm:$0xff]   ;;  %v11611_v49 = vld [vmem:[#allocation6 + $0x84] ss:$16 sps:$4 sm:$0xff]  }
 0x194   :  { %3406 = vmatpush1.bf16.msra.mxu0 %v11597_v39  ;;  %3858 = vmatpush1.bf16.msra.mxu1 %v11598_v40  ;;  %v11613_v50 = vld [vmem:[#allocation6 + $0x8c] ss:$16 sps:$4 sm:$0xff]   ;;  %v11615_v51 = vld [vmem:[#allocation6 + $0x80] ss:$16 sps:$4 sm:$0xff]   ;;  %v11616_v52 = vld [vmem:[#allocation6 + $0x88] ss:$16 sps:$4 sm:$0xff]  }
 0x195   :  { %3407 = vmatprep.subr.bf16.mxu0 %v11599_v41  ;;  %3859 = vmatprep.subr.bf16.mxu1 %v11601_v42  ;;  %v11617_v53 = vld [vmem:[#allocation6 + $0xa4] ss:$16 sps:$4 sm:$0xff]   ;;  %v11619_v54 = vld [vmem:[#allocation6 + $0xac] ss:$16 sps:$4 sm:$0xff]   ;;  %v11621_v55 = vld [vmem:[#allocation6 + $0xa0] ss:$16 sps:$4 sm:$0xff]  }
 0x196   :  { %v11622_v56 = vld [vmem:[#allocation6 + $0xa8] ss:$16 sps:$4 sm:$0xff]   ;;  %v11623_v57 = vld [vmem:[#allocation6 + $0xc4] ss:$16 sps:$4 sm:$0xff]   ;;  %v11625_v58 = vld [vmem:[#allocation6 + $0xcc] ss:$16 sps:$4 sm:$0xff]  }
 0x197   :  { %v11627_v59 = vld [vmem:[#allocation6 + $0xc0] ss:$16 sps:$4 sm:$0xff]   ;;  %v11628_v60 = vld [vmem:[#allocation6 + $0xc8] ss:$16 sps:$4 sm:$0xff]   ;;  %v11629_v61 = vld [vmem:[#allocation6 + $0xe4] ss:$16 sps:$4 sm:$0xff]  }
 0x198   :  { %3408 = vmatpush1.bf16.msra.mxu0 %v11603_v43  ;;  %3860 = vmatpush1.bf16.msra.mxu1 %v11604_v44  ;;  %v11631_v62 = vld [vmem:[#allocation6 + $0xec] ss:$16 sps:$4 sm:$0xff]   ;;  %v11633_v63 = vld [vmem:[#allocation6 + $0xe0] ss:$16 sps:$4 sm:$0xff]   ;;  %v11634_v0 = vld [vmem:[#allocation6 + $0xe8] ss:$16 sps:$4 sm:$0xff]  }
 0x199   :  { %3409 = vmatprep.subr.bf16.mxu0 %v11605_v45  ;;  %3861 = vmatprep.subr.bf16.mxu1 %v11607_v46  ;;  %v11635_v1 = vld [vmem:[#allocation6 + $0x104] ss:$16 sps:$4 sm:$0xff]   ;;  %v11637_v2 = vld [vmem:[#allocation6 + $0x10c] ss:$16 sps:$4 sm:$0xff]   ;;  %v11639_v3 = vld [vmem:[#allocation6 + $0x100] ss:$16 sps:$4 sm:$0xff]  }
 0x19a   :  { %v11640_v4 = vld [vmem:[#allocation6 + $0x108] ss:$16 sps:$4 sm:$0xff]   ;;  %v11641_v5 = vld [vmem:[#allocation6 + $0x124] ss:$16 sps:$4 sm:$0xff]   ;;  %v11643_v6 = vld [vmem:[#allocation6 + $0x12c] ss:$16 sps:$4 sm:$0xff]  }
 0x19b   :  { %v11645_v7 = vld [vmem:[#allocation6 + $0x120] ss:$16 sps:$4 sm:$0xff]   ;;  %v11646_v8 = vld [vmem:[#allocation6 + $0x128] ss:$16 sps:$4 sm:$0xff]   ;;  %v11647_v9 = vld [vmem:[#allocation6 + $0x144] ss:$16 sps:$4 sm:$0xff]  }
 0x19c   :  { %3410 = vmatpush1.bf16.msra.mxu0 %v11609_v47  ;;  %3862 = vmatpush1.bf16.msra.mxu1 %v11610_v48  ;;  %v11649_v10 = vld [vmem:[#allocation6 + $0x14c] ss:$16 sps:$4 sm:$0xff]   ;;  %v11651_v11 = vld [vmem:[#allocation6 + $0x140] ss:$16 sps:$4 sm:$0xff]   ;;  %v11652_v12 = vld [vmem:[#allocation6 + $0x148] ss:$16 sps:$4 sm:$0xff]  }
 0x19d   :  { %3411 = vmatprep.subr.bf16.mxu0 %v11611_v49  ;;  %3863 = vmatprep.subr.bf16.mxu1 %v11613_v50  ;;  %v11653_v13 = vld [vmem:[#allocation6 + $0x164] ss:$16 sps:$4 sm:$0xff]   ;;  %v11655_v14 = vld [vmem:[#allocation6 + $0x16c] ss:$16 sps:$4 sm:$0xff]   ;;  %v11657_v17 = vld [vmem:[#allocation6 + $0x160] ss:$16 sps:$4 sm:$0xff]  }
 0x19e   :  { %v2035_v15 = vld [vmem:[%s18658_s0 + $0x8] sm:$0xff]  ;;  %v2042_v16 = vld [vmem:[%s18658_s0 + $0x40] sm:$0xff]  ;;  %v2041_v36 = vld [vmem:[%s18658_s0 + $0x38] sm:$0xff]  ;;  %vm3378_vm0 = vcmask 130048  }
 0x19f   :  { %v2343_v18 = vpack.c.bf16 %v2042_v16, %v2035_v15  ;;  %v11658_v19 = vld [vmem:[#allocation6 + $0x168] ss:$16 sps:$4 sm:$0xff]   ;;  %v11659_v20 = vld [vmem:[#allocation6 + $0x184] ss:$16 sps:$4 sm:$0xff]   ;;  %v11661_v21 = vld [vmem:[#allocation6 + $0x18c] ss:$16 sps:$4 sm:$0xff]  }
 0x1a0   :  { %3412 = vmatpush1.bf16.msra.mxu0 %v11615_v51  ;;  %3864 = vmatpush1.bf16.msra.mxu1 %v11616_v52  ;;  %v11663_v22 = vld [vmem:[#allocation6 + $0x180] ss:$16 sps:$4 sm:$0xff]   ;;  %v11664_v23 = vld [vmem:[#allocation6 + $0x188] ss:$16 sps:$4 sm:$0xff]   ;;  %v11665_v24 = vld [vmem:[#allocation6 + $0x1a4] ss:$16 sps:$4 sm:$0xff]  }
 0x1a1   :  { %3413 = vmatprep.subr.bf16.mxu0 %v11617_v53  ;;  %3865 = vmatprep.subr.bf16.mxu1 %v11619_v54  ;;  %v11667_v25 = vld [vmem:[#allocation6 + $0x1ac] ss:$16 sps:$4 sm:$0xff]   ;;  %v11669_v26 = vld [vmem:[#allocation6 + $0x1a0] ss:$16 sps:$4 sm:$0xff]   ;;  %v11670_v27 = vld [vmem:[#allocation6 + $0x1a8] ss:$16 sps:$4 sm:$0xff]  }
 0x1a2   :  { %3435 = vmatprep.mubr.bf16.mxu0 %v2343_v18  ;;  %3887 = vmatprep.mubr.bf16.mxu1 %v2343_v18  ;;  %v11671_v28 = vld [vmem:[#allocation6 + $0x1c4] ss:$16 sps:$4 sm:$0xff]   ;;  %v11673_v29 = vld [vmem:[#allocation6 + $0x1cc] ss:$16 sps:$4 sm:$0xff]   ;;  %v11675_v30 = vld [vmem:[#allocation6 + $0x1c0] ss:$16 sps:$4 sm:$0xff]  }
 0x1a3   :  { %v11676_v31 = vld [vmem:[#allocation6 + $0x1c8] ss:$16 sps:$4 sm:$0xff]   ;;  %v11677_v32 = vld [vmem:[#allocation6 + $0x1e4] ss:$16 sps:$4 sm:$0xff]   ;;  %v11679_v33 = vld [vmem:[#allocation6 + $0x1ec] ss:$16 sps:$4 sm:$0xff]  }
 0x1a4   :  { %3414 = vmatpush1.bf16.msra.mxu0 %v11621_v55  ;;  %3866 = vmatpush1.bf16.msra.mxu1 %v11622_v56  ;;  %v11681_v34 = vld [vmem:[#allocation6 + $0x1e0] ss:$16 sps:$4 sm:$0xff]   ;;  %v11682_v37 = vld [vmem:[#allocation6 + $0x1e8] ss:$16 sps:$4 sm:$0xff]   ;;  %v11685_v38 = vld [vmem:[#allocation6 + $0x204] ss:$16 sps:$4 sm:$0xff]  }
 0x1a5   :  { %3415 = vmatprep.subr.bf16.mxu0 %v11623_v57  ;;  %3867 = vmatprep.subr.bf16.mxu1 %v11625_v58  ;;  %v2034_v35 = vld [vmem:[%s18658_s0] sm:$0xff]  ;;  %v11688_v39 = vld [vmem:[#allocation6 + $0x20c] ss:$16 sps:$4 sm:$0xff]   ;;  %v2056_v42 = vld [vmem:[%s18658_s0 + $0xb0] sm:$0xff] }
 0x1a6   :  { %v2342_v40 = vpack.c.bf16 %v2041_v36, %v2034_v35  ;;  %v2049_v41 = vld [vmem:[%s18658_s0 + $0x78] sm:$0xff]  ;;  %v11683_v43 = vld [vmem:[#allocation6 + $0x200] ss:$16 sps:$4 sm:$0xff]   ;;  %v11691_v45 = vld [vmem:[#allocation6 + $0x224] ss:$16 sps:$4 sm:$0xff]  }
 0x1a7   :  { %v11686_v44 = vld [vmem:[#allocation6 + $0x208] ss:$16 sps:$4 sm:$0xff]   ;;  %v11689_v46 = vld [vmem:[#allocation6 + $0x220] ss:$16 sps:$4 sm:$0xff]   ;;  %v11694_v47 = vld [vmem:[#allocation6 + $0x22c] ss:$16 sps:$4 sm:$0xff]   ;;  %v2350_v48 = vpack.c.bf16 %v2056_v42, %v2049_v41 }
 0x1a8   :  { %3416 = vmatpush1.bf16.msra.mxu0 %v11627_v59  ;;  %3868 = vmatpush1.bf16.msra.mxu1 %v11628_v60  ;;  %v2048_v49 = vld [vmem:[%s18658_s0 + $0x70] sm:$0xff]  ;;  %v2055_v50 = vld [vmem:[%s18658_s0 + $0xa8] sm:$0xff]  ;;  %v2070_v56 = vld [vmem:[%s18658_s0 + $0x120] sm:$0xff] }
 0x1a9   :  { %3417 = vmatprep.subr.bf16.mxu0 %v11629_v61  ;;  %3869 = vmatprep.subr.bf16.mxu1 %v11631_v62  ;;  %v11692_v51 = vld [vmem:[#allocation6 + $0x228] ss:$16 sps:$4 sm:$0xff]   ;;  %v11697_v52 = vld [vmem:[#allocation6 + $0x244] ss:$16 sps:$4 sm:$0xff]   ;;  %v11700_v53 = vld [vmem:[#allocation6 + $0x24c] ss:$16 sps:$4 sm:$0xff]   ;;  %v2349_v55 = vpack.c.bf16 %v2055_v50, %v2048_v49 }
 0x1aa   :  { %v2063_v54 = vld [vmem:[%s18658_s0 + $0xe8] sm:$0xff]  ;;  %v11695_v57 = vld [vmem:[#allocation6 + $0x240] ss:$16 sps:$4 sm:$0xff]   ;;  %v11703_v59 = vld [vmem:[#allocation6 + $0x264] ss:$16 sps:$4 sm:$0xff]  }
 0x1ab   :  { %v11698_v58 = vld [vmem:[#allocation6 + $0x248] ss:$16 sps:$4 sm:$0xff]   ;;  %v11706_v60 = vld [vmem:[#allocation6 + $0x26c] ss:$16 sps:$4 sm:$0xff]   ;;  %v2357_v61 = vpack.c.bf16 %v2070_v56, %v2063_v54  ;;  %v11701_v62 = vld [vmem:[#allocation6 + $0x260] ss:$16 sps:$4 sm:$0xff]  }
 0x1ac   :  { %3418 = vmatpush1.bf16.msra.mxu0 %v11633_v63  ;;  %3870 = vmatpush1.bf16.msra.mxu1 %v11634_v0  ;;  %v2062_v63 = vld [vmem:[%s18658_s0 + $0xe0] sm:$0xff]  ;;  %v2069_v0 = vld [vmem:[%s18658_s0 + $0x118] sm:$0xff]  ;;  %v2091_v18 = vld [vmem:[%s18658_s0 + $0x1c8] sm:$0xff] }
 0x1ad   :  { %3419 = vmatprep.subr.bf16.mxu0 %v11635_v1  ;;  %3871 = vmatprep.subr.bf16.mxu1 %v11637_v2  ;;  %v11704_v1 = vld [vmem:[#allocation6 + $0x268] ss:$16 sps:$4 sm:$0xff]   ;;  %v11709_v2 = vld [vmem:[#allocation6 + $0x284] ss:$16 sps:$4 sm:$0xff]   ;;  %v11731_v35 = vld [vmem:[#allocation6 + $0x300] ss:$16 sps:$4 sm:$0xff]  }
 0x1ae   :  { %v11716_v15 = vld [vmem:[#allocation6 + $0x2a8] ss:$16 sps:$4 sm:$0xff]   ;;  %v11721_v16 = vld [vmem:[#allocation6 + $0x2c4] ss:$16 sps:$4 sm:$0xff]   ;;  %v11743_v49 = vld [vmem:[#allocation6 + $0x340] ss:$16 sps:$4 sm:$0xff]  }
 0x1af   :  { %v11734_v36 = vld [vmem:[#allocation6 + $0x308] ss:$16 sps:$4 sm:$0xff]   ;;  %v2104_v41 = vld [vmem:[%s18658_s0 + $0x230] sm:$0xff] }
 0x1b0   :  { %3420 = vmatpush1.bf16.msra.mxu0 %v11639_v3  ;;  %3872 = vmatpush1.bf16.msra.mxu1 %v11640_v4  ;;  %v11712_v3 = vld [vmem:[#allocation6 + $0x28c] ss:$16 sps:$4 sm:$0xff]   ;;  %v11746_v50 = vld [vmem:[#allocation6 + $0x348] ss:$16 sps:$4 sm:$0xff]  }
 0x1b1   :  { %3421 = vmatprep.subr.bf16.mxu0 %v11641_v5  ;;  %3873 = vmatprep.subr.bf16.mxu1 %v11643_v6  ;;  %v2077_v4 = vld [vmem:[%s18658_s0 + $0x158] sm:$0xff]  ;;  %v2356_v5 = vpack.c.bf16 %v2069_v0, %v2062_v63  ;;  %v2084_v6 = vld [vmem:[%s18658_s0 + $0x190] sm:$0xff]  ;;  %v2111_v42 = vld [vmem:[%s18658_s0 + $0x268] sm:$0xff] }
 0x1b2   :  { %v2125_v56 = vld [vmem:[%s18658_s0 + $0x2d8] sm:$0xff]  ;;  %v11755_v63 = vld [vmem:[#allocation6 + $0x380] ss:$16 sps:$4 sm:$0xff]  }
 0x1b3   :  { %v11758_v0 = vld [vmem:[#allocation6 + $0x388] ss:$16 sps:$4 sm:$0xff]  }
 0x1b4   :  { %3422 = vmatpush1.bf16.msra.mxu0 %v11645_v7  ;;  %3874 = vmatpush1.bf16.msra.mxu1 %v11646_v8  ;;  %v11707_v7 = vld [vmem:[#allocation6 + $0x280] ss:$16 sps:$4 sm:$0xff]   ;;  %v11710_v8 = vld [vmem:[#allocation6 + $0x288] ss:$16 sps:$4 sm:$0xff]  }
 0x1b5   :  { %3423 = vmatprep.subr.bf16.mxu0 %v11647_v9  ;;  %3875 = vmatprep.subr.bf16.mxu1 %v11649_v10  ;;  %v11715_v9 = vld [vmem:[#allocation6 + $0x2a4] ss:$16 sps:$4 sm:$0xff]   ;;  %v11718_v10 = vld [vmem:[#allocation6 + $0x2ac] ss:$16 sps:$4 sm:$0xff]  }
 0x1b8   :  { %3424 = vmatpush1.bf16.msra.mxu0 %v11651_v11  ;;  %3876 = vmatpush1.bf16.msra.mxu1 %v11652_v12  ;;  %v2364_v11 = vpack.c.bf16 %v2084_v6, %v2077_v4  ;;  %v11713_v12 = vld [vmem:[#allocation6 + $0x2a0] ss:$16 sps:$4 sm:$0xff]   ;;  %v2139_v6 = vld [vmem:[%s18658_s0 + $0x348] sm:$0xff] }
 0x1b9   :  { %3425 = vmatprep.subr.bf16.mxu0 %v11653_v13  ;;  %3877 = vmatprep.subr.bf16.mxu1 %v11655_v14  ;;  %v2076_v13 = vld [vmem:[%s18658_s0 + $0x150] sm:$0xff]  ;;  %v2083_v14 = vld [vmem:[%s18658_s0 + $0x188] sm:$0xff] }
 0x1ba   :  { %v11761_v4 = vld [vmem:[#allocation6 + $0x3a0] ss:$16 sps:$4 sm:$0xff]  }
 0x1bc   :  { %3426 = vmatpush1.bf16.msra.mxu0 %v11657_v17  ;;  %3878 = vmatpush1.bf16.msra.mxu1 %v11658_v19  ;;  %v11724_v17 = vld [vmem:[#allocation6 + $0x2cc] ss:$16 sps:$4 sm:$0xff]   ;;  %v2363_v19 = vpack.c.bf16 %v2083_v14, %v2076_v13  ;;  %v11767_v13 = vld [vmem:[#allocation6 + $0x3c0] ss:$16 sps:$4 sm:$0xff]   ;;  %v11770_v14 = vld [vmem:[#allocation6 + $0x3c8] ss:$16 sps:$4 sm:$0xff]  }
 0x1bd   :  { %3427 = vmatprep.subr.bf16.mxu0 %v11659_v20  ;;  %3879 = vmatprep.subr.bf16.mxu1 %v11661_v21  ;;  %v2098_v20 = vld [vmem:[%s18658_s0 + $0x200] sm:$0xff] }
 0x1be   :  { %v11719_v21 = vld [vmem:[#allocation6 + $0x2c0] ss:$16 sps:$4 sm:$0xff]  }
 0x1c0   :  { %3428 = vmatpush1.bf16.msra.mxu0 %v11663_v22  ;;  %3880 = vmatpush1.bf16.msra.mxu1 %v11664_v23  ;;  %v11722_v22 = vld [vmem:[#allocation6 + $0x2c8] ss:$16 sps:$4 sm:$0xff]   ;;  %v11727_v23 = vld [vmem:[#allocation6 + $0x2e4] ss:$16 sps:$4 sm:$0xff]  }
 0x1c1   :  { %3429 = vmatprep.subr.bf16.mxu0 %v11665_v24  ;;  %3881 = vmatprep.subr.bf16.mxu1 %v11667_v25  ;;  %v11725_v24 = vld [vmem:[#allocation6 + $0x2e0] ss:$16 sps:$4 sm:$0xff]   ;;  %v11730_v25 = vld [vmem:[#allocation6 + $0x2ec] ss:$16 sps:$4 sm:$0xff]  }
 0x1c4   :  { %3430 = vmatpush1.bf16.msra.mxu0 %v11669_v26  ;;  %3882 = vmatpush1.bf16.msra.mxu1 %v11670_v27  ;;  %v2371_v26 = vpack.c.bf16 %v2098_v20, %v2091_v18  ;;  %v2090_v27 = vld [vmem:[%s18658_s0 + $0x1c0] sm:$0xff]  ;;  %v2043_v20 = vld [vmem:[%s18658_s0 + $0x48] sm:$0xff] }
 0x1c5   :  { %3431 = vmatprep.subr.bf16.mxu0 %v11671_v28  ;;  %3883 = vmatprep.subr.bf16.mxu1 %v11673_v29  ;;  %v2097_v28 = vld [vmem:[%s18658_s0 + $0x1f8] sm:$0xff]  ;;  %v11773_v18 = vld [vmem:[#allocation6 + $0x3e0] ss:$16 sps:$4 sm:$0xff]  }
 0x1c6   :  { %v11728_v29 = vld [vmem:[#allocation6 + $0x2e8] ss:$16 sps:$4 sm:$0xff]  }
 0x1c8   :  { %3432 = vmatpush1.bf16.msra.mxu0 %v11675_v30  ;;  %3884 = vmatpush1.bf16.msra.mxu1 %v11676_v31  ;;  %v11733_v30 = vld [vmem:[#allocation6 + $0x304] ss:$16 sps:$4 sm:$0xff]   ;;  %v11736_v31 = vld [vmem:[#allocation6 + $0x30c] ss:$16 sps:$4 sm:$0xff]  }
 0x1c9   :  { %3433 = vmatprep.subr.bf16.mxu0 %v11677_v32  ;;  %3885 = vmatprep.subr.bf16.mxu1 %v11679_v33  ;;  %v2105_v32 = vld [vmem:[%s18658_s0 + $0x238] sm:$0xff]  ;;  %v2370_v33 = vpack.c.bf16 %v2097_v28, %v2090_v27  ;;  %v11779_v27 = vld [vmem:[#allocation6 + $0x400] ss:$16 sps:$4 sm:$0xff]  }
 0x1ca   :  { %v11782_v28 = vld [vmem:[#allocation6 + $0x408] ss:$16 sps:$4 sm:$0xff]  }
 0x1cc   :  { %3434 = vmatpush1.bf16.msra.mxu0 %v11681_v34  ;;  %3886 = vmatpush1.bf16.msra.mxu1 %v11682_v37  ;;  %v2112_v34 = vld [vmem:[%s18658_s0 + $0x270] sm:$0xff] }
 0x1cd   :  { %3516 = vmatprep.subr.bf16.mxu0 %v11685_v38  ;;  %3968 = vmatprep.subr.bf16.mxu1 %v11688_v39  ;;  %v11739_v37 = vld [vmem:[#allocation6 + $0x324] ss:$16 sps:$4 sm:$0xff]   ;;  %v11737_v38 = vld [vmem:[#allocation6 + $0x320] ss:$16 sps:$4 sm:$0xff]   ;;  %v11742_v39 = vld [vmem:[#allocation6 + $0x32c] ss:$16 sps:$4 sm:$0xff]  }
 0x1cf   :  { %3436 = vmatmul.mubr.bf16.vlgmr.msra.gmra.mrb[0].mxu0 %v2342_v40  ;;  %3888 = vmatmul.mubr.bf16.vlgmr.msra.gmra.mrb[0].mxu1 %v2342_v40  ;;  %v2378_v40 = vpack.c.bf16 %v2112_v34, %v2105_v32  ;;  %v2057_v34 = vld [vmem:[%s18658_s0 + $0xb8] sm:$0xff] }
 0x1d0   :  { %3517 = vmatpush1.bf16.msra.mxu0 %v11683_v43  ;;  %3969 = vmatpush1.bf16.msra.mxu1 %v11686_v44  ;;  %v11740_v43 = vld [vmem:[#allocation6 + $0x328] ss:$16 sps:$4 sm:$0xff]   ;;  %v11745_v44 = vld [vmem:[#allocation6 + $0x344] ss:$16 sps:$4 sm:$0xff]  }
 0x1d1   :  { %3518 = vmatprep.subr.bf16.mxu0 %v11691_v45  ;;  %3970 = vmatprep.subr.bf16.mxu1 %v11694_v47  ;;  %v11748_v45 = vld [vmem:[#allocation6 + $0x34c] ss:$16 sps:$4 sm:$0xff]  }
 0x1d2   :  { %3445 = vmatprep.mubr.bf16.mxu0 %v2350_v48  ;;  %3897 = vmatprep.mubr.bf16.mxu1 %v2350_v48  ;;  %v2119_v47 = vld [vmem:[%s18658_s0 + $0x2a8] sm:$0xff]  ;;  %v2126_v48 = vld [vmem:[%s18658_s0 + $0x2e0] sm:$0xff] }
 0x1d3   :  { %v2385_v54 = vpack.c.bf16 %v2126_v48, %v2119_v47  ;;  %v2064_v47 = vld [vmem:[%s18658_s0 + $0xf0] sm:$0xff]  ;;  %v2071_v48 = vld [vmem:[%s18658_s0 + $0x128] sm:$0xff] }
 0x1d4   :  { %3519 = vmatpush1.bf16.msra.mxu0 %v11689_v46  ;;  %3971 = vmatpush1.bf16.msra.mxu1 %v11692_v51  ;;  %v2377_v46 = vpack.c.bf16 %v2111_v42, %v2104_v41  ;;  %v11751_v51 = vld [vmem:[#allocation6 + $0x364] ss:$16 sps:$4 sm:$0xff]   ;;  %v11791_v41 = vld [vmem:[#allocation6 + $0x440] ss:$16 sps:$4 sm:$0xff]   ;;  %v11794_v42 = vld [vmem:[#allocation6 + $0x448] ss:$16 sps:$4 sm:$0xff]  }
 0x1d5   :  { %3520 = vmatprep.subr.bf16.mxu0 %v11697_v52  ;;  %3972 = vmatprep.subr.bf16.mxu1 %v11700_v53  ;;  %v11749_v52 = vld [vmem:[#allocation6 + $0x360] ss:$16 sps:$4 sm:$0xff]   ;;  %v11754_v53 = vld [vmem:[#allocation6 + $0x36c] ss:$16 sps:$4 sm:$0xff]  }
 0x1d7   :  { %3446 = vmatmul.mubr.bf16.gmra.mrb[4].mxu0 %v2349_v55  ;;  %3898 = vmatmul.mubr.bf16.gmra.mrb[4].mxu1 %v2349_v55  ;;  %v2118_v55 = vld [vmem:[%s18658_s0 + $0x2a0] sm:$0xff] }
 0x1d8   :  { %3521 = vmatpush1.bf16.msra.mxu0 %v11695_v57  ;;  %3973 = vmatpush1.bf16.msra.mxu1 %v11698_v58  ;;  %v11752_v57 = vld [vmem:[#allocation6 + $0x368] ss:$16 sps:$4 sm:$0xff]   ;;  %v11757_v58 = vld [vmem:[#allocation6 + $0x384] ss:$16 sps:$4 sm:$0xff]  }
 0x1d9   :  { %3522 = vmatprep.subr.bf16.mxu0 %v11703_v59  ;;  %3974 = vmatprep.subr.bf16.mxu1 %v11706_v60  ;;  %v11760_v59 = vld [vmem:[#allocation6 + $0x38c] ss:$16 sps:$4 sm:$0xff]  }
 0x1da   :  { %3455 = vmatprep.mubr.bf16.mxu0 %v2357_v61  ;;  %3907 = vmatprep.mubr.bf16.mxu1 %v2357_v61  ;;  %v2133_v60 = vld [vmem:[%s18658_s0 + $0x318] sm:$0xff]  ;;  %v2384_v61 = vpack.c.bf16 %v2125_v56, %v2118_v55  ;;  %v11803_v55 = vld [vmem:[#allocation6 + $0x480] ss:$16 sps:$4 sm:$0xff]  }
 0x1db   :  { %v11806_v56 = vld [vmem:[#allocation6 + $0x488] ss:$16 sps:$4 sm:$0xff]  }
 0x1dc   :  { %3523 = vmatpush1.bf16.msra.mxu0 %v11701_v62  ;;  %3975 = vmatpush1.bf16.msra.mxu1 %v11704_v1  ;;  %v2140_v62 = vld [vmem:[%s18658_s0 + $0x350] sm:$0xff] }
 0x1dd   :  { %3524 = vmatprep.subr.bf16.mxu0 %v11709_v2  ;;  %3976 = vmatprep.subr.bf16.mxu1 %v11712_v3  ;;  %v11763_v1 = vld [vmem:[#allocation6 + $0x3a4] ss:$16 sps:$4 sm:$0xff]   ;;  %v11766_v2 = vld [vmem:[#allocation6 + $0x3ac] ss:$16 sps:$4 sm:$0xff]   ;;  %v2392_v3 = vpack.c.bf16 %v2140_v62, %v2133_v60 }
 0x1de   :  { %v2085_v62 = vld [vmem:[%s18658_s0 + $0x198] sm:$0xff] }
 0x1df   :  { %3456 = vmatmul.mubr.bf16.gmra.mrb[8].mxu0 %v2356_v5  ;;  %3908 = vmatmul.mubr.bf16.gmra.mrb[8].mxu1 %v2356_v5  ;;  %v2132_v5 = vld [vmem:[%s18658_s0 + $0x310] sm:$0xff] }
 0x1e0   :  { %3525 = vmatpush1.bf16.msra.mxu0 %v11707_v7  ;;  %3977 = vmatpush1.bf16.msra.mxu1 %v11710_v8  ;;  %v11764_v7 = vld [vmem:[#allocation6 + $0x3a8] ss:$16 sps:$4 sm:$0xff]   ;;  %v11769_v8 = vld [vmem:[#allocation6 + $0x3c4] ss:$16 sps:$4 sm:$0xff]  }
 0x1e1   :  { %3526 = vmatprep.subr.bf16.mxu0 %v11715_v9  ;;  %3978 = vmatprep.subr.bf16.mxu1 %v11718_v10  ;;  %v11772_v9 = vld [vmem:[#allocation6 + $0x3cc] ss:$16 sps:$4 sm:$0xff]  }
 0x1e2   :  { %3465 = vmatprep.mubr.bf16.mxu0 %v2364_v11  ;;  %3917 = vmatprep.mubr.bf16.mxu1 %v2364_v11  ;;  %v2037_v10 = vld [vmem:[%s18658_s0 + $0x18] sm:$0xff]  ;;  %v2391_v11 = vpack.c.bf16 %v2139_v6, %v2132_v5  ;;  %v11815_v5 = vld [vmem:[#allocation6 + $0x4c0] ss:$16 sps:$4 sm:$0xff]  }
 0x1e3   :  { %v11818_v6 = vld [vmem:[#allocation6 + $0x4c8] ss:$16 sps:$4 sm:$0xff]  }
 0x1e4   :  { %3527 = vmatpush1.bf16.msra.mxu0 %v11713_v12  ;;  %3979 = vmatpush1.bf16.msra.mxu1 %v11716_v15  ;;  %v2044_v12 = vld [vmem:[%s18658_s0 + $0x50] sm:$0xff] }
 0x1e5   :  { %3528 = vmatprep.subr.bf16.mxu0 %v11721_v16  ;;  %3980 = vmatprep.subr.bf16.mxu1 %v11724_v17  ;;  %v11775_v15 = vld [vmem:[#allocation6 + $0x3e4] ss:$16 sps:$4 sm:$0xff]   ;;  %v11778_v16 = vld [vmem:[#allocation6 + $0x3ec] ss:$16 sps:$4 sm:$0xff]   ;;  %v2345_v17 = vpack.c.bf16 %v2044_v12, %v2037_v10  ;;  %v11821_v10 = vld [vmem:[#allocation6 + $0x4e0] ss:$16 sps:$4 sm:$0xff]  }
 0x1e6   :  { %v2099_v12 = vld [vmem:[%s18658_s0 + $0x208] sm:$0xff] }
 0x1e7   :  { %3466 = vmatmul.mubr.bf16.gmra.mrb[12].mxu0 %v2363_v19  ;;  %3918 = vmatmul.mubr.bf16.gmra.mrb[12].mxu1 %v2363_v19  ;;  %v2036_v19 = vld [vmem:[%s18658_s0 + $0x10] sm:$0xff] }
 0x1e8   :  { %3529 = vmatpush1.bf16.msra.mxu0 %v11719_v21  ;;  %3981 = vmatpush1.bf16.msra.mxu1 %v11722_v22  ;;  %v11776_v21 = vld [vmem:[#allocation6 + $0x3e8] ss:$16 sps:$4 sm:$0xff]   ;;  %v11781_v22 = vld [vmem:[#allocation6 + $0x404] ss:$16 sps:$4 sm:$0xff]  }
 0x1e9   :  { %3530 = vmatprep.subr.bf16.mxu0 %v11727_v23  ;;  %3982 = vmatprep.subr.bf16.mxu1 %v11730_v25  ;;  %v11784_v23 = vld [vmem:[#allocation6 + $0x40c] ss:$16 sps:$4 sm:$0xff]   ;;  %v2344_v25 = vpack.c.bf16 %v2043_v20, %v2036_v19  ;;  %v11827_v19 = vld [vmem:[#allocation6 + $0x500] ss:$16 sps:$4 sm:$0xff]   ;;  %v11830_v20 = vld [vmem:[#allocation6 + $0x508] ss:$16 sps:$4 sm:$0xff]  }
 0x1ea   :  { %3475 = vmatprep.mubr.bf16.mxu0 %v2371_v26  ;;  %3927 = vmatprep.mubr.bf16.mxu1 %v2371_v26  ;;  %v2058_v26 = vld [vmem:[%s18658_s0 + $0xc0] sm:$0xff] }
 0x1ec   :  { %3531 = vmatpush1.bf16.msra.mxu0 %v11725_v24  ;;  %3983 = vmatpush1.bf16.msra.mxu1 %v11728_v29  ;;  %v2051_v24 = vld [vmem:[%s18658_s0 + $0x88] sm:$0xff]  ;;  %v11787_v29 = vld [vmem:[#allocation6 + $0x424] ss:$16 sps:$4 sm:$0xff]  }
 0x1ed   :  { %3532 = vmatprep.subr.bf16.mxu0 %v11733_v30  ;;  %3984 = vmatprep.subr.bf16.mxu1 %v11736_v31  ;;  %v11785_v30 = vld [vmem:[#allocation6 + $0x420] ss:$16 sps:$4 sm:$0xff]   ;;  %v11790_v31 = vld [vmem:[#allocation6 + $0x42c] ss:$16 sps:$4 sm:$0xff]   ;;  %v2352_v32 = vpack.c.bf16 %v2058_v26, %v2051_v24 }
 0x1ee   :  { %v11833_v24 = vld [vmem:[#allocation6 + $0x520] ss:$16 sps:$4 sm:$0xff]   ;;  %v2113_v26 = vld [vmem:[%s18658_s0 + $0x278] sm:$0xff] }
 0x1ef   :  { %3476 = vmatmul.mubr.bf16.gmra.mrb[16].mxu0 %v2370_v33  ;;  %3928 = vmatmul.mubr.bf16.gmra.mrb[16].mxu1 %v2370_v33  ;;  %v2050_v33 = vld [vmem:[%s18658_s0 + $0x80] sm:$0xff] }
 0x1f0   :  { %3533 = vmatpush1.bf16.msra.mxu0 %v11731_v35  ;;  %3985 = vmatpush1.bf16.msra.mxu1 %v11734_v36  ;;  %v11788_v35 = vld [vmem:[#allocation6 + $0x428] ss:$16 sps:$4 sm:$0xff]   ;;  %v11793_v36 = vld [vmem:[#allocation6 + $0x444] ss:$16 sps:$4 sm:$0xff]  }
 0x1f1   :  { %3534 = vmatprep.subr.bf16.mxu0 %v11739_v37  ;;  %3986 = vmatprep.subr.bf16.mxu1 %v11742_v39  ;;  %v11796_v37 = vld [vmem:[#allocation6 + $0x44c] ss:$16 sps:$4 sm:$0xff]   ;;  %v2351_v39 = vpack.c.bf16 %v2057_v34, %v2050_v33  ;;  %v11842_v34 = vld [vmem:[#allocation6 + $0x548] ss:$16 sps:$4 sm:$0xff]  }
 0x1f2   :  { %3485 = vmatprep.mubr.bf16.mxu0 %v2378_v40  ;;  %3937 = vmatprep.mubr.bf16.mxu1 %v2378_v40  ;;  %v2072_v40 = vld [vmem:[%s18658_s0 + $0x130] sm:$0xff] }
 0x1f4   :  { %3535 = vmatpush1.bf16.msra.mxu0 %v11737_v38  ;;  %3987 = vmatpush1.bf16.msra.mxu1 %v11740_v43  ;;  %v2065_v38 = vld [vmem:[%s18658_s0 + $0xf8] sm:$0xff]  ;;  %v11799_v43 = vld [vmem:[#allocation6 + $0x464] ss:$16 sps:$4 sm:$0xff]  }
 0x1f5   :  { %3536 = vmatprep.subr.bf16.mxu0 %v11745_v44  ;;  %3988 = vmatprep.subr.bf16.mxu1 %v11748_v45  ;;  %v11797_v44 = vld [vmem:[#allocation6 + $0x460] ss:$16 sps:$4 sm:$0xff]   ;;  %v11802_v45 = vld [vmem:[#allocation6 + $0x46c] ss:$16 sps:$4 sm:$0xff]  }
 0x1f7   :  { %3486 = vmatmul.mubr.bf16.gmra.mrb[20].mxu0 %v2377_v46  ;;  %3938 = vmatmul.mubr.bf16.gmra.mrb[20].mxu1 %v2377_v46  ;;  %v2359_v46 = vpack.c.bf16 %v2072_v40, %v2065_v38  ;;  %v2127_v40 = vld [vmem:[%s18658_s0 + $0x2e8] sm:$0xff] }
 0x1f8   :  { %3537 = vmatpush1.bf16.msra.mxu0 %v11743_v49  ;;  %3989 = vmatpush1.bf16.msra.mxu1 %v11746_v50  ;;  %v11800_v49 = vld [vmem:[#allocation6 + $0x468] ss:$16 sps:$4 sm:$0xff]   ;;  %v11805_v50 = vld [vmem:[#allocation6 + $0x484] ss:$16 sps:$4 sm:$0xff]  }
 0x1f9   :  { %3538 = vmatprep.subr.bf16.mxu0 %v11751_v51  ;;  %3990 = vmatprep.subr.bf16.mxu1 %v11754_v53  ;;  %v11808_v51 = vld [vmem:[#allocation6 + $0x48c] ss:$16 sps:$4 sm:$0xff]  }
 0x1fa   :  { %3495 = vmatprep.mubr.bf16.mxu0 %v2385_v54  ;;  %3947 = vmatprep.mubr.bf16.mxu1 %v2385_v54  ;;  %v2079_v53 = vld [vmem:[%s18658_s0 + $0x168] sm:$0xff]  ;;  %v2086_v54 = vld [vmem:[%s18658_s0 + $0x1a0] sm:$0xff] }
 0x1fb   :  { %v2366_v60 = vpack.c.bf16 %v2086_v54, %v2079_v53  ;;  %v2134_v53 = vld [vmem:[%s18658_s0 + $0x320] sm:$0xff]  ;;  %v2141_v54 = vld [vmem:[%s18658_s0 + $0x358] sm:$0xff] }
 0x1fc   :  { %3539 = vmatpush1.bf16.msra.mxu0 %v11749_v52  ;;  %3991 = vmatpush1.bf16.msra.mxu1 %v11752_v57  ;;  %v2358_v52 = vpack.c.bf16 %v2071_v48, %v2064_v47  ;;  %v11811_v57 = vld [vmem:[#allocation6 + $0x4a4] ss:$16 sps:$4 sm:$0xff]   ;;  %v11854_v48 = vld [vmem:[#allocation6 + $0x588] ss:$16 sps:$4 sm:$0xff]  }
 0x1fd   :  { %3540 = vmatprep.subr.bf16.mxu0 %v11757_v58  ;;  %3992 = vmatprep.subr.bf16.mxu1 %v11760_v59  ;;  %v11809_v58 = vld [vmem:[#allocation6 + $0x4a0] ss:$16 sps:$4 sm:$0xff]   ;;  %v11814_v59 = vld [vmem:[#allocation6 + $0x4ac] ss:$16 sps:$4 sm:$0xff]  }
 0x1ff   :  { %3496 = vmatmul.mubr.bf16.gmra.mrb[24].mxu0 %v2384_v61  ;;  %3948 = vmatmul.mubr.bf16.gmra.mrb[24].mxu1 %v2384_v61  ;;  %v2078_v61 = vld [vmem:[%s18658_s0 + $0x160] sm:$0xff] }
 0x200   :  { %3541 = vmatpush1.bf16.msra.mxu0 %v11755_v63  ;;  %3993 = vmatpush1.bf16.msra.mxu1 %v11758_v0  ;;  %v11812_v63 = vld [vmem:[#allocation6 + $0x4a8] ss:$16 sps:$4 sm:$0xff]   ;;  %v11817_v0 = vld [vmem:[#allocation6 + $0x4c4] ss:$16 sps:$4 sm:$0xff]  }
 0x201   :  { %3542 = vmatprep.subr.bf16.mxu0 %v11763_v1  ;;  %3994 = vmatprep.subr.bf16.mxu1 %v11766_v2  ;;  %v11820_v1 = vld [vmem:[#allocation6 + $0x4cc] ss:$16 sps:$4 sm:$0xff]  }
 0x202   :  { %3505 = vmatprep.mubr.bf16.mxu0 %v2392_v3  ;;  %3957 = vmatprep.mubr.bf16.mxu1 %v2392_v3  ;;  %v2093_v2 = vld [vmem:[%s18658_s0 + $0x1d8] sm:$0xff]  ;;  %v2365_v3 = vpack.c.bf16 %v2085_v62, %v2078_v61  ;;  %v2393_v61 = vpack.c.bf16 %v2141_v54, %v2134_v53  ;;  %v18673_v53 = vmov 0   ;;  %v2040_v54 = vld [vmem:[%s18658_s0 + $0x30] sm:$0xff] }
 0x203   :  { %v11866_v62 = vld [vmem:[#allocation6 + $0x5c8] ss:$16 sps:$4 sm:$0xff]  }
 0x204   :  { %3543 = vmatpush1.bf16.msra.mxu0 %v11761_v4  ;;  %3995 = vmatpush1.bf16.msra.mxu1 %v11764_v7  ;;  %v2100_v4 = vld [vmem:[%s18658_s0 + $0x210] sm:$0xff] }
 0x205   :  { %3544 = vmatprep.subr.bf16.mxu0 %v11769_v8  ;;  %3996 = vmatprep.subr.bf16.mxu1 %v11772_v9  ;;  %v11823_v7 = vld [vmem:[#allocation6 + $0x4e4] ss:$16 sps:$4 sm:$0xff]   ;;  %v11826_v8 = vld [vmem:[#allocation6 + $0x4ec] ss:$16 sps:$4 sm:$0xff]   ;;  %v2373_v9 = vpack.c.bf16 %v2100_v4, %v2093_v2 }
 0x206   :  { %v2045_v4 = vld [vmem:[%s18658_s0 + $0x58] sm:$0xff] }
 0x207   :  { %3506 = vmatmul.mubr.bf16.gmra.mrb[28].mxu0 %v2391_v11  ;;  %3958 = vmatmul.mubr.bf16.gmra.mrb[28].mxu1 %v2391_v11  ;;  %v2092_v11 = vld [vmem:[%s18658_s0 + $0x1d0] sm:$0xff] }
 0x208   :  { %3545 = vmatpush1.bf16.msra.mxu0 %v11767_v13  ;;  %3997 = vmatpush1.bf16.msra.mxu1 %v11770_v14  ;;  %v11824_v13 = vld [vmem:[#allocation6 + $0x4e8] ss:$16 sps:$4 sm:$0xff]   ;;  %v11829_v14 = vld [vmem:[#allocation6 + $0x504] ss:$16 sps:$4 sm:$0xff]  }
 0x209   :  { %3546 = vmatprep.subr.bf16.mxu0 %v11775_v15  ;;  %3998 = vmatprep.subr.bf16.mxu1 %v11778_v16  ;;  %v11832_v15 = vld [vmem:[#allocation6 + $0x50c] ss:$16 sps:$4 sm:$0xff]   ;;  %v2372_v16 = vpack.c.bf16 %v2099_v12, %v2092_v11  ;;  %v11878_v12 = vld [vmem:[#allocation6 + $0x608] ss:$16 sps:$4 sm:$0xff]  }
 0x20a   :  { %3548 = vmatprep.mubr.bf16.mxu0 %v2345_v17  ;;  %4000 = vmatprep.mubr.bf16.mxu1 %v2345_v17  ;;  %v2107_v17 = vld [vmem:[%s18658_s0 + $0x248] sm:$0xff] }
 0x20c   :  { %3547 = vmatpush1.bf16.msra.mxu0 %v11773_v18  ;;  %3999 = vmatpush1.bf16.msra.mxu1 %v11776_v21  ;;  %v2114_v18 = vld [vmem:[%s18658_s0 + $0x280] sm:$0xff] }
 0x20d   :  { %3629 = vmatprep.subr.bf16.mxu0 %v11781_v22  ;;  %4081 = vmatprep.subr.bf16.mxu1 %v11784_v23  ;;  %v11835_v21 = vld [vmem:[#allocation6 + $0x524] ss:$16 sps:$4 sm:$0xff]   ;;  %v11838_v22 = vld [vmem:[#allocation6 + $0x52c] ss:$16 sps:$4 sm:$0xff]   ;;  %v2380_v23 = vpack.c.bf16 %v2114_v18, %v2107_v17 }
 0x20e   :  { %v2074_v17 = vld [vmem:[%s18658_s0 + $0x140] sm:$0xff] }
 0x20f   :  { %3549 = vmatmul.mubr.bf16.vlgmr.msra.gmra.mrb[0].mxu0 %v2344_v25  ;;  %4001 = vmatmul.mubr.bf16.vlgmr.msra.gmra.mrb[0].mxu1 %v2344_v25  ;;  %v2106_v25 = vld [vmem:[%s18658_s0 + $0x240] sm:$0xff] }
 0x210   :  { %3630 = vmatpush1.bf16.msra.mxu0 %v11779_v27  ;;  %4082 = vmatpush1.bf16.msra.mxu1 %v11782_v28  ;;  %v11836_v27 = vld [vmem:[#allocation6 + $0x528] ss:$16 sps:$4 sm:$0xff]   ;;  %v11841_v28 = vld [vmem:[#allocation6 + $0x544] ss:$16 sps:$4 sm:$0xff]   ;;  %v2379_v33 = vpack.c.bf16 %v2113_v26, %v2106_v25 }
 0x211   :  { %3631 = vmatprep.subr.bf16.mxu0 %v11787_v29  ;;  %4083 = vmatprep.subr.bf16.mxu1 %v11790_v31  ;;  %v11839_v29 = vld [vmem:[#allocation6 + $0x540] ss:$16 sps:$4 sm:$0xff]   ;;  %v2121_v31 = vld [vmem:[%s18658_s0 + $0x2b8] sm:$0xff] }
 0x212   :  { %3558 = vmatprep.mubr.bf16.mxu0 %v2352_v32  ;;  %4010 = vmatprep.mubr.bf16.mxu1 %v2352_v32  ;;  %v2128_v32 = vld [vmem:[%s18658_s0 + $0x2f0] sm:$0xff] }
 0x213   :  { %v2387_v38 = vpack.c.bf16 %v2128_v32, %v2121_v31  ;;  %v2080_v26 = vld [vmem:[%s18658_s0 + $0x170] sm:$0xff]  ;;  %v2094_v32 = vld [vmem:[%s18658_s0 + $0x1e0] sm:$0xff] }
 0x214   :  { %3632 = vmatpush1.bf16.msra.mxu0 %v11785_v30  ;;  %4084 = vmatpush1.bf16.msra.mxu1 %v11788_v35  ;;  %v11844_v30 = vld [vmem:[#allocation6 + $0x54c] ss:$16 sps:$4 sm:$0xff]   ;;  %v11847_v35 = vld [vmem:[#allocation6 + $0x564] ss:$16 sps:$4 sm:$0xff]  }
 0x215   :  { %3633 = vmatprep.subr.bf16.mxu0 %v11793_v36  ;;  %4085 = vmatprep.subr.bf16.mxu1 %v11796_v37  ;;  %v11850_v36 = vld [vmem:[#allocation6 + $0x56c] ss:$16 sps:$4 sm:$0xff]   ;;  %v11845_v37 = vld [vmem:[#allocation6 + $0x560] ss:$16 sps:$4 sm:$0xff]  }
 0x217   :  { %3559 = vmatmul.mubr.bf16.gmra.mrb[4].mxu0 %v2351_v39  ;;  %4011 = vmatmul.mubr.bf16.gmra.mrb[4].mxu1 %v2351_v39  ;;  %v2120_v39 = vld [vmem:[%s18658_s0 + $0x2b0] sm:$0xff] }
 0x218   :  { %3634 = vmatpush1.bf16.msra.mxu0 %v11791_v41  ;;  %4086 = vmatpush1.bf16.msra.mxu1 %v11794_v42  ;;  %v11848_v41 = vld [vmem:[#allocation6 + $0x568] ss:$16 sps:$4 sm:$0xff]   ;;  %v11853_v42 = vld [vmem:[#allocation6 + $0x584] ss:$16 sps:$4 sm:$0xff]   ;;  %v2386_v47 = vpack.c.bf16 %v2127_v40, %v2120_v39 }
 0x219   :  { %3635 = vmatprep.subr.bf16.mxu0 %v11799_v43  ;;  %4087 = vmatprep.subr.bf16.mxu1 %v11802_v45  ;;  %v11856_v43 = vld [vmem:[#allocation6 + $0x58c] ss:$16 sps:$4 sm:$0xff]   ;;  %v2142_v45 = vld [vmem:[%s18658_s0 + $0x360] sm:$0xff] }
 0x21a   :  { %3568 = vmatprep.mubr.bf16.mxu0 %v2359_v46  ;;  %4020 = vmatprep.mubr.bf16.mxu1 %v2359_v46  ;;  %v11851_v46 = vld [vmem:[#allocation6 + $0x580] ss:$16 sps:$4 sm:$0xff]   ;;  %v2115_v39 = vld [vmem:[%s18658_s0 + $0x288] sm:$0xff] }
 0x21b   :  { %v2123_v40 = vld [vmem:[%s18658_s0 + $0x2c8] sm:$0xff] }
 0x21c   :  { %3636 = vmatpush1.bf16.msra.mxu0 %v11797_v44  ;;  %4088 = vmatpush1.bf16.msra.mxu1 %v11800_v49  ;;  %v2135_v44 = vld [vmem:[%s18658_s0 + $0x328] sm:$0xff]  ;;  %v11859_v49 = vld [vmem:[#allocation6 + $0x5a4] ss:$16 sps:$4 sm:$0xff]  }
 0x21d   :  { %3637 = vmatprep.subr.bf16.mxu0 %v11805_v50  ;;  %4089 = vmatprep.subr.bf16.mxu1 %v11808_v51  ;;  %v11862_v50 = vld [vmem:[#allocation6 + $0x5ac] ss:$16 sps:$4 sm:$0xff]   ;;  %v11857_v51 = vld [vmem:[#allocation6 + $0x5a0] ss:$16 sps:$4 sm:$0xff]  }
 0x21f   :  { %3569 = vmatmul.mubr.bf16.gmra.mrb[8].mxu0 %v2358_v52  ;;  %4021 = vmatmul.mubr.bf16.gmra.mrb[8].mxu1 %v2358_v52  ;;  %v2394_v52 = vpack.c.bf16 %v2142_v45, %v2135_v44  ;;  %v2122_v44 = vld [vmem:[%s18658_s0 + $0x2c0] sm:$0xff]  ;;  %v2129_v45 = vld [vmem:[%s18658_s0 + $0x2f8] sm:$0xff] }
 0x220   :  { %3638 = vmatpush1.bf16.msra.mxu0 %v11803_v55  ;;  %4090 = vmatpush1.bf16.msra.mxu1 %v11806_v56  ;;  %v11860_v55 = vld [vmem:[#allocation6 + $0x5a8] ss:$16 sps:$4 sm:$0xff]   ;;  %v11865_v56 = vld [vmem:[#allocation6 + $0x5c4] ss:$16 sps:$4 sm:$0xff]  }
 0x221   :  { %3639 = vmatprep.subr.bf16.mxu0 %v11811_v57  ;;  %4091 = vmatprep.subr.bf16.mxu1 %v11814_v59  ;;  %v11868_v57 = vld [vmem:[#allocation6 + $0x5cc] ss:$16 sps:$4 sm:$0xff]   ;;  %v2046_v59 = vld [vmem:[%s18658_s0 + $0x60] sm:$0xff] }
 0x222   :  { %3578 = vmatprep.mubr.bf16.mxu0 %v2366_v60  ;;  %4030 = vmatprep.mubr.bf16.mxu1 %v2366_v60  ;;  %v11863_v60 = vld [vmem:[#allocation6 + $0x5c0] ss:$16 sps:$4 sm:$0xff]  }
 0x224   :  { %3640 = vmatpush1.bf16.msra.mxu0 %v11809_v58  ;;  %4092 = vmatpush1.bf16.msra.mxu1 %v11812_v63  ;;  %v2039_v58 = vld [vmem:[%s18658_s0 + $0x28] sm:$0xff]  ;;  %v11871_v63 = vld [vmem:[#allocation6 + $0x5e4] ss:$16 sps:$4 sm:$0xff]  }
 0x225   :  { %3641 = vmatprep.subr.bf16.mxu0 %v11817_v0  ;;  %4093 = vmatprep.subr.bf16.mxu1 %v11820_v1  ;;  %v11874_v0 = vld [vmem:[#allocation6 + $0x5ec] ss:$16 sps:$4 sm:$0xff]   ;;  %v11869_v1 = vld [vmem:[#allocation6 + $0x5e0] ss:$16 sps:$4 sm:$0xff]   ;;  %v2347_v2 = vpack.c.bf16 %v2046_v59, %v2039_v58 }
 0x226   :  { %v2061_v58 = vld [vmem:[%s18658_s0 + $0xd8] sm:$0xff] }
 0x227   :  { %3579 = vmatmul.mubr.bf16.gmra.mrb[12].mxu0 %v2365_v3  ;;  %4031 = vmatmul.mubr.bf16.gmra.mrb[12].mxu1 %v2365_v3  ;;  %v2038_v3 = vld [vmem:[%s18658_s0 + $0x20] sm:$0xff] }
 0x228   :  { %3642 = vmatpush1.bf16.msra.mxu0 %v11815_v5  ;;  %4094 = vmatpush1.bf16.msra.mxu1 %v11818_v6  ;;  %v11872_v5 = vld [vmem:[#allocation6 + $0x5e8] ss:$16 sps:$4 sm:$0xff]   ;;  %v11877_v6 = vld [vmem:[#allocation6 + $0x604] ss:$16 sps:$4 sm:$0xff]   ;;  %v2346_v11 = vpack.c.bf16 %v2045_v4, %v2038_v3 }
 0x229   :  { %3643 = vmatprep.subr.bf16.mxu0 %v11823_v7  ;;  %4095 = vmatprep.subr.bf16.mxu1 %v11826_v8  ;;  %v11880_v7 = vld [vmem:[#allocation6 + $0x60c] ss:$16 sps:$4 sm:$0xff]  }
 0x22a   :  { %3588 = vmatprep.mubr.bf16.mxu0 %v2373_v9  ;;  %4040 = vmatprep.mubr.bf16.mxu1 %v2373_v9  ;;  %v2053_v8 = vld [vmem:[%s18658_s0 + $0x98] sm:$0xff]  ;;  %v2060_v9 = vld [vmem:[%s18658_s0 + $0xd0] sm:$0xff]  ;;  %v2103_v3 = vld [vmem:[%s18658_s0 + $0x228] sm:$0xff] }
 0x22c   :  { %3644 = vmatpush1.bf16.msra.mxu0 %v11821_v10  ;;  %4096 = vmatpush1.bf16.msra.mxu1 %v11824_v13  ;;  %v11875_v10 = vld [vmem:[#allocation6 + $0x600] ss:$16 sps:$4 sm:$0xff]   ;;  %v2354_v13 = vpack.c.bf16 %v2060_v9, %v2053_v8  ;;  %v2131_v9 = vld [vmem:[%s18658_s0 + $0x308] sm:$0xff] }
 0x22d   :  { %3645 = vmatprep.subr.bf16.mxu0 %v11829_v14  ;;  %4097 = vmatprep.subr.bf16.mxu1 %v11832_v15  ;;  %v2052_v14 = vld [vmem:[%s18658_s0 + $0x90] sm:$0xff]  ;;  %v2059_v15 = vld [vmem:[%s18658_s0 + $0xc8] sm:$0xff] }
 0x22e   :  { %v2353_v18 = vpack.c.bf16 %v2059_v15, %v2052_v14  ;;  %v2124_v8 = vld [vmem:[%s18658_s0 + $0x2d0] sm:$0xff]  ;;  %v11883_v14 = vld [vmem:[#allocation8 + $0x4] ss:$8 sps:$4 sm:$0xff]   ;;  %v11881_v15 = vld [vmem:[#allocation8] ss:$8 sps:$4 sm:$0xff]  }
 0x22f   :  { %3589 = vmatmul.mubr.bf16.gmra.mrb[16].mxu0 %v2372_v16  ;;  %4041 = vmatmul.mubr.bf16.gmra.mrb[16].mxu1 %v2372_v16  ;;  %v2067_v16 = vld [vmem:[%s18658_s0 + $0x108] sm:$0xff] }
 0x230   :  { %3646 = vmatpush1.bf16.msra.mxu0 %v11827_v19  ;;  %4098 = vmatpush1.bf16.msra.mxu1 %v11830_v20  ;;  %v2361_v19 = vpack.c.bf16 %v2074_v17, %v2067_v16  ;;  %v2066_v20 = vld [vmem:[%s18658_s0 + $0x100] sm:$0xff]  ;;  %v11886_v16 = vld [vmem:[#allocation8 + $0x14] ss:$8 sps:$4 sm:$0xff]   ;;  %v11884_v17 = vld [vmem:[#allocation8 + $0x10] ss:$8 sps:$4 sm:$0xff]  }
 0x231   :  { %3647 = vmatprep.subr.bf16.mxu0 %v11835_v21  ;;  %4099 = vmatprep.subr.bf16.mxu1 %v11838_v22  ;;  %v2073_v21 = vld [vmem:[%s18658_s0 + $0x138] sm:$0xff] }
 0x232   :  { %3598 = vmatprep.mubr.bf16.mxu0 %v2380_v23  ;;  %4050 = vmatprep.mubr.bf16.mxu1 %v2380_v23  ;;  %v2081_v22 = vld [vmem:[%s18658_s0 + $0x178] sm:$0xff]  ;;  %v2088_v23 = vld [vmem:[%s18658_s0 + $0x1b0] sm:$0xff] }
 0x233   :  { %v2368_v25 = vpack.c.bf16 %v2088_v23, %v2081_v22  ;;  %v11895_v22 = vld [vmem:[#allocation8 + $0x44] ss:$8 sps:$4 sm:$0xff]   ;;  %v11893_v23 = vld [vmem:[#allocation8 + $0x40] ss:$8 sps:$4 sm:$0xff]  }
 0x234   :  { %3648 = vmatpush1.bf16.msra.mxu0 %v11833_v24  ;;  %4100 = vmatpush1.bf16.msra.mxu1 %v11836_v27  ;;  %v2360_v24 = vpack.c.bf16 %v2073_v21, %v2066_v20  ;;  %v2087_v27 = vld [vmem:[%s18658_s0 + $0x1a8] sm:$0xff]  ;;  %v11892_v20 = vld [vmem:[#allocation8 + $0x34] ss:$8 sps:$4 sm:$0xff]   ;;  %v11890_v21 = vld [vmem:[#allocation8 + $0x30] ss:$8 sps:$4 sm:$0xff]  }
 0x235   :  { %3649 = vmatprep.subr.bf16.mxu0 %v11841_v28  ;;  %4101 = vmatprep.subr.bf16.mxu1 %v11844_v30  ;;  %v2095_v28 = vld [vmem:[%s18658_s0 + $0x1e8] sm:$0xff]  ;;  %v2367_v30 = vpack.c.bf16 %v2087_v27, %v2080_v26 }
 0x236   :  { %v11899_v26 = vld [vmem:[#allocation8 + $0x60] ss:$8 sps:$4 sm:$0xff]   ;;  %v11901_v27 = vld [vmem:[#allocation8 + $0x64] ss:$8 sps:$4 sm:$0xff]  }
 0x237   :  { %3599 = vmatmul.mubr.bf16.gmra.mrb[20].mxu0 %v2379_v33  ;;  %4051 = vmatmul.mubr.bf16.gmra.mrb[20].mxu1 %v2379_v33  ;;  %v2101_v33 = vld [vmem:[%s18658_s0 + $0x218] sm:$0xff] }
 0x238   :  { %3650 = vmatpush1.bf16.msra.mxu0 %v11839_v29  ;;  %4102 = vmatpush1.bf16.msra.mxu1 %v11842_v34  ;;  %v2102_v29 = vld [vmem:[%s18658_s0 + $0x220] sm:$0xff]  ;;  %v2109_v34 = vld [vmem:[%s18658_s0 + $0x258] sm:$0xff] }
 0x239   :  { %3651 = vmatprep.subr.bf16.mxu0 %v11847_v35  ;;  %4103 = vmatprep.subr.bf16.mxu1 %v11850_v36  ;;  %v2375_v31 = vpack.c.bf16 %v2102_v29, %v2095_v28  ;;  %v2116_v35 = vld [vmem:[%s18658_s0 + $0x290] sm:$0xff]  ;;  %v2374_v36 = vpack.c.bf16 %v2101_v33, %v2094_v32 }
 0x23a   :  { %3608 = vmatprep.mubr.bf16.mxu0 %v2387_v38  ;;  %4060 = vmatprep.mubr.bf16.mxu1 %v2387_v38  ;;  %v2108_v38 = vld [vmem:[%s18658_s0 + $0x250] sm:$0xff] }
 0x23b   :  { %v11904_v28 = vld [vmem:[#allocation8 + $0x74] ss:$8 sps:$4 sm:$0xff]   ;;  %v11902_v29 = vld [vmem:[#allocation8 + $0x70] ss:$8 sps:$4 sm:$0xff]  }
 0x23c   :  { %3652 = vmatpush1.bf16.msra.mxu0 %v11845_v37  ;;  %4104 = vmatpush1.bf16.msra.mxu1 %v11848_v41  ;;  %v2382_v37 = vpack.c.bf16 %v2116_v35, %v2109_v34  ;;  %v2130_v41 = vld [vmem:[%s18658_s0 + $0x300] sm:$0xff]  ;;  %v11910_v32 = vld [vmem:[#allocation8 + $0x94] ss:$8 sps:$4 sm:$0xff]   ;;  %v11908_v33 = vld [vmem:[#allocation8 + $0x90] ss:$8 sps:$4 sm:$0xff]  }
 0x23d   :  { %3653 = vmatprep.subr.bf16.mxu0 %v11853_v42  ;;  %4105 = vmatprep.subr.bf16.mxu1 %v11856_v43  ;;  %v2381_v42 = vpack.c.bf16 %v2115_v39, %v2108_v38  ;;  %v2389_v43 = vpack.c.bf16 %v2130_v41, %v2123_v40  ;;  %v11913_v34 = vld [vmem:[#allocation8 + $0xa4] ss:$8 sps:$4 sm:$0xff]   ;;  %v11911_v35 = vld [vmem:[#allocation8 + $0xa0] ss:$8 sps:$4 sm:$0xff]   ;;  %v11920_v40 = vld [vmem:[#allocation8 + $0xd0] ss:$8 sps:$4 sm:$0xff]  }
 0x23e   :  { %v11919_v38 = vld [vmem:[#allocation8 + $0xc4] ss:$8 sps:$4 sm:$0xff]   ;;  %v11917_v39 = vld [vmem:[#allocation8 + $0xc0] ss:$8 sps:$4 sm:$0xff]   ;;  %v11922_v41 = vld [vmem:[#allocation8 + $0xd4] ss:$8 sps:$4 sm:$0xff]  }
 0x23f   :  { %3609 = vmatmul.mubr.bf16.gmra.mrb[24].mxu0 %v2386_v47  ;;  %4061 = vmatmul.mubr.bf16.gmra.mrb[24].mxu1 %v2386_v47  ;;  %v2144_v47 = vld [vmem:[%s18658_s0 + $0x370] sm:$0xff] }
 0x240   :  { %3654 = vmatpush1.bf16.msra.mxu0 %v11851_v46  ;;  %4106 = vmatpush1.bf16.msra.mxu1 %v11854_v48  ;;  %v2137_v46 = vld [vmem:[%s18658_s0 + $0x338] sm:$0xff]  ;;  %v2388_v48 = vpack.c.bf16 %v2129_v45, %v2122_v44 }
 0x241   :  { %3655 = vmatprep.subr.bf16.mxu0 %v11859_v49  ;;  %4107 = vmatprep.subr.bf16.mxu1 %v11862_v50  ;;  %v2396_v49 = vpack.c.bf16 %v2144_v47, %v2137_v46  ;;  %v2136_v50 = vld [vmem:[%s18658_s0 + $0x330] sm:$0xff] }
 0x242   :  { %3618 = vmatprep.mubr.bf16.mxu0 %v2394_v52  ;;  %4070 = vmatprep.mubr.bf16.mxu1 %v2394_v52 }
 0x244   :  { %3656 = vmatpush1.bf16.msra.mxu0 %v11857_v51  ;;  %4108 = vmatpush1.bf16.msra.mxu1 %v11860_v55  ;;  %v2143_v51 = vld [vmem:[%s18658_s0 + $0x368] sm:$0xff] }
 0x245   :  { %3657 = vmatprep.subr.bf16.mxu0 %v11865_v56  ;;  %4109 = vmatprep.subr.bf16.mxu1 %v11868_v57  ;;  %v2395_v52 = vpack.c.bf16 %v2143_v51, %v2136_v50  ;;  %v2047_v55 = vld [vmem:[%s18658_s0 + $0x68] sm:$0xff]  ;;  %v2054_v57 = vld [vmem:[%s18658_s0 + $0xa0] sm:$0xff] }
 0x246   :  { %v2348_v56 = vpack.c.bf16 %v2047_v55, %v2040_v54  ;;  %v2355_v59 = vpack.c.bf16 %v2061_v58, %v2054_v57 }
 0x247   :  { %3619 = vmatmul.mubr.bf16.gmra.mrb[28].mxu0 %v2393_v61  ;;  %4071 = vmatmul.mubr.bf16.gmra.mrb[28].mxu1 %v2393_v61  ;;  %v2075_v61 = vld [vmem:[%s18658_s0 + $0x148] sm:$0xff] }
 0x248   :  { %3658 = vmatpush1.bf16.msra.mxu0 %v11863_v60  ;;  %4110 = vmatpush1.bf16.msra.mxu1 %v11866_v62  ;;  %v2068_v60 = vld [vmem:[%s18658_s0 + $0x110] sm:$0xff] }
 0x249   :  { %3659 = vmatprep.subr.bf16.mxu0 %v11871_v63  ;;  %4111 = vmatprep.subr.bf16.mxu1 %v11874_v0  ;;  %v2362_v62 = vpack.c.bf16 %v2075_v61, %v2068_v60  ;;  %v2082_v63 = vld [vmem:[%s18658_s0 + $0x180] sm:$0xff]  ;;  %v2089_v0 = vld [vmem:[%s18658_s0 + $0x1b8] sm:$0xff] }
 0x24a   :  { %3661 = vmatprep.mubr.bf16.mxu0 %v2347_v2  ;;  %4113 = vmatprep.mubr.bf16.mxu1 %v2347_v2  ;;  %v2096_v2 = vld [vmem:[%s18658_s0 + $0x1f0] sm:$0xff] }
 0x24b   :  { %v2376_v4 = vpack.c.bf16 %v2103_v3, %v2096_v2 }
 0x24c   :  { %3660 = vmatpush1.bf16.msra.mxu0 %v11869_v1  ;;  %4112 = vmatpush1.bf16.msra.mxu1 %v11872_v5  ;;  %v2369_v1 = vpack.c.bf16 %v2089_v0, %v2082_v63  ;;  %v2110_v5 = vld [vmem:[%s18658_s0 + $0x260] sm:$0xff] }
 0x24d   :  { %3742 = vmatprep.subr.bf16.mxu0 %v11877_v6  ;;  %4194 = vmatprep.subr.bf16.mxu1 %v11880_v7  ;;  %v2117_v6 = vld [vmem:[%s18658_s0 + $0x298] sm:$0xff] }
 0x24e   :  { %v2383_v7 = vpack.c.bf16 %v2117_v6, %v2110_v5  ;;  %v11926_v6 = vld [vmem:[#allocation8 + $0xf0] ss:$8 sps:$4 sm:$0xff]  }
 0x24f   :  { %3662 = vmatmul.mubr.bf16.vlgmr.msra.gmra.mrb[0].mxu0 %v2346_v11  ;;  %4114 = vmatmul.mubr.bf16.vlgmr.msra.gmra.mrb[0].mxu1 %v2346_v11  ;;  %v2138_v11 = vld [vmem:[%s18658_s0 + $0x340] sm:$0xff] }
 0x250   :  { %3743 = vmatpush1.bf16.msra.mxu0 %v11875_v10  ;;  %4195 = vmatpush1.bf16.msra.mxu1 %v11878_v12  ;;  %v2390_v10 = vpack.c.bf16 %v2131_v9, %v2124_v8  ;;  %v2145_v12 = vld [vmem:[%s18658_s0 + $0x378] sm:$0xff] }
 0x251   :  { %3671 = vmatprep.mubr.bf16.mxu0 %v2354_v13  ;;  %4123 = vmatprep.mubr.bf16.mxu1 %v2354_v13  ;;  %v2397_v13 = vpack.c.bf16 %v2145_v12, %v2138_v11 }
 0x252   :  { %5285 = vmatprep.subr.bf16.mxu0 %v11883_v14 }
 0x257   :  { %3672 = vmatmul.mubr.bf16.gmra.mrb[4].mxu0 %v2353_v18  ;;  %4124 = vmatmul.mubr.bf16.gmra.mrb[4].mxu1 %v2353_v18  ;;  %v11889_v18 = vld [vmem:[#allocation8 + $0x24] ss:$8 sps:$4 sm:$0xff]  }
 0x258   :  { %3681 = vmatprep.mubr.bf16.mxu0 %v2361_v19  ;;  %4133 = vmatprep.mubr.bf16.mxu1 %v2361_v19  ;;  %v11887_v19 = vld [vmem:[#allocation8 + $0x20] ss:$8 sps:$4 sm:$0xff]  }
 0x25f   :  { %3682 = vmatmul.mubr.bf16.gmra.mrb[8].mxu0 %v2360_v24  ;;  %4134 = vmatmul.mubr.bf16.gmra.mrb[8].mxu1 %v2360_v24  ;;  %v11898_v24 = vld [vmem:[#allocation8 + $0x54] ss:$8 sps:$4 sm:$0xff]  }
 0x260   :  { %3691 = vmatprep.mubr.bf16.mxu0 %v2368_v25  ;;  %4143 = vmatprep.mubr.bf16.mxu1 %v2368_v25  ;;  %v11896_v25 = vld [vmem:[#allocation8 + $0x50] ss:$8 sps:$4 sm:$0xff]  }
 0x267   :  { %3692 = vmatmul.mubr.bf16.gmra.mrb[12].mxu0 %v2367_v30  ;;  %4144 = vmatmul.mubr.bf16.gmra.mrb[12].mxu1 %v2367_v30  ;;  %v11907_v30 = vld [vmem:[#allocation8 + $0x84] ss:$8 sps:$4 sm:$0xff]  }
 0x268   :  { %3701 = vmatprep.mubr.bf16.mxu0 %v2375_v31  ;;  %4153 = vmatprep.mubr.bf16.mxu1 %v2375_v31  ;;  %v11905_v31 = vld [vmem:[#allocation8 + $0x80] ss:$8 sps:$4 sm:$0xff]  }
 0x26f   :  { %3702 = vmatmul.mubr.bf16.gmra.mrb[16].mxu0 %v2374_v36  ;;  %4154 = vmatmul.mubr.bf16.gmra.mrb[16].mxu1 %v2374_v36  ;;  %v11916_v36 = vld [vmem:[#allocation8 + $0xb4] ss:$8 sps:$4 sm:$0xff]  }
 0x270   :  { %3711 = vmatprep.mubr.bf16.mxu0 %v2382_v37  ;;  %4163 = vmatprep.mubr.bf16.mxu1 %v2382_v37  ;;  %v11914_v37 = vld [vmem:[#allocation8 + $0xb0] ss:$8 sps:$4 sm:$0xff]  }
 0x277   :  { %3712 = vmatmul.mubr.bf16.gmra.mrb[20].mxu0 %v2381_v42  ;;  %4164 = vmatmul.mubr.bf16.gmra.mrb[20].mxu1 %v2381_v42 }
 0x278   :  { %3721 = vmatprep.mubr.bf16.mxu0 %v2389_v43  ;;  %4173 = vmatprep.mubr.bf16.mxu1 %v2389_v43  ;;  %v11925_v43 = vld [vmem:[#allocation8 + $0xe4] ss:$8 sps:$4 sm:$0xff]  }
 0x27f   :  { %3722 = vmatmul.mubr.bf16.gmra.mrb[24].mxu0 %v2388_v48  ;;  %4174 = vmatmul.mubr.bf16.gmra.mrb[24].mxu1 %v2388_v48 }
 0x280   :  { %3731 = vmatprep.mubr.bf16.mxu0 %v2396_v49  ;;  %4183 = vmatprep.mubr.bf16.mxu1 %v2396_v49 }
 0x287   :  { %3732 = vmatmul.mubr.bf16.gmra.mrb[28].mxu0 %v2395_v52  ;;  %4184 = vmatmul.mubr.bf16.gmra.mrb[28].mxu1 %v2395_v52 }
 0x288   :  { %3774 = vmatprep.mubr.bf16.mxu0 %v18673_v53  ;;  %4226 = vmatprep.mubr.bf16.mxu1 %v18673_v53 }
 0x28f   :  { %10664 = vmatmul.mubr.msk.bf16.vlgmr.msra.gmra.mrb[0].mxu0 %vm3378_vm0, %v2348_v56  ;;  %10672 = vmatmul.mubr.msk.bf16.vlgmr.msra.gmra.mrb[0].mxu1 %vm3378_vm0, %v2348_v56  ;;  %v11923_v56 = vld [vmem:[#allocation8 + $0xe0] ss:$8 sps:$4 sm:$0xff]  }
 0x290   :  { %3784 = vmatprep.mubr.bf16.mxu0 %v18673_v53  ;;  %4236 = vmatprep.mubr.bf16.mxu1 %v18673_v53 }
 0x291   :  { %5286 = vmatpush1.bf16.msra.mxu0 %v11881_v15 }
 0x292   :  { %5287 = vmatprep.subr.bf16.mxu0 %v11886_v16 }
 0x295   :  { %5288 = vmatpush1.bf16.msra.mxu0 %v11884_v17 }
 0x296   :  { %5289 = vmatprep.subr.bf16.mxu0 %v11889_v18 }
 0x297   :  { %10665 = vmatmul.mubr.msk.bf16.gmra.mrb[4].mxu0 %vm3378_vm0, %v2355_v59  ;;  %10673 = vmatmul.mubr.msk.bf16.gmra.mrb[4].mxu1 %vm3378_vm0, %v2355_v59 }
 0x298   :  { %3794 = vmatprep.mubr.bf16.mxu0 %v18673_v53  ;;  %4246 = vmatprep.mubr.bf16.mxu1 %v18673_v53 }
 0x299   :  { %5290 = vmatpush1.bf16.msra.mxu0 %v11887_v19 }
 0x29a   :  { %5291 = vmatprep.subr.bf16.mxu0 %v11892_v20 }
 0x29d   :  { %5292 = vmatpush1.bf16.msra.mxu0 %v11890_v21 }
 0x29e   :  { %5293 = vmatprep.subr.bf16.mxu0 %v11895_v22 }
 0x29f   :  { %10666 = vmatmul.mubr.msk.bf16.gmra.mrb[8].mxu0 %vm3378_vm0, %v2362_v62  ;;  %10674 = vmatmul.mubr.msk.bf16.gmra.mrb[8].mxu1 %vm3378_vm0, %v2362_v62  ;;  %v11928_v62 = vld [vmem:[#allocation8 + $0xf4] ss:$8 sps:$4 sm:$0xff]  }
 0x2a0   :  { %3804 = vmatprep.mubr.bf16.mxu0 %v18673_v53  ;;  %4256 = vmatprep.mubr.bf16.mxu1 %v18673_v53 }
 0x2a1   :  { %5294 = vmatpush1.bf16.msra.mxu0 %v11893_v23 }
 0x2a2   :  { %5295 = vmatprep.subr.bf16.mxu0 %v11898_v24 }
 0x2a5   :  { %5296 = vmatpush1.bf16.msra.mxu0 %v11896_v25 }
 0x2a6   :  { %5297 = vmatprep.subr.bf16.mxu0 %v11901_v27 }
 0x2a7   :  { %10667 = vmatmul.mubr.msk.bf16.gmra.mrb[12].mxu0 %vm3378_vm0, %v2369_v1  ;;  %10675 = vmatmul.mubr.msk.bf16.gmra.mrb[12].mxu1 %vm3378_vm0, %v2369_v1 }
 0x2a8   :  { %3814 = vmatprep.mubr.bf16.mxu0 %v18673_v53  ;;  %4266 = vmatprep.mubr.bf16.mxu1 %v18673_v53 }
 0x2a9   :  { %5298 = vmatpush1.bf16.msra.mxu0 %v11899_v26 }
 0x2aa   :  { %5299 = vmatprep.subr.bf16.mxu0 %v11904_v28 }
 0x2ad   :  { %5300 = vmatpush1.bf16.msra.mxu0 %v11902_v29 }
 0x2ae   :  { %5301 = vmatprep.subr.bf16.mxu0 %v11907_v30 }
 0x2af   :  { %10668 = vmatmul.mubr.msk.bf16.gmra.mrb[16].mxu0 %vm3378_vm0, %v2376_v4  ;;  %10676 = vmatmul.mubr.msk.bf16.gmra.mrb[16].mxu1 %vm3378_vm0, %v2376_v4 }
 0x2b0   :  { %3824 = vmatprep.mubr.bf16.mxu0 %v18673_v53  ;;  %4276 = vmatprep.mubr.bf16.mxu1 %v18673_v53 }
 0x2b1   :  { %5302 = vmatpush1.bf16.msra.mxu0 %v11905_v31 }
 0x2b2   :  { %5303 = vmatprep.subr.bf16.mxu0 %v11910_v32 }
 0x2b5   :  { %5304 = vmatpush1.bf16.msra.mxu0 %v11908_v33 }
 0x2b6   :  { %5305 = vmatprep.subr.bf16.mxu0 %v11913_v34 }
 0x2b7   :  { %10669 = vmatmul.mubr.msk.bf16.gmra.mrb[20].mxu0 %vm3378_vm0, %v2383_v7  ;;  %10677 = vmatmul.mubr.msk.bf16.gmra.mrb[20].mxu1 %vm3378_vm0, %v2383_v7 }
 0x2b8   :  { %3834 = vmatprep.mubr.bf16.mxu0 %v18673_v53  ;;  %4286 = vmatprep.mubr.bf16.mxu1 %v18673_v53 }
 0x2b9   :  { %5306 = vmatpush1.bf16.msra.mxu0 %v11911_v35 }
 0x2ba   :  { %5307 = vmatprep.subr.bf16.mxu0 %v11916_v36  ;;  %v11931_v36 = vld [vmem:[#allocation8 + $0x104] ss:$8 sps:$4 sm:$0xff]  }
 0x2bd   :  { %5308 = vmatpush1.bf16.msra.mxu0 %v11914_v37 }
 0x2be   :  { %5309 = vmatprep.subr.bf16.mxu0 %v11919_v38 }
 0x2bf   :  { %10670 = vmatmul.mubr.msk.bf16.gmra.mrb[24].mxu0 %vm3378_vm0, %v2390_v10  ;;  %10678 = vmatmul.mubr.msk.bf16.gmra.mrb[24].mxu1 %vm3378_vm0, %v2390_v10 }
 0x2c0   :  { %3844 = vmatprep.mubr.bf16.mxu0 %v18673_v53  ;;  %4296 = vmatprep.mubr.bf16.mxu1 %v18673_v53 }
 0x2c1   :  { %5310 = vmatpush1.bf16.msra.mxu0 %v11917_v39 }
 0x2c2   :  { %5311 = vmatprep.subr.bf16.mxu0 %v11922_v41 }
 0x2c5   :  { %5312 = vmatpush1.bf16.msra.mxu0 %v11920_v40 }
 0x2c6   :  { %5313 = vmatprep.subr.bf16.mxu0 %v11925_v43 }
 0x2c7   :  { %10671 = vmatmul.mubr.msk.bf16.gmra.mrb[28].mxu0 %vm3378_vm0, %v2397_v13  ;;  %10679 = vmatmul.mubr.msk.bf16.gmra.mrb[28].mxu1 %vm3378_vm0, %v2397_v13 }
 0x2c9   :  { %5314 = vmatpush1.bf16.msra.mxu0 %v11923_v56 }
 0x2ca   :  { %5315 = vmatprep.subr.bf16.mxu0 %v11928_v62 }
 0x2cd   :  { %5316 = vmatpush1.bf16.msra.mxu0 %v11926_v6 }
 0x2ce   :  { %5398 = vmatprep.subr.bf16.mxu0 %v11931_v36 }
 0x362   :  { %v14816_v42 = vpop.f32.mrb[0].mxu0  ;;  %v14818_v44 = vpop.f32.mrb[0].mxu1 }
 0x363   :  { %18763 = vst [vmem:[#allocation28_spill] sm:$0xff] %v14818_v44  ;;  %v14820_v45 = vpop.f32.mrb[1].mxu0  ;;  %v4399_v46 = vmul.f32 %v14816_v42, %v14816_v42  ;;  %v14824_v47 = vpop.f32.mrb[1].mxu1  ;;  %v4401_v49 = vmul.f32 %v14818_v44, %v14818_v44 }
 0x364   :  { %18764 = vst [vmem:[#allocation29_spill] sm:$0xff] %v14824_v47  ;;  %v14826_v48 = vpop.f32.mrb[2].mxu0  ;;  %v4400_v50 = vmul.f32 %v14820_v45, %v14820_v45  ;;  %v14836_v54 = vpop.f32.mrb[2].mxu1  ;;  %v4402_v63 = vmul.f32 %v14824_v47, %v14824_v47 }
 0x365   :  { %v4310_v51 = vadd.f32 %v14826_v48, %v14816_v42  ;;  %v4403_v52 = vmul.f32 %v14826_v48, %v14826_v48  ;;  %18765 = vst [vmem:[#allocation30_spill] sm:$0xff] %v14836_v54  ;;  %v14838_v55 = vpop.f32.mrb[3].mxu0  ;;  %v4352_v57 = vadd.f32 %v14836_v54, %v14818_v44  ;;  %v4405_v58 = vmul.f32 %v14836_v54, %v14836_v54  ;;  %v14848_v61 = vpop.f32.mrb[3].mxu1 }
 0x366   :  { %v4331_v59 = vadd.f32 %v14838_v55, %v14820_v45  ;;  %v4404_v60 = vmul.f32 %v14838_v55, %v14838_v55  ;;  %18766 = vst [vmem:[#allocation31_spill] sm:$0xff] %v14848_v61  ;;  %v4373_v1 = vadd.f32 %v14848_v61, %v14824_v47  ;;  %v4406_v2 = vmul.f32 %v14848_v61, %v14848_v61 }
 0x367   :  { %v4463_v0 = vadd.f32 %v4403_v52, %v4399_v46  ;;  %v4505_v3 = vadd.f32 %v4405_v58, %v4401_v49 }
 0x368   :  { %v4484_v4 = vadd.f32 %v4404_v60, %v4400_v50  ;;  %v4526_v5 = vadd.f32 %v4406_v2, %v4402_v63 }
 0x36a   :  { %v14856_v7 = vpop.f32.mrb[4].mxu0  ;;  %v14861_v10 = vpop.f32.mrb[4].mxu1 }
 0x36b   :  { %v4311_v8 = vadd.f32 %v4310_v51, %v14856_v7  ;;  %v4407_v9 = vmul.f32 %v14856_v7, %v14856_v7  ;;  %18767 = vst [vmem:[#allocation32_spill] sm:$0xff] %v14861_v10  ;;  %v14863_v11 = vpop.f32.mrb[5].mxu0  ;;  %v4353_v12 = vadd.f32 %v4352_v57, %v14861_v10  ;;  %v4409_v13 = vmul.f32 %v14861_v10, %v14861_v10  ;;  %v14871_v16 = vpop.f32.mrb[5].mxu1 }
 0x36c   :  { %v4332_v14 = vadd.f32 %v4331_v59, %v14863_v11  ;;  %v4408_v15 = vmul.f32 %v14863_v11, %v14863_v11  ;;  %18768 = vst [vmem:[#allocation33_spill] sm:$0xff] %v14871_v16  ;;  %v14873_v17 = vpop.f32.mrb[6].mxu0  ;;  %v4374_v19 = vadd.f32 %v4373_v1, %v14871_v16  ;;  %v4410_v20 = vmul.f32 %v14871_v16, %v14871_v16  ;;  %v14879_v22 = vpop.f32.mrb[6].mxu1 }
 0x36d   :  { %v4464_v18 = vadd.f32 %v4463_v0, %v4407_v9  ;;  %v4312_v21 = vadd.f32 %v4311_v8, %v14873_v17  ;;  %18769 = vst [vmem:[#allocation34_spill] sm:$0xff] %v14879_v22  ;;  %v14881_v23 = vpop.f32.mrb[7].mxu0  ;;  %v4506_v24 = vadd.f32 %v4505_v3, %v4409_v13  ;;  %v4411_v26 = vmul.f32 %v14873_v17, %v14873_v17  ;;  %v14886_v28 = vpop.f32.mrb[7].mxu1 }
 0x36e   :  { %v4485_v25 = vadd.f32 %v4484_v4, %v4408_v15  ;;  %v4354_v27 = vadd.f32 %v4353_v12, %v14879_v22  ;;  %18770 = vst [vmem:[#allocation35_spill] sm:$0xff] %v14886_v28  ;;  %v4527_v29 = vadd.f32 %v4526_v5, %v4410_v20  ;;  %v4413_v30 = vmul.f32 %v14879_v22, %v14879_v22 }
 0x36f   :  { %v4333_v31 = vadd.f32 %v4332_v14, %v14881_v23  ;;  %v4412_v32 = vmul.f32 %v14881_v23, %v14881_v23  ;;  %v4465_v33 = vadd.f32 %v4464_v18, %v4411_v26  ;;  %v4375_v34 = vadd.f32 %v4374_v19, %v14886_v28 }
 0x370   :  { %v4414_v35 = vmul.f32 %v14886_v28, %v14886_v28  ;;  %v4507_v37 = vadd.f32 %v4506_v24, %v4413_v30 }
 0x371   :  { %v4486_v38 = vadd.f32 %v4485_v25, %v4412_v32 }
 0x372   :  { %v4528_v39 = vadd.f32 %v4527_v29, %v4414_v35  ;;  %v14896_v40 = vpop.f32.mrb[8].mxu0  ;;  %v14901_v46 = vpop.f32.mrb[8].mxu1 }
 0x373   :  { %v4313_v41 = vadd.f32 %v4312_v21, %v14896_v40  ;;  %v4415_v43 = vmul.f32 %v14896_v40, %v14896_v40  ;;  %18771 = vst [vmem:[#allocation36_spill] sm:$0xff] %v14901_v46  ;;  %v14903_v49 = vpop.f32.mrb[9].mxu0  ;;  %v4355_v50 = vadd.f32 %v4354_v27, %v14901_v46  ;;  %v4417_v51 = vmul.f32 %v14901_v46, %v14901_v46  ;;  %v14911_v57 = vpop.f32.mrb[9].mxu1 }
 0x374   :  { %v4334_v52 = vadd.f32 %v4333_v31, %v14903_v49  ;;  %v4416_v56 = vmul.f32 %v14903_v49, %v14903_v49  ;;  %18772 = vst [vmem:[#allocation37_spill] sm:$0xff] %v14911_v57  ;;  %v14913_v58 = vpop.f32.mrb[10].mxu0  ;;  %v4376_v60 = vadd.f32 %v4375_v34, %v14911_v57  ;;  %v4418_v62 = vmul.f32 %v14911_v57, %v14911_v57  ;;  %v14919_v0 = vpop.f32.mrb[10].mxu1 }
 0x375   :  { %v4466_v59 = vadd.f32 %v4465_v33, %v4415_v43  ;;  %v4314_v63 = vadd.f32 %v4313_v41, %v14913_v58  ;;  %18773 = vst [vmem:[#allocation38_spill] sm:$0xff] %v14919_v0  ;;  %v14921_v1 = vpop.f32.mrb[11].mxu0  ;;  %v4508_v2 = vadd.f32 %v4507_v37, %v4417_v51  ;;  %v4419_v4 = vmul.f32 %v14913_v58, %v14913_v58  ;;  %v14926_v6 = vpop.f32.mrb[11].mxu1 }
 0x376   :  { %v4487_v3 = vadd.f32 %v4486_v38, %v4416_v56  ;;  %v4356_v5 = vadd.f32 %v4355_v50, %v14919_v0  ;;  %18774 = vst [vmem:[#allocation39_spill] sm:$0xff] %v14926_v6  ;;  %v4529_v8 = vadd.f32 %v4528_v39, %v4418_v62  ;;  %v4421_v9 = vmul.f32 %v14919_v0, %v14919_v0 }
 0x377   :  { %v4335_v12 = vadd.f32 %v4334_v52, %v14921_v1  ;;  %v4420_v13 = vmul.f32 %v14921_v1, %v14921_v1  ;;  %v4467_v14 = vadd.f32 %v4466_v59, %v4419_v4  ;;  %v4377_v15 = vadd.f32 %v4376_v60, %v14926_v6 }
 0x378   :  { %v4422_v18 = vmul.f32 %v14926_v6, %v14926_v6  ;;  %v4509_v19 = vadd.f32 %v4508_v2, %v4421_v9 }
 0x379   :  { %v4488_v20 = vadd.f32 %v4487_v3, %v4420_v13 }
 0x37a   :  { %v4530_v21 = vadd.f32 %v4529_v8, %v4422_v18  ;;  %v14936_v24 = vpop.f32.mrb[12].mxu0  ;;  %v14941_v27 = vpop.f32.mrb[12].mxu1 }
 0x37b   :  { %v4315_v25 = vadd.f32 %v4314_v63, %v14936_v24  ;;  %v4423_v26 = vmul.f32 %v14936_v24, %v14936_v24  ;;  %18775 = vst [vmem:[#allocation40_spill] sm:$0xff] %v14941_v27  ;;  %v14943_v29 = vpop.f32.mrb[13].mxu0  ;;  %v4357_v30 = vadd.f32 %v4356_v5, %v14941_v27  ;;  %v4425_v31 = vmul.f32 %v14941_v27, %v14941_v27  ;;  %v14951_v34 = vpop.f32.mrb[13].mxu1 }
 0x37c   :  { %v4336_v32 = vadd.f32 %v4335_v12, %v14943_v29  ;;  %v4424_v33 = vmul.f32 %v14943_v29, %v14943_v29  ;;  %18776 = vst [vmem:[#allocation41_spill] sm:$0xff] %v14951_v34  ;;  %v14953_v35 = vpop.f32.mrb[14].mxu0  ;;  %v4378_v37 = vadd.f32 %v4377_v15, %v14951_v34  ;;  %v4426_v38 = vmul.f32 %v14951_v34, %v14951_v34  ;;  %v14959_v41 = vpop.f32.mrb[14].mxu1 }
 0x37d   :  { %v4468_v36 = vadd.f32 %v4467_v14, %v4423_v26  ;;  %v4316_v39 = vadd.f32 %v4315_v25, %v14953_v35  ;;  %18777 = vst [vmem:[#allocation42_spill] sm:$0xff] %v14959_v41  ;;  %v14961_v43 = vpop.f32.mrb[15].mxu0  ;;  %v4510_v50 = vadd.f32 %v4509_v19, %v4425_v31  ;;  %v4427_v52 = vmul.f32 %v14953_v35, %v14953_v35  ;;  %v14966_v59 = vpop.f32.mrb[15].mxu1 }
 0x37e   :  { %v4489_v51 = vadd.f32 %v4488_v20, %v4424_v33  ;;  %v4358_v56 = vadd.f32 %v4357_v30, %v14959_v41  ;;  %18778 = vst [vmem:[#allocation43_spill] sm:$0xff] %v14966_v59  ;;  %v4531_v60 = vadd.f32 %v4530_v21, %v4426_v38  ;;  %v4429_v62 = vmul.f32 %v14959_v41, %v14959_v41 }
 0x37f   :  { %v4337_v63 = vadd.f32 %v4336_v32, %v14961_v43  ;;  %v4428_v2 = vmul.f32 %v14961_v43, %v14961_v43  ;;  %v4469_v3 = vadd.f32 %v4468_v36, %v4427_v52  ;;  %v4379_v4 = vadd.f32 %v4378_v37, %v14966_v59 }
 0x380   :  { %v4430_v5 = vmul.f32 %v14966_v59, %v14966_v59  ;;  %v4511_v8 = vadd.f32 %v4510_v50, %v4429_v62 }
 0x381   :  { %v4490_v9 = vadd.f32 %v4489_v51, %v4428_v2 }
 0x382   :  { %v4532_v12 = vadd.f32 %v4531_v60, %v4430_v5  ;;  %v14976_v13 = vpop.f32.mrb[16].mxu0  ;;  %v14981_v18 = vpop.f32.mrb[16].mxu1 }
 0x383   :  { %v4317_v14 = vadd.f32 %v4316_v39, %v14976_v13  ;;  %v4431_v15 = vmul.f32 %v14976_v13, %v14976_v13  ;;  %18779 = vst [vmem:[#allocation44_spill] sm:$0xff] %v14981_v18  ;;  %v14983_v19 = vpop.f32.mrb[17].mxu0  ;;  %v4359_v20 = vadd.f32 %v4358_v56, %v14981_v18  ;;  %v4433_v21 = vmul.f32 %v14981_v18, %v14981_v18  ;;  %v14991_v30 = vpop.f32.mrb[17].mxu1 }
 0x384   :  { %v4338_v25 = vadd.f32 %v4337_v63, %v14983_v19  ;;  %v4432_v26 = vmul.f32 %v14983_v19, %v14983_v19  ;;  %18780 = vst [vmem:[#allocation45_spill] sm:$0xff] %v14991_v30  ;;  %v14993_v31 = vpop.f32.mrb[18].mxu0  ;;  %v4380_v33 = vadd.f32 %v4379_v4, %v14991_v30  ;;  %v4434_v36 = vmul.f32 %v14991_v30, %v14991_v30  ;;  %v14999_v38 = vpop.f32.mrb[18].mxu1 }
 0x385   :  { %v4470_v32 = vadd.f32 %v4469_v3, %v4431_v15  ;;  %v4318_v37 = vadd.f32 %v4317_v14, %v14993_v31  ;;  %18781 = vst [vmem:[#allocation46_spill] sm:$0xff] %v14999_v38  ;;  %v15001_v39 = vpop.f32.mrb[19].mxu0  ;;  %v4512_v50 = vadd.f32 %v4511_v8, %v4433_v21  ;;  %v4435_v52 = vmul.f32 %v14993_v31, %v14993_v31  ;;  %v15006_v60 = vpop.f32.mrb[19].mxu1 }
 0x386   :  { %v4491_v51 = vadd.f32 %v4490_v9, %v4432_v26  ;;  %v4360_v56 = vadd.f32 %v4359_v20, %v14999_v38  ;;  %18782 = vst [vmem:[#allocation47_spill] sm:$0xff] %v15006_v60  ;;  %v4533_v62 = vadd.f32 %v4532_v12, %v4434_v36  ;;  %v4437_v63 = vmul.f32 %v14999_v38, %v14999_v38 }
 0x387   :  { %v4339_v2 = vadd.f32 %v4338_v25, %v15001_v39  ;;  %v4436_v3 = vmul.f32 %v15001_v39, %v15001_v39  ;;  %v4471_v4 = vadd.f32 %v4470_v32, %v4435_v52  ;;  %v4381_v5 = vadd.f32 %v4380_v33, %v15006_v60 }
 0x388   :  { %v4438_v8 = vmul.f32 %v15006_v60, %v15006_v60  ;;  %v4513_v9 = vadd.f32 %v4512_v50, %v4437_v63 }
 0x389   :  { %v4492_v14 = vadd.f32 %v4491_v51, %v4436_v3 }
 0x38a   :  { %v4534_v15 = vadd.f32 %v4533_v62, %v4438_v8  ;;  %v15016_v20 = vpop.f32.mrb[20].mxu0  ;;  %v15021_v25 = vpop.f32.mrb[20].mxu1 }
 0x38b   :  { %v4319_v12 = vadd.f32 %v4318_v37, %v15016_v20  ;;  %v4439_v21 = vmul.f32 %v15016_v20, %v15016_v20  ;;  %18783 = vst [vmem:[#allocation48_spill] sm:$0xff] %v15021_v25  ;;  %v15023_v26 = vpop.f32.mrb[21].mxu0  ;;  %v4361_v32 = vadd.f32 %v4360_v56, %v15021_v25  ;;  %v4441_v33 = vmul.f32 %v15021_v25, %v15021_v25  ;;  %v15031_v51 = vpop.f32.mrb[21].mxu1 }
 0x38c   :  { %v4340_v36 = vadd.f32 %v4339_v2, %v15023_v26  ;;  %v4440_v50 = vmul.f32 %v15023_v26, %v15023_v26  ;;  %18784 = vst [vmem:[#allocation49_spill] sm:$0xff] %v15031_v51  ;;  %v15033_v37 = vpop.f32.mrb[22].mxu0  ;;  %v4382_v62 = vadd.f32 %v4381_v5, %v15031_v51  ;;  %v4442_v63 = vmul.f32 %v15031_v51, %v15031_v51  ;;  %v15039_v3 = vpop.f32.mrb[22].mxu1 }
 0x38d   :  { %v4472_v52 = vadd.f32 %v4471_v4, %v4439_v21  ;;  %v4320_v56 = vadd.f32 %v4319_v12, %v15033_v37  ;;  %18785 = vst [vmem:[#allocation50_spill] sm:$0xff] %v15039_v3  ;;  %v15041_v8 = vpop.f32.mrb[23].mxu0  ;;  %v4514_v2 = vadd.f32 %v4513_v9, %v4441_v33  ;;  %v4443_v25 = vmul.f32 %v15033_v37, %v15033_v37  ;;  %v15046_v18 = vpop.f32.mrb[23].mxu1 }
 0x38e   :  { %v4493_v53 = vadd.f32 %v4492_v14, %v4440_v50  ;;  %v4362_v38 = vadd.f32 %v4361_v32, %v15039_v3  ;;  %18786 = vst [vmem:[#allocation51_spill] sm:$0xff] %v15046_v18  ;;  %v4535_v4 = vadd.f32 %v4534_v15, %v4442_v63  ;;  %v4445_v5 = vmul.f32 %v15039_v3, %v15039_v3 }
 0x38f   :  { %v4341_v21 = vadd.f32 %v4340_v36, %v15041_v8  ;;  %v4444_v12 = vmul.f32 %v15041_v8, %v15041_v8  ;;  %v4473_v51 = vadd.f32 %v4472_v52, %v4443_v25  ;;  %v4383_v9 = vadd.f32 %v4382_v62, %v15046_v18 }
 0x390   :  { %v4446_v14 = vmul.f32 %v15046_v18, %v15046_v18  ;;  %v4515_v33 = vadd.f32 %v4514_v2, %v4445_v5 }
 0x391   :  { %v4494_v50 = vadd.f32 %v4493_v53, %v4444_v12 }
 0x392   :  { %v4536_v32 = vadd.f32 %v4535_v4, %v4446_v14  ;;  %v15056_v60 = vpop.f32.mrb[24].mxu0  ;;  %v15061_v36 = vpop.f32.mrb[24].mxu1 }
 0x393   :  { %v4321_v15 = vadd.f32 %v4320_v56, %v15056_v60  ;;  %v4447_v63 = vmul.f32 %v15056_v60, %v15056_v60  ;;  %18787 = vst [vmem:[#allocation52_spill] sm:$0xff] %v15061_v36  ;;  %v15063_v3 = vpop.f32.mrb[25].mxu0  ;;  %v4363_v25 = vadd.f32 %v4362_v38, %v15061_v36  ;;  %v4449_v52 = vmul.f32 %v15061_v36, %v15061_v36  ;;  %v15071_v2 = vpop.f32.mrb[25].mxu1 }
 0x394   :  { %v4342_v62 = vadd.f32 %v4341_v21, %v15063_v3  ;;  %v4448_v53 = vmul.f32 %v15063_v3, %v15063_v3  ;;  %18788 = vst [vmem:[#allocation53_spill] sm:$0xff] %v15071_v2  ;;  %v15073_v56 = vpop.f32.mrb[26].mxu0  ;;  %v4384_v5 = vadd.f32 %v4383_v9, %v15071_v2  ;;  %v4450_v12 = vmul.f32 %v15071_v2, %v15071_v2  ;;  %v15079_v14 = vpop.f32.mrb[26].mxu1 }
 0x395   :  { %v4474_v4 = vadd.f32 %v4473_v51, %v4447_v63  ;;  %v4322_v38 = vadd.f32 %v4321_v15, %v15073_v56  ;;  %18789 = vst [vmem:[#allocation54_spill] sm:$0xff] %v15079_v14  ;;  %v15081_v36 = vpop.f32.mrb[27].mxu0  ;;  %v4516_v21 = vadd.f32 %v4515_v33, %v4449_v52  ;;  %v4451_v30 = vmul.f32 %v15073_v56, %v15073_v56  ;;  %v15086_v27 = vpop.f32.mrb[27].mxu1 }
 0x396   :  { %v4495_v18 = vadd.f32 %v4494_v50, %v4448_v53  ;;  %v4364_v41 = vadd.f32 %v4363_v25, %v15079_v14  ;;  %18790 = vst [vmem:[#allocation55_spill] sm:$0xff] %v15086_v27  ;;  %v4537_v51 = vadd.f32 %v4536_v32, %v4450_v12  ;;  %v4453_v9 = vmul.f32 %v15079_v14, %v15079_v14 }
 0x397   :  { %v4343_v63 = vadd.f32 %v4342_v62, %v15081_v36  ;;  %v4452_v15 = vmul.f32 %v15081_v36, %v15081_v36  ;;  %v4475_v2 = vadd.f32 %v4474_v4, %v4451_v30  ;;  %v4385_v33 = vadd.f32 %v4384_v5, %v15086_v27 }
 0x398   :  { %v4454_v50 = vmul.f32 %v15086_v27, %v15086_v27  ;;  %v4517_v52 = vadd.f32 %v4516_v21, %v4453_v9 }
 0x399   :  { %v4496_v53 = vadd.f32 %v4495_v18, %v4452_v15 }
 0x39a   :  { %v4538_v25 = vadd.f32 %v4537_v51, %v4454_v50  ;;  %v15096_v59 = vpop.f32.mrb[28].mxu0  ;;  %v15101_v62 = vpop.f32.mrb[28].mxu1 }
 0x39b   :  { %18791 = vst [vmem:[#allocation56_spill] sm:$0xff] %v15096_v59  ;;  %v4323_v32 = vadd.f32 %v4322_v38, %v15096_v59  ;;  %v4455_v12 = vmul.f32 %v15096_v59, %v15096_v59  ;;  %18792 = vst [vmem:[#allocation57_spill] sm:$0xff] %v15101_v62  ;;  %v15103_v14 = vpop.f32.mrb[29].mxu0  ;;  %v4365_v30 = vadd.f32 %v4364_v41, %v15101_v62  ;;  %v15111_v21 = vpop.f32.mrb[29].mxu1 }
 0x39c   :  { %v4457_v4 = vmul.f32 %v15101_v62, %v15101_v62  ;;  %v4344_v5 = vadd.f32 %v4343_v63, %v15103_v14  ;;  %v4456_v18 = vmul.f32 %v15103_v14, %v15103_v14  ;;  %18793 = vst [vmem:[#allocation58_spill] sm:$0xff] %v15111_v21  ;;  %v15113_v38 = vpop.f32.mrb[30].mxu0  ;;  %v4386_v9 = vadd.f32 %v4385_v33, %v15111_v21  ;;  %v15119_v50 = vpop.f32.mrb[30].mxu1 }
 0x39d   :  { %18794 = vst [vmem:[#allocation59_spill] sm:$0xff] %v15113_v38  ;;  %v4476_v51 = vadd.f32 %v4475_v2, %v4455_v12  ;;  %v4458_v15 = vmul.f32 %v15111_v21, %v15111_v21  ;;  %v4324_v41 = vadd.f32 %v4323_v32, %v15113_v38  ;;  %18795 = vst [vmem:[#allocation60_spill] sm:$0xff] %v15119_v50  ;;  %v15121_v62 = vpop.f32.mrb[31].mxu0  ;;  %v15126_v46 = vpop.f32.mrb[31].mxu1 }
 0x39e   :  { %18796 = vst [vmem:[#allocation61_spill] sm:$0xff] %v15121_v62  ;;  %v4518_v63 = vadd.f32 %v4517_v52, %v4457_v4  ;;  %v4497_v27 = vadd.f32 %v4496_v53, %v4456_v18  ;;  %v4459_v34 = vmul.f32 %v15113_v38, %v15113_v38  ;;  %v4366_v0 = vadd.f32 %v4365_v30, %v15119_v50 }
 0x39f   :  { %v4539_v2 = vadd.f32 %v4538_v25, %v4458_v15  ;;  %v4325_v33 = vrot.slane %v4324_v41, 4  ;;  %v4461_v12 = vmul.f32 %v15119_v50, %v15119_v50  ;;  %v4345_v32 = vadd.f32 %v4344_v5, %v15121_v62 }
 0x3a0   :  { %v4477_v21 = vadd.f32 %v4476_v51, %v4459_v34  ;;  %v4367_v6 = vrot.slane %v4366_v0, 4  ;;  %v4460_v52 = vmul.f32 %v15121_v62, %v15121_v62  ;;  %v4387_v53 = vadd.f32 %v4386_v9, %v15126_v46 }
 0x3a1   :  { %v4326_v4 = vadd.f32 %v4325_v33, %v4324_v41  ;;  %v4519_v18 = vadd.f32 %v4518_v63, %v4461_v12  ;;  %v4346_v57 = vrot.slane %v4345_v32, 4  ;;  %v4462_v30 = vmul.f32 %v15126_v46, %v15126_v46 }
 0x3a2   :  { %v4478_v25 = vrot.slane %v4477_v21, 4  ;;  %v4368_v15 = vadd.f32 %v4367_v6, %v4366_v0  ;;  %v4498_v22 = vadd.f32 %v4497_v27, %v4460_v52  ;;  %v4388_v10 = vrot.slane %v4387_v53, 4 }
 0x3a3   :  { %v4327_v50 = vrot.slane %v4326_v4, 2  ;;  %v4520_v28 = vrot.slane %v4519_v18, 4  ;;  %v4347_v5 = vadd.f32 %v4346_v57, %v4345_v32  ;;  %v4540_v34 = vadd.f32 %v4539_v2, %v4462_v30 }
 0x3a4   :  { %v4479_v51 = vadd.f32 %v4478_v25, %v4477_v21  ;;  %v4369_v16 = vrot.slane %v4368_v15, 2  ;;  %v4499_v54 = vrot.slane %v4498_v22, 4  ;;  %v4389_v44 = vadd.f32 %v4388_v10, %v4387_v53 }
 0x3a5   :  { %v4328_v61 = vadd.f32 %v4327_v50, %v4326_v4  ;;  %v4521_v9 = vadd.f32 %v4520_v28, %v4519_v18  ;;  %v4348_v41 = vrot.slane %v4347_v5, 2  ;;  %v4541_v63 = vrot.slane %v4540_v34, 4 }
 0x3a6   :  { %v4480_v33 = vrot.slane %v4479_v51, 2  ;;  %v4370_v12 = vadd.f32 %v4369_v16, %v4368_v15  ;;  %v4500_v47 = vadd.f32 %v4499_v54, %v4498_v22  ;;  %v4390_v38 = vrot.slane %v4389_v44, 2 }
 0x3a7   :  { %v4329_v59 = vrot.slane %v4328_v61, 1  ;;  %v4522_v0 = vrot.slane %v4521_v9, 2  ;;  %v4349_v6 = vadd.f32 %v4348_v41, %v4347_v5  ;;  %v4542_v27 = vadd.f32 %v4541_v63, %v4540_v34 }
 0x3a8   :  { %v4481_v52 = vadd.f32 %v4480_v33, %v4479_v51  ;;  %v4371_v62 = vrot.slane %v4370_v12, 1  ;;  %v4501_v57 = vrot.slane %v4500_v47, 2  ;;  %v4391_v2 = vadd.f32 %v4390_v38, %v4389_v44 }
 0x3a9   :  { %v4330_v21 = vadd.f32 %v4329_v59, %v4328_v61  ;;  %v4523_v32 = vadd.f32 %v4522_v0, %v4521_v9  ;;  %v4350_v30 = vrot.slane %v4349_v6, 1  ;;  %v4543_v10 = vrot.slane %v4542_v27, 2 }
 0x3aa   :  { %v4482_v50 = vrot.slane %v4481_v52, 1  ;;  %v4372_v28 = vadd.f32 %v4371_v62, %v4370_v12  ;;  %v4502_v53 = vadd.f32 %v4501_v57, %v4500_v47  ;;  %v4392_v4 = vrot.slane %v4391_v2, 1 }
 0x3ab   :  { %v15136_v18 = vmul.f32 0.0078125, %v4330_v21  ;;  %v4524_v54 = vrot.slane %v4523_v32, 1  ;;  %v4351_v16 = vadd.f32 %v4350_v30, %v4349_v6  ;;  %v4544_v22 = vadd.f32 %v4543_v10, %v4542_v27 }
 0x3ac   :  { %v4483_v25 = vadd.f32 %v4482_v50, %v4481_v52  ;;  %v4397_v15 = vmul.f32 0.0078125, %v4372_v28  ;;  %v4503_v5 = vrot.slane %v4502_v53, 1  ;;  %v4393_v34 = vadd.f32 %v4392_v4, %v4391_v2 }
 0x3ad   :  { %v4551_v44 = vmul.f32 %v15136_v18, %v15136_v18  ;;  %v4525_v61 = vadd.f32 %v4524_v54, %v4523_v32  ;;  %v4396_v59 = vmul.f32 0.0078125, %v4351_v16  ;;  %v4545_v38 = vrot.slane %v4544_v22, 1 }
 0x3ae   :  { %v4547_v51 = vmul.f32 0.0078125, %v4483_v25  ;;  %v4553_v9 = vmul.f32 %v4397_v15, %v4397_v15  ;;  %v4504_v62 = vadd.f32 %v4503_v5, %v4502_v53  ;;  %v4398_v47 = vmul.f32 0.0078125, %v4393_v34 }
 0x3af   :  { %v4549_v41 = vmul.f32 0.0078125, %v4525_v61  ;;  %v4552_v63 = vmul.f32 %v4396_v59, %v4396_v59  ;;  %v4546_v33 = vadd.f32 %v4545_v38, %v4544_v22  ;;  %v13008_v54 = vmov 1966171168  }
 0x3b0   :  { %v4555_v12 = vsub.f32 %v4547_v51, %v4551_v44  ;;  %v4548_v0 = vmul.f32 0.0078125, %v4504_v62  ;;  %v4554_v6 = vmul.f32 %v4398_v47, %v4398_v47  ;;  %v4578_v16 = vunpack.c.l.s4 %v13008_v54 }
 0x3b1   :  { %v4557_v27 = vsub.f32 %v4549_v41, %v4553_v9  ;;  %v4550_v52 = vmul.f32 0.0078125, %v4546_v33  ;;  %v4580_v22 = vlaneseq }
 0x3b2   :  { %v4559_v57 = vmax.f32 %v4555_v12, 0.0  ;;  %v4556_v2 = vsub.f32 %v4548_v0, %v4552_v63  ;;  %v4579_v25 = vunpack.c.0.s8 %v4578_v16  ;;  %v4307_v12 = vld [vmem:[%s18670_s12] ss:$8 sm:$0xf] }
 0x3b3   :  { %v4561_v21 = vmax.f32 %v4557_v27, 0.0  ;;  %v4558_v30 = vsub.f32 %v4550_v52, %v4554_v6  ;;  %v15140_v5 = vshrl.u32 %v4580_v22, 7 }
 0x3b4   :  { %v4563_v10 = vadd.f32 1e-05, %v4559_v57  ;;  %v4560_v32 = vmax.f32 %v4556_v2, 0.0 }
 0x3b5   :  { %v4565_v50 = vadd.f32 1e-05, %v4561_v21  ;;  %v4562_v28 = vmax.f32 %v4558_v30, 0.0  ;;  %18797 = vst [vmem:[#allocation62_spill] sm:$0xff] %v15140_v5  ;;  %v15143_v61 = vsub.s32 %v4579_v25, %v15140_v5  ;;  %v15151_v0 = vsub.s32 0, %v15140_v5 }
 0x3b6   :  { %12041 = vrsqrt.f32 %v4563_v10  ;;  %v4564_v4 = vadd.f32 1e-05, %v4560_v32  ;;  %v15155_v27 = vsub.s32 1, %v15140_v5  ;;  %v15158_v52 = vsub.s32 2, %v15140_v5 }
 0x3b7   :  { %12043 = vrsqrt.f32 %v4565_v50  ;;  %v4566_v53 = vadd.f32 1e-05, %v4562_v28  ;;  %18798 = vst [vmem:[#allocation63_spill] sm:$0xff] %v15143_v61  ;;  %18799 = vst [vmem:[#allocation64_spill] sm:$0xff] %v15151_v0  ;;  %v15161_v57 = vsub.s32 3, %v15140_v5 }
 0x3b8   :  { %12045 = vrsqrt.f32 %v4564_v4  ;;  %18800 = vst [vmem:[#allocation65_spill] sm:$0xff] %v15155_v27  ;;  %18801 = vst [vmem:[#allocation66_spill] sm:$0xff] %v15158_v52 }
 0x3b9   :  { %12047 = vrsqrt.f32 %v4566_v53  ;;  %18802 = vst [vmem:[#allocation67_spill] sm:$0xff] %v15161_v57 }
 0x3c0   :  { %v12042_v34 = vpop.eup %12041 }
 0x3c1   :  { %v12044_v44 = vpop.eup %12043 }
 0x3c2   :  { %v12046_v38 = vpop.eup %12045 }
 0x3c3   :  { %v12048_v51 = vpop.eup %12047  ;;  %v4575_v9 = vcombine.low %v12042_v34, %v12046_v38 }
 0x3c4   :  { %v4576_v62 = vcombine.low %v12044_v44, %v12048_v51 }
 0x3c5   :  { %v4583_v41 = vrot.slane %v4575_v9, %v15143_v61 }
 0x3c6   :  { %v4590_v63 = vrot.slane %v4576_v62, %v15143_v61 }
 0x3c8   :  { %v4591_v33 = vcombine.low %v4583_v41, %v4590_v63 }
 0x3ca   :  { %v4598_v6 = vrot.slane %v4591_v33, %v15143_v61 }
 0x3cc   :  { %v4600_v2 = vmul.f32 %v4598_v6, %v4307_v12 }
 0x3ce   :  { %v4605_v21 = vrot.slane %v4600_v2, %v15151_v0  ;;  %v4609_v30 = vrot.slane %v4600_v2, %v15155_v27  ;;  %v15166_v10 = vrot.slane %v4600_v2, %v15158_v52  ;;  %v15169_v32 = vrot.slane %v4600_v2, %v15161_v57  ;;  %v18805_v2 = vld [vmem:[#allocation59_spill] sm:$0xff] }
 0x3d0   :  { %v4622_v50 = vmul.f32 %v4605_v21, %v15136_v18  ;;  %v4623_v28 = vmul.f32 %v4609_v30, %v4396_v59  ;;  %v4624_v4 = vmul.f32 %v15166_v10, %v4397_v15  ;;  %v4625_v53 = vmul.f32 %v15169_v32, %v4398_v47 }
 0x3d1   :  { %v4719_v54 = vmul.f32 %v15169_v32, %v15126_v46  ;;  %v4657_v16 = vmul.f32 %v4609_v30, %v14820_v45  ;;  %v4661_v22 = vmul.f32 %v4609_v30, %v14838_v55  ;;  %v4656_v25 = vmul.f32 %v4605_v21, %v14816_v42 }
 0x3d2   :  { %v4630_v34 = vcombine.low %v4622_v50, %v4623_v28  ;;  %v4631_v44 = vcombine.low %v4624_v4, %v4625_v53  ;;  %v4660_v38 = vmul.f32 %v4605_v21, %v14826_v48  ;;  %v4665_v18 = vmul.f32 %v4609_v30, %v14863_v11  ;;  %v18807_v28 = vld [vmem:[#allocation31_spill] sm:$0xff]  ;;  %v18809_v4 = vld [vmem:[#allocation30_spill] sm:$0xff] }
 0x3d3   :  { %v4669_v59 = vmul.f32 %v4609_v30, %v14881_v23  ;;  %v4664_v15 = vmul.f32 %v4605_v21, %v14856_v7  ;;  %v4668_v47 = vmul.f32 %v4605_v21, %v14873_v17  ;;  %v4673_v46 = vmul.f32 %v4609_v30, %v14903_v49 }
 0x3d4   :  { %v4638_v45 = vrot.slane %v4630_v34, %v15143_v61  ;;  %v4645_v55 = vrot.slane %v4631_v44, %v15143_v61  ;;  %v4677_v42 = vmul.f32 %v4609_v30, %v14921_v1  ;;  %v4672_v51 = vmul.f32 %v4605_v21, %v14896_v40  ;;  %v10680_v1 = vld [vmem:[%s18670_s12 + $0x1] ss:$8 sm:$0xf] }
 0x3d5   :  { %v4676_v48 = vmul.f32 %v4605_v21, %v14913_v58  ;;  %v4681_v11 = vmul.f32 %v4609_v30, %v14943_v29  ;;  %v4685_v23 = vmul.f32 %v4609_v30, %v14961_v43  ;;  %v4680_v7 = vmul.f32 %v4605_v21, %v14936_v24  ;;  %v18810_v34 = vld [vmem:[#allocation33_spill] sm:$0xff] }
 0x3d6   :  { %v4646_v9 = vcombine.low %v4638_v45, %v4645_v55  ;;  %v4684_v17 = vmul.f32 %v4605_v21, %v14953_v35  ;;  %v4689_v49 = vmul.f32 %v4609_v30, %v14983_v19  ;;  %v4693_v62 = vmul.f32 %v4609_v30, %v15001_v39  ;;  %v18811_v45 = vld [vmem:[#allocation35_spill] sm:$0xff] }
 0x3d7   :  { %v4688_v40 = vmul.f32 %v4605_v21, %v14976_v13  ;;  %v4692_v58 = vmul.f32 %v4605_v21, %v14993_v31  ;;  %v4697_v29 = vmul.f32 %v4609_v30, %v15023_v26  ;;  %v4701_v43 = vmul.f32 %v4609_v30, %v15041_v8  ;;  %v18803_v26 = vld [vmem:[#allocation61_spill] sm:$0xff]  ;;  %v18804_v8 = vld [vmem:[#allocation56_spill] sm:$0xff] }
 0x3d8   :  { %v4653_v24 = vrot.slane %v4646_v9, %v15143_v61  ;;  %v4696_v35 = vmul.f32 %v4605_v21, %v15016_v20  ;;  %v4700_v19 = vmul.f32 %v4605_v21, %v15033_v37  ;;  %v4705_v39 = vmul.f32 %v4609_v30, %v15063_v3  ;;  %v18806_v20 = vld [vmem:[#allocation29_spill] sm:$0xff]  ;;  %v18812_v9 = vld [vmem:[#allocation32_spill] sm:$0xff] }
 0x3d9   :  { %v4709_v41 = vmul.f32 %v4609_v30, %v15081_v36  ;;  %v4704_v63 = vmul.f32 %v4605_v21, %v15056_v60  ;;  %v4708_v13 = vmul.f32 %v4605_v21, %v15073_v56  ;;  %v4713_v31 = vmul.f32 %v4609_v30, %v15103_v14  ;;  %v18808_v36 = vld [vmem:[#allocation28_spill] sm:$0xff] }
 0x3da   :  { %v4655_v33 = vsub.f32 %v10680_v1, %v4653_v24  ;;  %v4717_v12 = vmul.f32 %v4609_v30, %v18803_v26  ;;  %v4712_v6 = vmul.f32 %v4605_v21, %v18804_v8  ;;  %v4716_v50 = vmul.f32 %v4605_v21, %v18805_v2  ;;  %v18813_v24 = vld [vmem:[#allocation34_spill] sm:$0xff] }
 0x3db   :  { %v4659_v37 = vmul.f32 %v15169_v32, %v18806_v20  ;;  %v4663_v3 = vmul.f32 %v15169_v32, %v18807_v28  ;;  %v4658_v60 = vmul.f32 %v15166_v10, %v18808_v36  ;;  %v4662_v56 = vmul.f32 %v15166_v10, %v18809_v4 }
 0x3dc   :  { %v4724_v14 = vrot.slane %v4655_v33, %v15151_v0  ;;  %v4728_v30 = vrot.slane %v4655_v33, %v15155_v27  ;;  %v15225_v53 = vrot.slane %v4655_v33, %v15158_v52  ;;  %v15228_v21 = vrot.slane %v4655_v33, %v15161_v57 }
 0x3dd   :  { %v4667_v44 = vmul.f32 %v15169_v32, %v18810_v34  ;;  %v4671_v55 = vmul.f32 %v15169_v32, %v18811_v45  ;;  %v4666_v1 = vmul.f32 %v15166_v10, %v18812_v9  ;;  %v4670_v26 = vmul.f32 %v15166_v10, %v18813_v24 }
 0x3de   :  { %v4804_v8 = vadd.f32 %v15228_v21, %v4719_v54  ;;  %v4742_v2 = vadd.f32 %v4728_v30, %v4657_v16  ;;  %v4746_v20 = vadd.f32 %v4728_v30, %v4661_v22  ;;  %v4741_v28 = vadd.f32 %v4724_v14, %v4656_v25 }
 0x3df   :  { %v4745_v36 = vadd.f32 %v4724_v14, %v4660_v38  ;;  %v4750_v33 = vadd.f32 %v4728_v30, %v4665_v18  ;;  %v4754_v4 = vadd.f32 %v4728_v30, %v4669_v59  ;;  %v4749_v5 = vadd.f32 %v4724_v14, %v4664_v15 }
 0x3e0   :  { %12049 = vtanh.f32 %v4804_v8  ;;  %v4753_v34 = vadd.f32 %v4724_v14, %v4668_v47  ;;  %v4758_v57 = vadd.f32 %v4728_v30, %v4673_v46  ;;  %v4762_v52 = vadd.f32 %v4728_v30, %v4677_v42 }
 0x3e1   :  { %12051 = vtanh.f32 %v4742_v2  ;;  %v4757_v45 = vadd.f32 %v4724_v14, %v4672_v51  ;;  %v4761_v27 = vadd.f32 %v4724_v14, %v4676_v48  ;;  %v4766_v9 = vadd.f32 %v4728_v30, %v4681_v11 }
 0x3e2   :  { %12053 = vtanh.f32 %v4746_v20  ;;  %v4770_v0 = vadd.f32 %v4728_v30, %v4685_v23  ;;  %v4765_v24 = vadd.f32 %v4724_v14, %v4680_v7  ;;  %v4769_v61 = vadd.f32 %v4724_v14, %v4684_v17 }
 0x3e3   :  { %12055 = vtanh.f32 %v4741_v28  ;;  %v15239_v54 = vadd.f32 %v4728_v30, %v4689_v49  ;;  %v15241_v16 = vadd.f32 %v4728_v30, %v4693_v62  ;;  %v15243_v22 = vadd.f32 %v4724_v14, %v4688_v40  ;;  %v11934_v28 = vld [vmem:[#allocation8 + $0x114] ss:$8 sps:$4 sm:$0xff]  }
 0x3e4   :  { %12057 = vtanh.f32 %v4745_v36  ;;  %v15245_v25 = vadd.f32 %v4724_v14, %v4692_v58  ;;  %v15247_v38 = vadd.f32 %v4728_v30, %v4697_v29  ;;  %v15249_v18 = vadd.f32 %v4728_v30, %v4701_v43 }
 0x3e5   :  { %12059 = vtanh.f32 %v4750_v33  ;;  %v15251_v59 = vadd.f32 %v4724_v14, %v4696_v35  ;;  %v15253_v15 = vadd.f32 %v4724_v14, %v4700_v19  ;;  %v15255_v47 = vadd.f32 %v4728_v30, %v4705_v39  ;;  %v18814_v19 = vld [vmem:[#allocation37_spill] sm:$0xff]  ;;  %v18820_v33 = vld [vmem:[#allocation40_spill] sm:$0xff] }
 0x3e6   :  { %12061 = vtanh.f32 %v4754_v4  ;;  %v15257_v46 = vadd.f32 %v4728_v30, %v4709_v41  ;;  %v15259_v42 = vadd.f32 %v4724_v14, %v4704_v63  ;;  %v15261_v51 = vadd.f32 %v4724_v14, %v4708_v13  ;;  %v18815_v41 = vld [vmem:[#allocation39_spill] sm:$0xff]  ;;  %v18816_v13 = vld [vmem:[#allocation36_spill] sm:$0xff] }
 0x3e7   :  { %12063 = vtanh.f32 %v4749_v5  ;;  %v15263_v48 = vadd.f32 %v4728_v30, %v4713_v31  ;;  %v15265_v11 = vadd.f32 %v4728_v30, %v4717_v12  ;;  %v15267_v23 = vadd.f32 %v4724_v14, %v4712_v6  ;;  %v18817_v12 = vld [vmem:[#allocation38_spill] sm:$0xff] }
 0x3e8   :  { %12065 = vtanh.f32 %v4753_v34  ;;  %v15269_v7 = vadd.f32 %v4724_v14, %v4716_v50  ;;  %v15272_v17 = vadd.f32 %v15228_v21, %v4659_v37  ;;  %v15275_v49 = vadd.f32 %v15228_v21, %v4663_v3  ;;  %v18818_v50 = vld [vmem:[#allocation41_spill] sm:$0xff]  ;;  %v18819_v3 = vld [vmem:[#allocation43_spill] sm:$0xff]  ;;  %v18821_v34 = vld [vmem:[#allocation42_spill] sm:$0xff] }
 0x3e9   :  { %12067 = vtanh.f32 %v4758_v57  ;;  %v15278_v62 = vadd.f32 %v15225_v53, %v4658_v60  ;;  %v15281_v5 = vadd.f32 %v15225_v53, %v4662_v56  ;;  %v15284_v40 = vadd.f32 %v15228_v21, %v4667_v44 }
 0x3ea   :  { %v15286_v58 = vpop.eup %12049  ;;  %12069 = vtanh.f32 %v4762_v52  ;;  %v15289_v29 = vadd.f32 %v15228_v21, %v4671_v55  ;;  %v15292_v43 = vadd.f32 %v15225_v53, %v4666_v1  ;;  %v15295_v57 = vadd.f32 %v15225_v53, %v4670_v26 }
 0x3eb   :  { %v12052_v35 = vpop.eup %12051  ;;  %12071 = vtanh.f32 %v4757_v45  ;;  %v4675_v39 = vmul.f32 %v15169_v32, %v18814_v19  ;;  %v4679_v63 = vmul.f32 %v15169_v32, %v18815_v41  ;;  %v4674_v52 = vmul.f32 %v15166_v10, %v18816_v13  ;;  %v18823_v19 = vld [vmem:[#allocation47_spill] sm:$0xff]  ;;  %v18824_v13 = vld [vmem:[#allocation44_spill] sm:$0xff] }
 0x3ec   :  { %v12054_v31 = vpop.eup %12053  ;;  %12073 = vtanh.f32 %v4761_v27  ;;  %v4678_v6 = vmul.f32 %v15166_v10, %v18817_v12  ;;  %v4683_v37 = vmul.f32 %v15169_v32, %v18818_v50  ;;  %v4687_v60 = vmul.f32 %v15169_v32, %v18819_v3  ;;  %v11929_v27 = vld [vmem:[#allocation8 + $0x100] ss:$8 sps:$4 sm:$0xff]   ;;  %v11937_v3 = vld [vmem:[#allocation8 + $0x124] ss:$8 sps:$4 sm:$0xff]  }
 0x3ed   :  { %v12056_v56 = vpop.eup %12055  ;;  %v4934_v14 = vpack.c.bf16 %v12054_v31, %v12052_v35  ;;  %12075 = vtanh.f32 %v4766_v9  ;;  %v15310_v30 = vadd.f32 %v15228_v21, %v4675_v39  ;;  %v15313_v44 = vadd.f32 %v15228_v21, %v4679_v63  ;;  %v18822_v9 = vld [vmem:[#allocation45_spill] sm:$0xff]  ;;  %v11932_v31 = vld [vmem:[#allocation8 + $0x110] ss:$8 sps:$4 sm:$0xff]  }
 0x3ee   :  { %v12058_v55 = vpop.eup %12057  ;;  %12077 = vtanh.f32 %v4770_v0  ;;  %v15316_v1 = vadd.f32 %v15225_v53, %v4674_v52  ;;  %v15319_v26 = vadd.f32 %v15225_v53, %v4678_v6  ;;  %v15322_v8 = vadd.f32 %v15228_v21, %v4683_v37 }
 0x3ef   :  { %v12060_v2 = vpop.eup %12059  ;;  %5317 = vmatprep.mubr.bf16.mxu0 %v4934_v14  ;;  %v4933_v20 = vpack.c.bf16 %v12058_v55, %v12056_v56  ;;  %12079 = vtanh.f32 %v4765_v24  ;;  %v15325_v36 = vadd.f32 %v15228_v21, %v4687_v60  ;;  %v4682_v0 = vmul.f32 %v15166_v10, %v18820_v33  ;;  %v18825_v60 = vld [vmem:[#allocation46_spill] sm:$0xff]  ;;  %v18826_v55 = vld [vmem:[#allocation49_spill] sm:$0xff] }
 0x3f0   :  { %v12062_v4 = vpop.eup %12061  ;;  %12081 = vtanh.f32 %v4769_v61  ;;  %v4686_v45 = vmul.f32 %v15166_v10, %v18821_v34  ;;  %v4691_v35 = vmul.f32 %v15169_v32, %v18822_v9  ;;  %v4695_v39 = vmul.f32 %v15169_v32, %v18823_v19  ;;  %v18829_v34 = vld [vmem:[#allocation50_spill] sm:$0xff]  ;;  %v11935_v9 = vld [vmem:[#allocation8 + $0x120] ss:$8 sps:$4 sm:$0xff]  }
 0x3f1   :  { %v12064_v41 = vpop.eup %12063  ;;  %5318 = vmatmul.mubr.bf16.vlgmr.msra.gmra.mrb[32].mxu0 %v4933_v20  ;;  %v4938_v24 = vpack.c.bf16 %v12062_v4, %v12060_v2  ;;  %12083 = vtanh.f32 %v15239_v54  ;;  %v15337_v63 = vadd.f32 %v15225_v53, %v4682_v0  ;;  %v4690_v61 = vmul.f32 %v15166_v10, %v18824_v13  ;;  %v18827_v2 = vld [vmem:[#allocation51_spill] sm:$0xff] }
 0x3f2   :  { %v12066_v52 = vpop.eup %12065  ;;  %5399 = vmatpush1.bf16.msra.mxu0 %v11929_v27  ;;  %12085 = vtanh.f32 %v15241_v16  ;;  %v15343_v12 = vadd.f32 %v15225_v53, %v4686_v45  ;;  %v15346_v6 = vadd.f32 %v15228_v21, %v4691_v35  ;;  %v15349_v50 = vadd.f32 %v15228_v21, %v4695_v39 }
 0x3f3   :  { %v12068_v54 = vpop.eup %12067  ;;  %5327 = vmatprep.mubr.bf16.mxu0 %v4938_v24  ;;  %5400 = vmatprep.subr.bf16.mxu0 %v11934_v28  ;;  %v4937_v37 = vpack.c.bf16 %v12066_v52, %v12064_v41  ;;  %12087 = vtanh.f32 %v15243_v22  ;;  %v4694_v56 = vmul.f32 %v15166_v10, %v18825_v60  ;;  %v15355_v16 = vadd.f32 %v15225_v53, %v4690_v61  ;;  %v18828_v28 = vld [vmem:[#allocation48_spill] sm:$0xff]  ;;  %v11940_v41 = vld [vmem:[#allocation8 + $0x134] ss:$8 sps:$4 sm:$0xff]  }
 0x3f4   :  { %v12070_v14 = vpop.eup %12069  ;;  %12089 = vtanh.f32 %v15245_v25  ;;  %v4699_v27 = vmul.f32 %v15169_v32, %v18826_v55  ;;  %v4703_v20 = vmul.f32 %v15169_v32, %v18827_v2  ;;  %v4698_v33 = vmul.f32 %v15166_v10, %v18828_v28  ;;  %v18832_v60 = vld [vmem:[#allocation52_spill] sm:$0xff]  ;;  %v18834_v2 = vld [vmem:[#allocation58_spill] sm:$0xff] }
 0x3f5   :  { %v15364_v0 = vpop.eup %12071  ;;  %v4942_v22 = vpack.c.bf16 %v12070_v14, %v12068_v54  ;;  %12091 = vtanh.f32 %v15247_v38  ;;  %v15368_v4 = vadd.f32 %v15225_v53, %v4694_v56  ;;  %v4702_v25 = vmul.f32 %v15166_v10, %v18829_v34  ;;  %v18833_v56 = vld [vmem:[#allocation54_spill] sm:$0xff]  ;;  %v11943_v34 = vld [vmem:[#allocation8 + $0x144] ss:$8 sps:$4 sm:$0xff]  }
 0x3f6   :  { %v12074_v45 = vpop.eup %12073  ;;  %5401 = vmatpush1.bf16.msra.mxu0 %v11932_v31  ;;  %12093 = vtanh.f32 %v15249_v18  ;;  %v15374_v35 = vadd.f32 %v15228_v21, %v4699_v27  ;;  %v15377_v19 = vadd.f32 %v15228_v21, %v4703_v20  ;;  %v15380_v39 = vadd.f32 %v15225_v53, %v4698_v33  ;;  %v18830_v18 = vld [vmem:[#allocation53_spill] sm:$0xff]  ;;  %v18831_v31 = vld [vmem:[#allocation55_spill] sm:$0xff] }
 0x3f7   :  { %v12076_v38 = vpop.eup %12075  ;;  %5402 = vmatprep.subr.bf16.mxu0 %v11937_v3  ;;  %v4941_v24 = vpack.c.bf16 %v12074_v45, %v15364_v0  ;;  %12095 = vtanh.f32 %v15251_v59  ;;  %v15385_v13 = vadd.f32 %v15225_v53, %v4702_v25  ;;  %v4707_v61 = vmul.f32 %v15169_v32, %v18830_v18  ;;  %v11938_v28 = vld [vmem:[#allocation8 + $0x130] ss:$8 sps:$4 sm:$0xff]  }
 0x3f8   :  { %v12078_v52 = vpop.eup %12077  ;;  %12097 = vtanh.f32 %v15253_v15  ;;  %v4711_v54 = vmul.f32 %v15169_v32, %v18831_v31  ;;  %v4706_v3 = vmul.f32 %v15166_v10, %v18832_v60  ;;  %v4710_v14 = vmul.f32 %v15166_v10, %v18833_v56  ;;  %v11944_v60 = vld [vmem:[#allocation8 + $0x150] ss:$8 sps:$4 sm:$0xff]  }
 0x3f9   :  { %v15396_v55 = vpop.eup %12079  ;;  %5328 = vmatmul.mubr.bf16.gmra.mrb[36].mxu0 %v4937_v37  ;;  %v4946_v59 = vpack.c.bf16 %v12078_v52, %v12076_v38  ;;  %12099 = vtanh.f32 %v15255_v47  ;;  %v15400_v27 = vadd.f32 %v15228_v21, %v4707_v61  ;;  %v4715_v15 = vmul.f32 %v15169_v32, %v18834_v2 }
 0x3fa   :  { %v15404_v20 = vpop.eup %12081  ;;  %5337 = vmatprep.mubr.bf16.mxu0 %v4942_v22  ;;  %5403 = vmatpush1.bf16.msra.mxu0 %v11935_v9  ;;  %12101 = vtanh.f32 %v15257_v46  ;;  %v15408_v33 = vadd.f32 %v15228_v21, %v4711_v54  ;;  %v15411_v37 = vadd.f32 %v15225_v53, %v4706_v3  ;;  %v15414_v47 = vadd.f32 %v15225_v53, %v4710_v14  ;;  %v18835_v46 = vld [vmem:[#allocation57_spill] sm:$0xff]  ;;  %v18836_v9 = vld [vmem:[#allocation60_spill] sm:$0xff] }
 0x3fb   :  { %v12084_v0 = vpop.eup %12083  ;;  %5404 = vmatprep.subr.bf16.mxu0 %v11940_v41  ;;  %v4945_v32 = vpack.c.bf16 %v15404_v20, %v15396_v55  ;;  %12103 = vtanh.f32 %v15259_v42  ;;  %v15420_v22 = vadd.f32 %v15228_v21, %v4715_v15  ;;  %v4714_v25 = vmul.f32 %v15166_v10, %v18835_v46  ;;  %v11941_v21 = vld [vmem:[#allocation8 + $0x140] ss:$8 sps:$4 sm:$0xff]   ;;  %v11949_v3 = vld [vmem:[#allocation8 + $0x164] ss:$8 sps:$4 sm:$0xff]   ;;  %v11950_v15 = vld [vmem:[#allocation8 + $0x170] ss:$8 sps:$4 sm:$0xff]  }
 0x3fc   :  { %v12086_v45 = vpop.eup %12085  ;;  %12105 = vtanh.f32 %v15261_v51  ;;  %v4718_v38 = vmul.f32 %v15166_v10, %v18836_v9  ;;  %v11946_v10 = vld [vmem:[#allocation8 + $0x154] ss:$8 sps:$4 sm:$0xff]   ;;  %v11947_v14 = vld [vmem:[#allocation8 + $0x160] ss:$8 sps:$4 sm:$0xff]   ;;  %v11955_v20 = vld [vmem:[#allocation8 + $0x184] ss:$8 sps:$4 sm:$0xff]  }
 0x3fd   :  { %v15427_v18 = vpop.eup %12087  ;;  %v4950_v41 = vpack.c.bf16 %v12086_v45, %v12084_v0  ;;  %12107 = vtanh.f32 %v15263_v48  ;;  %v15431_v61 = vadd.f32 %v15225_v53, %v4714_v25 }
 0x3fe   :  { %v15433_v42 = vpop.eup %12089  ;;  %5405 = vmatpush1.bf16.msra.mxu0 %v11938_v28  ;;  %12109 = vtanh.f32 %v15265_v11  ;;  %v15437_v52 = vadd.f32 %v15225_v53, %v4718_v38 }
 0x3ff   :  { %v15439_v51 = vpop.eup %12091  ;;  %5406 = vmatprep.subr.bf16.mxu0 %v11943_v34  ;;  %v4949_v31 = vpack.c.bf16 %v15433_v42, %v15427_v18  ;;  %12111 = vtanh.f32 %v15267_v23  ;;  %v11953_v34 = vld [vmem:[#allocation8 + $0x180] ss:$8 sps:$4 sm:$0xff]  }
 0x400   :  { %v15444_v48 = vpop.eup %12093  ;;  %12113 = vtanh.f32 %v15269_v7 }
 0x401   :  { %v15447_v54 = vpop.eup %12095  ;;  %5338 = vmatmul.mubr.bf16.gmra.mrb[40].mxu0 %v4941_v24  ;;  %v4954_v53 = vpack.c.bf16 %v15444_v48, %v15439_v51  ;;  %12115 = vtanh.f32 %v15272_v17 }
 0x402   :  { %v15452_v11 = vpop.eup %12097  ;;  %5347 = vmatprep.mubr.bf16.mxu0 %v4946_v59  ;;  %5407 = vmatpush1.bf16.msra.mxu0 %v11941_v21  ;;  %12117 = vtanh.f32 %v15275_v49 }
 0x403   :  { %v15455_v23 = vpop.eup %12099  ;;  %5408 = vmatprep.subr.bf16.mxu0 %v11946_v10  ;;  %v4953_v7 = vpack.c.bf16 %v15452_v11, %v15447_v54  ;;  %12119 = vtanh.f32 %v15278_v62  ;;  %v11952_v62 = vld [vmem:[#allocation8 + $0x174] ss:$8 sps:$4 sm:$0xff]   ;;  %v11967_v10 = vld [vmem:[#allocation8 + $0x1c4] ss:$8 sps:$4 sm:$0xff]   ;;  %v11965_v11 = vld [vmem:[#allocation8 + $0x1c0] ss:$8 sps:$4 sm:$0xff]  }
 0x404   :  { %v15460_v24 = vpop.eup %12101  ;;  %12121 = vtanh.f32 %v15281_v5 }
 0x405   :  { %v15463_v17 = vpop.eup %12103  ;;  %v4958_v56 = vpack.c.bf16 %v15460_v24, %v15455_v23  ;;  %12123 = vtanh.f32 %v15284_v40  ;;  %v11973_v24 = vld [vmem:[#allocation8 + $0x1e4] ss:$8 sps:$4 sm:$0xff]  }
 0x406   :  { %v15468_v49 = vpop.eup %12105  ;;  %5409 = vmatpush1.bf16.msra.mxu0 %v11944_v60  ;;  %12125 = vtanh.f32 %v15289_v29  ;;  %v11970_v60 = vld [vmem:[#allocation8 + $0x1d4] ss:$8 sps:$4 sm:$0xff]  }
 0x407   :  { %v15471_v55 = vpop.eup %12107  ;;  %5410 = vmatprep.subr.bf16.mxu0 %v11949_v3  ;;  %v4957_v5 = vpack.c.bf16 %v15468_v49, %v15463_v17  ;;  %12127 = vtanh.f32 %v15292_v43  ;;  %v11976_v49 = vld [vmem:[#allocation8 + $0x1f4] ss:$8 sps:$4 sm:$0xff]  }
 0x408   :  { %v15476_v59 = vpop.eup %12109  ;;  %12129 = vtanh.f32 %v15295_v57 }
 0x409   :  { %v15479_v40 = vpop.eup %12111  ;;  %5348 = vmatmul.mubr.bf16.gmra.mrb[44].mxu0 %v4945_v32  ;;  %v4962_v2 = vpack.c.bf16 %v15476_v59, %v15471_v55  ;;  %12131 = vtanh.f32 %v15310_v30 }
 0x40a   :  { %v15484_v29 = vpop.eup %12113  ;;  %5357 = vmatprep.mubr.bf16.mxu0 %v4950_v41  ;;  %5411 = vmatpush1.bf16.msra.mxu0 %v11947_v14  ;;  %12133 = vtanh.f32 %v15313_v44  ;;  %v11959_v41 = vld [vmem:[#allocation8 + $0x1a0] ss:$8 sps:$4 sm:$0xff]  }
 0x40b   :  { %v15487_v43 = vpop.eup %12115  ;;  %5412 = vmatprep.subr.bf16.mxu0 %v11952_v62  ;;  %v4961_v57 = vpack.c.bf16 %v15484_v29, %v15479_v40  ;;  %12135 = vtanh.f32 %v15316_v1  ;;  %v11958_v1 = vld [vmem:[#allocation8 + $0x194] ss:$8 sps:$4 sm:$0xff]   ;;  %v11978_v40 = vld [vmem:[%s18662_s4] sm:$0xff]   ;;  %v11979_v29 = vld [vmem:[%s18662_s4 + $0x48] sm:$0xff]  }
 0x40c   :  { %v15492_v28 = vpop.eup %12117  ;;  %12137 = vtanh.f32 %v15319_v26 }
 0x40d   :  { %v15495_v30 = vpop.eup %12119  ;;  %v4936_v0 = vpack.c.bf16 %v15492_v28, %v15487_v43  ;;  %12139 = vtanh.f32 %v15322_v8  ;;  %v11980_v43 = vld [vmem:[%s18662_s4 + $0x8] sm:$0xff]   ;;  %v11982_v28 = vld [vmem:[%s18662_s4 + $0x10] sm:$0xff]  }
 0x40e   :  { %v15500_v44 = vpop.eup %12121  ;;  %5413 = vmatpush1.bf16.msra.mxu0 %v11950_v15  ;;  %12141 = vtanh.f32 %v15325_v36 }
 0x40f   :  { %v15503_v32 = vpop.eup %12123  ;;  %5414 = vmatprep.subr.bf16.mxu0 %v11955_v20  ;;  %v4935_v26 = vpack.c.bf16 %v15500_v44, %v15495_v30  ;;  %12143 = vtanh.f32 %v15337_v63  ;;  %v11956_v63 = vld [vmem:[#allocation8 + $0x190] ss:$8 sps:$4 sm:$0xff]   ;;  %v11971_v20 = vld [vmem:[#allocation8 + $0x1e0] ss:$8 sps:$4 sm:$0xff]  }
 0x410   :  { %v15508_v46 = vpop.eup %12125  ;;  %12145 = vtanh.f32 %v15343_v12  ;;  %v11961_v12 = vld [vmem:[#allocation8 + $0x1a4] ss:$8 sps:$4 sm:$0xff]   ;;  %v11983_v30 = vld [vmem:[%s18662_s4 + $0x58] sm:$0xff]  }
 0x411   :  { %v15511_v8 = vpop.eup %12127  ;;  %5358 = vmatmul.mubr.bf16.gmra.mrb[48].mxu0 %v4949_v31  ;;  %v4940_v36 = vpack.c.bf16 %v15508_v46, %v15503_v32  ;;  %12147 = vtanh.f32 %v15346_v6 }
 0x412   :  { %v15519_v25 = vpop.eup %12129  ;;  %5367 = vmatprep.mubr.bf16.mxu0 %v4954_v53  ;;  %5415 = vmatpush1.bf16.msra.mxu0 %v11953_v34  ;;  %12149 = vtanh.f32 %v15349_v50 }
 0x413   :  { %v15522_v45 = vpop.eup %12131  ;;  %5416 = vmatprep.subr.bf16.mxu0 %v11958_v1  ;;  %v4939_v9 = vpack.c.bf16 %v15519_v25, %v15511_v8  ;;  %12151 = vtanh.f32 %v15355_v16  ;;  %v11964_v16 = vld [vmem:[#allocation8 + $0x1b4] ss:$8 sps:$4 sm:$0xff]  }
 0x414   :  { %v15527_v38 = vpop.eup %12133  ;;  %12153 = vtanh.f32 %v15368_v4 }
 0x415   :  { %v15530_v6 = vpop.eup %12135  ;;  %v4944_v18 = vpack.c.bf16 %v15527_v38, %v15522_v45  ;;  %12155 = vtanh.f32 %v15374_v35 }
 0x416   :  { %v15535_v50 = vpop.eup %12137  ;;  %5417 = vmatpush1.bf16.msra.mxu0 %v11956_v63  ;;  %12157 = vtanh.f32 %v15377_v19  ;;  %v11985_v63 = vld [vmem:[%s18662_s4 + $0x60] sm:$0xff]  }
 0x417   :  { %v15538_v42 = vpop.eup %12139  ;;  %5418 = vmatprep.subr.bf16.mxu0 %v11961_v12  ;;  %v4943_v4 = vpack.c.bf16 %v15535_v50, %v15530_v6  ;;  %12159 = vtanh.f32 %v15380_v39  ;;  %v11962_v39 = vld [vmem:[#allocation8 + $0x1b0] ss:$8 sps:$4 sm:$0xff]   ;;  %v11987_v50 = vld [vmem:[%s18662_s4 + $0x68] sm:$0xff]  }
 0x418   :  { %v15543_v21 = vpop.eup %12141  ;;  %12161 = vtanh.f32 %v15385_v13 }
 0x419   :  { %v15546_v35 = vpop.eup %12143  ;;  %5368 = vmatmul.mubr.bf16.gmra.mrb[52].mxu0 %v4953_v7  ;;  %v4948_v19 = vpack.c.bf16 %v15543_v21, %v15538_v42  ;;  %12163 = vtanh.f32 %v15400_v27 }
 0x41a   :  { %v12146_v51 = vpop.eup %12145  ;;  %5377 = vmatprep.mubr.bf16.mxu0 %v4958_v56  ;;  %5419 = vmatpush1.bf16.msra.mxu0 %v11959_v41  ;;  %12165 = vtanh.f32 %v15408_v33 }
 0x41b   :  { %v12148_v13 = vpop.eup %12147  ;;  %5420 = vmatprep.subr.bf16.mxu0 %v11964_v16  ;;  %v4947_v31 = vpack.c.bf16 %v12146_v51, %v15546_v35  ;;  %12167 = vtanh.f32 %v15411_v37  ;;  %v11988_v51 = vld [vmem:[%s18662_s4 + $0x28] sm:$0xff]  }
 0x41c   :  { %v12150_v48 = vpop.eup %12149  ;;  %12169 = vtanh.f32 %v15414_v47 }
 0x41d   :  { %v12152_v27 = vpop.eup %12151  ;;  %v4952_v54 = vpack.c.bf16 %v12150_v48, %v12148_v13  ;;  %12171 = vtanh.f32 %v15420_v22  ;;  %v11968_v22 = vld [vmem:[#allocation8 + $0x1d0] ss:$8 sps:$4 sm:$0xff]  }
 0x41e   :  { %v12154_v53 = vpop.eup %12153  ;;  %5421 = vmatpush1.bf16.msra.mxu0 %v11962_v39  ;;  %12173 = vtanh.f32 %v15431_v61  ;;  %v11989_v48 = vld [vmem:[%s18662_s4 + $0x70] sm:$0xff]  }
 0x41f   :  { %v12156_v33 = vpop.eup %12155  ;;  %5422 = vmatprep.subr.bf16.mxu0 %v11967_v10  ;;  %v4951_v23 = vpack.c.bf16 %v12154_v53, %v12152_v27  ;;  %12175 = vtanh.f32 %v15437_v52 }
 0x420   :  { %v12158_v3 = vpop.eup %12157 }
 0x421   :  { %v12160_v37 = vpop.eup %12159  ;;  %5378 = vmatmul.mubr.bf16.gmra.mrb[56].mxu0 %v4957_v5  ;;  %v4956_v47 = vpack.c.bf16 %v12158_v3, %v12156_v33 }
 0x422   :  { %v12162_v7 = vpop.eup %12161  ;;  %5387 = vmatprep.mubr.bf16.mxu0 %v4962_v2  ;;  %5423 = vmatpush1.bf16.msra.mxu0 %v11965_v11  ;;  %v11974_v2 = vld [vmem:[#allocation8 + $0x1f0] ss:$8 sps:$4 sm:$0xff]  }
 0x423   :  { %v12164_v61 = vpop.eup %12163  ;;  %5424 = vmatprep.subr.bf16.mxu0 %v11970_v60  ;;  %v4955_v56 = vpack.c.bf16 %v12162_v7, %v12160_v37  ;;  %v11990_v60 = vld [vmem:[%s18662_s4 + $0x30] sm:$0xff]  }
 0x424   :  { %v12166_v14 = vpop.eup %12165 }
 0x425   :  { %v12168_v52 = vpop.eup %12167  ;;  %v4960_v62 = vpack.c.bf16 %v12166_v14, %v12164_v61 }
 0x426   :  { %v12170_v15 = vpop.eup %12169  ;;  %5425 = vmatpush1.bf16.msra.mxu0 %v11968_v22 }
 0x427   :  { %v12172_v17 = vpop.eup %12171  ;;  %5426 = vmatprep.subr.bf16.mxu0 %v11973_v24  ;;  %v4959_v5 = vpack.c.bf16 %v12170_v15, %v12168_v52 }
 0x428   :  { %v12174_v34 = vpop.eup %12173  ;;  %v4964_v55 = vpack.c.bf16 %v15286_v58, %v12172_v17  ;;  %v11977_v58 = vld [vmem:[%s18662_s4 + $0x40] sm:$0xff]  }
 0x429   :  { %v12176_v59 = vpop.eup %12175  ;;  %5388 = vmatmul.mubr.bf16.gmra.mrb[60].mxu0 %v4961_v57  ;;  %10813 = vmatprep.subr.bf16.mxu1 %v11977_v58  ;;  %v11981_v57 = vld [vmem:[%s18662_s4 + $0x50] sm:$0xff]  }
 0x42a   :  { %5427 = vmatpush1.bf16.msra.mxu0 %v11971_v20  ;;  %5430 = vmatprep.mubr.bf16.mxu0 %v4936_v0  ;;  %v4963_v1 = vpack.c.bf16 %v12176_v59, %v12174_v34 }
 0x42b   :  { %5428 = vmatprep.subr.bf16.mxu0 %v11976_v49  ;;  %10814 = vmatpush3.bf16.msra.mxu1 %v11978_v40 }
 0x42c   :  { %10815 = vmatprep.subr.bf16.mxu1 %v11979_v29 }
 0x42e   :  { %5429 = vmatpush1.bf16.msra.mxu0 %v11974_v2 }
 0x42f   :  { %10816 = vmatpush3.bf16.msra.mxu1 %v11980_v43 }
 0x430   :  { %10817 = vmatprep.subr.bf16.mxu1 %v11981_v57 }
 0x431   :  { %5431 = vmatmul.mubr.bf16.vlgmr.msra.gmra.mrb[32].mxu0 %v4935_v26  ;;  %v11984_v26 = vld [vmem:[%s18662_s4 + $0x18] sm:$0xff]  }
 0x432   :  { %5440 = vmatprep.mubr.bf16.mxu0 %v4940_v36 }
 0x433   :  { %10818 = vmatpush3.bf16.msra.mxu1 %v11982_v28 }
 0x434   :  { %10819 = vmatprep.subr.bf16.mxu1 %v11983_v30 }
 0x437   :  { %10820 = vmatpush3.bf16.msra.mxu1 %v11984_v26 }
 0x438   :  { %10821 = vmatprep.subr.bf16.mxu1 %v11985_v63 }
 0x439   :  { %5441 = vmatmul.mubr.bf16.gmra.mrb[36].mxu0 %v4939_v9 }
 0x43a   :  { %5450 = vmatprep.mubr.bf16.mxu0 %v4944_v18  ;;  %v11986_v18 = vld [vmem:[%s18662_s4 + $0x20] sm:$0xff]  }
 0x43b   :  { %10822 = vmatpush3.bf16.msra.mxu1 %v11986_v18 }
 0x43c   :  { %10823 = vmatprep.subr.bf16.mxu1 %v11987_v50 }
 0x43f   :  { %10824 = vmatpush3.bf16.msra.mxu1 %v11988_v51 }
 0x440   :  { %10825 = vmatprep.subr.bf16.mxu1 %v11989_v48 }
 0x441   :  { %5451 = vmatmul.mubr.bf16.gmra.mrb[40].mxu0 %v4943_v4 }
 0x442   :  { %5460 = vmatprep.mubr.bf16.mxu0 %v4948_v19 }
 0x443   :  { %10826 = vmatpush3.bf16.msra.mxu1 %v11990_v60 }
 0x449   :  { %5461 = vmatmul.mubr.bf16.gmra.mrb[44].mxu0 %v4947_v31 }
 0x44a   :  { %5470 = vmatprep.mubr.bf16.mxu0 %v4952_v54 }
 0x451   :  { %5471 = vmatmul.mubr.bf16.gmra.mrb[48].mxu0 %v4951_v23  ;;  %v11991_v23 = vld [vmem:[%s18662_s4 + $0x78] sm:$0xff]  }
 0x452   :  { %5480 = vmatprep.mubr.bf16.mxu0 %v4956_v47  ;;  %10827 = vmatprep.subr.bf16.mxu1 %v11991_v23 }
 0x459   :  { %5481 = vmatmul.mubr.bf16.gmra.mrb[52].mxu0 %v4955_v56  ;;  %v11992_v56 = vld [vmem:[%s18662_s4 + $0x38] sm:$0xff]  }
 0x45a   :  { %5490 = vmatprep.mubr.bf16.mxu0 %v4960_v62  ;;  %10828 = vmatpush3.bf16.msra.mxu1 %v11992_v56 }
 0x461   :  { %5491 = vmatmul.mubr.bf16.gmra.mrb[56].mxu0 %v4959_v5 }
 0x462   :  { %5500 = vmatprep.mubr.bf16.mxu0 %v4964_v55 }
 0x469   :  { %5501 = vmatmul.mubr.bf16.gmra.mrb[60].mxu0 %v4963_v1 }
 0x504   :  { %v15613_v0 = vpop.f32.mrb[32].mxu0 }
 0x505   :  { %v15615_v44 = vpop.f32.mrb[33].mxu0  ;;  %v5559_v46 = vmul.f32 %v15613_v0, %v15613_v0 }
 0x506   :  { %v15617_v32 = vpop.f32.mrb[34].mxu0  ;;  %v5560_v45 = vmul.f32 %v15615_v44, %v15615_v44 }
 0x507   :  { %v5515_v8 = vadd.f32 %v15617_v32, %v15613_v0  ;;  %v5561_v36 = vmul.f32 %v15617_v32, %v15617_v32  ;;  %v15628_v25 = vpop.f32.mrb[35].mxu0 }
 0x508   :  { %v5536_v12 = vadd.f32 %v15628_v25, %v15615_v44  ;;  %v5562_v9 = vmul.f32 %v15628_v25, %v15628_v25 }
 0x509   :  { %v5591_v38 = vadd.f32 %v5561_v36, %v5559_v46 }
 0x50a   :  { %v5612_v6 = vadd.f32 %v5562_v9, %v5560_v45 }
 0x50c   :  { %v15645_v41 = vpop.f32.mrb[36].mxu0 }
 0x50d   :  { %v5516_v42 = vadd.f32 %v5515_v8, %v15645_v41  ;;  %v5563_v16 = vmul.f32 %v15645_v41, %v15645_v41  ;;  %v15650_v4 = vpop.f32.mrb[37].mxu0 }
 0x50e   :  { %v5537_v21 = vadd.f32 %v5536_v12, %v15650_v4  ;;  %v5564_v35 = vmul.f32 %v15650_v4, %v15650_v4  ;;  %v15655_v19 = vpop.f32.mrb[38].mxu0 }
 0x50f   :  { %v5592_v39 = vadd.f32 %v5591_v38, %v5563_v16  ;;  %v5517_v13 = vadd.f32 %v5516_v42, %v15655_v19  ;;  %v5565_v10 = vmul.f32 %v15655_v19, %v15655_v19  ;;  %v15663_v31 = vpop.f32.mrb[39].mxu0 }
 0x510   :  { %v5613_v27 = vadd.f32 %v5612_v6, %v5564_v35  ;;  %v5538_v54 = vadd.f32 %v5537_v21, %v15663_v31  ;;  %v5566_v53 = vmul.f32 %v15663_v31, %v15663_v31 }
 0x511   :  { %v5593_v11 = vadd.f32 %v5592_v39, %v5565_v10 }
 0x512   :  { %v5614_v33 = vadd.f32 %v5613_v27, %v5566_v53 }
 0x514   :  { %v15677_v3 = vpop.f32.mrb[40].mxu0 }
 0x515   :  { %v5518_v37 = vadd.f32 %v5517_v13, %v15677_v3  ;;  %v5567_v47 = vmul.f32 %v15677_v3, %v15677_v3  ;;  %v15682_v7 = vpop.f32.mrb[41].mxu0 }
 0x516   :  { %v5539_v22 = vadd.f32 %v5538_v54, %v15682_v7  ;;  %v5568_v61 = vmul.f32 %v15682_v7, %v15682_v7  ;;  %v15687_v24 = vpop.f32.mrb[42].mxu0 }
 0x517   :  { %v5594_v14 = vadd.f32 %v5593_v11, %v5567_v47  ;;  %v5519_v52 = vadd.f32 %v5518_v37, %v15687_v24  ;;  %v5569_v62 = vmul.f32 %v15687_v24, %v15687_v24  ;;  %v15695_v15 = vpop.f32.mrb[43].mxu0 }
 0x518   :  { %v5615_v20 = vadd.f32 %v5614_v33, %v5568_v61  ;;  %v5540_v17 = vadd.f32 %v5539_v22, %v15695_v15  ;;  %v5570_v49 = vmul.f32 %v15695_v15, %v15695_v15 }
 0x519   :  { %v5595_v5 = vadd.f32 %v5594_v14, %v5569_v62 }
 0x51a   :  { %v5616_v34 = vadd.f32 %v5615_v20, %v5570_v49 }
 0x51c   :  { %v15700_v55 = vpop.f32.mrb[44].mxu0 }
 0x51d   :  { %v5520_v59 = vadd.f32 %v5519_v52, %v15700_v55  ;;  %v5571_v2 = vmul.f32 %v15700_v55, %v15700_v55  ;;  %v15705_v1 = vpop.f32.mrb[45].mxu0 }
 0x51e   :  { %v5541_v58 = vadd.f32 %v5540_v17, %v15705_v1  ;;  %v5572_v40 = vmul.f32 %v15705_v1, %v15705_v1  ;;  %v15710_v29 = vpop.f32.mrb[46].mxu0 }
 0x51f   :  { %v5596_v43 = vadd.f32 %v5595_v5, %v5571_v2  ;;  %v5521_v57 = vadd.f32 %v5520_v59, %v15710_v29  ;;  %v5573_v28 = vmul.f32 %v15710_v29, %v15710_v29  ;;  %v15715_v30 = vpop.f32.mrb[47].mxu0 }
 0x520   :  { %v5617_v26 = vadd.f32 %v5616_v34, %v5572_v40  ;;  %v5542_v46 = vadd.f32 %v5541_v58, %v15715_v30  ;;  %v5574_v8 = vmul.f32 %v15715_v30, %v15715_v30 }
 0x521   :  { %v5597_v36 = vadd.f32 %v5596_v43, %v5573_v28 }
 0x522   :  { %v5618_v63 = vadd.f32 %v5617_v26, %v5574_v8 }
 0x524   :  { %v15720_v45 = vpop.f32.mrb[48].mxu0 }
 0x525   :  { %v5522_v12 = vadd.f32 %v5521_v57, %v15720_v45  ;;  %v5575_v9 = vmul.f32 %v15720_v45, %v15720_v45  ;;  %v15725_v38 = vpop.f32.mrb[49].mxu0 }
 0x526   :  { %v5543_v6 = vadd.f32 %v5542_v46, %v15725_v38  ;;  %v5576_v18 = vmul.f32 %v15725_v38, %v15725_v38  ;;  %v15730_v50 = vpop.f32.mrb[50].mxu0 }
 0x527   :  { %v5598_v42 = vadd.f32 %v5597_v36, %v5575_v9  ;;  %v5523_v16 = vadd.f32 %v5522_v12, %v15730_v50  ;;  %v5577_v21 = vmul.f32 %v15730_v50, %v15730_v50  ;;  %v15735_v35 = vpop.f32.mrb[51].mxu0 }
 0x528   :  { %v5619_v51 = vadd.f32 %v5618_v63, %v5576_v18  ;;  %v5544_v39 = vadd.f32 %v5543_v6, %v15735_v35  ;;  %v5578_v13 = vmul.f32 %v15735_v35, %v15735_v35 }
 0x529   :  { %v5599_v10 = vadd.f32 %v5598_v42, %v5577_v21 }
 0x52a   :  { %v5620_v48 = vadd.f32 %v5619_v51, %v5578_v13 }
 0x52c   :  { %v15740_v27 = vpop.f32.mrb[52].mxu0 }
 0x52d   :  { %v5524_v54 = vadd.f32 %v5523_v16, %v15740_v27  ;;  %v5579_v53 = vmul.f32 %v15740_v27, %v15740_v27  ;;  %v15745_v11 = vpop.f32.mrb[53].mxu0 }
 0x52e   :  { %v5545_v33 = vadd.f32 %v5544_v39, %v15745_v11  ;;  %v5580_v60 = vmul.f32 %v15745_v11, %v15745_v11  ;;  %v15750_v23 = vpop.f32.mrb[54].mxu0 }
 0x52f   :  { %v5600_v37 = vadd.f32 %v5599_v10, %v5579_v53  ;;  %v5525_v47 = vadd.f32 %v5524_v54, %v15750_v23  ;;  %v5581_v22 = vmul.f32 %v15750_v23, %v15750_v23  ;;  %v15755_v61 = vpop.f32.mrb[55].mxu0 }
 0x530   :  { %v5621_v56 = vadd.f32 %v5620_v48, %v5580_v60  ;;  %v5546_v14 = vadd.f32 %v5545_v33, %v15755_v61  ;;  %v5582_v52 = vmul.f32 %v15755_v61, %v15755_v61 }
 0x531   :  { %v5601_v62 = vadd.f32 %v5600_v37, %v5581_v22 }
 0x532   :  { %v5622_v20 = vadd.f32 %v5621_v56, %v5582_v52 }
 0x534   :  { %v15760_v17 = vpop.f32.mrb[56].mxu0 }
 0x535   :  { %v5526_v49 = vadd.f32 %v5525_v47, %v15760_v17  ;;  %v5583_v5 = vmul.f32 %v15760_v17, %v15760_v17  ;;  %v15765_v34 = vpop.f32.mrb[57].mxu0 }
 0x536   :  { %v5547_v59 = vadd.f32 %v5546_v14, %v15765_v34  ;;  %v5584_v2 = vmul.f32 %v15765_v34, %v15765_v34  ;;  %v15770_v58 = vpop.f32.mrb[58].mxu0 }
 0x537   :  { %v5602_v40 = vadd.f32 %v5601_v62, %v5583_v5  ;;  %v5527_v43 = vadd.f32 %v5526_v49, %v15770_v58  ;;  %v5585_v57 = vmul.f32 %v15770_v58, %v15770_v58  ;;  %v15775_v28 = vpop.f32.mrb[59].mxu0 }
 0x538   :  { %v5623_v26 = vadd.f32 %v5622_v20, %v5584_v2  ;;  %v5548_v46 = vadd.f32 %v5547_v59, %v15775_v28  ;;  %v5586_v8 = vmul.f32 %v15775_v28, %v15775_v28 }
 0x539   :  { %v5603_v36 = vadd.f32 %v5602_v40, %v5585_v57 }
 0x53a   :  { %v5624_v63 = vadd.f32 %v5623_v26, %v5586_v8 }
 0x53c   :  { %v15780_v12 = vpop.f32.mrb[60].mxu0 }
 0x53d   :  { %v5528_v9 = vadd.f32 %v5527_v43, %v15780_v12  ;;  %v5587_v6 = vmul.f32 %v15780_v12, %v15780_v12  ;;  %v15785_v18 = vpop.f32.mrb[61].mxu0 }
 0x53e   :  { %v5549_v42 = vadd.f32 %v5548_v46, %v15785_v18  ;;  %v5588_v16 = vmul.f32 %v15785_v18, %v15785_v18  ;;  %v15790_v21 = vpop.f32.mrb[62].mxu0 }
 0x53f   :  { %v5604_v51 = vadd.f32 %v5603_v36, %v5587_v6  ;;  %v5529_v39 = vadd.f32 %v5528_v9, %v15790_v21  ;;  %v5589_v13 = vmul.f32 %v15790_v21, %v15790_v21  ;;  %v5508_v10 = vpop.f32.mrb[63].mxu0 }
 0x540   :  { %v5625_v48 = vadd.f32 %v5624_v63, %v5588_v16  ;;  %v5550_v54 = vadd.f32 %v5549_v42, %v5508_v10  ;;  %v5590_v53 = vmul.f32 %v5508_v10, %v5508_v10 }
 0x541   :  { %v5530_v33 = vrot.slane %v5529_v39, 4  ;;  %v5605_v60 = vadd.f32 %v5604_v51, %v5589_v13 }
 0x542   :  { %v5551_v37 = vrot.slane %v5550_v54, 4  ;;  %v5626_v47 = vadd.f32 %v5625_v48, %v5590_v53 }
 0x543   :  { %v5531_v22 = vadd.f32 %v5530_v33, %v5529_v39  ;;  %v5606_v56 = vrot.slane %v5605_v60, 4 }
 0x544   :  { %v5552_v14 = vadd.f32 %v5551_v37, %v5550_v54  ;;  %v5627_v52 = vrot.slane %v5626_v47, 4 }
 0x545   :  { %v5532_v62 = vrot.slane %v5531_v22, 2  ;;  %v5607_v20 = vadd.f32 %v5606_v56, %v5605_v60 }
 0x546   :  { %v5553_v49 = vrot.slane %v5552_v14, 2  ;;  %v5628_v5 = vadd.f32 %v5627_v52, %v5626_v47 }
 0x547   :  { %v5533_v59 = vadd.f32 %v5532_v62, %v5531_v22  ;;  %v5608_v2 = vrot.slane %v5607_v20, 2 }
 0x548   :  { %v5554_v40 = vadd.f32 %v5553_v49, %v5552_v14  ;;  %v5629_v43 = vrot.slane %v5628_v5, 2 }
 0x549   :  { %v5534_v57 = vrot.slane %v5533_v59, 1  ;;  %v5609_v26 = vadd.f32 %v5608_v2, %v5607_v20  ;;  %v18837_v20 = vld [vmem:[#allocation63_spill] sm:$0xff] }
 0x54a   :  { %v5555_v46 = vrot.slane %v5554_v40, 1  ;;  %v5630_v8 = vadd.f32 %v5629_v43, %v5628_v5  ;;  %v10745_v5 = vld [vmem:[%s18670_s12 + $0x2] ss:$8 sm:$0x3] }
 0x54b   :  { %v5535_v36 = vadd.f32 %v5534_v57, %v5533_v59  ;;  %v5610_v63 = vrot.slane %v5609_v26, 1  ;;  %v18839_v57 = vld [vmem:[#allocation65_spill] sm:$0xff] }
 0x54c   :  { %v5556_v9 = vadd.f32 %v5555_v46, %v5554_v40  ;;  %v5631_v6 = vrot.slane %v5630_v8, 1  ;;  %v18838_v40 = vld [vmem:[#allocation64_spill] sm:$0xff] }
 0x54d   :  { %v5557_v42 = vmul.f32 0.0078125, %v5535_v36  ;;  %v5611_v16 = vadd.f32 %v5610_v63, %v5609_v26 }
 0x54e   :  { %v5558_v51 = vmul.f32 0.0078125, %v5556_v9  ;;  %v5632_v39 = vadd.f32 %v5631_v6, %v5630_v8 }
 0x54f   :  { %v5633_v13 = vmul.f32 0.0078125, %v5611_v16  ;;  %v5635_v48 = vmul.f32 %v5557_v42, %v5557_v42 }
 0x550   :  { %v5634_v54 = vmul.f32 0.0078125, %v5632_v39  ;;  %v5636_v53 = vmul.f32 %v5558_v51, %v5558_v51 }
 0x551   :  { %v5637_v33 = vsub.f32 %v5633_v13, %v5635_v48 }
 0x552   :  { %v5638_v60 = vsub.f32 %v5634_v54, %v5636_v53 }
 0x553   :  { %v5639_v37 = vmax.f32 %v5637_v33, 0.0 }
 0x554   :  { %v5640_v47 = vmax.f32 %v5638_v60, 0.0 }
 0x555   :  { %v5641_v22 = vadd.f32 1e-05, %v5639_v37 }
 0x556   :  { %v5642_v56 = vadd.f32 1e-05, %v5640_v47 }
 0x557   :  { %12177 = vrsqrt.f32 %v5641_v22 }
 0x558   :  { %12179 = vrsqrt.f32 %v5642_v56 }
 0x561   :  { %v12178_v14 = vpop.eup %12177 }
 0x562   :  { %v12180_v52 = vpop.eup %12179 }
 0x563   :  { %v5647_v62 = vcombine.low %v12178_v14, %v12180_v52 }
 0x565   :  { %v5654_v49 = vrot.slane %v5647_v62, %v18837_v20 }
 0x567   :  { %v5661_v59 = vrot.slane %v5654_v49, %v18837_v20 }
 0x569   :  { %v5663_v2 = vmul.f32 %v10745_v5, %v5661_v59 }
 0x56b   :  { %v5668_v43 = vrot.slane %v5663_v2, %v18838_v40  ;;  %v5672_v26 = vrot.slane %v5663_v2, %v18839_v57 }
 0x56d   :  { %v5675_v46 = vmul.f32 %v5668_v43, %v5557_v42  ;;  %v5676_v8 = vmul.f32 %v5672_v26, %v5558_v51  ;;  %v5727_v36 = vmul.f32 %v5672_v26, %v5508_v10  ;;  %v5697_v63 = vmul.f32 %v5672_v26, %v15615_v44 }
 0x56e   :  { %v5699_v9 = vmul.f32 %v5672_v26, %v15628_v25  ;;  %v5696_v6 = vmul.f32 %v5668_v43, %v15613_v0  ;;  %v5698_v16 = vmul.f32 %v5668_v43, %v15617_v32  ;;  %v5701_v39 = vmul.f32 %v5672_v26, %v15650_v4 }
 0x56f   :  { %v5679_v13 = vcombine.low %v5675_v46, %v5676_v8  ;;  %v5703_v48 = vmul.f32 %v5672_v26, %v15663_v31  ;;  %v5700_v54 = vmul.f32 %v5668_v43, %v15645_v41  ;;  %v5702_v53 = vmul.f32 %v5668_v43, %v15655_v19  ;;  %v10746_v41 = vld [vmem:[%s18670_s12 + $0x3] ss:$8 sm:$0x3] }
 0x570   :  { %v5705_v42 = vmul.f32 %v5672_v26, %v15682_v7  ;;  %v5707_v10 = vmul.f32 %v5672_v26, %v15695_v15  ;;  %v5704_v44 = vmul.f32 %v5668_v43, %v15677_v3  ;;  %v5706_v25 = vmul.f32 %v5668_v43, %v15687_v24 }
 0x571   :  { %v5686_v0 = vrot.slane %v5679_v13, %v18837_v20  ;;  %v5709_v32 = vmul.f32 %v5672_v26, %v15705_v1  ;;  %v5711_v4 = vmul.f32 %v5672_v26, %v15715_v30  ;;  %v5708_v31 = vmul.f32 %v5668_v43, %v15700_v55 }
 0x572   :  { %v5710_v19 = vmul.f32 %v5668_v43, %v15710_v29  ;;  %v5713_v7 = vmul.f32 %v5672_v26, %v15725_v38  ;;  %v5715_v3 = vmul.f32 %v5672_v26, %v15735_v35  ;;  %v5712_v24 = vmul.f32 %v5668_v43, %v15720_v45 }
 0x573   :  { %v5693_v15 = vrot.slane %v5686_v0, %v18837_v20  ;;  %v5714_v1 = vmul.f32 %v5668_v43, %v15730_v50  ;;  %v5717_v30 = vmul.f32 %v5672_v26, %v15745_v11  ;;  %v5719_v55 = vmul.f32 %v5672_v26, %v15755_v61 }
 0x574   :  { %v5716_v51 = vmul.f32 %v5668_v43, %v15740_v27  ;;  %v5718_v33 = vmul.f32 %v5668_v43, %v15750_v23  ;;  %v5721_v29 = vmul.f32 %v5672_v26, %v15765_v34  ;;  %v5723_v38 = vmul.f32 %v5672_v26, %v15775_v28 }
 0x575   :  { %v5695_v60 = vsub.f32 %v10746_v41, %v5693_v15  ;;  %v5720_v35 = vmul.f32 %v5668_v43, %v15760_v17  ;;  %v5722_v45 = vmul.f32 %v5668_v43, %v15770_v58  ;;  %v5725_v37 = vmul.f32 %v5672_v26, %v15785_v18 }
 0x576   :  { %v5724_v50 = vmul.f32 %v5668_v43, %v15780_v12  ;;  %v5726_v11 = vmul.f32 %v5668_v43, %v15790_v21 }
 0x577   :  { %v5732_v61 = vrot.slane %v5695_v60, %v18838_v40  ;;  %v5736_v27 = vrot.slane %v5695_v60, %v18839_v57 }
 0x579   :  { %v5770_v23 = vadd.f32 %v5736_v27, %v5727_v36  ;;  %v5740_v47 = vadd.f32 %v5736_v27, %v5697_v63  ;;  %v5742_v34 = vadd.f32 %v5736_v27, %v5699_v9  ;;  %v5739_v22 = vadd.f32 %v5732_v61, %v5696_v6 }
 0x57a   :  { %v5741_v28 = vadd.f32 %v5732_v61, %v5698_v16  ;;  %v5744_v56 = vadd.f32 %v5736_v27, %v5701_v39  ;;  %v5746_v14 = vadd.f32 %v5736_v27, %v5703_v48  ;;  %v5743_v17 = vadd.f32 %v5732_v61, %v5700_v54 }
 0x57b   :  { %12181 = vtanh.f32 %v5770_v23  ;;  %v5745_v58 = vadd.f32 %v5732_v61, %v5702_v53  ;;  %v5748_v52 = vadd.f32 %v5736_v27, %v5705_v42  ;;  %v5750_v18 = vadd.f32 %v5736_v27, %v5707_v10 }
 0x57c   :  { %12183 = vtanh.f32 %v5740_v47  ;;  %v5747_v12 = vadd.f32 %v5732_v61, %v5704_v44  ;;  %v5749_v62 = vadd.f32 %v5732_v61, %v5706_v25  ;;  %v5752_v21 = vadd.f32 %v5736_v27, %v5709_v32 }
 0x57d   :  { %12185 = vtanh.f32 %v5742_v34  ;;  %v5754_v49 = vadd.f32 %v5736_v27, %v5711_v4  ;;  %v5751_v5 = vadd.f32 %v5732_v61, %v5708_v31  ;;  %v5753_v59 = vadd.f32 %v5732_v61, %v5710_v19 }
 0x57e   :  { %12187 = vtanh.f32 %v5739_v22  ;;  %v5756_v2 = vadd.f32 %v5736_v27, %v5713_v7  ;;  %v5758_v43 = vadd.f32 %v5736_v27, %v5715_v3  ;;  %v5755_v26 = vadd.f32 %v5732_v61, %v5712_v24 }
 0x57f   :  { %12189 = vtanh.f32 %v5741_v28  ;;  %v5757_v46 = vadd.f32 %v5732_v61, %v5714_v1  ;;  %v5760_v8 = vadd.f32 %v5736_v27, %v5717_v30  ;;  %v5762_v36 = vadd.f32 %v5736_v27, %v5719_v55 }
 0x580   :  { %12191 = vtanh.f32 %v5744_v56  ;;  %v5759_v63 = vadd.f32 %v5732_v61, %v5716_v51  ;;  %v5761_v9 = vadd.f32 %v5732_v61, %v5718_v33  ;;  %v5764_v6 = vadd.f32 %v5736_v27, %v5721_v29 }
 0x581   :  { %12193 = vtanh.f32 %v5746_v14  ;;  %v5766_v16 = vadd.f32 %v5736_v27, %v5723_v38  ;;  %v5763_v39 = vadd.f32 %v5732_v61, %v5720_v35  ;;  %v5765_v13 = vadd.f32 %v5732_v61, %v5722_v45 }
 0x582   :  { %12195 = vtanh.f32 %v5743_v17  ;;  %v5768_v48 = vadd.f32 %v5736_v27, %v5725_v37  ;;  %v5767_v54 = vadd.f32 %v5732_v61, %v5724_v50  ;;  %v5769_v53 = vadd.f32 %v5732_v61, %v5726_v11 }
 0x583   :  { %12197 = vtanh.f32 %v5745_v58 }
 0x584   :  { %12199 = vtanh.f32 %v5748_v52 }
 0x585   :  { %v15840_v42 = vpop.eup %12181  ;;  %12201 = vtanh.f32 %v5750_v18 }
 0x586   :  { %v12184_v10 = vpop.eup %12183  ;;  %12203 = vtanh.f32 %v5747_v12 }
 0x587   :  { %v12186_v44 = vpop.eup %12185  ;;  %12205 = vtanh.f32 %v5749_v62 }
 0x588   :  { %v12188_v25 = vpop.eup %12187  ;;  %v5836_v0 = vpack.c.bf16 %v12186_v44, %v12184_v10  ;;  %12207 = vtanh.f32 %v5752_v21 }
 0x589   :  { %v12190_v32 = vpop.eup %12189  ;;  %12209 = vtanh.f32 %v5754_v49 }
 0x58a   :  { %v12192_v4 = vpop.eup %12191  ;;  %5979 = vmatprep.mubr.bf16.mxu1 %v5836_v0  ;;  %v5835_v31 = vpack.c.bf16 %v12190_v32, %v12188_v25  ;;  %12211 = vtanh.f32 %v5751_v5 }
 0x58b   :  { %v12194_v41 = vpop.eup %12193  ;;  %12213 = vtanh.f32 %v5753_v59 }
 0x58c   :  { %v12196_v19 = vpop.eup %12195  ;;  %5980 = vmatmul.mubr.bf16.vlgmr.msra.gmra.mrb[32].mxu1 %v5835_v31  ;;  %v5838_v7 = vpack.c.bf16 %v12194_v41, %v12192_v4  ;;  %12215 = vtanh.f32 %v5756_v2 }
 0x58d   :  { %v12198_v3 = vpop.eup %12197  ;;  %12217 = vtanh.f32 %v5758_v43 }
 0x58e   :  { %v12200_v24 = vpop.eup %12199  ;;  %5987 = vmatprep.mubr.bf16.mxu1 %v5838_v7  ;;  %v5837_v15 = vpack.c.bf16 %v12198_v3, %v12196_v19  ;;  %12219 = vtanh.f32 %v5755_v26  ;;  %v11993_v26 = vld [vmem:[#allocation10] sm:$0xff]  }
 0x58f   :  { %v12202_v1 = vpop.eup %12201  ;;  %12221 = vtanh.f32 %v5757_v46  ;;  %11053 = vmatprep.subr.bf16.mxu1 %v11993_v26  ;;  %v11994_v46 = vld [vmem:[#allocation10 + $0x8] sm:$0xff]  }
 0x590   :  { %v12204_v30 = vpop.eup %12203  ;;  %v5840_v55 = vpack.c.bf16 %v12202_v1, %v12200_v24  ;;  %12223 = vtanh.f32 %v5760_v8  ;;  %11054 = vmatpush3.bf16.msra.mxu1 %v11993_v26  ;;  %v11995_v8 = vld [vmem:[#allocation10 + $0x10] sm:$0xff]  }
 0x591   :  { %v12206_v51 = vpop.eup %12205  ;;  %12225 = vtanh.f32 %v5762_v36  ;;  %11055 = vmatprep.subr.bf16.mxu1 %v11994_v46  ;;  %v11996_v36 = vld [vmem:[#allocation10 + $0x18] sm:$0xff]  }
 0x592   :  { %v12208_v33 = vpop.eup %12207  ;;  %v5839_v29 = vpack.c.bf16 %v12206_v51, %v12204_v30  ;;  %12227 = vtanh.f32 %v5759_v63  ;;  %v11997_v63 = vld [vmem:[#allocation10 + $0x20] sm:$0xff]  }
 0x593   :  { %v12210_v38 = vpop.eup %12209  ;;  %12229 = vtanh.f32 %v5761_v9  ;;  %v11998_v9 = vld [vmem:[#allocation10 + $0x28] sm:$0xff]  }
 0x594   :  { %v12212_v60 = vpop.eup %12211  ;;  %5988 = vmatmul.mubr.bf16.gmra.mrb[36].mxu1 %v5837_v15  ;;  %v5842_v35 = vpack.c.bf16 %v12210_v38, %v12208_v33  ;;  %12231 = vtanh.f32 %v5764_v6  ;;  %v11999_v6 = vld [vmem:[#allocation10 + $0x30] sm:$0xff]  }
 0x595   :  { %v12214_v45 = vpop.eup %12213  ;;  %5995 = vmatprep.mubr.bf16.mxu1 %v5840_v55  ;;  %12233 = vtanh.f32 %v5766_v16  ;;  %11056 = vmatpush3.bf16.msra.mxu1 %v11994_v46  ;;  %v12000_v16 = vld [vmem:[#allocation10 + $0x38] sm:$0xff]  }
 0x596   :  { %v12216_v37 = vpop.eup %12215  ;;  %v5841_v50 = vpack.c.bf16 %v12214_v45, %v12212_v60  ;;  %12235 = vtanh.f32 %v5763_v39  ;;  %11057 = vmatprep.subr.bf16.mxu1 %v11995_v8 }
 0x597   :  { %v12218_v11 = vpop.eup %12217  ;;  %12237 = vtanh.f32 %v5765_v13 }
 0x598   :  { %v12220_v61 = vpop.eup %12219  ;;  %v5844_v27 = vpack.c.bf16 %v12218_v11, %v12216_v37  ;;  %12239 = vtanh.f32 %v5768_v48 }
 0x599   :  { %v12222_v23 = vpop.eup %12221  ;;  %12241 = vtanh.f32 %v5767_v54  ;;  %11058 = vmatpush3.bf16.msra.mxu1 %v11995_v8 }
 0x59a   :  { %v12224_v47 = vpop.eup %12223  ;;  %v5843_v34 = vpack.c.bf16 %v12222_v23, %v12220_v61  ;;  %12243 = vtanh.f32 %v5769_v53  ;;  %11059 = vmatprep.subr.bf16.mxu1 %v11996_v36 }
 0x59b   :  { %v12226_v22 = vpop.eup %12225 }
 0x59c   :  { %v12228_v28 = vpop.eup %12227  ;;  %5996 = vmatmul.mubr.bf16.gmra.mrb[40].mxu1 %v5839_v29  ;;  %v5846_v56 = vpack.c.bf16 %v12226_v22, %v12224_v47 }
 0x59d   :  { %v12230_v14 = vpop.eup %12229  ;;  %6003 = vmatprep.mubr.bf16.mxu1 %v5842_v35  ;;  %11060 = vmatpush3.bf16.msra.mxu1 %v11996_v36 }
 0x59e   :  { %v12232_v17 = vpop.eup %12231  ;;  %v5845_v58 = vpack.c.bf16 %v12230_v14, %v12228_v28  ;;  %11061 = vmatprep.subr.bf16.mxu1 %v11997_v63 }
 0x59f   :  { %v12234_v52 = vpop.eup %12233 }
 0x5a0   :  { %v12236_v18 = vpop.eup %12235  ;;  %v5848_v12 = vpack.c.bf16 %v12234_v52, %v12232_v17 }
 0x5a1   :  { %v12238_v62 = vpop.eup %12237  ;;  %11062 = vmatpush3.bf16.msra.mxu1 %v11997_v63 }
 0x5a2   :  { %v12240_v21 = vpop.eup %12239  ;;  %v5847_v49 = vpack.c.bf16 %v12238_v62, %v12236_v18  ;;  %11063 = vmatprep.subr.bf16.mxu1 %v11998_v9 }
 0x5a3   :  { %v12242_v5 = vpop.eup %12241  ;;  %v5850_v59 = vpack.c.bf16 %v15840_v42, %v12240_v21 }
 0x5a4   :  { %v12244_v2 = vpop.eup %12243  ;;  %6004 = vmatmul.mubr.bf16.gmra.mrb[44].mxu1 %v5841_v50 }
 0x5a5   :  { %6011 = vmatprep.mubr.bf16.mxu1 %v5844_v27  ;;  %v5849_v43 = vpack.c.bf16 %v12244_v2, %v12242_v5  ;;  %11064 = vmatpush3.bf16.msra.mxu1 %v11998_v9 }
 0x5a6   :  { %11065 = vmatprep.subr.bf16.mxu1 %v11999_v6 }
 0x5a9   :  { %11066 = vmatpush3.bf16.msra.mxu1 %v11999_v6 }
 0x5aa   :  { %11067 = vmatprep.subr.bf16.mxu1 %v12000_v16 }
 0x5ac   :  { %6012 = vmatmul.mubr.bf16.gmra.mrb[48].mxu1 %v5843_v34 }
 0x5ad   :  { %6019 = vmatprep.mubr.bf16.mxu1 %v5846_v56  ;;  %11068 = vmatpush3.bf16.msra.mxu1 %v12000_v16 }
 0x5b4   :  { %6020 = vmatmul.mubr.bf16.gmra.mrb[52].mxu1 %v5845_v58 }
 0x5b5   :  { %6027 = vmatprep.mubr.bf16.mxu1 %v5848_v12 }
 0x5bc   :  { %6028 = vmatmul.mubr.bf16.gmra.mrb[56].mxu1 %v5847_v49 }
 0x5bd   :  { %6035 = vmatprep.mubr.bf16.mxu1 %v5850_v59 }
 0x5c4   :  { %6036 = vmatmul.mubr.bf16.gmra.mrb[60].mxu1 %v5849_v43 }
 0x65f   :  { %v10829_v39 = vpop.f32.mrb[32].mxu1 }
 0x660   :  { %v10830_v13 = vpop.f32.mrb[33].mxu1 }
 0x661   :  { %v15843_v48 = vadd.f32 %v10830_v13, %v10829_v39  ;;  %v10832_v54 = vpop.f32.mrb[34].mxu1 }
 0x662   :  { %v10833_v53 = vpop.f32.mrb[35].mxu1 }
 0x663   :  { %v15845_v42 = vadd.f32 %v10833_v53, %v10832_v54  ;;  %v6068_v41 = vmul.f32 %v15843_v48, %v15843_v48 }
 0x665   :  { %v6069_v31 = vmul.f32 %v15845_v42, %v15845_v42  ;;  %v6046_v19 = vadd.f32 %v15845_v42, %v15843_v48 }
 0x667   :  { %v10835_v10 = vpop.f32.mrb[36].mxu1  ;;  %v6084_v15 = vadd.f32 %v6069_v31, %v6068_v41 }
 0x668   :  { %v10836_v44 = vpop.f32.mrb[37].mxu1 }
 0x669   :  { %v15847_v25 = vadd.f32 %v10836_v44, %v10835_v10  ;;  %v10838_v0 = vpop.f32.mrb[38].mxu1 }
 0x66a   :  { %v10839_v32 = vpop.f32.mrb[39].mxu1 }
 0x66b   :  { %v15849_v4 = vadd.f32 %v10839_v32, %v10838_v0  ;;  %v6070_v7 = vmul.f32 %v15847_v25, %v15847_v25  ;;  %v6047_v1 = vadd.f32 %v15847_v25, %v6046_v19 }
 0x66d   :  { %v6085_v33 = vadd.f32 %v6084_v15, %v6070_v7  ;;  %v6071_v29 = vmul.f32 %v15849_v4, %v15849_v4  ;;  %v6048_v60 = vadd.f32 %v15849_v4, %v6047_v1 }
 0x66f   :  { %v10841_v3 = vpop.f32.mrb[40].mxu1  ;;  %v6086_v45 = vadd.f32 %v6085_v33, %v6071_v29 }
 0x670   :  { %v10842_v24 = vpop.f32.mrb[41].mxu1 }
 0x671   :  { %v15860_v30 = vadd.f32 %v10842_v24, %v10841_v3  ;;  %v10844_v55 = vpop.f32.mrb[42].mxu1 }
 0x672   :  { %v10845_v51 = vpop.f32.mrb[43].mxu1 }
 0x673   :  { %v15864_v38 = vadd.f32 %v10845_v51, %v10844_v55  ;;  %v6072_v35 = vmul.f32 %v15860_v30, %v15860_v30  ;;  %v6049_v37 = vadd.f32 %v15860_v30, %v6048_v60 }
 0x675   :  { %v6087_v61 = vadd.f32 %v6086_v45, %v6072_v35  ;;  %v6073_v27 = vmul.f32 %v15864_v38, %v15864_v38  ;;  %v6050_v22 = vadd.f32 %v15864_v38, %v6049_v37 }
 0x677   :  { %v10847_v50 = vpop.f32.mrb[44].mxu1  ;;  %v6088_v14 = vadd.f32 %v6087_v61, %v6073_v27 }
 0x678   :  { %v10848_v11 = vpop.f32.mrb[45].mxu1 }
 0x679   :  { %v15872_v23 = vadd.f32 %v10848_v11, %v10847_v50  ;;  %v10850_v47 = vpop.f32.mrb[46].mxu1 }
 0x67a   :  { %v10851_v34 = vpop.f32.mrb[47].mxu1 }
 0x67b   :  { %v6074_v28 = vmul.f32 %v15872_v23, %v15872_v23  ;;  %v15877_v56 = vadd.f32 %v10851_v34, %v10850_v47  ;;  %v6051_v17 = vadd.f32 %v15872_v23, %v6050_v22 }
 0x67d   :  { %v6089_v58 = vadd.f32 %v6088_v14, %v6074_v28  ;;  %v6075_v52 = vmul.f32 %v15877_v56, %v15877_v56  ;;  %v6052_v62 = vadd.f32 %v15877_v56, %v6051_v17 }
 0x67f   :  { %v10853_v18 = vpop.f32.mrb[48].mxu1  ;;  %v6090_v59 = vadd.f32 %v6089_v58, %v6075_v52 }
 0x680   :  { %v10854_v12 = vpop.f32.mrb[49].mxu1 }
 0x681   :  { %v15883_v21 = vadd.f32 %v10854_v12, %v10853_v18  ;;  %v10856_v49 = vpop.f32.mrb[50].mxu1 }
 0x682   :  { %v10857_v5 = vpop.f32.mrb[51].mxu1 }
 0x683   :  { %v6053_v2 = vadd.f32 %v15883_v21, %v6052_v62  ;;  %v6076_v43 = vmul.f32 %v15883_v21, %v15883_v21  ;;  %v15888_v26 = vadd.f32 %v10857_v5, %v10856_v49 }
 0x685   :  { %v6091_v46 = vadd.f32 %v6090_v59, %v6076_v43  ;;  %v6054_v8 = vadd.f32 %v15888_v26, %v6053_v2  ;;  %v6077_v36 = vmul.f32 %v15888_v26, %v15888_v26 }
 0x687   :  { %v6092_v63 = vadd.f32 %v6091_v46, %v6077_v36  ;;  %v10859_v9 = vpop.f32.mrb[52].mxu1 }
 0x688   :  { %v10860_v6 = vpop.f32.mrb[53].mxu1 }
 0x689   :  { %v15893_v16 = vadd.f32 %v10860_v6, %v10859_v9  ;;  %v10862_v39 = vpop.f32.mrb[54].mxu1 }
 0x68a   :  { %v10863_v13 = vpop.f32.mrb[55].mxu1 }
 0x68b   :  { %v6055_v54 = vadd.f32 %v15893_v16, %v6054_v8  ;;  %v6078_v53 = vmul.f32 %v15893_v16, %v15893_v16  ;;  %v15898_v10 = vadd.f32 %v10863_v13, %v10862_v39  ;;  %v6044_v13 = vld [vmem:[%s18670_s12 + $0x4] ss:$0 sm:$0xff] }
 0x68d   :  { %v6093_v44 = vadd.f32 %v6092_v63, %v6078_v53  ;;  %v6056_v0 = vadd.f32 %v15898_v10, %v6055_v54  ;;  %v6079_v32 = vmul.f32 %v15898_v10, %v15898_v10 }
 0x68f   :  { %v6094_v31 = vadd.f32 %v6093_v44, %v6079_v32  ;;  %v10865_v41 = vpop.f32.mrb[56].mxu1  ;;  %v6045_v44 = vld [vmem:[%s18670_s12 + $0x5] ss:$0 sm:$0xff] }
 0x690   :  { %v10866_v19 = vpop.f32.mrb[57].mxu1 }
 0x691   :  { %v10867_v7 = vadd.f32 %v10866_v19, %v10865_v41  ;;  %v10868_v3 = vpop.f32.mrb[58].mxu1 }
 0x692   :  { %v10869_v24 = vpop.f32.mrb[59].mxu1 }
 0x693   :  { %v6057_v15 = vadd.f32 %v10867_v7, %v6056_v0  ;;  %v6080_v1 = vmul.f32 %v10867_v7, %v10867_v7  ;;  %v15903_v55 = vadd.f32 %v10869_v24, %v10868_v3 }
 0x695   :  { %v6095_v51 = vadd.f32 %v6094_v31, %v6080_v1  ;;  %v6058_v33 = vadd.f32 %v15903_v55, %v6057_v15  ;;  %v6081_v29 = vmul.f32 %v15903_v55, %v15903_v55 }
 0x697   :  { %v6096_v60 = vadd.f32 %v6095_v51, %v6081_v29  ;;  %v10871_v35 = vpop.f32.mrb[60].mxu1 }
 0x698   :  { %v10872_v45 = vpop.f32.mrb[61].mxu1 }
 0x699   :  { %v15908_v37 = vadd.f32 %v10872_v45, %v10871_v35  ;;  %v10874_v50 = vpop.f32.mrb[62].mxu1 }
 0x69a   :  { %v10875_v11 = vpop.f32.mrb[63].mxu1 }
 0x69b   :  { %v6059_v61 = vadd.f32 %v15908_v37, %v6058_v33  ;;  %v6082_v27 = vmul.f32 %v15908_v37, %v15908_v37  ;;  %v10876_v47 = vadd.f32 %v10875_v11, %v10874_v50 }
 0x69d   :  { %v6097_v34 = vadd.f32 %v6096_v60, %v6082_v27  ;;  %v6060_v22 = vadd.f32 %v10876_v47, %v6059_v61  ;;  %v6083_v28 = vmul.f32 %v10876_v47, %v10876_v47 }
 0x69f   :  { %v6061_v14 = vrot.slane %v6060_v22, 4  ;;  %v6098_v17 = vadd.f32 %v6097_v34, %v6083_v28 }
 0x6a1   :  { %v6062_v58 = vadd.f32 %v6061_v14, %v6060_v22  ;;  %v6099_v52 = vrot.slane %v6098_v17, 4 }
 0x6a3   :  { %v6063_v18 = vrot.slane %v6062_v58, 2  ;;  %v6100_v12 = vadd.f32 %v6099_v52, %v6098_v17 }
 0x6a5   :  { %v6064_v62 = vadd.f32 %v6063_v18, %v6062_v58  ;;  %v6101_v49 = vrot.slane %v6100_v12, 2 }
 0x6a7   :  { %v6065_v5 = vrot.slane %v6064_v62, 1  ;;  %v6102_v59 = vadd.f32 %v6101_v49, %v6100_v12 }
 0x6a9   :  { %v6066_v2 = vadd.f32 %v6065_v5, %v6064_v62  ;;  %v6103_v43 = vrot.slane %v6102_v59, 1 }
 0x6ab   :  { %v6067_v46 = vmul.f32 0.0078125, %v6066_v2  ;;  %v6104_v8 = vadd.f32 %v6103_v43, %v6102_v59 }
 0x6ad   :  { %v6105_v36 = vmul.f32 0.0078125, %v6104_v8  ;;  %v6106_v63 = vmul.f32 %v6067_v46, %v6067_v46 }
 0x6af   :  { %v6107_v9 = vsub.f32 %v6105_v36, %v6106_v63 }
 0x6b1   :  { %v6108_v6 = vmax.f32 %v6107_v9, 0.0 }
 0x6b3   :  { %v6109_v39 = vadd.f32 1e-05, %v6108_v6 }
 0x6b5   :  { %12245 = vrsqrt.f32 %v6109_v39 }
 0x6bf   :  { %v12246_v54 = vpop.eup %12245 }
 0x6c0   :  { %v6111_v53 = vmul.f32 %v12246_v54, %v6044_v13  ;;  %v18840_v54 = vmov 0  }
 0x6c2   :  { %v6112_v0 = vmul.f32 %v6111_v53, %v6067_v46  ;;  %v6129_v32 = vmul.f32 %v10876_v47, %v6111_v53  ;;  %v6114_v31 = vmul.f32 %v15843_v48, %v6111_v53  ;;  %v6115_v41 = vmul.f32 %v15845_v42, %v6111_v53 }
 0x6c3   :  { %v6116_v19 = vmul.f32 %v15847_v25, %v6111_v53  ;;  %v6117_v3 = vmul.f32 %v15849_v4, %v6111_v53  ;;  %v6118_v24 = vmul.f32 %v15860_v30, %v6111_v53  ;;  %v6119_v15 = vmul.f32 %v15864_v38, %v6111_v53 }
 0x6c4   :  { %v6113_v1 = vsub.f32 %v6045_v44, %v6112_v0  ;;  %v6120_v51 = vmul.f32 %v15872_v23, %v6111_v53  ;;  %v6121_v33 = vmul.f32 %v15877_v56, %v6111_v53  ;;  %v6122_v29 = vmul.f32 %v15883_v21, %v6111_v53  ;;  %v12003_v44 = vld [vmem:[#allocation11 + $0x4] ss:$8 sps:$4 sm:$0xff]   ;;  %v12006_v0 = vld [vmem:[#allocation11 + $0x14] ss:$8 sps:$4 sm:$0xff]  }
 0x6c5   :  { %v6123_v60 = vmul.f32 %v15888_v26, %v6111_v53  ;;  %v6124_v48 = vmul.f32 %v15893_v16, %v6111_v53  ;;  %v6125_v42 = vmul.f32 %v15898_v10, %v6111_v53  ;;  %v6126_v25 = vmul.f32 %v10867_v7, %v6111_v53  ;;  %6566 = vmatprep.subr.bf16.mxu1 %v12003_v44 }
 0x6c6   :  { %v6145_v35 = vadd.f32 %v6129_v32, %v6113_v1  ;;  %v6130_v4 = vadd.f32 %v6114_v31, %v6113_v1  ;;  %v6131_v45 = vadd.f32 %v6115_v41, %v6113_v1  ;;  %v6132_v30 = vadd.f32 %v6116_v19, %v6113_v1  ;;  %v12004_v32 = vld [vmem:[#allocation11 + $0x10] ss:$8 sps:$4 sm:$0xff]   ;;  %v12009_v31 = vld [vmem:[#allocation11 + $0x24] ss:$8 sps:$4 sm:$0xff]   ;;  %v12007_v41 = vld [vmem:[#allocation11 + $0x20] ss:$8 sps:$4 sm:$0xff]  }
 0x6c7   :  { %v6133_v50 = vadd.f32 %v6117_v3, %v6113_v1  ;;  %v6134_v38 = vadd.f32 %v6118_v24, %v6113_v1  ;;  %v6135_v11 = vadd.f32 %v6119_v15, %v6113_v1  ;;  %v6136_v61 = vadd.f32 %v6120_v51, %v6113_v1  ;;  %v12012_v19 = vld [vmem:[#allocation11 + $0x34] ss:$8 sps:$4 sm:$0xff]   ;;  %v12010_v3 = vld [vmem:[#allocation11 + $0x30] ss:$8 sps:$4 sm:$0xff]   ;;  %v12015_v24 = vld [vmem:[#allocation11 + $0x44] ss:$8 sps:$4 sm:$0xff]  }
 0x6c8   :  { %12247 = vtanh.f32 %v6145_v35  ;;  %v6137_v23 = vadd.f32 %v6121_v33, %v6113_v1  ;;  %v6138_v56 = vadd.f32 %v6122_v29, %v6113_v1  ;;  %v6139_v27 = vadd.f32 %v6123_v60, %v6113_v1  ;;  %v12013_v15 = vld [vmem:[#allocation11 + $0x40] ss:$8 sps:$4 sm:$0xff]   ;;  %v12016_v51 = vld [vmem:[#allocation11 + $0x50] ss:$8 sps:$4 sm:$0xff]   ;;  %v12021_v33 = vld [vmem:[#allocation11 + $0x64] ss:$8 sps:$4 sm:$0xff]  }
 0x6c9   :  { %12249 = vtanh.f32 %v6130_v4  ;;  %v6140_v21 = vadd.f32 %v6124_v48, %v6113_v1  ;;  %v6141_v26 = vadd.f32 %v6125_v42, %v6113_v1  ;;  %v6127_v16 = vmul.f32 %v15903_v55, %v6111_v53  ;;  %v12019_v29 = vld [vmem:[#allocation11 + $0x60] ss:$8 sps:$4 sm:$0xff]   ;;  %v12024_v60 = vld [vmem:[#allocation11 + $0x74] ss:$8 sps:$4 sm:$0xff]   ;;  %v12022_v48 = vld [vmem:[#allocation11 + $0x70] ss:$8 sps:$4 sm:$0xff]  }
 0x6ca   :  { %12251 = vtanh.f32 %v6131_v45  ;;  %v6142_v10 = vadd.f32 %v6126_v25, %v6113_v1  ;;  %v6128_v7 = vmul.f32 %v15908_v37, %v6111_v53  ;;  %v12001_v53 = vld [vmem:[#allocation11] ss:$8 sps:$4 sm:$0xff]  }
 0x6cb   :  { %12253 = vtanh.f32 %v6132_v30  ;;  %v6143_v47 = vadd.f32 %v6127_v16, %v6113_v1 }
 0x6cc   :  { %12255 = vtanh.f32 %v6133_v50  ;;  %v6144_v34 = vadd.f32 %v6128_v7, %v6113_v1  ;;  %v12018_v1 = vld [vmem:[#allocation11 + $0x54] ss:$8 sps:$4 sm:$0xff]  }
 0x6cd   :  { %12257 = vtanh.f32 %v6134_v38 }
 0x6ce   :  { %12259 = vtanh.f32 %v6135_v11 }
 0x6cf   :  { %12261 = vtanh.f32 %v6136_v61 }
 0x6d0   :  { %12263 = vtanh.f32 %v6137_v23 }
 0x6d1   :  { %12265 = vtanh.f32 %v6138_v56 }
 0x6d2   :  { %v12248_v22 = vpop.eup %12247  ;;  %12267 = vtanh.f32 %v6139_v27 }
 0x6d3   :  { %v12250_v28 = vpop.eup %12249  ;;  %12269 = vtanh.f32 %v6140_v21 }
 0x6d4   :  { %v12252_v14 = vpop.eup %12251  ;;  %12271 = vtanh.f32 %v6141_v26 }
 0x6d5   :  { %v12254_v55 = vpop.eup %12253  ;;  %v6178_v17 = vpack.c.bf16 %v12252_v14, %v12250_v28  ;;  %12273 = vtanh.f32 %v6142_v10 }
 0x6d6   :  { %v12256_v58 = vpop.eup %12255  ;;  %12275 = vtanh.f32 %v6143_v47 }
 0x6d7   :  { %v12258_v37 = vpop.eup %12257  ;;  %11069 = vmatprep.mubr.bf16.mxu1 %v6178_v17  ;;  %v6179_v52 = vpack.c.bf16 %v12256_v58, %v12254_v55  ;;  %12277 = vtanh.f32 %v6144_v34 }
 0x6d8   :  { %v12260_v18 = vpop.eup %12259 }
 0x6d9   :  { %v12262_v12 = vpop.eup %12261  ;;  %11070 = vmatmul.mubr.bf16.vlgmr.msra.gmra.mrb[64].mxu1 %v6179_v52  ;;  %v6180_v62 = vpack.c.bf16 %v12260_v18, %v12258_v37 }
 0x6da   :  { %v12264_v49 = vpop.eup %12263  ;;  %6567 = vmatpush1.bf16.msra.mxu1 %v12001_v53 }
 0x6db   :  { %v12266_v5 = vpop.eup %12265  ;;  %11073 = vmatprep.mubr.bf16.mxu1 %v6180_v62  ;;  %v6181_v59 = vpack.c.bf16 %v12264_v49, %v12262_v12  ;;  %6568 = vmatprep.subr.bf16.mxu1 %v12006_v0 }
 0x6dc   :  { %v12268_v2 = vpop.eup %12267 }
 0x6dd   :  { %v12270_v43 = vpop.eup %12269  ;;  %v6182_v46 = vpack.c.bf16 %v12268_v2, %v12266_v5 }
 0x6de   :  { %v12272_v8 = vpop.eup %12271  ;;  %6569 = vmatpush1.bf16.msra.mxu1 %v12004_v32 }
 0x6df   :  { %v12274_v36 = vpop.eup %12273  ;;  %v6183_v63 = vpack.c.bf16 %v12272_v8, %v12270_v43  ;;  %6570 = vmatprep.subr.bf16.mxu1 %v12009_v31  ;;  %v12025_v43 = vld [vmem:[#allocation13] sm:$0xff]  }
 0x6e0   :  { %v12276_v9 = vpop.eup %12275  ;;  %11085 = vmatprep.subr.bf16.mxu0 %v12025_v43 }
 0x6e1   :  { %v12278_v6 = vpop.eup %12277  ;;  %11074 = vmatmul.mubr.bf16.gmra.mrb[68].mxu1 %v6181_v59  ;;  %v6184_v39 = vpack.c.bf16 %v12276_v9, %v12274_v36  ;;  %11086 = vmatpush3.bf16.msra.mxu0 %v12025_v43  ;;  %v6332_v43 = vld [vmem:[%s18670_s12 + $0x7] ss:$0 sm:$0xff] }
 0x6e2   :  { %11077 = vmatprep.mubr.bf16.mxu1 %v6182_v46  ;;  %v6185_v13 = vpack.c.bf16 %v12248_v22, %v12278_v6  ;;  %6571 = vmatpush1.bf16.msra.mxu1 %v12007_v41 }
 0x6e3   :  { %6572 = vmatprep.subr.bf16.mxu1 %v12012_v19 }
 0x6e6   :  { %6573 = vmatpush1.bf16.msra.mxu1 %v12010_v3 }
 0x6e7   :  { %6574 = vmatprep.subr.bf16.mxu1 %v12015_v24 }
 0x6e9   :  { %11078 = vmatmul.mubr.bf16.gmra.mrb[72].mxu1 %v6183_v63 }
 0x6ea   :  { %11081 = vmatprep.mubr.bf16.mxu1 %v6184_v39  ;;  %6575 = vmatpush1.bf16.msra.mxu1 %v12013_v15 }
 0x6eb   :  { %6576 = vmatprep.subr.bf16.mxu1 %v12018_v1 }
 0x6ee   :  { %6577 = vmatpush1.bf16.msra.mxu1 %v12016_v51 }
 0x6ef   :  { %6578 = vmatprep.subr.bf16.mxu1 %v12021_v33 }
 0x6f1   :  { %11082 = vmatmul.mubr.bf16.gmra.mrb[76].mxu1 %v6185_v13 }
 0x6f2   :  { %6598 = vmatprep.mubr.bf16.mxu1 %v18840_v54  ;;  %6579 = vmatpush1.bf16.msra.mxu1 %v12019_v29 }
 0x6f3   :  { %6580 = vmatprep.subr.bf16.mxu1 %v12024_v60 }
 0x6f6   :  { %6581 = vmatpush1.bf16.msra.mxu1 %v12022_v48 }
 0x7ac   :  { %v15934_v42 = vpop.f32.mrb[64].mxu1 }
 0x7ad   :  { %v15936_v25 = vpop.f32.mrb[65].mxu1  ;;  %v6357_v38 = vmul.f32 %v15934_v42, %v15934_v42 }
 0x7ae   :  { %v15938_v35 = vpop.f32.mrb[66].mxu1  ;;  %v6355_v45 = vmul.f32 %v15936_v25, %v15936_v25 }
 0x7af   :  { %v15940_v4 = vpop.f32.mrb[67].mxu1  ;;  %v6358_v23 = vmul.f32 %v15938_v35, %v15938_v35 }
 0x7b0   :  { %v6333_v30 = vadd.f32 %v15940_v4, %v15936_v25  ;;  %v6356_v50 = vmul.f32 %v15940_v4, %v15940_v4 }
 0x7b2   :  { %v6334_v11 = vadd.f32 %v15934_v42, %v6333_v30  ;;  %v6371_v61 = vadd.f32 %v6356_v50, %v6355_v45 }
 0x7b4   :  { %v6372_v56 = vadd.f32 %v6371_v61, %v6357_v38  ;;  %v15953_v27 = vpop.f32.mrb[68].mxu1  ;;  %v6335_v21 = vadd.f32 %v15938_v35, %v6334_v11 }
 0x7b5   :  { %v15956_v26 = vpop.f32.mrb[69].mxu1  ;;  %v6361_v55 = vmul.f32 %v15953_v27, %v15953_v27 }
 0x7b6   :  { %v6336_v16 = vadd.f32 %v6335_v21, %v15956_v26  ;;  %v6359_v10 = vmul.f32 %v15956_v26, %v15956_v26  ;;  %v6373_v7 = vadd.f32 %v6372_v56, %v6358_v23  ;;  %v15961_v47 = vpop.f32.mrb[70].mxu1 }
 0x7b7   :  { %v15963_v34 = vpop.f32.mrb[71].mxu1  ;;  %v6362_v37 = vmul.f32 %v15961_v47, %v15961_v47 }
 0x7b8   :  { %v6374_v22 = vadd.f32 %v6373_v7, %v6359_v10  ;;  %v6337_v28 = vadd.f32 %v6336_v16, %v15963_v34  ;;  %v6360_v14 = vmul.f32 %v15963_v34, %v15963_v34 }
 0x7ba   :  { %v6338_v17 = vadd.f32 %v15953_v27, %v6337_v28  ;;  %v6375_v58 = vadd.f32 %v6374_v22, %v6360_v14 }
 0x7bc   :  { %v6376_v52 = vadd.f32 %v6375_v58, %v6361_v55  ;;  %v15973_v18 = vpop.f32.mrb[72].mxu1  ;;  %v6339_v12 = vadd.f32 %v15961_v47, %v6338_v17 }
 0x7bd   :  { %v15976_v62 = vpop.f32.mrb[73].mxu1  ;;  %v6365_v9 = vmul.f32 %v15973_v18, %v15973_v18 }
 0x7be   :  { %v6340_v49 = vadd.f32 %v6339_v12, %v15976_v62  ;;  %v6363_v5 = vmul.f32 %v15976_v62, %v15976_v62  ;;  %v6377_v59 = vadd.f32 %v6376_v52, %v6362_v37  ;;  %v15981_v2 = vpop.f32.mrb[74].mxu1 }
 0x7bf   :  { %v15983_v46 = vpop.f32.mrb[75].mxu1  ;;  %v6366_v13 = vmul.f32 %v15981_v2, %v15981_v2 }
 0x7c0   :  { %v6378_v8 = vadd.f32 %v6377_v59, %v6363_v5  ;;  %v6341_v36 = vadd.f32 %v6340_v49, %v15983_v46  ;;  %v6364_v63 = vmul.f32 %v15983_v46, %v15983_v46  ;;  %v6331_v49 = vld [vmem:[%s18670_s12 + $0x6] ss:$0 sm:$0xff] }
 0x7c2   :  { %v6342_v6 = vadd.f32 %v15973_v18, %v6341_v36  ;;  %v6379_v39 = vadd.f32 %v6378_v8, %v6364_v63 }
 0x7c4   :  { %v6380_v53 = vadd.f32 %v6379_v39, %v6365_v9  ;;  %v15993_v44 = vpop.f32.mrb[76].mxu1  ;;  %v6343_v0 = vadd.f32 %v15981_v2, %v6342_v6 }
 0x7c5   :  { %v6316_v32 = vpop.f32.mrb[77].mxu1  ;;  %v6369_v33 = vmul.f32 %v15993_v44, %v15993_v44 }
 0x7c6   :  { %v6344_v31 = vadd.f32 %v6343_v0, %v6316_v32  ;;  %v6367_v41 = vmul.f32 %v6316_v32, %v6316_v32  ;;  %v6381_v19 = vadd.f32 %v6380_v53, %v6366_v13  ;;  %v15996_v3 = vpop.f32.mrb[78].mxu1 }
 0x7c7   :  { %v6319_v24 = vpop.f32.mrb[79].mxu1  ;;  %v6370_v48 = vmul.f32 %v15996_v3, %v15996_v3 }
 0x7c8   :  { %v6382_v15 = vadd.f32 %v6381_v19, %v6367_v41  ;;  %v6345_v1 = vadd.f32 %v6344_v31, %v6319_v24  ;;  %v6368_v51 = vmul.f32 %v6319_v24, %v6319_v24 }
 0x7ca   :  { %v6346_v29 = vadd.f32 %v15993_v44, %v6345_v1  ;;  %v6383_v60 = vadd.f32 %v6382_v15, %v6368_v51 }
 0x7cc   :  { %v6347_v45 = vadd.f32 %v15996_v3, %v6346_v29  ;;  %v6384_v30 = vadd.f32 %v6383_v60, %v6369_v33 }
 0x7ce   :  { %v6348_v50 = vrot.slane %v6347_v45, 4  ;;  %v6385_v38 = vadd.f32 %v6384_v30, %v6370_v48 }
 0x7d0   :  { %v6349_v11 = vadd.f32 %v6348_v50, %v6347_v45  ;;  %v6386_v61 = vrot.slane %v6385_v38, 4 }
 0x7d2   :  { %v6350_v23 = vrot.slane %v6349_v11, 2  ;;  %v6387_v56 = vadd.f32 %v6386_v61, %v6385_v38 }
 0x7d4   :  { %v6351_v21 = vadd.f32 %v6350_v23, %v6349_v11  ;;  %v6388_v16 = vrot.slane %v6387_v56, 2 }
 0x7d6   :  { %v6352_v10 = vrot.slane %v6351_v21, 1  ;;  %v6389_v7 = vadd.f32 %v6388_v16, %v6387_v56 }
 0x7d8   :  { %v6353_v22 = vadd.f32 %v6352_v10, %v6351_v21  ;;  %v6390_v28 = vrot.slane %v6389_v7, 1 }
 0x7da   :  { %v6354_v14 = vmul.f32 0.0078125, %v6353_v22  ;;  %v6391_v55 = vadd.f32 %v6390_v28, %v6389_v7 }
 0x7dc   :  { %v6392_v17 = vmul.f32 0.0078125, %v6391_v55  ;;  %v6393_v58 = vmul.f32 %v6354_v14, %v6354_v14 }
 0x7de   :  { %v6394_v37 = vsub.f32 %v6392_v17, %v6393_v58 }
 0x7e0   :  { %v6395_v52 = vmax.f32 %v6394_v37, 0.0 }
 0x7e2   :  { %v6396_v12 = vadd.f32 1e-05, %v6395_v52 }
 0x7e4   :  { %12279 = vrsqrt.f32 %v6396_v12 }
 0x7ee   :  { %v12280_v5 = vpop.eup %12279 }
 0x7ef   :  { %v6398_v59 = vmul.f32 %v12280_v5, %v6331_v49 }
 0x7f1   :  { %v6399_v8 = vmul.f32 %v6398_v59, %v6354_v14  ;;  %v6414_v36 = vmul.f32 %v6398_v59, %v6319_v24  ;;  %v6401_v63 = vmul.f32 %v6398_v59, %v15936_v25  ;;  %v6402_v9 = vmul.f32 %v6398_v59, %v15940_v4 }
 0x7f2   :  { %v6403_v6 = vmul.f32 %v15934_v42, %v6398_v59  ;;  %v6404_v39 = vmul.f32 %v15938_v35, %v6398_v59  ;;  %v6405_v13 = vmul.f32 %v6398_v59, %v15956_v26  ;;  %v6406_v53 = vmul.f32 %v6398_v59, %v15963_v34 }
 0x7f3   :  { %v6400_v0 = vsub.f32 %v6332_v43, %v6399_v8  ;;  %v6407_v31 = vmul.f32 %v15953_v27, %v6398_v59  ;;  %v6408_v41 = vmul.f32 %v15961_v47, %v6398_v59  ;;  %v6409_v19 = vmul.f32 %v6398_v59, %v15976_v62  ;;  %v12027_v43 = vld [vmem:[#allocation13 + $0x10] sm:$0xff]   ;;  %v12028_v8 = vld [vmem:[#allocation13 + $0x18] sm:$0xff]  }
 0x7f4   :  { %v6410_v24 = vmul.f32 %v6398_v59, %v15983_v46  ;;  %v6411_v25 = vmul.f32 %v15973_v18, %v6398_v59  ;;  %v6412_v4 = vmul.f32 %v15981_v2, %v6398_v59  ;;  %v6413_v42 = vmul.f32 %v6398_v59, %v6316_v32 }
 0x7f5   :  { %v6430_v15 = vadd.f32 %v6414_v36, %v6400_v0  ;;  %v6417_v35 = vadd.f32 %v6401_v63, %v6400_v0  ;;  %v6418_v1 = vadd.f32 %v6402_v9, %v6400_v0  ;;  %v6419_v26 = vadd.f32 %v6403_v6, %v6400_v0  ;;  %v12029_v36 = vld [vmem:[#allocation13 + $0x20] sm:$0xff]   ;;  %v12030_v63 = vld [vmem:[#allocation13 + $0x28] sm:$0xff]   ;;  %v12031_v9 = vld [vmem:[#allocation13 + $0x30] sm:$0xff]  }
 0x7f6   :  { %v6420_v51 = vadd.f32 %v6404_v39, %v6400_v0  ;;  %v6421_v34 = vadd.f32 %v6405_v13, %v6400_v0  ;;  %v6422_v33 = vadd.f32 %v6406_v53, %v6400_v0  ;;  %v6423_v29 = vadd.f32 %v6407_v31, %v6400_v0  ;;  %v12032_v6 = vld [vmem:[#allocation13 + $0x38] sm:$0xff]  }
 0x7f7   :  { %12281 = vtanh.f32 %v6430_v15  ;;  %v6424_v27 = vadd.f32 %v6408_v41, %v6400_v0  ;;  %v6425_v47 = vadd.f32 %v6409_v19, %v6400_v0  ;;  %v6426_v60 = vadd.f32 %v6410_v24, %v6400_v0  ;;  %v10771_v39 = vld [vmem:[%s18670_s12 + $0x38] ss:$8 sm:$0x3] }
 0x7f8   :  { %12283 = vtanh.f32 %v6417_v35  ;;  %v6427_v62 = vadd.f32 %v6411_v25, %v6400_v0  ;;  %v6428_v46 = vadd.f32 %v6412_v4, %v6400_v0  ;;  %v6429_v48 = vadd.f32 %v6413_v42, %v6400_v0 }
 0x7f9   :  { %12285 = vtanh.f32 %v6418_v1  ;;  %v6415_v18 = vmul.f32 %v15993_v44, %v6398_v59  ;;  %v6416_v2 = vmul.f32 %v15996_v3, %v6398_v59  ;;  %v12026_v59 = vld [vmem:[#allocation13 + $0x8] sm:$0xff]   ;;  %v16035_v13 = vrot.slane %v10771_v39, %v18838_v40 }
 0x7fa   :  { %12287 = vtanh.f32 %v6419_v26  ;;  %11087 = vmatprep.subr.bf16.mxu0 %v12026_v59  ;;  %v16038_v53 = vrot.slane %v10771_v39, %v18839_v57 }
 0x7fb   :  { %12289 = vtanh.f32 %v6420_v51  ;;  %v6431_v32 = vadd.f32 %v6415_v18, %v6400_v0  ;;  %v6432_v45 = vadd.f32 %v6416_v2, %v6400_v0  ;;  %11088 = vmatpush3.bf16.msra.mxu0 %v12026_v59  ;;  %v6714_v59 = vld [vmem:[%s18659_s1 + $0x18] sm:$0xff] }
 0x7fc   :  { %12291 = vtanh.f32 %v6421_v34  ;;  %11089 = vmatprep.subr.bf16.mxu0 %v12027_v43 }
 0x7fd   :  { %12293 = vtanh.f32 %v6422_v33 }
 0x7fe   :  { %12295 = vtanh.f32 %v6423_v29 }
 0x7ff   :  { %12297 = vtanh.f32 %v6424_v27  ;;  %11090 = vmatpush3.bf16.msra.mxu0 %v12027_v43 }
 0x800   :  { %12299 = vtanh.f32 %v6425_v47  ;;  %11091 = vmatprep.subr.bf16.mxu0 %v12028_v8 }
 0x801   :  { %v12282_v30 = vpop.eup %12281  ;;  %12301 = vtanh.f32 %v6426_v60 }
 0x802   :  { %v12284_v50 = vpop.eup %12283  ;;  %12303 = vtanh.f32 %v6427_v62 }
 0x803   :  { %v12286_v38 = vpop.eup %12285  ;;  %12305 = vtanh.f32 %v6428_v46  ;;  %11092 = vmatpush3.bf16.msra.mxu0 %v12028_v8 }
 0x804   :  { %v12288_v11 = vpop.eup %12287  ;;  %v6465_v61 = vpack.c.bf16 %v12286_v38, %v12284_v50  ;;  %12307 = vtanh.f32 %v6429_v48  ;;  %11093 = vmatprep.subr.bf16.mxu0 %v12029_v36 }
 0x805   :  { %v12290_v44 = vpop.eup %12289  ;;  %12309 = vtanh.f32 %v6431_v32 }
 0x806   :  { %v12292_v3 = vpop.eup %12291  ;;  %6599 = vmatmul.mubr.bf16.vlgmr.msra.gmra.mrb[80].mxu1 %v6465_v61  ;;  %v6466_v23 = vpack.c.bf16 %v12290_v44, %v12288_v11  ;;  %12311 = vtanh.f32 %v6432_v45  ;;  %v6711_v45 = vld [vmem:[%s18659_s1] sm:$0xff]  ;;  %v6712_v44 = vld [vmem:[%s18659_s1 + $0x8] sm:$0xff] }
 0x807   :  { %v12294_v56 = vpop.eup %12293  ;;  %6608 = vmatprep.mubr.bf16.mxu1 %v18840_v54  ;;  %11094 = vmatpush3.bf16.msra.mxu0 %v12029_v36 }
 0x808   :  { %v12296_v21 = vpop.eup %12295  ;;  %v6467_v16 = vpack.c.bf16 %v12294_v56, %v12292_v3  ;;  %11095 = vmatprep.subr.bf16.mxu0 %v12030_v63 }
 0x809   :  { %v12298_v10 = vpop.eup %12297 }
 0x80a   :  { %v12300_v7 = vpop.eup %12299  ;;  %v6468_v22 = vpack.c.bf16 %v12298_v10, %v12296_v21 }
 0x80b   :  { %v12302_v28 = vpop.eup %12301  ;;  %11096 = vmatpush3.bf16.msra.mxu0 %v12030_v63 }
 0x80c   :  { %v12304_v14 = vpop.eup %12303  ;;  %v6469_v55 = vpack.c.bf16 %v12302_v28, %v12300_v7  ;;  %11097 = vmatprep.subr.bf16.mxu0 %v12031_v9 }
 0x80d   :  { %v12306_v17 = vpop.eup %12305 }
 0x80e   :  { %v12308_v58 = vpop.eup %12307  ;;  %6609 = vmatmul.mubr.bf16.gmra.mrb[84].mxu1 %v6466_v23  ;;  %v6470_v37 = vpack.c.bf16 %v12306_v17, %v12304_v14  ;;  %v6713_v17 = vld [vmem:[%s18659_s1 + $0x10] sm:$0xff] }
 0x80f   :  { %v12310_v52 = vpop.eup %12309  ;;  %6618 = vmatprep.mubr.bf16.mxu1 %v18840_v54  ;;  %v6471_v12 = vpack.c.bf16 %v12282_v30, %v12308_v58  ;;  %11098 = vmatpush3.bf16.msra.mxu0 %v12031_v9 }
 0x810   :  { %v12312_v49 = vpop.eup %12311  ;;  %11099 = vmatprep.subr.bf16.mxu0 %v12032_v6 }
 0x811   :  { %v6472_v5 = vpack.c.bf16 %v12312_v49, %v12310_v52 }
 0x813   :  { %11100 = vmatpush3.bf16.msra.mxu0 %v12032_v6 }
 0x816   :  { %6619 = vmatmul.mubr.bf16.gmra.mrb[88].mxu1 %v6467_v16 }
 0x817   :  { %6628 = vmatprep.mubr.bf16.mxu1 %v18840_v54 }
 0x81e   :  { %6629 = vmatmul.mubr.bf16.gmra.mrb[92].mxu1 %v6468_v22 }
 0x81f   :  { %6638 = vmatprep.mubr.bf16.mxu1 %v18840_v54 }
 0x826   :  { %6639 = vmatmul.mubr.bf16.gmra.mrb[96].mxu1 %v6469_v55 }
 0x827   :  { %6648 = vmatprep.mubr.bf16.mxu1 %v18840_v54 }
 0x82e   :  { %6649 = vmatmul.mubr.bf16.gmra.mrb[100].mxu1 %v6470_v37 }
 0x82f   :  { %6658 = vmatprep.mubr.bf16.mxu1 %v18840_v54 }
 0x836   :  { %6659 = vmatmul.mubr.bf16.gmra.mrb[104].mxu1 %v6471_v12 }
 0x837   :  { %6668 = vmatprep.mubr.bf16.mxu1 %v18840_v54 }
 0x83e   :  { %6669 = vmatmul.mubr.bf16.gmra.mrb[108].mxu1 %v6472_v5 }
 0x8d9   :  { %v6600_v0 = vpop.f32.mrb[80].mxu1 }
 0x8da   :  { %v6601_v31 = vadd.f32 %v6600_v0, %v16035_v13  ;;  %v6602_v41 = vpop.f32.mrb[81].mxu1 }
 0x8db   :  { %v6603_v19 = vadd.f32 %v6602_v41, %v16038_v53  ;;  %v6604_v24 = vpop.f32.mrb[82].mxu1 }
 0x8dc   :  { %6679 = vst [vmem:[%s18671_s13] sm:$0xff] %v6601_v31  ;;  %v6605_v25 = vadd.f32 %v6604_v24, %v16035_v13  ;;  %v6606_v4 = vpop.f32.mrb[83].mxu1 }
 0x8dd   :  { %6680 = vst [vmem:[%s18671_s13 + $0x8] sm:$0xff] %v6603_v19  ;;  %v6727_v42 = vmul.f32 0.5, %v6603_v19  ;;  %v6607_v15 = vadd.f32 %v6606_v4, %v16038_v53 }
 0x8de   :  { %6681 = vst [vmem:[%s18671_s13 + $0x10] sm:$0xff] %v6605_v25 }
 0x8df   :  { %v6743_v35 = vmul.f32 1.442695, %v6727_v42  ;;  %6682 = vst [vmem:[%s18671_s13 + $0x18] sm:$0xff] %v6607_v15  ;;  %v6728_v1 = vmul.f32 0.5, %v6607_v15  ;;  %v6715_v15 = vld [vmem:[%s18659_s1 + $0x20] sm:$0xff] }
 0x8e1   :  { %12313 = vpow2.f32 %v6743_v35  ;;  %v6745_v26 = vmul.f32 1.442695, %v6728_v1  ;;  %v6610_v51 = vpop.f32.mrb[84].mxu1 }
 0x8e2   :  { %v16057_v34 = vadd.f32 %v6610_v51, %v16035_v13  ;;  %v6612_v33 = vpop.f32.mrb[85].mxu1 }
 0x8e3   :  { %12315 = vpow2.f32 %v6745_v26  ;;  %v6613_v29 = vadd.f32 %v6612_v33, %v16038_v53  ;;  %v6614_v27 = vpop.f32.mrb[86].mxu1 }
 0x8e4   :  { %6683 = vst [vmem:[%s18671_s13 + $0x20] sm:$0xff] %v16057_v34  ;;  %v6615_v47 = vadd.f32 %v6614_v27, %v16035_v13  ;;  %v6616_v60 = vpop.f32.mrb[87].mxu1 }
 0x8e5   :  { %6684 = vst [vmem:[%s18671_s13 + $0x28] sm:$0xff] %v6613_v29  ;;  %v6729_v62 = vmul.f32 0.5, %v6613_v29  ;;  %v6617_v46 = vadd.f32 %v6616_v60, %v16038_v53  ;;  %v6716_v29 = vld [vmem:[%s18659_s1 + $0x28] sm:$0xff] }
 0x8e6   :  { %6685 = vst [vmem:[%s18671_s13 + $0x30] sm:$0xff] %v6615_v47 }
 0x8e7   :  { %v6747_v48 = vmul.f32 1.442695, %v6729_v62  ;;  %6686 = vst [vmem:[%s18671_s13 + $0x38] sm:$0xff] %v6617_v46  ;;  %v6730_v18 = vmul.f32 0.5, %v6617_v46 }
 0x8e9   :  { %12317 = vpow2.f32 %v6747_v48  ;;  %v6749_v2 = vmul.f32 1.442695, %v6730_v18  ;;  %v6620_v32 = vpop.f32.mrb[88].mxu1 }
 0x8ea   :  { %v16079_v30 = vadd.f32 %v6620_v32, %v16035_v13  ;;  %v6622_v50 = vpop.f32.mrb[89].mxu1 }
 0x8eb   :  { %v12314_v38 = vpop.eup %12313  ;;  %12319 = vpow2.f32 %v6749_v2  ;;  %v6623_v11 = vadd.f32 %v6622_v50, %v16038_v53  ;;  %v6624_v61 = vpop.f32.mrb[90].mxu1 }
 0x8ec   :  { %6687 = vst [vmem:[%s18671_s13 + $0x40] sm:$0xff] %v16079_v30  ;;  %v16090_v3 = vadd.f32 %v6624_v61, %v16035_v13  ;;  %v6626_v23 = vpop.f32.mrb[91].mxu1  ;;  %v6775_v56 = vmul.f32 %v12314_v38, %v6711_v45  ;;  %v6717_v61 = vld [vmem:[%s18659_s1 + $0x30] sm:$0xff] }
 0x8ed   :  { %v12316_v21 = vpop.eup %12315  ;;  %6688 = vst [vmem:[%s18671_s13 + $0x48] sm:$0xff] %v6623_v11  ;;  %v6731_v16 = vmul.f32 0.5, %v6623_v11  ;;  %v6627_v10 = vadd.f32 %v6626_v23, %v16038_v53 }
 0x8ee   :  { %6689 = vst [vmem:[%s18671_s13 + $0x50] sm:$0xff] %v16090_v3  ;;  %v6776_v7 = vmul.f32 %v12316_v21, %v6712_v44  ;;  %v6791_v22 = vadd.f32 %v6775_v56, %v6601_v31 }
 0x8ef   :  { %v6751_v28 = vmul.f32 1.442695, %v6731_v16  ;;  %6690 = vst [vmem:[%s18671_s13 + $0x58] sm:$0xff] %v6627_v10  ;;  %v6732_v14 = vmul.f32 0.5, %v6627_v10 }
 0x8f0   :  { %v6792_v55 = vadd.f32 %v6776_v7, %v6605_v25 }
 0x8f1   :  { %12321 = vpow2.f32 %v6751_v28  ;;  %v6753_v58 = vmul.f32 1.442695, %v6732_v14  ;;  %v6630_v37 = vpop.f32.mrb[92].mxu1 }
 0x8f2   :  { %v16107_v52 = vadd.f32 %v6630_v37, %v16035_v13  ;;  %v6632_v12 = vpop.f32.mrb[93].mxu1  ;;  %v6823_v49 = vpack.c.bf16 %v6792_v55, %v6791_v22 }
 0x8f3   :  { %v12318_v5 = vpop.eup %12317  ;;  %12323 = vpow2.f32 %v6753_v58  ;;  %v6633_v43 = vadd.f32 %v6632_v12, %v16038_v53  ;;  %v6634_v8 = vpop.f32.mrb[94].mxu1 }
 0x8f4   :  { %v6777_v36 = vmul.f32 %v12318_v5, %v6713_v17  ;;  %6691 = vst [vmem:[%s18671_s13 + $0x60] sm:$0xff] %v16107_v52  ;;  %v16118_v63 = vadd.f32 %v6634_v8, %v16035_v13  ;;  %v6636_v9 = vpop.f32.mrb[95].mxu1  ;;  %11101 = vmatprep.mubr.bf16.mxu0 %v6823_v49 }
 0x8f5   :  { %v12320_v6 = vpop.eup %12319  ;;  %6692 = vst [vmem:[%s18671_s13 + $0x68] sm:$0xff] %v6633_v43  ;;  %v6733_v39 = vmul.f32 0.5, %v6633_v43  ;;  %v6637_v0 = vadd.f32 %v6636_v9, %v16038_v53  ;;  %v6719_v43 = vld [vmem:[%s18659_s1 + $0x40] sm:$0xff] }
 0x8f6   :  { %v6778_v31 = vmul.f32 %v12320_v6, %v6714_v59  ;;  %6693 = vst [vmem:[%s18671_s13 + $0x70] sm:$0xff] %v16118_v63  ;;  %v6793_v41 = vadd.f32 %v6777_v36, %v16057_v34 }
 0x8f7   :  { %v6755_v19 = vmul.f32 1.442695, %v6733_v39  ;;  %6694 = vst [vmem:[%s18671_s13 + $0x78] sm:$0xff] %v6637_v0  ;;  %v6734_v24 = vmul.f32 0.5, %v6637_v0 }
 0x8f8   :  { %v6794_v25 = vadd.f32 %v6778_v31, %v6615_v47 }
 0x8f9   :  { %12325 = vpow2.f32 %v6755_v19  ;;  %v6757_v4 = vmul.f32 1.442695, %v6734_v24  ;;  %v6640_v42 = vpop.f32.mrb[96].mxu1 }
 0x8fa   :  { %v16136_v35 = vadd.f32 %v6640_v42, %v16035_v13  ;;  %v6642_v1 = vpop.f32.mrb[97].mxu1  ;;  %v6824_v26 = vpack.c.bf16 %v6794_v25, %v6793_v41 }
 0x8fb   :  { %v12322_v51 = vpop.eup %12321  ;;  %12327 = vpow2.f32 %v6757_v4  ;;  %v6643_v34 = vadd.f32 %v6642_v1, %v16038_v53  ;;  %v6644_v33 = vpop.f32.mrb[98].mxu1 }
 0x8fc   :  { %6695 = vst [vmem:[%s18671_s13 + $0x80] sm:$0xff] %v16136_v35  ;;  %v16147_v27 = vadd.f32 %v6644_v33, %v16035_v13  ;;  %v6646_v47 = vpop.f32.mrb[99].mxu1  ;;  %11102 = vmatmul.mubr.bf16.vlgmr.msra.gmra.mrb[64].mxu0 %v6824_v26  ;;  %v6779_v60 = vmul.f32 %v12322_v51, %v6715_v15  ;;  %v6721_v33 = vld [vmem:[%s18659_s1 + $0x50] sm:$0xff] }
 0x8fd   :  { %v12324_v62 = vpop.eup %12323  ;;  %6696 = vst [vmem:[%s18671_s13 + $0x88] sm:$0xff] %v6643_v34  ;;  %v6735_v46 = vmul.f32 0.5, %v6643_v34  ;;  %v6647_v48 = vadd.f32 %v6646_v47, %v16038_v53 }
 0x8fe   :  { %6697 = vst [vmem:[%s18671_s13 + $0x90] sm:$0xff] %v16147_v27  ;;  %v6780_v18 = vmul.f32 %v12324_v62, %v6716_v29  ;;  %v6795_v2 = vadd.f32 %v6779_v60, %v16079_v30 }
 0x8ff   :  { %v6759_v32 = vmul.f32 1.442695, %v6735_v46  ;;  %6698 = vst [vmem:[%s18671_s13 + $0x98] sm:$0xff] %v6647_v48  ;;  %v6736_v45 = vmul.f32 0.5, %v6647_v48 }
 0x900   :  { %v6796_v50 = vadd.f32 %v6780_v18, %v16090_v3  ;;  %v6718_v3 = vld [vmem:[%s18659_s1 + $0x38] sm:$0xff] }
 0x901   :  { %12329 = vpow2.f32 %v6759_v32  ;;  %v6761_v38 = vmul.f32 1.442695, %v6736_v45  ;;  %v6650_v11 = vpop.f32.mrb[100].mxu1 }
 0x902   :  { %v16166_v44 = vadd.f32 %v6650_v11, %v16035_v13  ;;  %v6652_v23 = vpop.f32.mrb[101].mxu1  ;;  %v6825_v30 = vpack.c.bf16 %v6796_v50, %v6795_v2 }
 0x903   :  { %v12326_v56 = vpop.eup %12325  ;;  %12331 = vpow2.f32 %v6761_v38  ;;  %v6653_v21 = vadd.f32 %v6652_v23, %v16038_v53  ;;  %v6654_v16 = vpop.f32.mrb[102].mxu1 }
 0x904   :  { %6699 = vst [vmem:[%s18671_s13 + $0xa0] sm:$0xff] %v16166_v44  ;;  %v16177_v10 = vadd.f32 %v6654_v16, %v16035_v13  ;;  %v6656_v7 = vpop.f32.mrb[103].mxu1  ;;  %11105 = vmatprep.mubr.bf16.mxu0 %v6825_v30  ;;  %v6781_v22 = vmul.f32 %v12326_v56, %v6717_v61 }
 0x905   :  { %v12328_v28 = vpop.eup %12327  ;;  %6700 = vst [vmem:[%s18671_s13 + $0xa8] sm:$0xff] %v6653_v21  ;;  %v6737_v14 = vmul.f32 0.5, %v6653_v21  ;;  %v6657_v55 = vadd.f32 %v6656_v7, %v16038_v53 }
 0x906   :  { %6701 = vst [vmem:[%s18671_s13 + $0xb0] sm:$0xff] %v16177_v10  ;;  %v6782_v17 = vmul.f32 %v12328_v28, %v6718_v3  ;;  %v6797_v58 = vadd.f32 %v6781_v22, %v16107_v52  ;;  %v6725_v28 = vld [vmem:[%s18659_s1 + $0x70] sm:$0xff] }
 0x907   :  { %v6763_v37 = vmul.f32 1.442695, %v6737_v14  ;;  %6702 = vst [vmem:[%s18671_s13 + $0xb8] sm:$0xff] %v6657_v55  ;;  %v6738_v12 = vmul.f32 0.5, %v6657_v55 }
 0x908   :  { %v6798_v49 = vadd.f32 %v6782_v17, %v16118_v63  ;;  %v6720_v63 = vld [vmem:[%s18659_s1 + $0x48] sm:$0xff]  ;;  %v6726_v17 = vld [vmem:[%s18659_s1 + $0x78] sm:$0xff] }
 0x909   :  { %12333 = vpow2.f32 %v6763_v37  ;;  %v6765_v5 = vmul.f32 1.442695, %v6738_v12  ;;  %v6660_v59 = vpop.f32.mrb[104].mxu1 }
 0x90a   :  { %v16196_v8 = vadd.f32 %v6660_v59, %v16035_v13  ;;  %v6662_v36 = vpop.f32.mrb[105].mxu1  ;;  %v6826_v52 = vpack.c.bf16 %v6798_v49, %v6797_v58 }
 0x90b   :  { %v12330_v9 = vpop.eup %12329  ;;  %12335 = vpow2.f32 %v6765_v5  ;;  %v6663_v6 = vadd.f32 %v6662_v36, %v16038_v53  ;;  %v6664_v39 = vpop.f32.mrb[106].mxu1  ;;  %v12035_v36 = vld [vmem:[#allocation14 + $0x10] sm:$0xff]  }
 0x90c   :  { %6703 = vst [vmem:[%s18671_s13 + $0xc0] sm:$0xff] %v16196_v8  ;;  %v6665_v0 = vadd.f32 %v6664_v39, %v16035_v13  ;;  %v6666_v31 = vpop.f32.mrb[107].mxu1  ;;  %11106 = vmatmul.mubr.bf16.gmra.mrb[68].mxu0 %v6826_v52  ;;  %v6783_v41 = vmul.f32 %v12330_v9, %v6719_v43  ;;  %v12033_v43 = vld [vmem:[#allocation14] sm:$0xff]   ;;  %v12036_v52 = vld [vmem:[#allocation14 + $0x18] sm:$0xff]   ;;  %v12039_v39 = vld [vmem:[#allocation14 + $0x30] sm:$0xff]  }
 0x90d   :  { %v12332_v19 = vpop.eup %12331  ;;  %6704 = vst [vmem:[%s18671_s13 + $0xc8] sm:$0xff] %v6663_v6  ;;  %v6739_v24 = vmul.f32 0.5, %v6663_v6  ;;  %v6667_v25 = vadd.f32 %v6666_v31, %v16038_v53  ;;  %11117 = vmatprep.subr.bf16.mxu0 %v12033_v43  ;;  %v12037_v9 = vld [vmem:[#allocation14 + $0x20] sm:$0xff]   ;;  %v12038_v6 = vld [vmem:[#allocation14 + $0x28] sm:$0xff]  }
 0x90e   :  { %6705 = vst [vmem:[%s18671_s13 + $0xd0] sm:$0xff] %v6665_v0  ;;  %v6784_v4 = vmul.f32 %v12332_v19, %v6720_v63  ;;  %v6799_v42 = vadd.f32 %v6783_v41, %v16136_v35  ;;  %11118 = vmatpush3.bf16.msra.mxu0 %v12033_v43  ;;  %v12040_v63 = vld [vmem:[#allocation14 + $0x38] sm:$0xff]  }
 0x90f   :  { %v6767_v15 = vmul.f32 1.442695, %v6739_v24  ;;  %6706 = vst [vmem:[%s18671_s13 + $0xd8] sm:$0xff] %v6667_v25  ;;  %v6740_v1 = vmul.f32 0.5, %v6667_v25 }
 0x910   :  { %v6800_v26 = vadd.f32 %v6784_v4, %v16147_v27  ;;  %v6722_v27 = vld [vmem:[%s18659_s1 + $0x58] sm:$0xff] }
 0x911   :  { %12337 = vpow2.f32 %v6767_v15  ;;  %v6769_v51 = vmul.f32 1.442695, %v6740_v1  ;;  %v6670_v34 = vpop.f32.mrb[108].mxu1 }
 0x912   :  { %v6671_v29 = vadd.f32 %v6670_v34, %v16035_v13  ;;  %v6672_v47 = vpop.f32.mrb[109].mxu1  ;;  %v6827_v60 = vpack.c.bf16 %v6800_v26, %v6799_v42 }
 0x913   :  { %v12334_v35 = vpop.eup %12333  ;;  %12339 = vpow2.f32 %v6769_v51  ;;  %v6673_v62 = vadd.f32 %v6672_v47, %v16038_v53  ;;  %v6674_v46 = vpop.f32.mrb[110].mxu1 }
 0x914   :  { %6707 = vst [vmem:[%s18671_s13 + $0xe0] sm:$0xff] %v6671_v29  ;;  %v6675_v48 = vadd.f32 %v6674_v46, %v16035_v13  ;;  %v6676_v18 = vpop.f32.mrb[111].mxu1  ;;  %11109 = vmatprep.mubr.bf16.mxu0 %v6827_v60  ;;  %v6785_v2 = vmul.f32 %v12334_v35, %v6721_v33 }
 0x915   :  { %v12336_v32 = vpop.eup %12335  ;;  %6708 = vst [vmem:[%s18671_s13 + $0xe8] sm:$0xff] %v6673_v62  ;;  %v6741_v45 = vmul.f32 0.5, %v6673_v62  ;;  %v6677_v50 = vadd.f32 %v6676_v18, %v16038_v53  ;;  %v6723_v53 = vld [vmem:[%s18659_s1 + $0x60] sm:$0xff] }
 0x916   :  { %6709 = vst [vmem:[%s18671_s13 + $0xf0] sm:$0xff] %v6675_v48  ;;  %v6786_v38 = vmul.f32 %v12336_v32, %v6722_v27  ;;  %v6801_v11 = vadd.f32 %v6785_v2, %v16166_v44  ;;  %v6724_v44 = vld [vmem:[%s18659_s1 + $0x68] sm:$0xff] }
 0x917   :  { %v6771_v61 = vmul.f32 1.442695, %v6741_v45  ;;  %6710 = vst [vmem:[%s18671_s13 + $0xf8] sm:$0xff] %v6677_v50  ;;  %v6742_v13 = vmul.f32 0.5, %v6677_v50 }
 0x918   :  { %v6802_v23 = vadd.f32 %v6786_v38, %v16177_v10 }
 0x919   :  { %12341 = vpow2.f32 %v6771_v61  ;;  %v6773_v30 = vmul.f32 1.442695, %v6742_v13 }
 0x91a   :  { %v6828_v56 = vpack.c.bf16 %v6802_v23, %v6801_v11 }
 0x91b   :  { %v12338_v21 = vpop.eup %12337  ;;  %12343 = vpow2.f32 %v6773_v30 }
 0x91c   :  { %11110 = vmatmul.mubr.bf16.gmra.mrb[72].mxu0 %v6828_v56  ;;  %v6787_v16 = vmul.f32 %v12338_v21, %v6723_v53 }
 0x91d   :  { %v12340_v3 = vpop.eup %12339 }
 0x91e   :  { %v6788_v7 = vmul.f32 %v12340_v3, %v6724_v44  ;;  %v6803_v22 = vadd.f32 %v6787_v16, %v16196_v8  ;;  %v12034_v8 = vld [vmem:[#allocation14 + $0x8] sm:$0xff]  }
 0x91f   :  { %11119 = vmatprep.subr.bf16.mxu0 %v12034_v8 }
 0x920   :  { %v6804_v10 = vadd.f32 %v6788_v7, %v6665_v0  ;;  %11120 = vmatpush3.bf16.msra.mxu0 %v12034_v8 }
 0x921   :  { %11121 = vmatprep.subr.bf16.mxu0 %v12035_v36 }
 0x922   :  { %v6829_v14 = vpack.c.bf16 %v6804_v10, %v6803_v22 }
 0x923   :  { %v12342_v55 = vpop.eup %12341 }
 0x924   :  { %11113 = vmatprep.mubr.bf16.mxu0 %v6829_v14  ;;  %v6789_v58 = vmul.f32 %v12342_v55, %v6725_v28  ;;  %11122 = vmatpush3.bf16.msra.mxu0 %v12035_v36 }
 0x925   :  { %v12344_v37 = vpop.eup %12343  ;;  %11123 = vmatprep.subr.bf16.mxu0 %v12036_v52 }
 0x926   :  { %v6790_v12 = vmul.f32 %v12344_v37, %v6726_v17  ;;  %v6805_v49 = vadd.f32 %v6789_v58, %v6671_v29 }
 0x928   :  { %v6806_v5 = vadd.f32 %v6790_v12, %v6675_v48  ;;  %11124 = vmatpush3.bf16.msra.mxu0 %v12036_v52 }
 0x929   :  { %11125 = vmatprep.subr.bf16.mxu0 %v12037_v9 }
 0x92a   :  { %v6830_v59 = vpack.c.bf16 %v6806_v5, %v6805_v49 }
 0x92c   :  { %11114 = vmatmul.mubr.bf16.gmra.mrb[76].mxu0 %v6830_v59 }
 0x92d   :  { %11126 = vmatpush3.bf16.msra.mxu0 %v12037_v9 }
 0x92e   :  { %11127 = vmatprep.subr.bf16.mxu0 %v12038_v6 }
 0x931   :  { %11128 = vmatpush3.bf16.msra.mxu0 %v12038_v6 }
 0x932   :  { %11129 = vmatprep.subr.bf16.mxu0 %v12039_v39 }
 0x935   :  { %11130 = vmatpush3.bf16.msra.mxu0 %v12039_v39 }
 0x936   :  { %11131 = vmatprep.subr.bf16.mxu0 %v12040_v63 }
 0x939   :  { %11132 = vmatpush3.bf16.msra.mxu0 %v12040_v63 }
 0x9cf   :  { %v16256_v0 = vpop.f32.mrb[64].mxu0 }
 0x9d0   :  { %v16258_v31 = vpop.f32.mrb[65].mxu0  ;;  %v7002_v42 = vmul.f32 %v16256_v0, %v16256_v0 }
 0x9d1   :  { %v16260_v41 = vpop.f32.mrb[66].mxu0  ;;  %v7000_v24 = vmul.f32 %v16258_v31, %v16258_v31 }
 0x9d2   :  { %v16262_v19 = vpop.f32.mrb[67].mxu0  ;;  %v7003_v26 = vmul.f32 %v16260_v41, %v16260_v41 }
 0x9d3   :  { %v6978_v25 = vadd.f32 %v16262_v19, %v16258_v31  ;;  %v7001_v4 = vmul.f32 %v16262_v19, %v16262_v19 }
 0x9d5   :  { %v6979_v15 = vadd.f32 %v16256_v0, %v6978_v25  ;;  %v7016_v1 = vadd.f32 %v7001_v4, %v7000_v24 }
 0x9d7   :  { %v7017_v51 = vadd.f32 %v7016_v1, %v7002_v42  ;;  %v6980_v34 = vadd.f32 %v16260_v41, %v6979_v15 }
 0x9d9   :  { %v7018_v33 = vadd.f32 %v7017_v51, %v7003_v26 }
 0x9df   :  { %v16276_v29 = vpop.f32.mrb[68].mxu0 }
 0x9e0   :  { %v16278_v47 = vpop.f32.mrb[69].mxu0  ;;  %v7006_v2 = vmul.f32 %v16276_v29, %v16276_v29 }
 0x9e1   :  { %v6981_v60 = vadd.f32 %v6980_v34, %v16278_v47  ;;  %v7004_v35 = vmul.f32 %v16278_v47, %v16278_v47  ;;  %v16283_v62 = vpop.f32.mrb[70].mxu0 }
 0x9e2   :  { %v16285_v46 = vpop.f32.mrb[71].mxu0  ;;  %v7007_v50 = vmul.f32 %v16283_v62, %v16283_v62 }
 0x9e3   :  { %v7019_v27 = vadd.f32 %v7018_v33, %v7004_v35  ;;  %v6982_v48 = vadd.f32 %v6981_v60, %v16285_v46  ;;  %v7005_v18 = vmul.f32 %v16285_v46, %v16285_v46 }
 0x9e5   :  { %v6983_v32 = vadd.f32 %v16276_v29, %v6982_v48  ;;  %v7020_v45 = vadd.f32 %v7019_v27, %v7005_v18 }
 0x9e7   :  { %v7021_v38 = vadd.f32 %v7020_v45, %v7006_v2  ;;  %v6984_v11 = vadd.f32 %v16283_v62, %v6983_v32 }
 0x9e9   :  { %v7022_v61 = vadd.f32 %v7021_v38, %v7007_v50 }
 0x9ef   :  { %v16296_v13 = vpop.f32.mrb[72].mxu0 }
 0x9f0   :  { %v16298_v23 = vpop.f32.mrb[73].mxu0  ;;  %v7010_v7 = vmul.f32 %v16296_v13, %v16296_v13 }
 0x9f1   :  { %v6985_v30 = vadd.f32 %v6984_v11, %v16298_v23  ;;  %v7008_v53 = vmul.f32 %v16298_v23, %v16298_v23  ;;  %v16303_v56 = vpop.f32.mrb[74].mxu0  ;;  %v6976_v11 = vld [vmem:[%s18670_s12 + $0x39] ss:$0 sm:$0xff] }
 0x9f2   :  { %v6948_v21 = vpop.f32.mrb[75].mxu0  ;;  %v7011_v28 = vmul.f32 %v16303_v56, %v16303_v56 }
 0x9f3   :  { %v7023_v44 = vadd.f32 %v7022_v61, %v7008_v53  ;;  %v6986_v16 = vadd.f32 %v6985_v30, %v6948_v21  ;;  %v7009_v3 = vmul.f32 %v6948_v21, %v6948_v21  ;;  %v6977_v53 = vld [vmem:[%s18670_s12 + $0x3a] ss:$0 sm:$0xff] }
 0x9f5   :  { %v6987_v22 = vadd.f32 %v16296_v13, %v6986_v16  ;;  %v7024_v10 = vadd.f32 %v7023_v44, %v7009_v3 }
 0x9f7   :  { %v7025_v14 = vadd.f32 %v7024_v10, %v7010_v7  ;;  %v6988_v55 = vadd.f32 %v16303_v56, %v6987_v22 }
 0x9f9   :  { %v7026_v17 = vadd.f32 %v7025_v14, %v7011_v28 }
 0x9ff   :  { %v16311_v58 = vpop.f32.mrb[76].mxu0 }
 0xa00   :  { %v6961_v37 = vpop.f32.mrb[77].mxu0  ;;  %v7014_v52 = vmul.f32 %v16311_v58, %v16311_v58 }
 0xa01   :  { %v6989_v12 = vadd.f32 %v6988_v55, %v6961_v37  ;;  %v7012_v49 = vmul.f32 %v6961_v37, %v6961_v37  ;;  %v16313_v5 = vpop.f32.mrb[78].mxu0 }
 0xa02   :  { %v6964_v59 = vpop.f32.mrb[79].mxu0  ;;  %v7015_v39 = vmul.f32 %v16313_v5, %v16313_v5 }
 0xa03   :  { %v7027_v43 = vadd.f32 %v7026_v17, %v7012_v49  ;;  %v6990_v8 = vadd.f32 %v6989_v12, %v6964_v59  ;;  %v7013_v36 = vmul.f32 %v6964_v59, %v6964_v59 }
 0xa05   :  { %v6991_v9 = vadd.f32 %v16311_v58, %v6990_v8  ;;  %v7028_v6 = vadd.f32 %v7027_v43, %v7013_v36 }
 0xa07   :  { %v6992_v63 = vadd.f32 %v16313_v5, %v6991_v9  ;;  %v7029_v24 = vadd.f32 %v7028_v6, %v7014_v52 }
 0xa09   :  { %v6993_v25 = vrot.slane %v6992_v63, 4  ;;  %v7030_v4 = vadd.f32 %v7029_v24, %v7015_v39 }
 0xa0b   :  { %v6994_v42 = vadd.f32 %v6993_v25, %v6992_v63  ;;  %v7031_v15 = vrot.slane %v7030_v4, 4 }
 0xa0d   :  { %v6995_v1 = vrot.slane %v6994_v42, 2  ;;  %v7032_v26 = vadd.f32 %v7031_v15, %v7030_v4 }
 0xa0f   :  { %v6996_v51 = vadd.f32 %v6995_v1, %v6994_v42  ;;  %v7033_v34 = vrot.slane %v7032_v26, 2 }
 0xa11   :  { %v6997_v33 = vrot.slane %v6996_v51, 1  ;;  %v7034_v60 = vadd.f32 %v7033_v34, %v7032_v26 }
 0xa13   :  { %v6998_v35 = vadd.f32 %v6997_v33, %v6996_v51  ;;  %v7035_v27 = vrot.slane %v7034_v60, 1 }
 0xa15   :  { %v6999_v48 = vmul.f32 0.0078125, %v6998_v35  ;;  %v7036_v18 = vadd.f32 %v7035_v27, %v7034_v60 }
 0xa17   :  { %v7037_v2 = vmul.f32 0.0078125, %v7036_v18  ;;  %v7038_v32 = vmul.f32 %v6999_v48, %v6999_v48 }
 0xa19   :  { %v7039_v45 = vsub.f32 %v7037_v2, %v7038_v32 }
 0xa1b   :  { %v7040_v50 = vmax.f32 %v7039_v45, 0.0 }
 0xa1d   :  { %v7041_v38 = vadd.f32 1e-05, %v7040_v50 }
 0xa1f   :  { %12345 = vrsqrt.f32 %v7041_v38 }
 0xa29   :  { %v12346_v61 = vpop.eup %12345 }
 0xa2a   :  { %v7043_v30 = vmul.f32 %v12346_v61, %v6976_v11 }
 0xa2c   :  { %v7044_v44 = vmul.f32 %v7043_v30, %v6999_v48  ;;  %v7059_v16 = vmul.f32 %v7043_v30, %v6964_v59  ;;  %v7046_v3 = vmul.f32 %v7043_v30, %v16258_v31  ;;  %v7047_v7 = vmul.f32 %v7043_v30, %v16262_v19 }
 0xa2d   :  { %v7048_v22 = vmul.f32 %v16256_v0, %v7043_v30  ;;  %v7049_v10 = vmul.f32 %v16260_v41, %v7043_v30  ;;  %v7050_v28 = vmul.f32 %v7043_v30, %v16278_v47  ;;  %v7051_v14 = vmul.f32 %v7043_v30, %v16285_v46 }
 0xa2e   :  { %v7045_v55 = vsub.f32 %v6977_v53, %v7044_v44  ;;  %v7052_v17 = vmul.f32 %v16276_v29, %v7043_v30  ;;  %v7053_v12 = vmul.f32 %v16283_v62, %v7043_v30  ;;  %v7054_v49 = vmul.f32 %v7043_v30, %v16298_v23 }
 0xa2f   :  { %v7055_v59 = vmul.f32 %v7043_v30, %v6948_v21  ;;  %v7056_v31 = vmul.f32 %v16296_v13, %v7043_v30  ;;  %v7057_v19 = vmul.f32 %v16303_v56, %v7043_v30  ;;  %v7058_v43 = vmul.f32 %v7043_v30, %v6961_v37 }
 0xa30   :  { %v7075_v0 = vadd.f32 %v7059_v16, %v7045_v55  ;;  %v7062_v8 = vadd.f32 %v7046_v3, %v7045_v55  ;;  %v7063_v41 = vadd.f32 %v7047_v7, %v7045_v55  ;;  %v7064_v36 = vadd.f32 %v7048_v22, %v7045_v55 }
 0xa31   :  { %v7065_v47 = vadd.f32 %v7049_v10, %v7045_v55  ;;  %v7066_v52 = vadd.f32 %v7050_v28, %v7045_v55  ;;  %v7067_v46 = vadd.f32 %v7051_v14, %v7045_v55  ;;  %v7068_v9 = vadd.f32 %v7052_v17, %v7045_v55 }
 0xa32   :  { %12347 = vtanh.f32 %v7075_v0  ;;  %v7069_v29 = vadd.f32 %v7053_v12, %v7045_v55  ;;  %v7070_v6 = vadd.f32 %v7054_v49, %v7045_v55  ;;  %v7071_v62 = vadd.f32 %v7055_v59, %v7045_v55 }
 0xa33   :  { %12349 = vtanh.f32 %v7062_v8  ;;  %v7072_v23 = vadd.f32 %v7056_v31, %v7045_v55  ;;  %v7073_v21 = vadd.f32 %v7057_v19, %v7045_v55  ;;  %v7074_v39 = vadd.f32 %v7058_v43, %v7045_v55 }
 0xa34   :  { %12351 = vtanh.f32 %v7063_v41  ;;  %v7060_v13 = vmul.f32 %v16311_v58, %v7043_v30  ;;  %v7061_v56 = vmul.f32 %v16313_v5, %v7043_v30 }
 0xa35   :  { %12353 = vtanh.f32 %v7064_v36 }
 0xa36   :  { %12355 = vtanh.f32 %v7065_v47  ;;  %v7076_v37 = vadd.f32 %v7060_v13, %v7045_v55  ;;  %v7077_v63 = vadd.f32 %v7061_v56, %v7045_v55 }
 0xa37   :  { %12357 = vtanh.f32 %v7066_v52 }
 0xa38   :  { %12359 = vtanh.f32 %v7067_v46 }
 0xa39   :  { %12361 = vtanh.f32 %v7068_v9 }
 0xa3a   :  { %12363 = vtanh.f32 %v7069_v29 }
 0xa3b   :  { %12365 = vtanh.f32 %v7070_v6 }
 0xa3c   :  { %v12348_v24 = vpop.eup %12347  ;;  %12367 = vtanh.f32 %v7071_v62 }
 0xa3d   :  { %v12350_v25 = vpop.eup %12349  ;;  %12369 = vtanh.f32 %v7072_v23 }
 0xa3e   :  { %v12352_v4 = vpop.eup %12351  ;;  %12371 = vtanh.f32 %v7073_v21 }
 0xa3f   :  { %v12354_v42 = vpop.eup %12353  ;;  %v7110_v15 = vpack.c.bf16 %v12352_v4, %v12350_v25  ;;  %12373 = vtanh.f32 %v7074_v39 }
 0xa40   :  { %v12356_v58 = vpop.eup %12355  ;;  %12375 = vtanh.f32 %v7076_v37 }
 0xa41   :  { %v12358_v5 = vpop.eup %12357  ;;  %11133 = vmatprep.mubr.bf16.mxu0 %v7110_v15  ;;  %v7111_v1 = vpack.c.bf16 %v12356_v58, %v12354_v42  ;;  %12377 = vtanh.f32 %v7077_v63 }
 0xa42   :  { %v12360_v26 = vpop.eup %12359 }
 0xa43   :  { %v12362_v51 = vpop.eup %12361  ;;  %11134 = vmatmul.mubr.bf16.vlgmr.msra.gmra.mrb[80].mxu0 %v7111_v1  ;;  %v7112_v34 = vpack.c.bf16 %v12360_v26, %v12358_v5 }
 0xa44   :  { %v12364_v33 = vpop.eup %12363 }
 0xa45   :  { %v12366_v60 = vpop.eup %12365  ;;  %11137 = vmatprep.mubr.bf16.mxu0 %v7112_v34  ;;  %v7113_v35 = vpack.c.bf16 %v12364_v33, %v12362_v51 }
 0xa46   :  { %v12368_v27 = vpop.eup %12367 }
 0xa47   :  { %v12370_v48 = vpop.eup %12369  ;;  %v7114_v18 = vpack.c.bf16 %v12368_v27, %v12366_v60 }
 0xa48   :  { %v12372_v2 = vpop.eup %12371 }
 0xa49   :  { %v12374_v32 = vpop.eup %12373  ;;  %v7115_v45 = vpack.c.bf16 %v12372_v2, %v12370_v48 }
 0xa4a   :  { %v12376_v50 = vpop.eup %12375  ;;  %v7116_v38 = vpack.c.bf16 %v12348_v24, %v12374_v32 }
 0xa4b   :  { %v12378_v11 = vpop.eup %12377  ;;  %11138 = vmatmul.mubr.bf16.gmra.mrb[84].mxu0 %v7113_v35 }
 0xa4c   :  { %11141 = vmatprep.mubr.bf16.mxu0 %v7114_v18  ;;  %v7117_v61 = vpack.c.bf16 %v12378_v11, %v12376_v50 }
 0xa53   :  { %11142 = vmatmul.mubr.bf16.gmra.mrb[88].mxu0 %v7115_v45 }
 0xa54   :  { %11145 = vmatprep.mubr.bf16.mxu0 %v7116_v38 }
 0xa5b   :  { %11146 = vmatmul.mubr.bf16.gmra.mrb[92].mxu0 %v7117_v61 }
 0xb16   :  { %v16340_v30 = vpop.f32.mrb[80].mxu0 }
 0xb17   :  { %v16342_v53 = vpop.f32.mrb[81].mxu0  ;;  %v7289_v10 = vmul.f32 %v16340_v30, %v16340_v30 }
 0xb18   :  { %v16344_v44 = vpop.f32.mrb[82].mxu0  ;;  %v7287_v3 = vmul.f32 %v16342_v53, %v16342_v53 }
 0xb19   :  { %v16346_v16 = vpop.f32.mrb[83].mxu0  ;;  %v7290_v55 = vmul.f32 %v16344_v44, %v16344_v44 }
 0xb1a   :  { %v7265_v7 = vadd.f32 %v16346_v16, %v16342_v53  ;;  %v7288_v22 = vmul.f32 %v16346_v16, %v16346_v16 }
 0xb1c   :  { %v7266_v28 = vadd.f32 %v16340_v30, %v7265_v7  ;;  %v7303_v14 = vadd.f32 %v7288_v22, %v7287_v3 }
 0xb1e   :  { %v7304_v17 = vadd.f32 %v7303_v14, %v7289_v10  ;;  %v16359_v12 = vpop.f32.mrb[84].mxu0  ;;  %v7267_v49 = vadd.f32 %v16344_v44, %v7266_v28 }
 0xb1f   :  { %v16362_v59 = vpop.f32.mrb[85].mxu0  ;;  %v7293_v52 = vmul.f32 %v16359_v12, %v16359_v12 }
 0xb20   :  { %v7268_v31 = vadd.f32 %v7267_v49, %v16362_v59  ;;  %v7291_v19 = vmul.f32 %v16362_v59, %v16362_v59  ;;  %v7305_v43 = vadd.f32 %v7304_v17, %v7290_v55  ;;  %v16367_v0 = vpop.f32.mrb[86].mxu0 }
 0xb21   :  { %v16369_v8 = vpop.f32.mrb[87].mxu0  ;;  %v7294_v29 = vmul.f32 %v16367_v0, %v16367_v0 }
 0xb22   :  { %v7306_v41 = vadd.f32 %v7305_v43, %v7291_v19  ;;  %v7269_v36 = vadd.f32 %v7268_v31, %v16369_v8  ;;  %v7292_v47 = vmul.f32 %v16369_v8, %v16369_v8 }
 0xb24   :  { %v7270_v46 = vadd.f32 %v16359_v12, %v7269_v36  ;;  %v7307_v9 = vadd.f32 %v7306_v41, %v7292_v47 }
 0xb26   :  { %v7308_v6 = vadd.f32 %v7307_v9, %v7293_v52  ;;  %v16379_v62 = vpop.f32.mrb[88].mxu0  ;;  %v7271_v23 = vadd.f32 %v16367_v0, %v7270_v46 }
 0xb27   :  { %v16382_v21 = vpop.f32.mrb[89].mxu0  ;;  %v7297_v42 = vmul.f32 %v16379_v62, %v16379_v62 }
 0xb28   :  { %v7272_v39 = vadd.f32 %v7271_v23, %v16382_v21  ;;  %v7295_v13 = vmul.f32 %v16382_v21, %v16382_v21  ;;  %v7309_v56 = vadd.f32 %v7308_v6, %v7294_v29  ;;  %v16387_v37 = vpop.f32.mrb[90].mxu0  ;;  %v7263_v23 = vld [vmem:[%s18670_s12 + $0x3b] ss:$0 sm:$0xff] }
 0xb29   :  { %v7235_v63 = vpop.f32.mrb[91].mxu0  ;;  %v7298_v5 = vmul.f32 %v16387_v37, %v16387_v37 }
 0xb2a   :  { %v7310_v24 = vadd.f32 %v7309_v56, %v7295_v13  ;;  %v7273_v25 = vadd.f32 %v7272_v39, %v7235_v63  ;;  %v7296_v4 = vmul.f32 %v7235_v63, %v7235_v63  ;;  %v7264_v56 = vld [vmem:[%s18670_s12 + $0x3c] ss:$0 sm:$0xff] }
 0xb2c   :  { %v7274_v15 = vadd.f32 %v16379_v62, %v7273_v25  ;;  %v7311_v58 = vadd.f32 %v7310_v24, %v7296_v4 }
 0xb2e   :  { %v7312_v1 = vadd.f32 %v7311_v58, %v7297_v42  ;;  %v11147_v26 = vpop.f32.mrb[92].mxu0  ;;  %v7275_v51 = vadd.f32 %v16387_v37, %v7274_v15 }
 0xb2f   :  { %v7248_v34 = vpop.f32.mrb[93].mxu0  ;;  %v7301_v45 = vmul.f32 %v11147_v26, %v11147_v26 }
 0xb30   :  { %v7276_v33 = vadd.f32 %v7275_v51, %v7248_v34  ;;  %v7299_v60 = vmul.f32 %v7248_v34, %v7248_v34  ;;  %v7313_v35 = vadd.f32 %v7312_v1, %v7298_v5  ;;  %v11148_v27 = vpop.f32.mrb[94].mxu0 }
 0xb31   :  { %v7251_v48 = vpop.f32.mrb[95].mxu0  ;;  %v7302_v11 = vmul.f32 %v11148_v27, %v11148_v27 }
 0xb32   :  { %v7314_v18 = vadd.f32 %v7313_v35, %v7299_v60  ;;  %v7277_v2 = vadd.f32 %v7276_v33, %v7251_v48  ;;  %v7300_v32 = vmul.f32 %v7251_v48, %v7251_v48 }
 0xb34   :  { %v7278_v50 = vadd.f32 %v11147_v26, %v7277_v2  ;;  %v7315_v38 = vadd.f32 %v7314_v18, %v7300_v32 }
 0xb36   :  { %v7279_v61 = vadd.f32 %v11148_v27, %v7278_v50  ;;  %v7316_v3 = vadd.f32 %v7315_v38, %v7301_v45 }
 0xb38   :  { %v7280_v7 = vrot.slane %v7279_v61, 4  ;;  %v7317_v22 = vadd.f32 %v7316_v3, %v7302_v11 }
 0xb3a   :  { %v7281_v10 = vadd.f32 %v7280_v7, %v7279_v61  ;;  %v7318_v28 = vrot.slane %v7317_v22, 4 }
 0xb3c   :  { %v7282_v14 = vrot.slane %v7281_v10, 2  ;;  %v7319_v55 = vadd.f32 %v7318_v28, %v7317_v22 }
 0xb3e   :  { %v7283_v17 = vadd.f32 %v7282_v14, %v7281_v10  ;;  %v7320_v49 = vrot.slane %v7319_v55, 2 }
 0xb40   :  { %v7284_v31 = vrot.slane %v7283_v17, 1  ;;  %v7321_v19 = vadd.f32 %v7320_v49, %v7319_v55 }
 0xb42   :  { %v7285_v43 = vadd.f32 %v7284_v31, %v7283_v17  ;;  %v7322_v41 = vrot.slane %v7321_v19, 1 }
 0xb44   :  { %v7286_v36 = vmul.f32 0.0078125, %v7285_v43  ;;  %v7323_v47 = vadd.f32 %v7322_v41, %v7321_v19 }
 0xb46   :  { %v7324_v52 = vmul.f32 0.0078125, %v7323_v47  ;;  %v7325_v46 = vmul.f32 %v7286_v36, %v7286_v36 }
 0xb48   :  { %v7326_v9 = vsub.f32 %v7324_v52, %v7325_v46 }
 0xb4a   :  { %v7327_v29 = vmax.f32 %v7326_v9, 0.0 }
 0xb4c   :  { %v7328_v6 = vadd.f32 1e-05, %v7327_v29 }
 0xb4e   :  { %12379 = vrsqrt.f32 %v7328_v6 }
 0xb58   :  { %v12380_v39 = vpop.eup %12379 }
 0xb59   :  { %v7330_v13 = vmul.f32 %v12380_v39, %v7263_v23 }
 0xb5b   :  { %v7331_v24 = vmul.f32 %v7330_v13, %v7286_v36  ;;  %v7333_v25 = vmul.f32 %v7330_v13, %v16342_v53  ;;  %v7334_v4 = vmul.f32 %v7330_v13, %v16346_v16  ;;  %v7335_v42 = vmul.f32 %v16340_v30, %v7330_v13 }
 0xb5c   :  { %v7336_v15 = vmul.f32 %v16344_v44, %v7330_v13  ;;  %v7337_v58 = vmul.f32 %v7330_v13, %v16362_v59  ;;  %v7338_v5 = vmul.f32 %v7330_v13, %v16369_v8  ;;  %v7339_v1 = vmul.f32 %v16359_v12, %v7330_v13 }
 0xb5d   :  { %v7332_v51 = vsub.f32 %v7264_v56, %v7331_v24  ;;  %v7340_v33 = vmul.f32 %v16367_v0, %v7330_v13  ;;  %v7341_v60 = vmul.f32 %v7330_v13, %v16382_v21  ;;  %v7342_v35 = vmul.f32 %v7330_v13, %v7235_v63 }
 0xb5e   :  { %v7343_v53 = vmul.f32 %v16379_v62, %v7330_v13  ;;  %v7344_v16 = vmul.f32 %v16387_v37, %v7330_v13  ;;  %v7345_v18 = vmul.f32 %v7330_v13, %v7248_v34  ;;  %v7346_v30 = vmul.f32 %v7330_v13, %v7251_v48 }
 0xb5f   :  { %v7347_v2 = vmul.f32 %v11147_v26, %v7330_v13  ;;  %v7348_v44 = vmul.f32 %v11148_v27, %v7330_v13  ;;  %v7349_v32 = vadd.f32 %v7333_v25, %v7332_v51  ;;  %v7350_v59 = vadd.f32 %v7334_v4, %v7332_v51 }
 0xb60   :  { %v7351_v45 = vadd.f32 %v7335_v42, %v7332_v51  ;;  %v7352_v8 = vadd.f32 %v7336_v15, %v7332_v51  ;;  %v7353_v50 = vadd.f32 %v7337_v58, %v7332_v51  ;;  %v7354_v12 = vadd.f32 %v7338_v5, %v7332_v51 }
 0xb61   :  { %v7355_v38 = vadd.f32 %v7339_v1, %v7332_v51  ;;  %v7356_v11 = vadd.f32 %v7340_v33, %v7332_v51  ;;  %v7357_v0 = vadd.f32 %v7341_v60, %v7332_v51  ;;  %v7358_v61 = vadd.f32 %v7342_v35, %v7332_v51 }
 0xb62   :  { %v7359_v21 = vadd.f32 %v7343_v53, %v7332_v51  ;;  %v7360_v63 = vadd.f32 %v7344_v16, %v7332_v51  ;;  %v7361_v3 = vadd.f32 %v7345_v18, %v7332_v51  ;;  %v7362_v62 = vadd.f32 %v7346_v30, %v7332_v51 }
 0xb63   :  { %v7363_v7 = vadd.f32 %v7347_v2, %v7332_v51  ;;  %v7364_v37 = vadd.f32 %v7348_v44, %v7332_v51  ;;  %12381 = vtanh.f32 %v7349_v32 }
 0xb64   :  { %12383 = vtanh.f32 %v7350_v59 }
 0xb65   :  { %12385 = vtanh.f32 %v7351_v45 }
 0xb66   :  { %12387 = vtanh.f32 %v7352_v8 }
 0xb67   :  { %12389 = vtanh.f32 %v7353_v50 }
 0xb68   :  { %12391 = vtanh.f32 %v7354_v12 }
 0xb69   :  { %12393 = vtanh.f32 %v7355_v38 }
 0xb6a   :  { %12395 = vtanh.f32 %v7356_v11 }
 0xb6b   :  { %12397 = vtanh.f32 %v7357_v0 }
 0xb6c   :  { %12399 = vtanh.f32 %v7358_v61 }
 0xb6d   :  { %v12382_v26 = vpop.eup %12381  ;;  %12401 = vtanh.f32 %v7359_v21 }
 0xb6e   :  { %v12384_v34 = vpop.eup %12383  ;;  %12403 = vtanh.f32 %v7360_v63 }
 0xb6f   :  { %v12386_v27 = vpop.eup %12385  ;;  %12405 = vtanh.f32 %v7361_v3 }
 0xb70   :  { %v12388_v48 = vpop.eup %12387  ;;  %12407 = vtanh.f32 %v7362_v62 }
 0xb71   :  { %v12390_v22 = vpop.eup %12389  ;;  %12409 = vtanh.f32 %v7363_v7 }
 0xb72   :  { %v12392_v10 = vpop.eup %12391  ;;  %12411 = vtanh.f32 %v7364_v37 }
 0xb73   :  { %v12394_v28 = vpop.eup %12393 }
 0xb74   :  { %v12396_v14 = vpop.eup %12395 }
 0xb75   :  { %v12398_v55 = vpop.eup %12397 }
 0xb76   :  { %v12400_v17 = vpop.eup %12399 }
 0xb77   :  { %v12402_v49 = vpop.eup %12401 }
 0xb78   :  { %v12404_v31 = vpop.eup %12403 }
 0xb79   :  { %v12406_v19 = vpop.eup %12405 }
 0xb7a   :  { %v12408_v43 = vpop.eup %12407 }
 0xb7b   :  { %v12410_v41 = vpop.eup %12409 }
 0xb7c   :  { %v12412_v36 = vpop.eup %12411 }
 0xb7d   :  { %12981 = dma.done.wait [#allocation5], 2048 }
 0xb7e   :  { %12982 = vsyncadd [#allocation5], 4294965248  ;;  %7441 = vmatprep.mubr.bf16.mxu1 %v18840_v54  ;;  %v7386_v47 = vld [vmem:[#allocation2 + $0x8] sm:$0xff]  ;;  %v7385_v52 = vld [vmem:[#allocation2] sm:$0xff]  ;;  %v7401_v5 = vpack.c.bf16 %v12384_v34, %v12382_v26  ;;  %v7402_v1 = vpack.c.bf16 %v12388_v48, %v12386_v27  ;;  %v7403_v51 = vpack.c.bf16 %v12392_v10, %v12390_v22  ;;  %v7404_v33 = vpack.c.bf16 %v12396_v14, %v12394_v28 }
 0xb7f   :  { %v7388_v46 = vld [vmem:[#allocation2 + $0x18] sm:$0xff]  ;;  %7409 = vmatprep.subr.bf16.mxu1 %v7386_v47  ;;  %v7387_v9 = vld [vmem:[#allocation2 + $0x10] sm:$0xff]  ;;  %v7390_v29 = vld [vmem:[#allocation2 + $0x28] sm:$0xff]  ;;  %v7405_v60 = vpack.c.bf16 %v12400_v17, %v12398_v55  ;;  %v7406_v35 = vpack.c.bf16 %v12404_v31, %v12402_v49  ;;  %v7407_v53 = vpack.c.bf16 %v12408_v43, %v12406_v19  ;;  %v7408_v16 = vpack.c.bf16 %v12412_v36, %v12410_v41 }
 0xb80   :  { %7410 = vmatpush1.bf16.msra.mxu1 %v7385_v52  ;;  %v7389_v6 = vld [vmem:[#allocation2 + $0x20] sm:$0xff]  ;;  %v7392_v23 = vld [vmem:[#allocation2 + $0x38] sm:$0xff]  ;;  %v7391_v39 = vld [vmem:[#allocation2 + $0x30] sm:$0xff] }
 0xb81   :  { %7411 = vmatprep.subr.bf16.mxu1 %v7388_v46  ;;  %v7394_v13 = vld [vmem:[#allocation2 + $0x48] sm:$0xff]  ;;  %v7393_v56 = vld [vmem:[#allocation2 + $0x40] sm:$0xff]  ;;  %v7396_v24 = vld [vmem:[#allocation2 + $0x58] sm:$0xff] }
 0xb82   :  { %v7395_v25 = vld [vmem:[#allocation2 + $0x50] sm:$0xff]  ;;  %v7398_v4 = vld [vmem:[#allocation2 + $0x68] sm:$0xff]  ;;  %v7397_v42 = vld [vmem:[#allocation2 + $0x60] sm:$0xff] }
 0xb83   :  { %v7400_v15 = vld [vmem:[#allocation2 + $0x78] sm:$0xff]  ;;  %v7399_v58 = vld [vmem:[#allocation2 + $0x70] sm:$0xff] }
 0xb84   :  { %7412 = vmatpush1.bf16.msra.mxu1 %v7387_v9 }
 0xb85   :  { %7413 = vmatprep.subr.bf16.mxu1 %v7390_v29 }
 0xb88   :  { %7414 = vmatpush1.bf16.msra.mxu1 %v7389_v6 }
 0xb89   :  { %7415 = vmatprep.subr.bf16.mxu1 %v7392_v23 }
 0xb8c   :  { %7416 = vmatpush1.bf16.msra.mxu1 %v7391_v39 }
 0xb8d   :  { %7417 = vmatprep.subr.bf16.mxu1 %v7394_v13 }
 0xb90   :  { %7418 = vmatpush1.bf16.msra.mxu1 %v7393_v56 }
 0xb91   :  { %7419 = vmatprep.subr.bf16.mxu1 %v7396_v24 }
 0xb94   :  { %7420 = vmatpush1.bf16.msra.mxu1 %v7395_v25 }
 0xb95   :  { %7421 = vmatprep.subr.bf16.mxu1 %v7398_v4 }
 0xb98   :  { %7422 = vmatpush1.bf16.msra.mxu1 %v7397_v42 }
 0xb99   :  { %7423 = vmatprep.subr.bf16.mxu1 %v7400_v15 }
 0xb9c   :  { %7424 = vmatpush1.bf16.msra.mxu1 %v7399_v58 }
 0xb9f   :  { %7442 = vmatmul.mubr.bf16.vlgmr.msra.gmra.mrb[112].mxu1 %v7401_v5 }
 0xba0   :  { %7451 = vmatprep.mubr.bf16.mxu1 %v18840_v54 }
 0xba7   :  { %7452 = vmatmul.mubr.bf16.gmra.mrb[116].mxu1 %v7402_v1 }
 0xba8   :  { %7461 = vmatprep.mubr.bf16.mxu1 %v18840_v54 }
 0xbaf   :  { %7462 = vmatmul.mubr.bf16.gmra.mrb[120].mxu1 %v7403_v51 }
 0xbb0   :  { %7471 = vmatprep.mubr.bf16.mxu1 %v18840_v54 }
 0xbb7   :  { %7472 = vmatmul.mubr.bf16.gmra.mrb[124].mxu1 %v7404_v33 }
 0xbb8   :  { %7481 = vmatprep.mubr.bf16.mxu1 %v18840_v54 }
 0xbbf   :  { %7482 = vmatmul.mubr.bf16.gmra.mrb[128].mxu1 %v7405_v60 }
 0xbc0   :  { %7491 = vmatprep.mubr.bf16.mxu1 %v18840_v54 }
 0xbc7   :  { %7492 = vmatmul.mubr.bf16.gmra.mrb[132].mxu1 %v7406_v35 }
 0xbc8   :  { %7501 = vmatprep.mubr.bf16.mxu1 %v18840_v54 }
 0xbcf   :  { %7502 = vmatmul.mubr.bf16.gmra.mrb[136].mxu1 %v7407_v53 }
 0xbd0   :  { %7511 = vmatprep.mubr.bf16.mxu1 %v18840_v54 }
 0xbd7   :  { %7512 = vmatmul.mubr.bf16.gmra.mrb[140].mxu1 %v7408_v16 }
 0xc72   :  { %v16420_v18 = vpop.f32.mrb[112].mxu1 }
 0xc73   :  { %v16422_v30 = vpop.f32.mrb[113].mxu1  ;;  %v7570_v44 = vmul.f32 %v16420_v18, %v16420_v18 }
 0xc74   :  { %v16424_v2 = vpop.f32.mrb[114].mxu1  ;;  %v7571_v54 = vmul.f32 %v16422_v30, %v16422_v30 }
 0xc75   :  { %v7526_v32 = vadd.f32 %v16424_v2, %v16420_v18  ;;  %v7572_v59 = vmul.f32 %v16424_v2, %v16424_v2  ;;  %v16432_v45 = vpop.f32.mrb[115].mxu1 }
 0xc76   :  { %v7547_v8 = vadd.f32 %v16432_v45, %v16422_v30  ;;  %v7573_v50 = vmul.f32 %v16432_v45, %v16432_v45 }
 0xc77   :  { %v7602_v12 = vadd.f32 %v7572_v59, %v7570_v44 }
 0xc78   :  { %v7623_v38 = vadd.f32 %v7573_v50, %v7571_v54 }
 0xc7a   :  { %v16440_v11 = vpop.f32.mrb[116].mxu1 }
 0xc7b   :  { %v7527_v0 = vadd.f32 %v7526_v32, %v16440_v11  ;;  %v7574_v61 = vmul.f32 %v16440_v11, %v16440_v11  ;;  %v16445_v21 = vpop.f32.mrb[117].mxu1 }
 0xc7c   :  { %v7548_v63 = vadd.f32 %v7547_v8, %v16445_v21  ;;  %v7575_v3 = vmul.f32 %v16445_v21, %v16445_v21  ;;  %v16450_v62 = vpop.f32.mrb[118].mxu1 }
 0xc7d   :  { %v7603_v7 = vadd.f32 %v7602_v12, %v7574_v61  ;;  %v7528_v37 = vadd.f32 %v7527_v0, %v16450_v62  ;;  %v7576_v26 = vmul.f32 %v16450_v62, %v16450_v62  ;;  %v16455_v34 = vpop.f32.mrb[119].mxu1 }
 0xc7e   :  { %v7624_v27 = vadd.f32 %v7623_v38, %v7575_v3  ;;  %v7549_v48 = vadd.f32 %v7548_v63, %v16455_v34  ;;  %v7577_v22 = vmul.f32 %v16455_v34, %v16455_v34 }
 0xc7f   :  { %v7604_v10 = vadd.f32 %v7603_v7, %v7576_v26 }
 0xc80   :  { %v7625_v28 = vadd.f32 %v7624_v27, %v7577_v22 }
 0xc82   :  { %v16460_v14 = vpop.f32.mrb[120].mxu1 }
 0xc83   :  { %v7529_v55 = vadd.f32 %v7528_v37, %v16460_v14  ;;  %v7578_v17 = vmul.f32 %v16460_v14, %v16460_v14  ;;  %v16465_v49 = vpop.f32.mrb[121].mxu1 }
 0xc84   :  { %v7550_v31 = vadd.f32 %v7549_v48, %v16465_v49  ;;  %v7579_v19 = vmul.f32 %v16465_v49, %v16465_v49  ;;  %v16470_v43 = vpop.f32.mrb[122].mxu1 }
 0xc85   :  { %v7605_v41 = vadd.f32 %v7604_v10, %v7578_v17  ;;  %v7530_v36 = vadd.f32 %v7529_v55, %v16470_v43  ;;  %v7580_v47 = vmul.f32 %v16470_v43, %v16470_v43  ;;  %v16475_v52 = vpop.f32.mrb[123].mxu1 }
 0xc86   :  { %v7626_v46 = vadd.f32 %v7625_v28, %v7579_v19  ;;  %v7551_v9 = vadd.f32 %v7550_v31, %v16475_v52  ;;  %v7581_v29 = vmul.f32 %v16475_v52, %v16475_v52 }
 0xc87   :  { %v7606_v6 = vadd.f32 %v7605_v41, %v7580_v47 }
 0xc88   :  { %v7627_v23 = vadd.f32 %v7626_v46, %v7581_v29 }
 0xc8a   :  { %v16480_v39 = vpop.f32.mrb[124].mxu1 }
 0xc8b   :  { %v7531_v13 = vadd.f32 %v7530_v36, %v16480_v39  ;;  %v7582_v56 = vmul.f32 %v16480_v39, %v16480_v39  ;;  %v16485_v24 = vpop.f32.mrb[125].mxu1 }
 0xc8c   :  { %v7552_v25 = vadd.f32 %v7551_v9, %v16485_v24  ;;  %v7583_v4 = vmul.f32 %v16485_v24, %v16485_v24  ;;  %v16490_v42 = vpop.f32.mrb[126].mxu1 }
 0xc8d   :  { %v7607_v15 = vadd.f32 %v7606_v6, %v7582_v56  ;;  %v7532_v58 = vadd.f32 %v7531_v13, %v16490_v42  ;;  %v7584_v5 = vmul.f32 %v16490_v42, %v16490_v42  ;;  %v16495_v1 = vpop.f32.mrb[127].mxu1 }
 0xc8e   :  { %v7628_v51 = vadd.f32 %v7627_v23, %v7583_v4  ;;  %v7553_v33 = vadd.f32 %v7552_v25, %v16495_v1  ;;  %v7585_v60 = vmul.f32 %v16495_v1, %v16495_v1 }
 0xc8f   :  { %v7608_v35 = vadd.f32 %v7607_v15, %v7584_v5 }
 0xc90   :  { %v7629_v53 = vadd.f32 %v7628_v51, %v7585_v60 }
 0xc92   :  { %v16500_v16 = vpop.f32.mrb[128].mxu1 }
 0xc93   :  { %v7533_v44 = vadd.f32 %v7532_v58, %v16500_v16  ;;  %v7586_v32 = vmul.f32 %v16500_v16, %v16500_v16  ;;  %v16505_v59 = vpop.f32.mrb[129].mxu1 }
 0xc94   :  { %v7554_v54 = vadd.f32 %v7553_v33, %v16505_v59  ;;  %v7587_v8 = vmul.f32 %v16505_v59, %v16505_v59  ;;  %v16510_v50 = vpop.f32.mrb[130].mxu1 }
 0xc95   :  { %v7609_v12 = vadd.f32 %v7608_v35, %v7586_v32  ;;  %v7534_v38 = vadd.f32 %v7533_v44, %v16510_v50  ;;  %v7588_v0 = vmul.f32 %v16510_v50, %v16510_v50  ;;  %v16515_v61 = vpop.f32.mrb[131].mxu1 }
 0xc96   :  { %v7630_v63 = vadd.f32 %v7629_v53, %v7587_v8  ;;  %v7555_v3 = vadd.f32 %v7554_v54, %v16515_v61  ;;  %v7589_v7 = vmul.f32 %v16515_v61, %v16515_v61 }
 0xc97   :  { %v7610_v37 = vadd.f32 %v7609_v12, %v7588_v0 }
 0xc98   :  { %v7631_v26 = vadd.f32 %v7630_v63, %v7589_v7 }
 0xc9a   :  { %v16520_v27 = vpop.f32.mrb[132].mxu1 }
 0xc9b   :  { %v7535_v48 = vadd.f32 %v7534_v38, %v16520_v27  ;;  %v7590_v22 = vmul.f32 %v16520_v27, %v16520_v27  ;;  %v16525_v10 = vpop.f32.mrb[133].mxu1 }
 0xc9c   :  { %v7556_v28 = vadd.f32 %v7555_v3, %v16525_v10  ;;  %v7591_v55 = vmul.f32 %v16525_v10, %v16525_v10  ;;  %v16530_v17 = vpop.f32.mrb[134].mxu1 }
 0xc9d   :  { %v7611_v31 = vadd.f32 %v7610_v37, %v7590_v22  ;;  %v7536_v19 = vadd.f32 %v7535_v48, %v16530_v17  ;;  %v7592_v41 = vmul.f32 %v16530_v17, %v16530_v17  ;;  %v16535_v36 = vpop.f32.mrb[135].mxu1 }
 0xc9e   :  { %v7632_v47 = vadd.f32 %v7631_v26, %v7591_v55  ;;  %v7557_v46 = vadd.f32 %v7556_v28, %v16535_v36  ;;  %v7593_v9 = vmul.f32 %v16535_v36, %v16535_v36 }
 0xc9f   :  { %v7612_v29 = vadd.f32 %v7611_v31, %v7592_v41 }
 0xca0   :  { %v7633_v6 = vadd.f32 %v7632_v47, %v7593_v9 }
 0xca2   :  { %v16540_v23 = vpop.f32.mrb[136].mxu1 }
 0xca3   :  { %v7537_v13 = vadd.f32 %v7536_v19, %v16540_v23  ;;  %v7594_v56 = vmul.f32 %v16540_v23, %v16540_v23  ;;  %v16545_v25 = vpop.f32.mrb[137].mxu1 }
 0xca4   :  { %v7558_v4 = vadd.f32 %v7557_v46, %v16545_v25  ;;  %v7595_v15 = vmul.f32 %v16545_v25, %v16545_v25  ;;  %v16550_v58 = vpop.f32.mrb[138].mxu1 }
 0xca5   :  { %v7613_v5 = vadd.f32 %v7612_v29, %v7594_v56  ;;  %v7538_v51 = vadd.f32 %v7537_v13, %v16550_v58  ;;  %v7596_v33 = vmul.f32 %v16550_v58, %v16550_v58  ;;  %v16555_v60 = vpop.f32.mrb[139].mxu1 }
 0xca6   :  { %v7634_v35 = vadd.f32 %v7633_v6, %v7595_v15  ;;  %v7559_v53 = vadd.f32 %v7558_v4, %v16555_v60  ;;  %v7597_v44 = vmul.f32 %v16555_v60, %v16555_v60 }
 0xca7   :  { %v7614_v32 = vadd.f32 %v7613_v5, %v7596_v33 }
 0xca8   :  { %v7635_v54 = vadd.f32 %v7634_v35, %v7597_v44 }
 0xcaa   :  { %v16560_v8 = vpop.f32.mrb[140].mxu1 }
 0xcab   :  { %v7539_v12 = vadd.f32 %v7538_v51, %v16560_v8  ;;  %v7598_v38 = vmul.f32 %v16560_v8, %v16560_v8  ;;  %v16565_v0 = vpop.f32.mrb[141].mxu1 }
 0xcac   :  { %v7560_v63 = vadd.f32 %v7559_v53, %v16565_v0  ;;  %v7599_v3 = vmul.f32 %v16565_v0, %v16565_v0  ;;  %v16570_v7 = vpop.f32.mrb[142].mxu1 }
 0xcad   :  { %v7615_v37 = vadd.f32 %v7614_v32, %v7598_v38  ;;  %v7540_v26 = vadd.f32 %v7539_v12, %v16570_v7  ;;  %v7600_v48 = vmul.f32 %v16570_v7, %v16570_v7  ;;  %v16575_v22 = vpop.f32.mrb[143].mxu1 }
 0xcae   :  { %v7636_v28 = vadd.f32 %v7635_v54, %v7599_v3  ;;  %v7561_v55 = vadd.f32 %v7560_v63, %v16575_v22  ;;  %v7601_v31 = vmul.f32 %v16575_v22, %v16575_v22 }
 0xcaf   :  { %v7541_v19 = vrot.slane %v7540_v26, 4  ;;  %v7616_v41 = vadd.f32 %v7615_v37, %v7600_v48 }
 0xcb0   :  { %v7562_v47 = vrot.slane %v7561_v55, 4  ;;  %v7637_v46 = vadd.f32 %v7636_v28, %v7601_v31 }
 0xcb1   :  { %v7542_v9 = vadd.f32 %v7541_v19, %v7540_v26  ;;  %v7617_v29 = vrot.slane %v7616_v41, 4 }
 0xcb2   :  { %v7563_v6 = vadd.f32 %v7562_v47, %v7561_v55  ;;  %v7638_v13 = vrot.slane %v7637_v46, 4 }
 0xcb3   :  { %v7543_v56 = vrot.slane %v7542_v9, 2  ;;  %v7618_v4 = vadd.f32 %v7617_v29, %v7616_v41 }
 0xcb4   :  { %v7564_v15 = vrot.slane %v7563_v6, 2  ;;  %v7639_v5 = vadd.f32 %v7638_v13, %v7637_v46 }
 0xcb5   :  { %v7544_v51 = vadd.f32 %v7543_v56, %v7542_v9  ;;  %v7619_v33 = vrot.slane %v7618_v4, 2 }
 0xcb6   :  { %v7565_v35 = vadd.f32 %v7564_v15, %v7563_v6  ;;  %v7640_v53 = vrot.slane %v7639_v5, 2 }
 0xcb7   :  { %v7545_v44 = vrot.slane %v7544_v51, 1  ;;  %v7620_v32 = vadd.f32 %v7619_v33, %v7618_v4  ;;  %v10804_v33 = vld [vmem:[%s18670_s12 + $0x3d] ss:$8 sm:$0x3] }
 0xcb8   :  { %v7566_v54 = vrot.slane %v7565_v35, 1  ;;  %v7641_v12 = vadd.f32 %v7640_v53, %v7639_v5 }
 0xcb9   :  { %v7546_v38 = vadd.f32 %v7545_v44, %v7544_v51  ;;  %v7621_v63 = vrot.slane %v7620_v32, 1 }
 0xcba   :  { %v7567_v3 = vadd.f32 %v7566_v54, %v7565_v35  ;;  %v7642_v37 = vrot.slane %v7641_v12, 1 }
 0xcbb   :  { %v7568_v26 = vmul.f32 0.0078125, %v7546_v38  ;;  %v7622_v48 = vadd.f32 %v7621_v63, %v7620_v32 }
 0xcbc   :  { %v7569_v28 = vmul.f32 0.0078125, %v7567_v3  ;;  %v7643_v55 = vadd.f32 %v7642_v37, %v7641_v12 }
 0xcbd   :  { %v7644_v31 = vmul.f32 0.0078125, %v7622_v48  ;;  %v7646_v19 = vmul.f32 %v7568_v26, %v7568_v26 }
 0xcbe   :  { %v7645_v41 = vmul.f32 0.0078125, %v7643_v55  ;;  %v7647_v47 = vmul.f32 %v7569_v28, %v7569_v28 }
 0xcbf   :  { %v7648_v46 = vsub.f32 %v7644_v31, %v7646_v19 }
 0xcc0   :  { %v7649_v9 = vsub.f32 %v7645_v41, %v7647_v47 }
 0xcc1   :  { %v7650_v29 = vmax.f32 %v7648_v46, 0.0 }
 0xcc2   :  { %v7651_v6 = vmax.f32 %v7649_v9, 0.0 }
 0xcc3   :  { %v7652_v13 = vadd.f32 1e-05, %v7650_v29 }
 0xcc4   :  { %v7653_v56 = vadd.f32 1e-05, %v7651_v6 }
 0xcc5   :  { %12413 = vrsqrt.f32 %v7652_v13 }
 0xcc6   :  { %12415 = vrsqrt.f32 %v7653_v56 }
 0xccf   :  { %v12414_v4 = vpop.eup %12413 }
 0xcd0   :  { %v12416_v15 = vpop.eup %12415 }
 0xcd1   :  { %v7658_v5 = vcombine.low %v12414_v4, %v12416_v15 }
 0xcd3   :  { %v7665_v51 = vrot.slane %v7658_v5, %v18837_v20 }
 0xcd5   :  { %v7672_v35 = vrot.slane %v7665_v51, %v18837_v20 }
 0xcd7   :  { %v7674_v53 = vmul.f32 %v10804_v33, %v7672_v35 }
 0xcd9   :  { %v7679_v44 = vrot.slane %v7674_v53, %v18838_v40  ;;  %v7683_v32 = vrot.slane %v7674_v53, %v18839_v57 }
 0xcdb   :  { %v7686_v54 = vmul.f32 %v7679_v44, %v7568_v26  ;;  %v7687_v12 = vmul.f32 %v7683_v32, %v7569_v28  ;;  %v7707_v38 = vmul.f32 %v7679_v44, %v16420_v18  ;;  %v7708_v63 = vmul.f32 %v7683_v32, %v16422_v30 }
 0xcdc   :  { %v7709_v3 = vmul.f32 %v7679_v44, %v16424_v2  ;;  %v7710_v37 = vmul.f32 %v7683_v32, %v16432_v45  ;;  %v7711_v48 = vmul.f32 %v7679_v44, %v16440_v11  ;;  %v7712_v55 = vmul.f32 %v7683_v32, %v16445_v21 }
 0xcdd   :  { %v7690_v31 = vcombine.low %v7686_v54, %v7687_v12  ;;  %v7713_v19 = vmul.f32 %v7679_v44, %v16450_v62  ;;  %v7714_v41 = vmul.f32 %v7683_v32, %v16455_v34  ;;  %v7715_v26 = vmul.f32 %v7679_v44, %v16460_v14  ;;  %v10805_v34 = vld [vmem:[%s18670_s12 + $0x3e] ss:$8 sm:$0x3] }
 0xcde   :  { %v7716_v28 = vmul.f32 %v7683_v32, %v16465_v49  ;;  %v7717_v18 = vmul.f32 %v7679_v44, %v16470_v43  ;;  %v7718_v30 = vmul.f32 %v7683_v32, %v16475_v52  ;;  %v7719_v2 = vmul.f32 %v7679_v44, %v16480_v39 }
 0xcdf   :  { %v7697_v45 = vrot.slane %v7690_v31, %v18837_v20  ;;  %v7720_v11 = vmul.f32 %v7683_v32, %v16485_v24  ;;  %v7721_v21 = vmul.f32 %v7679_v44, %v16490_v42  ;;  %v7722_v62 = vmul.f32 %v7683_v32, %v16495_v1 }
 0xce0   :  { %v7723_v14 = vmul.f32 %v7679_v44, %v16500_v16  ;;  %v7724_v49 = vmul.f32 %v7683_v32, %v16505_v59  ;;  %v7725_v43 = vmul.f32 %v7679_v44, %v16510_v50  ;;  %v7726_v52 = vmul.f32 %v7683_v32, %v16515_v61 }
 0xce1   :  { %v7704_v39 = vrot.slane %v7697_v45, %v18837_v20  ;;  %v7727_v24 = vmul.f32 %v7679_v44, %v16520_v27  ;;  %v7728_v42 = vmul.f32 %v7683_v32, %v16525_v10  ;;  %v7729_v1 = vmul.f32 %v7679_v44, %v16530_v17 }
 0xce2   :  { %v7730_v47 = vmul.f32 %v7683_v32, %v16535_v36  ;;  %v7731_v46 = vmul.f32 %v7679_v44, %v16540_v23  ;;  %v7732_v16 = vmul.f32 %v7683_v32, %v16545_v25  ;;  %v7733_v59 = vmul.f32 %v7679_v44, %v16550_v58 }
 0xce3   :  { %v7706_v9 = vsub.f32 %v10805_v34, %v7704_v39  ;;  %v7734_v50 = vmul.f32 %v7683_v32, %v16555_v60  ;;  %v7735_v61 = vmul.f32 %v7679_v44, %v16560_v8  ;;  %v7736_v29 = vmul.f32 %v7683_v32, %v16565_v0 }
 0xce4   :  { %v7737_v27 = vmul.f32 %v7679_v44, %v16570_v7  ;;  %v7738_v10 = vmul.f32 %v7683_v32, %v16575_v22 }
 0xce5   :  { %v7743_v17 = vrot.slane %v7706_v9, %v18838_v40  ;;  %v7747_v36 = vrot.slane %v7706_v9, %v18839_v57 }
 0xce7   :  { %v7750_v23 = vadd.f32 %v7743_v17, %v7707_v38  ;;  %v7751_v6 = vadd.f32 %v7747_v36, %v7708_v63  ;;  %v7752_v25 = vadd.f32 %v7743_v17, %v7709_v3  ;;  %v7753_v13 = vadd.f32 %v7747_v36, %v7710_v37 }
 0xce8   :  { %v7754_v58 = vadd.f32 %v7743_v17, %v7711_v48  ;;  %v7755_v56 = vadd.f32 %v7747_v36, %v7712_v55  ;;  %v7756_v4 = vadd.f32 %v7743_v17, %v7713_v19  ;;  %v7757_v60 = vadd.f32 %v7747_v36, %v7714_v41 }
 0xce9   :  { %v7758_v15 = vadd.f32 %v7743_v17, %v7715_v26  ;;  %v7759_v8 = vadd.f32 %v7747_v36, %v7716_v28  ;;  %v7760_v5 = vadd.f32 %v7743_v17, %v7717_v18  ;;  %v7761_v0 = vadd.f32 %v7747_v36, %v7718_v30 }
 0xcea   :  { %v7762_v51 = vadd.f32 %v7743_v17, %v7719_v2  ;;  %v7763_v7 = vadd.f32 %v7747_v36, %v7720_v11  ;;  %v7764_v33 = vadd.f32 %v7743_v17, %v7721_v21  ;;  %v7765_v22 = vadd.f32 %v7747_v36, %v7722_v62 }
 0xceb   :  { %v7766_v35 = vadd.f32 %v7743_v17, %v7723_v14  ;;  %v7767_v53 = vadd.f32 %v7747_v36, %v7724_v49  ;;  %v7768_v44 = vadd.f32 %v7743_v17, %v7725_v43  ;;  %v7769_v32 = vadd.f32 %v7747_v36, %v7726_v52 }
 0xcec   :  { %v7770_v54 = vadd.f32 %v7743_v17, %v7727_v24  ;;  %v7771_v12 = vadd.f32 %v7747_v36, %v7728_v42  ;;  %v7772_v38 = vadd.f32 %v7743_v17, %v7729_v1  ;;  %v7773_v63 = vadd.f32 %v7747_v36, %v7730_v47 }
 0xced   :  { %v7774_v3 = vadd.f32 %v7743_v17, %v7731_v46  ;;  %v7775_v37 = vadd.f32 %v7747_v36, %v7732_v16  ;;  %v7776_v48 = vadd.f32 %v7743_v17, %v7733_v59  ;;  %v7777_v55 = vadd.f32 %v7747_v36, %v7734_v50 }
 0xcee   :  { %v7778_v31 = vadd.f32 %v7743_v17, %v7735_v61  ;;  %v7779_v19 = vadd.f32 %v7747_v36, %v7736_v29  ;;  %v7780_v41 = vadd.f32 %v7743_v17, %v7737_v27  ;;  %v7781_v26 = vadd.f32 %v7747_v36, %v7738_v10 }
 0xcef   :  { %12417 = vtanh.f32 %v7750_v23 }
 0xcf0   :  { %12419 = vtanh.f32 %v7751_v6 }
 0xcf1   :  { %12421 = vtanh.f32 %v7752_v25 }
 0xcf2   :  { %12423 = vtanh.f32 %v7753_v13 }
 0xcf3   :  { %12425 = vtanh.f32 %v7754_v58 }
 0xcf4   :  { %12427 = vtanh.f32 %v7755_v56 }
 0xcf5   :  { %12429 = vtanh.f32 %v7756_v4 }
 0xcf6   :  { %12431 = vtanh.f32 %v7757_v60 }
 0xcf7   :  { %12433 = vtanh.f32 %v7758_v15 }
 0xcf8   :  { %12435 = vtanh.f32 %v7759_v8 }
 0xcf9   :  { %v16626_v28 = vpop.eup %12417  ;;  %12437 = vtanh.f32 %v7760_v5 }
 0xcfa   :  { %v12420_v18 = vpop.eup %12419  ;;  %12439 = vtanh.f32 %v7761_v0 }
 0xcfb   :  { %v16628_v30 = vpop.eup %12421  ;;  %12441 = vtanh.f32 %v7762_v51 }
 0xcfc   :  { %v12424_v2 = vpop.eup %12423  ;;  %12443 = vtanh.f32 %v7763_v7 }
 0xcfd   :  { %v16630_v45 = vpop.eup %12425  ;;  %12445 = vtanh.f32 %v7764_v33 }
 0xcfe   :  { %v16632_v11 = vpop.eup %12427  ;;  %12447 = vtanh.f32 %v7765_v22 }
 0xcff   :  { %v16634_v21 = vpop.eup %12429  ;;  %12449 = vtanh.f32 %v7766_v35 }
 0xd00   :  { %v16636_v62 = vpop.eup %12431  ;;  %12451 = vtanh.f32 %v7767_v53 }
 0xd01   :  { %v16638_v34 = vpop.eup %12433  ;;  %12453 = vtanh.f32 %v7768_v44 }
 0xd02   :  { %v16640_v14 = vpop.eup %12435  ;;  %12455 = vtanh.f32 %v7769_v32 }
 0xd03   :  { %v16642_v49 = vpop.eup %12437  ;;  %12457 = vtanh.f32 %v7770_v54 }
 0xd04   :  { %v16644_v43 = vpop.eup %12439  ;;  %12459 = vtanh.f32 %v7771_v12 }
 0xd05   :  { %v16646_v52 = vpop.eup %12441  ;;  %12461 = vtanh.f32 %v7772_v38 }
 0xd06   :  { %v16648_v39 = vpop.eup %12443  ;;  %12463 = vtanh.f32 %v7773_v63 }
 0xd07   :  { %v16650_v24 = vpop.eup %12445  ;;  %12465 = vtanh.f32 %v7774_v3 }
 0xd08   :  { %v16652_v42 = vpop.eup %12447  ;;  %12467 = vtanh.f32 %v7775_v37 }
 0xd09   :  { %v16654_v1 = vpop.eup %12449  ;;  %12469 = vtanh.f32 %v7776_v48 }
 0xd0a   :  { %v16656_v47 = vpop.eup %12451  ;;  %12471 = vtanh.f32 %v7777_v55 }
 0xd0b   :  { %v16658_v46 = vpop.eup %12453  ;;  %12473 = vtanh.f32 %v7778_v31 }
 0xd0c   :  { %v16660_v16 = vpop.eup %12455  ;;  %12475 = vtanh.f32 %v7779_v19 }
 0xd0d   :  { %v16662_v59 = vpop.eup %12457  ;;  %12477 = vtanh.f32 %v7780_v41 }
 0xd0e   :  { %v16664_v9 = vpop.eup %12459  ;;  %12479 = vtanh.f32 %v7781_v26 }
 0xd0f   :  { %v16666_v50 = vpop.eup %12461 }
 0xd10   :  { %v16668_v61 = vpop.eup %12463 }
 0xd11   :  { %v16670_v29 = vpop.eup %12465 }
 0xd12   :  { %v16672_v27 = vpop.eup %12467 }
 0xd13   :  { %v16674_v10 = vpop.eup %12469 }
 0xd14   :  { %v16676_v17 = vpop.eup %12471 }
 0xd15   :  { %v16678_v36 = vpop.eup %12473 }
 0xd16   :  { %v16680_v23 = vpop.eup %12475 }
 0xd17   :  { %v16682_v6 = vpop.eup %12477 }
 0xd18   :  { %v16684_v25 = vpop.eup %12479 }
 0xd19   :  { %12983 = dma.done.wait [#allocation5 + $0x1], 8192 }
 0xd1a   :  { %12984 = vsyncadd [#allocation5 + $0x1], 4294959104  ;;  %v7883_v13 = vpack.c.bf16 %v12424_v2, %v12420_v18  ;;  %v7819_v58 = vld [vmem:[#allocation3 + $0x8] sm:$0xff]  ;;  %v7821_v56 = vld [vmem:[#allocation3 + $0x18] sm:$0xff] }
 0xd1b   :  { %v7818_v4 = vld [vmem:[#allocation3] sm:$0xff]  ;;  %7898 = vmatprep.subr.bf16.mxu0 %v7819_v58  ;;  %8011 = vmatprep.subr.bf16.mxu1 %v7821_v56  ;;  %v7820_v60 = vld [vmem:[#allocation3 + $0x10] sm:$0xff]  ;;  %v7823_v15 = vld [vmem:[#allocation3 + $0x28] sm:$0xff] }
 0xd1c   :  { %7930 = vmatprep.mubr.bf16.mxu0 %v7883_v13  ;;  %8043 = vmatprep.mubr.bf16.mxu1 %v7883_v13  ;;  %v7825_v8 = vld [vmem:[#allocation3 + $0x38] sm:$0xff]  ;;  %v7822_v5 = vld [vmem:[#allocation3 + $0x20] sm:$0xff]  ;;  %v7824_v0 = vld [vmem:[#allocation3 + $0x30] sm:$0xff] }
 0xd1d   :  { %7899 = vmatpush1.bf16.msra.mxu0 %v7818_v4  ;;  %8012 = vmatpush1.bf16.msra.mxu1 %v7820_v60  ;;  %v7827_v51 = vld [vmem:[#allocation3 + $0x48] sm:$0xff]  ;;  %v7829_v7 = vld [vmem:[#allocation3 + $0x58] sm:$0xff]  ;;  %v7826_v33 = vld [vmem:[#allocation3 + $0x40] sm:$0xff] }
 0xd1e   :  { %7900 = vmatprep.subr.bf16.mxu0 %v7823_v15  ;;  %8013 = vmatprep.subr.bf16.mxu1 %v7825_v8  ;;  %v7828_v22 = vld [vmem:[#allocation3 + $0x50] sm:$0xff]  ;;  %v7831_v35 = vld [vmem:[#allocation3 + $0x68] sm:$0xff]  ;;  %v7833_v53 = vld [vmem:[#allocation3 + $0x78] sm:$0xff] }
 0xd1f   :  { %v7830_v44 = vld [vmem:[#allocation3 + $0x60] sm:$0xff]  ;;  %v7832_v32 = vld [vmem:[#allocation3 + $0x70] sm:$0xff]  ;;  %v7835_v54 = vld [vmem:[#allocation3 + $0x88] sm:$0xff] }
 0xd20   :  { %v7837_v12 = vld [vmem:[#allocation3 + $0x98] sm:$0xff]  ;;  %v7834_v38 = vld [vmem:[#allocation3 + $0x80] sm:$0xff]  ;;  %v7836_v63 = vld [vmem:[#allocation3 + $0x90] sm:$0xff] }
 0xd21   :  { %7901 = vmatpush1.bf16.msra.mxu0 %v7822_v5  ;;  %8014 = vmatpush1.bf16.msra.mxu1 %v7824_v0  ;;  %v7839_v3 = vld [vmem:[#allocation3 + $0xa8] sm:$0xff]  ;;  %v7841_v37 = vld [vmem:[#allocation3 + $0xb8] sm:$0xff]  ;;  %v7838_v48 = vld [vmem:[#allocation3 + $0xa0] sm:$0xff] }
 0xd22   :  { %7902 = vmatprep.subr.bf16.mxu0 %v7827_v51  ;;  %8015 = vmatprep.subr.bf16.mxu1 %v7829_v7  ;;  %v7840_v55 = vld [vmem:[#allocation3 + $0xb0] sm:$0xff]  ;;  %v7843_v31 = vld [vmem:[#allocation3 + $0xc8] sm:$0xff]  ;;  %v7845_v19 = vld [vmem:[#allocation3 + $0xd8] sm:$0xff] }
 0xd23   :  { %v7842_v41 = vld [vmem:[#allocation3 + $0xc0] sm:$0xff]  ;;  %v7844_v26 = vld [vmem:[#allocation3 + $0xd0] sm:$0xff]  ;;  %v7847_v18 = vld [vmem:[#allocation3 + $0xe8] sm:$0xff] }
 0xd24   :  { %v7849_v2 = vld [vmem:[#allocation3 + $0xf8] sm:$0xff]  ;;  %v7846_v13 = vld [vmem:[#allocation3 + $0xe0] sm:$0xff]  ;;  %v7848_v58 = vld [vmem:[#allocation3 + $0xf0] sm:$0xff] }
 0xd25   :  { %7903 = vmatpush1.bf16.msra.mxu0 %v7826_v33  ;;  %8016 = vmatpush1.bf16.msra.mxu1 %v7828_v22  ;;  %v7851_v56 = vld [vmem:[#allocation3 + $0x108] sm:$0xff]  ;;  %v7853_v4 = vld [vmem:[#allocation3 + $0x118] sm:$0xff]  ;;  %v7850_v60 = vld [vmem:[#allocation3 + $0x100] sm:$0xff] }
 0xd26   :  { %7904 = vmatprep.subr.bf16.mxu0 %v7831_v35  ;;  %8017 = vmatprep.subr.bf16.mxu1 %v7833_v53  ;;  %v7852_v15 = vld [vmem:[#allocation3 + $0x110] sm:$0xff]  ;;  %v7855_v8 = vld [vmem:[#allocation3 + $0x128] sm:$0xff]  ;;  %v7857_v5 = vld [vmem:[#allocation3 + $0x138] sm:$0xff] }
 0xd27   :  { %v7854_v0 = vld [vmem:[#allocation3 + $0x120] sm:$0xff]  ;;  %v7856_v51 = vld [vmem:[#allocation3 + $0x130] sm:$0xff]  ;;  %v7859_v7 = vld [vmem:[#allocation3 + $0x148] sm:$0xff] }
 0xd28   :  { %v7861_v33 = vld [vmem:[#allocation3 + $0x158] sm:$0xff]  ;;  %v7858_v22 = vld [vmem:[#allocation3 + $0x140] sm:$0xff]  ;;  %v7860_v35 = vld [vmem:[#allocation3 + $0x150] sm:$0xff] }
 0xd29   :  { %7905 = vmatpush1.bf16.msra.mxu0 %v7830_v44  ;;  %8018 = vmatpush1.bf16.msra.mxu1 %v7832_v32  ;;  %v7863_v53 = vld [vmem:[#allocation3 + $0x168] sm:$0xff]  ;;  %v7865_v44 = vld [vmem:[#allocation3 + $0x178] sm:$0xff]  ;;  %v7862_v32 = vld [vmem:[#allocation3 + $0x160] sm:$0xff] }
 0xd2a   :  { %7906 = vmatprep.subr.bf16.mxu0 %v7835_v54  ;;  %8019 = vmatprep.subr.bf16.mxu1 %v7837_v12  ;;  %v7864_v54 = vld [vmem:[#allocation3 + $0x170] sm:$0xff]  ;;  %v7867_v12 = vld [vmem:[#allocation3 + $0x188] sm:$0xff] }
 0xd2d   :  { %7907 = vmatpush1.bf16.msra.mxu0 %v7834_v38  ;;  %8020 = vmatpush1.bf16.msra.mxu1 %v7836_v63  ;;  %v7869_v38 = vld [vmem:[#allocation3 + $0x198] sm:$0xff]  ;;  %v7866_v63 = vld [vmem:[#allocation3 + $0x180] sm:$0xff] }
 0xd2e   :  { %7908 = vmatprep.subr.bf16.mxu0 %v7839_v3  ;;  %8021 = vmatprep.subr.bf16.mxu1 %v7841_v37  ;;  %v7868_v3 = vld [vmem:[#allocation3 + $0x190] sm:$0xff]  ;;  %v7871_v37 = vld [vmem:[#allocation3 + $0x1a8] sm:$0xff] }
 0xd31   :  { %7909 = vmatpush1.bf16.msra.mxu0 %v7838_v48  ;;  %8022 = vmatpush1.bf16.msra.mxu1 %v7840_v55  ;;  %v7873_v48 = vld [vmem:[#allocation3 + $0x1b8] sm:$0xff]  ;;  %v7870_v55 = vld [vmem:[#allocation3 + $0x1a0] sm:$0xff] }
 0xd32   :  { %7910 = vmatprep.subr.bf16.mxu0 %v7843_v31  ;;  %8023 = vmatprep.subr.bf16.mxu1 %v7845_v19  ;;  %v7872_v31 = vld [vmem:[#allocation3 + $0x1b0] sm:$0xff]  ;;  %v7875_v19 = vld [vmem:[#allocation3 + $0x1c8] sm:$0xff] }
 0xd35   :  { %7911 = vmatpush1.bf16.msra.mxu0 %v7842_v41  ;;  %8024 = vmatpush1.bf16.msra.mxu1 %v7844_v26  ;;  %v7877_v41 = vld [vmem:[#allocation3 + $0x1d8] sm:$0xff]  ;;  %v7874_v26 = vld [vmem:[#allocation3 + $0x1c0] sm:$0xff] }
 0xd36   :  { %7912 = vmatprep.subr.bf16.mxu0 %v7847_v18  ;;  %8025 = vmatprep.subr.bf16.mxu1 %v7849_v2  ;;  %v7876_v18 = vld [vmem:[#allocation3 + $0x1d0] sm:$0xff]  ;;  %v7879_v2 = vld [vmem:[#allocation3 + $0x1e8] sm:$0xff] }
 0xd39   :  { %7913 = vmatpush1.bf16.msra.mxu0 %v7846_v13  ;;  %8026 = vmatpush1.bf16.msra.mxu1 %v7848_v58  ;;  %v7881_v13 = vld [vmem:[#allocation3 + $0x1f8] sm:$0xff]  ;;  %v7878_v58 = vld [vmem:[#allocation3 + $0x1e0] sm:$0xff] }
 0xd3a   :  { %7914 = vmatprep.subr.bf16.mxu0 %v7851_v56  ;;  %8027 = vmatprep.subr.bf16.mxu1 %v7853_v4  ;;  %v7880_v56 = vld [vmem:[#allocation3 + $0x1f0] sm:$0xff]  ;;  %v7882_v4 = vpack.c.bf16 %v16628_v30, %v16626_v28  ;;  %v7886_v28 = vpack.c.bf16 %v16642_v49, %v16638_v34  ;;  %v7889_v30 = vpack.c.bf16 %v16652_v42, %v16648_v39 }
 0xd3b   :  { %v7892_v34 = vpack.c.bf16 %v16666_v50, %v16662_v59  ;;  %v7894_v49 = vpack.c.bf16 %v16674_v10, %v16670_v29 }
 0xd3d   :  { %7915 = vmatpush1.bf16.msra.mxu0 %v7850_v60  ;;  %8028 = vmatpush1.bf16.msra.mxu1 %v7852_v15  ;;  %v7885_v60 = vpack.c.bf16 %v16636_v62, %v16632_v11  ;;  %v7884_v15 = vpack.c.bf16 %v16634_v21, %v16630_v45  ;;  %v7888_v45 = vpack.c.bf16 %v16650_v24, %v16646_v52 }
 0xd3e   :  { %7916 = vmatprep.subr.bf16.mxu0 %v7855_v8  ;;  %8029 = vmatprep.subr.bf16.mxu1 %v7857_v5  ;;  %v7887_v8 = vpack.c.bf16 %v16644_v43, %v16640_v14  ;;  %v7891_v11 = vpack.c.bf16 %v16660_v16, %v16656_v47  ;;  %v7890_v21 = vpack.c.bf16 %v16658_v46, %v16654_v1 }
 0xd3f   :  { %v7893_v62 = vpack.c.bf16 %v16668_v61, %v16664_v9  ;;  %v7895_v14 = vpack.c.bf16 %v16676_v17, %v16672_v27  ;;  %v7897_v43 = vpack.c.bf16 %v16684_v25, %v16680_v23  ;;  %v7896_v52 = vpack.c.bf16 %v16682_v6, %v16678_v36 }
 0xd41   :  { %7917 = vmatpush1.bf16.msra.mxu0 %v7854_v0  ;;  %8030 = vmatpush1.bf16.msra.mxu1 %v7856_v51 }
 0xd42   :  { %7918 = vmatprep.subr.bf16.mxu0 %v7859_v7  ;;  %8031 = vmatprep.subr.bf16.mxu1 %v7861_v33 }
 0xd45   :  { %7919 = vmatpush1.bf16.msra.mxu0 %v7858_v22  ;;  %8032 = vmatpush1.bf16.msra.mxu1 %v7860_v35 }
 0xd46   :  { %7920 = vmatprep.subr.bf16.mxu0 %v7863_v53  ;;  %8033 = vmatprep.subr.bf16.mxu1 %v7865_v44 }
 0xd49   :  { %7921 = vmatpush1.bf16.msra.mxu0 %v7862_v32  ;;  %8034 = vmatpush1.bf16.msra.mxu1 %v7864_v54 }
 0xd4a   :  { %7922 = vmatprep.subr.bf16.mxu0 %v7867_v12  ;;  %8035 = vmatprep.subr.bf16.mxu1 %v7869_v38 }
 0xd4d   :  { %7923 = vmatpush1.bf16.msra.mxu0 %v7866_v63  ;;  %8036 = vmatpush1.bf16.msra.mxu1 %v7868_v3 }
 0xd4e   :  { %7924 = vmatprep.subr.bf16.mxu0 %v7871_v37  ;;  %8037 = vmatprep.subr.bf16.mxu1 %v7873_v48 }
 0xd51   :  { %7925 = vmatpush1.bf16.msra.mxu0 %v7870_v55  ;;  %8038 = vmatpush1.bf16.msra.mxu1 %v7872_v31 }
 0xd52   :  { %7926 = vmatprep.subr.bf16.mxu0 %v7875_v19  ;;  %8039 = vmatprep.subr.bf16.mxu1 %v7877_v41 }
 0xd55   :  { %7927 = vmatpush1.bf16.msra.mxu0 %v7874_v26  ;;  %8040 = vmatpush1.bf16.msra.mxu1 %v7876_v18 }
 0xd56   :  { %7928 = vmatprep.subr.bf16.mxu0 %v7879_v2  ;;  %8041 = vmatprep.subr.bf16.mxu1 %v7881_v13 }
 0xd59   :  { %7929 = vmatpush1.bf16.msra.mxu0 %v7878_v58  ;;  %8042 = vmatpush1.bf16.msra.mxu1 %v7880_v56 }
 0xd5c   :  { %7931 = vmatmul.mubr.bf16.vlgmr.msra.gmra.mrb[96].mxu0 %v7882_v4  ;;  %8044 = vmatmul.mubr.bf16.vlgmr.msra.gmra.mrb[144].mxu1 %v7882_v4 }
 0xd5d   :  { %7940 = vmatprep.mubr.bf16.mxu0 %v7885_v60  ;;  %8053 = vmatprep.mubr.bf16.mxu1 %v7885_v60 }
 0xd64   :  { %7941 = vmatmul.mubr.bf16.gmra.mrb[100].mxu0 %v7884_v15  ;;  %8054 = vmatmul.mubr.bf16.gmra.mrb[148].mxu1 %v7884_v15 }
 0xd65   :  { %7950 = vmatprep.mubr.bf16.mxu0 %v7887_v8  ;;  %8063 = vmatprep.mubr.bf16.mxu1 %v7887_v8 }
 0xd6c   :  { %7951 = vmatmul.mubr.bf16.gmra.mrb[104].mxu0 %v7886_v28  ;;  %8064 = vmatmul.mubr.bf16.gmra.mrb[152].mxu1 %v7886_v28 }
 0xd6d   :  { %7960 = vmatprep.mubr.bf16.mxu0 %v7889_v30  ;;  %8073 = vmatprep.mubr.bf16.mxu1 %v7889_v30 }
 0xd74   :  { %7961 = vmatmul.mubr.bf16.gmra.mrb[108].mxu0 %v7888_v45  ;;  %8074 = vmatmul.mubr.bf16.gmra.mrb[156].mxu1 %v7888_v45 }
 0xd75   :  { %7970 = vmatprep.mubr.bf16.mxu0 %v7891_v11  ;;  %8083 = vmatprep.mubr.bf16.mxu1 %v7891_v11 }
 0xd7c   :  { %7971 = vmatmul.mubr.bf16.gmra.mrb[112].mxu0 %v7890_v21  ;;  %8084 = vmatmul.mubr.bf16.gmra.mrb[160].mxu1 %v7890_v21 }
 0xd7d   :  { %7980 = vmatprep.mubr.bf16.mxu0 %v7893_v62  ;;  %8093 = vmatprep.mubr.bf16.mxu1 %v7893_v62 }
 0xd84   :  { %7981 = vmatmul.mubr.bf16.gmra.mrb[116].mxu0 %v7892_v34  ;;  %8094 = vmatmul.mubr.bf16.gmra.mrb[164].mxu1 %v7892_v34 }
 0xd85   :  { %7990 = vmatprep.mubr.bf16.mxu0 %v7895_v14  ;;  %8103 = vmatprep.mubr.bf16.mxu1 %v7895_v14 }
 0xd8c   :  { %7991 = vmatmul.mubr.bf16.gmra.mrb[120].mxu0 %v7894_v49  ;;  %8104 = vmatmul.mubr.bf16.gmra.mrb[168].mxu1 %v7894_v49 }
 0xd8d   :  { %8000 = vmatprep.mubr.bf16.mxu0 %v7897_v43  ;;  %8113 = vmatprep.mubr.bf16.mxu1 %v7897_v43 }
 0xd94   :  { %8001 = vmatmul.mubr.bf16.gmra.mrb[124].mxu0 %v7896_v52  ;;  %8114 = vmatmul.mubr.bf16.gmra.mrb[172].mxu1 %v7896_v52 }
 0xe2f   :  { %v16716_v39 = vpop.f32.mrb[96].mxu0  ;;  %v16718_v24 = vpop.f32.mrb[144].mxu1 }
 0xe30   :  { %v16720_v42 = vpop.f32.mrb[97].mxu0  ;;  %v16722_v1 = vpop.f32.mrb[145].mxu1  ;;  %v8216_v47 = vmul.f32 %v16716_v39, %v16716_v39  ;;  %v8218_v46 = vmul.f32 %v16718_v24, %v16718_v24 }
 0xe31   :  { %v8217_v16 = vmul.f32 %v16720_v42, %v16720_v42  ;;  %v8219_v59 = vmul.f32 %v16722_v1, %v16722_v1  ;;  %v16732_v9 = vpop.f32.mrb[98].mxu0  ;;  %v16734_v50 = vpop.f32.mrb[146].mxu1 }
 0xe32   :  { %v8128_v61 = vadd.f32 %v16732_v9, %v16716_v39  ;;  %v8220_v29 = vmul.f32 %v16732_v9, %v16732_v9  ;;  %v8170_v27 = vadd.f32 %v16734_v50, %v16718_v24  ;;  %v8222_v10 = vmul.f32 %v16734_v50, %v16734_v50  ;;  %v16744_v17 = vpop.f32.mrb[99].mxu0  ;;  %v16746_v36 = vpop.f32.mrb[147].mxu1 }
 0xe33   :  { %v8149_v23 = vadd.f32 %v16744_v17, %v16720_v42  ;;  %v8221_v6 = vmul.f32 %v16744_v17, %v16744_v17  ;;  %v8191_v25 = vadd.f32 %v16746_v36, %v16722_v1  ;;  %v8223_v5 = vmul.f32 %v16746_v36, %v16746_v36 }
 0xe34   :  { %v8280_v0 = vadd.f32 %v8220_v29, %v8216_v47  ;;  %v8322_v51 = vadd.f32 %v8222_v10, %v8218_v46 }
 0xe35   :  { %v8301_v7 = vadd.f32 %v8221_v6, %v8217_v16  ;;  %v8343_v33 = vadd.f32 %v8223_v5, %v8219_v59 }
 0xe37   :  { %v16756_v22 = vpop.f32.mrb[100].mxu0  ;;  %v16758_v35 = vpop.f32.mrb[148].mxu1 }
 0xe38   :  { %v8129_v53 = vadd.f32 %v8128_v61, %v16756_v22  ;;  %v8224_v44 = vmul.f32 %v16756_v22, %v16756_v22  ;;  %v8171_v32 = vadd.f32 %v8170_v27, %v16758_v35  ;;  %v8226_v54 = vmul.f32 %v16758_v35, %v16758_v35  ;;  %v16766_v12 = vpop.f32.mrb[101].mxu0  ;;  %v16768_v38 = vpop.f32.mrb[149].mxu1 }
 0xe39   :  { %v8150_v63 = vadd.f32 %v8149_v23, %v16766_v12  ;;  %v8225_v3 = vmul.f32 %v16766_v12, %v16766_v12  ;;  %v8192_v37 = vadd.f32 %v8191_v25, %v16768_v38  ;;  %v8227_v48 = vmul.f32 %v16768_v38, %v16768_v38  ;;  %v16776_v55 = vpop.f32.mrb[102].mxu0  ;;  %v16778_v31 = vpop.f32.mrb[150].mxu1 }
 0xe3a   :  { %v8281_v19 = vadd.f32 %v8280_v0, %v8224_v44  ;;  %v8323_v41 = vadd.f32 %v8322_v51, %v8226_v54  ;;  %v8130_v26 = vadd.f32 %v8129_v53, %v16776_v55  ;;  %v8228_v18 = vmul.f32 %v16776_v55, %v16776_v55  ;;  %v16783_v2 = vpop.f32.mrb[103].mxu0  ;;  %v16785_v13 = vpop.f32.mrb[151].mxu1 }
 0xe3b   :  { %v8302_v58 = vadd.f32 %v8301_v7, %v8225_v3  ;;  %v8344_v56 = vadd.f32 %v8343_v33, %v8227_v48  ;;  %v8172_v4 = vadd.f32 %v8171_v32, %v16778_v31  ;;  %v8230_v60 = vmul.f32 %v16778_v31, %v16778_v31 }
 0xe3c   :  { %v8282_v15 = vadd.f32 %v8281_v19, %v8228_v18  ;;  %v8151_v8 = vadd.f32 %v8150_v63, %v16783_v2  ;;  %v8229_v28 = vmul.f32 %v16783_v2, %v16783_v2  ;;  %v8193_v30 = vadd.f32 %v8192_v37, %v16785_v13 }
 0xe3d   :  { %v8324_v45 = vadd.f32 %v8323_v41, %v8230_v60  ;;  %v8231_v11 = vmul.f32 %v16785_v13, %v16785_v13 }
 0xe3e   :  { %v8303_v21 = vadd.f32 %v8302_v58, %v8229_v28 }
 0xe3f   :  { %v8345_v62 = vadd.f32 %v8344_v56, %v8231_v11  ;;  %v16796_v34 = vpop.f32.mrb[104].mxu0  ;;  %v16798_v14 = vpop.f32.mrb[152].mxu1 }
 0xe40   :  { %v8131_v49 = vadd.f32 %v8130_v26, %v16796_v34  ;;  %v8232_v43 = vmul.f32 %v16796_v34, %v16796_v34  ;;  %v8173_v52 = vadd.f32 %v8172_v4, %v16798_v14  ;;  %v8234_v47 = vmul.f32 %v16798_v14, %v16798_v14  ;;  %v16806_v46 = vpop.f32.mrb[105].mxu0  ;;  %v16808_v16 = vpop.f32.mrb[153].mxu1 }
 0xe41   :  { %v8152_v59 = vadd.f32 %v8151_v8, %v16806_v46  ;;  %v8233_v61 = vmul.f32 %v16806_v46, %v16806_v46  ;;  %v8194_v29 = vadd.f32 %v8193_v30, %v16808_v16  ;;  %v8235_v27 = vmul.f32 %v16808_v16, %v16808_v16  ;;  %v16816_v10 = vpop.f32.mrb[106].mxu0  ;;  %v16818_v23 = vpop.f32.mrb[154].mxu1 }
 0xe42   :  { %v8283_v6 = vadd.f32 %v8282_v15, %v8232_v43  ;;  %v8325_v25 = vadd.f32 %v8324_v45, %v8234_v47  ;;  %v8132_v5 = vadd.f32 %v8131_v49, %v16816_v10  ;;  %v8236_v0 = vmul.f32 %v16816_v10, %v16816_v10  ;;  %v16823_v51 = vpop.f32.mrb[107].mxu0  ;;  %v16825_v7 = vpop.f32.mrb[155].mxu1 }
 0xe43   :  { %v8304_v33 = vadd.f32 %v8303_v21, %v8233_v61  ;;  %v8346_v53 = vadd.f32 %v8345_v62, %v8235_v27  ;;  %v8174_v44 = vadd.f32 %v8173_v52, %v16818_v23  ;;  %v8238_v32 = vmul.f32 %v16818_v23, %v16818_v23 }
 0xe44   :  { %v8284_v54 = vadd.f32 %v8283_v6, %v8236_v0  ;;  %v8153_v63 = vadd.f32 %v8152_v59, %v16823_v51  ;;  %v8237_v3 = vmul.f32 %v16823_v51, %v16823_v51  ;;  %v8195_v37 = vadd.f32 %v8194_v29, %v16825_v7 }
 0xe45   :  { %v8326_v48 = vadd.f32 %v8325_v25, %v8238_v32  ;;  %v8239_v19 = vmul.f32 %v16825_v7, %v16825_v7 }
 0xe46   :  { %v8305_v41 = vadd.f32 %v8304_v33, %v8237_v3 }
 0xe47   :  { %v8347_v26 = vadd.f32 %v8346_v53, %v8239_v19  ;;  %v16836_v18 = vpop.f32.mrb[108].mxu0  ;;  %v16838_v58 = vpop.f32.mrb[156].mxu1 }
 0xe48   :  { %v8133_v56 = vadd.f32 %v8132_v5, %v16836_v18  ;;  %v8240_v4 = vmul.f32 %v16836_v18, %v16836_v18  ;;  %v8175_v60 = vadd.f32 %v8174_v44, %v16838_v58  ;;  %v8242_v15 = vmul.f32 %v16838_v58, %v16838_v58  ;;  %v16846_v8 = vpop.f32.mrb[109].mxu0  ;;  %v16848_v28 = vpop.f32.mrb[157].mxu1 }
 0xe49   :  { %v8154_v30 = vadd.f32 %v8153_v63, %v16846_v8  ;;  %v8241_v45 = vmul.f32 %v16846_v8, %v16846_v8  ;;  %v8196_v11 = vadd.f32 %v8195_v37, %v16848_v28  ;;  %v8243_v21 = vmul.f32 %v16848_v28, %v16848_v28  ;;  %v16856_v62 = vpop.f32.mrb[110].mxu0  ;;  %v16858_v49 = vpop.f32.mrb[158].mxu1 }
 0xe4a   :  { %18841 = vst [vmem:[#allocation61_spill] sm:$0xff] %v16856_v62  ;;  %18842 = vst [vmem:[#allocation56_spill] sm:$0xff] %v16858_v49  ;;  %v8285_v43 = vadd.f32 %v8284_v54, %v8240_v4  ;;  %v8327_v52 = vadd.f32 %v8326_v48, %v8242_v15  ;;  %v8134_v47 = vadd.f32 %v8133_v56, %v16856_v62  ;;  %v16863_v61 = vpop.f32.mrb[111].mxu0  ;;  %v16865_v29 = vpop.f32.mrb[159].mxu1 }
 0xe4b   :  { %v8244_v59 = vmul.f32 %v16856_v62, %v16856_v62  ;;  %18843 = vst [vmem:[#allocation59_spill] sm:$0xff] %v16863_v61  ;;  %18844 = vst [vmem:[#allocation29_spill] sm:$0xff] %v16865_v29  ;;  %v8306_v27 = vadd.f32 %v8305_v41, %v8241_v45  ;;  %v8348_v6 = vadd.f32 %v8347_v26, %v8243_v21 }
 0xe4c   :  { %v8176_v25 = vadd.f32 %v8175_v60, %v16858_v49  ;;  %v8246_v5 = vmul.f32 %v16858_v49, %v16858_v49  ;;  %v8155_v33 = vadd.f32 %v8154_v30, %v16863_v61  ;;  %v8245_v53 = vmul.f32 %v16863_v61, %v16863_v61 }
 0xe4d   :  { %v8286_v0 = vadd.f32 %v8285_v43, %v8244_v59  ;;  %v8197_v44 = vadd.f32 %v8196_v11, %v16865_v29  ;;  %v8247_v54 = vmul.f32 %v16865_v29, %v16865_v29 }
 0xe4e   :  { %v8328_v32 = vadd.f32 %v8327_v52, %v8246_v5  ;;  %v8307_v63 = vadd.f32 %v8306_v27, %v8245_v53 }
 0xe4f   :  { %v8349_v3 = vadd.f32 %v8348_v6, %v8247_v54  ;;  %v16876_v37 = vpop.f32.mrb[112].mxu0  ;;  %v16878_v48 = vpop.f32.mrb[160].mxu1 }
 0xe50   :  { %18845 = vst [vmem:[#allocation31_spill] sm:$0xff] %v16876_v37  ;;  %18846 = vst [vmem:[#allocation28_spill] sm:$0xff] %v16878_v48  ;;  %v8135_v19 = vadd.f32 %v8134_v47, %v16876_v37  ;;  %v8248_v41 = vmul.f32 %v16876_v37, %v16876_v37  ;;  %v8177_v26 = vadd.f32 %v8176_v25, %v16878_v48  ;;  %v16886_v4 = vpop.f32.mrb[113].mxu0  ;;  %v16888_v60 = vpop.f32.mrb[161].mxu1 }
 0xe51   :  { %v8250_v56 = vmul.f32 %v16878_v48, %v16878_v48  ;;  %18847 = vst [vmem:[#allocation30_spill] sm:$0xff] %v16886_v4  ;;  %18848 = vst [vmem:[#allocation33_spill] sm:$0xff] %v16888_v60  ;;  %v8156_v15 = vadd.f32 %v8155_v33, %v16886_v4  ;;  %v8249_v30 = vmul.f32 %v16886_v4, %v16886_v4  ;;  %v16896_v21 = vpop.f32.mrb[114].mxu0  ;;  %v16898_v43 = vpop.f32.mrb[162].mxu1 }
 0xe52   :  { %v8198_v45 = vadd.f32 %v8197_v44, %v16888_v60  ;;  %v8251_v11 = vmul.f32 %v16888_v60, %v16888_v60  ;;  %18849 = vst [vmem:[#allocation35_spill] sm:$0xff] %v16896_v21  ;;  %18850 = vst [vmem:[#allocation32_spill] sm:$0xff] %v16898_v43  ;;  %v8287_v52 = vadd.f32 %v8286_v0, %v8248_v41  ;;  %v16903_v6 = vpop.f32.mrb[115].mxu0  ;;  %v16905_v25 = vpop.f32.mrb[163].mxu1 }
 0xe53   :  { %v8329_v47 = vadd.f32 %v8328_v32, %v8250_v56  ;;  %v8136_v59 = vadd.f32 %v8135_v19, %v16896_v21  ;;  %v8252_v27 = vmul.f32 %v16896_v21, %v16896_v21  ;;  %18851 = vst [vmem:[#allocation34_spill] sm:$0xff] %v16903_v6  ;;  %18852 = vst [vmem:[#allocation37_spill] sm:$0xff] %v16905_v25 }
 0xe54   :  { %v8308_v5 = vadd.f32 %v8307_v63, %v8249_v30  ;;  %v8350_v33 = vadd.f32 %v8349_v3, %v8251_v11  ;;  %v8178_v53 = vadd.f32 %v8177_v26, %v16898_v43  ;;  %v8254_v44 = vmul.f32 %v16898_v43, %v16898_v43 }
 0xe55   :  { %v8288_v54 = vadd.f32 %v8287_v52, %v8252_v27  ;;  %v8157_v0 = vadd.f32 %v8156_v15, %v16903_v6  ;;  %v8253_v32 = vmul.f32 %v16903_v6, %v16903_v6  ;;  %v8199_v19 = vadd.f32 %v8198_v45, %v16905_v25 }
 0xe56   :  { %v8330_v41 = vadd.f32 %v8329_v47, %v8254_v44  ;;  %v8255_v56 = vmul.f32 %v16905_v25, %v16905_v25 }
 0xe57   :  { %v8309_v21 = vadd.f32 %v8308_v5, %v8253_v32  ;;  %v16916_v3 = vpop.f32.mrb[116].mxu0  ;;  %v16918_v26 = vpop.f32.mrb[164].mxu1 }
 0xe58   :  { %v8351_v63 = vadd.f32 %v8350_v33, %v8255_v56  ;;  %18853 = vst [vmem:[#allocation39_spill] sm:$0xff] %v16916_v3  ;;  %18854 = vst [vmem:[#allocation36_spill] sm:$0xff] %v16918_v26  ;;  %v8137_v30 = vadd.f32 %v8136_v59, %v16916_v3  ;;  %v8256_v15 = vmul.f32 %v16916_v3, %v16916_v3  ;;  %v16926_v52 = vpop.f32.mrb[117].mxu0  ;;  %v16928_v47 = vpop.f32.mrb[165].mxu1 }
 0xe59   :  { %v8179_v11 = vadd.f32 %v8178_v53, %v16918_v26  ;;  %v8258_v45 = vmul.f32 %v16918_v26, %v16918_v26  ;;  %18855 = vst [vmem:[#allocation38_spill] sm:$0xff] %v16926_v52  ;;  %18856 = vst [vmem:[#allocation41_spill] sm:$0xff] %v16928_v47  ;;  %v8158_v27 = vadd.f32 %v8157_v0, %v16926_v52  ;;  %v16936_v44 = vpop.f32.mrb[118].mxu0  ;;  %v16938_v53 = vpop.f32.mrb[166].mxu1 }
 0xe5a   :  { %v8257_v5 = vmul.f32 %v16926_v52, %v16926_v52  ;;  %v8200_v33 = vadd.f32 %v8199_v19, %v16928_v47  ;;  %v8259_v59 = vmul.f32 %v16928_v47, %v16928_v47  ;;  %18857 = vst [vmem:[#allocation43_spill] sm:$0xff] %v16936_v44  ;;  %18858 = vst [vmem:[#allocation40_spill] sm:$0xff] %v16938_v53  ;;  %v16943_v0 = vpop.f32.mrb[119].mxu0  ;;  %v16945_v25 = vpop.f32.mrb[167].mxu1 }
 0xe5b   :  { %v8289_v32 = vadd.f32 %v8288_v54, %v8256_v15  ;;  %v8331_v56 = vadd.f32 %v8330_v41, %v8258_v45  ;;  %v8138_v26 = vadd.f32 %v8137_v30, %v16936_v44  ;;  %v8260_v3 = vmul.f32 %v16936_v44, %v16936_v44  ;;  %18859 = vst [vmem:[#allocation42_spill] sm:$0xff] %v16943_v0 }
 0xe5c   :  { %18860 = vst [vmem:[#allocation45_spill] sm:$0xff] %v16945_v25  ;;  %v8310_v52 = vadd.f32 %v8309_v21, %v8257_v5  ;;  %v8352_v19 = vadd.f32 %v8351_v63, %v8259_v59  ;;  %v8180_v43 = vadd.f32 %v8179_v11, %v16938_v53  ;;  %v8262_v47 = vmul.f32 %v16938_v53, %v16938_v53 }
 0xe5d   :  { %v8290_v6 = vadd.f32 %v8289_v32, %v8260_v3  ;;  %v8159_v54 = vadd.f32 %v8158_v27, %v16943_v0  ;;  %v8261_v41 = vmul.f32 %v16943_v0, %v16943_v0  ;;  %v8201_v30 = vadd.f32 %v8200_v33, %v16945_v25 }
 0xe5e   :  { %v8332_v15 = vadd.f32 %v8331_v56, %v8262_v47  ;;  %v8263_v45 = vmul.f32 %v16945_v25, %v16945_v25 }
 0xe5f   :  { %v8311_v44 = vadd.f32 %v8310_v52, %v8261_v41  ;;  %v16956_v63 = vpop.f32.mrb[120].mxu0  ;;  %v16958_v11 = vpop.f32.mrb[168].mxu1 }
 0xe60   :  { %v8353_v21 = vadd.f32 %v8352_v19, %v8263_v45  ;;  %18861 = vst [vmem:[#allocation47_spill] sm:$0xff] %v16956_v63  ;;  %18862 = vst [vmem:[#allocation44_spill] sm:$0xff] %v16958_v11  ;;  %v8139_v5 = vadd.f32 %v8138_v26, %v16956_v63  ;;  %v8264_v3 = vmul.f32 %v16956_v63, %v16956_v63  ;;  %v16966_v47 = vpop.f32.mrb[121].mxu0  ;;  %v16968_v59 = vpop.f32.mrb[169].mxu1 }
 0xe61   :  { %v8181_v27 = vadd.f32 %v8180_v43, %v16958_v11  ;;  %v8266_v33 = vmul.f32 %v16958_v11, %v16958_v11  ;;  %18863 = vst [vmem:[#allocation46_spill] sm:$0xff] %v16966_v47  ;;  %18864 = vst [vmem:[#allocation49_spill] sm:$0xff] %v16968_v59  ;;  %v8160_v52 = vadd.f32 %v8159_v54, %v16966_v47  ;;  %v16976_v19 = vpop.f32.mrb[122].mxu0  ;;  %v16978_v43 = vpop.f32.mrb[170].mxu1 }
 0xe62   :  { %v8265_v32 = vmul.f32 %v16966_v47, %v16966_v47  ;;  %v8202_v56 = vadd.f32 %v8201_v30, %v16968_v59  ;;  %v8267_v26 = vmul.f32 %v16968_v59, %v16968_v59  ;;  %18865 = vst [vmem:[#allocation51_spill] sm:$0xff] %v16976_v19  ;;  %18866 = vst [vmem:[#allocation48_spill] sm:$0xff] %v16978_v43  ;;  %v16983_v54 = vpop.f32.mrb[123].mxu0  ;;  %v16985_v25 = vpop.f32.mrb[171].mxu1 }
 0xe63   :  { %v8291_v41 = vadd.f32 %v8290_v6, %v8264_v3  ;;  %v8333_v45 = vadd.f32 %v8332_v15, %v8266_v33  ;;  %v8140_v11 = vadd.f32 %v8139_v5, %v16976_v19  ;;  %v8268_v63 = vmul.f32 %v16976_v19, %v16976_v19  ;;  %18867 = vst [vmem:[#allocation50_spill] sm:$0xff] %v16983_v54 }
 0xe64   :  { %18868 = vst [vmem:[#allocation53_spill] sm:$0xff] %v16985_v25  ;;  %v8312_v47 = vadd.f32 %v8311_v44, %v8265_v32  ;;  %v8354_v30 = vadd.f32 %v8353_v21, %v8267_v26  ;;  %v8182_v53 = vadd.f32 %v8181_v27, %v16978_v43  ;;  %v8270_v59 = vmul.f32 %v16978_v43, %v16978_v43 }
 0xe65   :  { %v8292_v0 = vadd.f32 %v8291_v41, %v8268_v63  ;;  %v8161_v6 = vadd.f32 %v8160_v52, %v16983_v54  ;;  %v8269_v15 = vmul.f32 %v16983_v54, %v16983_v54  ;;  %v8203_v5 = vadd.f32 %v8202_v56, %v16985_v25 }
 0xe66   :  { %v8334_v3 = vadd.f32 %v8333_v45, %v8270_v59  ;;  %v8271_v33 = vmul.f32 %v16985_v25, %v16985_v25 }
 0xe67   :  { %v8313_v19 = vadd.f32 %v8312_v47, %v8269_v15  ;;  %v16996_v21 = vpop.f32.mrb[124].mxu0  ;;  %v16998_v27 = vpop.f32.mrb[172].mxu1 }
 0xe68   :  { %v8355_v44 = vadd.f32 %v8354_v30, %v8271_v33  ;;  %18869 = vst [vmem:[#allocation55_spill] sm:$0xff] %v16996_v21  ;;  %18870 = vst [vmem:[#allocation52_spill] sm:$0xff] %v16998_v27  ;;  %v8141_v32 = vadd.f32 %v8140_v11, %v16996_v21  ;;  %v8272_v63 = vmul.f32 %v16996_v21, %v16996_v21  ;;  %v17006_v59 = vpop.f32.mrb[125].mxu0  ;;  %v17008_v26 = vpop.f32.mrb[173].mxu1 }
 0xe69   :  { %v8183_v52 = vadd.f32 %v8182_v53, %v16998_v27  ;;  %v8274_v56 = vmul.f32 %v16998_v27, %v16998_v27  ;;  %18871 = vst [vmem:[#allocation54_spill] sm:$0xff] %v17006_v59  ;;  %18872 = vst [vmem:[#allocation58_spill] sm:$0xff] %v17008_v26  ;;  %v8162_v47 = vadd.f32 %v8161_v6, %v17006_v59  ;;  %v17016_v30 = vpop.f32.mrb[126].mxu0  ;;  %v17018_v53 = vpop.f32.mrb[174].mxu1 }
 0xe6a   :  { %v8273_v41 = vmul.f32 %v17006_v59, %v17006_v59  ;;  %v8204_v45 = vadd.f32 %v8203_v5, %v17008_v26  ;;  %v8275_v11 = vmul.f32 %v17008_v26, %v17008_v26  ;;  %18873 = vst [vmem:[#allocation57_spill] sm:$0xff] %v17016_v30  ;;  %18874 = vst [vmem:[#allocation60_spill] sm:$0xff] %v17018_v53  ;;  %v17023_v6 = vpop.f32.mrb[127].mxu0  ;;  %v17025_v25 = vpop.f32.mrb[175].mxu1 }
 0xe6b   :  { %v8293_v15 = vadd.f32 %v8292_v0, %v8272_v63  ;;  %v8335_v33 = vadd.f32 %v8334_v3, %v8274_v56  ;;  %v8142_v27 = vadd.f32 %v8141_v32, %v17016_v30  ;;  %v8276_v21 = vmul.f32 %v17016_v30, %v17016_v30  ;;  %18875 = vst [vmem:[#allocation63_spill] sm:$0xff] %v17023_v6 }
 0xe6c   :  { %18876 = vst [vmem:[#allocation68_spill] sm:$0xff] %v17025_v25  ;;  %v8314_v59 = vadd.f32 %v8313_v19, %v8273_v41  ;;  %v8356_v5 = vadd.f32 %v8355_v44, %v8275_v11  ;;  %v8184_v43 = vadd.f32 %v8183_v52, %v17018_v53  ;;  %v8278_v26 = vmul.f32 %v17018_v53, %v17018_v53 }
 0xe6d   :  { %v8143_v54 = vrot.slane %v8142_v27, 4  ;;  %v8294_v60 = vadd.f32 %v8293_v15, %v8276_v21  ;;  %v8163_v0 = vadd.f32 %v8162_v47, %v17023_v6  ;;  %v8277_v3 = vmul.f32 %v17023_v6, %v17023_v6 }
 0xe6e   :  { %v8185_v32 = vrot.slane %v8184_v43, 4  ;;  %v8336_v63 = vadd.f32 %v8335_v33, %v8278_v26  ;;  %v8205_v56 = vadd.f32 %v8204_v45, %v17025_v25  ;;  %v8279_v19 = vmul.f32 %v17025_v25, %v17025_v25 }
 0xe6f   :  { %v8144_v44 = vadd.f32 %v8143_v54, %v8142_v27  ;;  %v8295_v41 = vrot.slane %v8294_v60, 4  ;;  %v8164_v52 = vrot.slane %v8163_v0, 4  ;;  %v8315_v11 = vadd.f32 %v8314_v59, %v8277_v3 }
 0xe70   :  { %v8186_v30 = vadd.f32 %v8185_v32, %v8184_v43  ;;  %v8337_v53 = vrot.slane %v8336_v63, 4  ;;  %v8206_v48 = vrot.slane %v8205_v56, 4  ;;  %v8357_v21 = vadd.f32 %v8356_v5, %v8279_v19 }
 0xe71   :  { %v8145_v15 = vrot.slane %v8144_v44, 2  ;;  %v8296_v47 = vadd.f32 %v8295_v41, %v8294_v60  ;;  %v8165_v4 = vadd.f32 %v8164_v52, %v8163_v0  ;;  %v8316_v37 = vrot.slane %v8315_v11, 4 }
 0xe72   :  { %v8187_v6 = vrot.slane %v8186_v30, 2  ;;  %v8338_v29 = vadd.f32 %v8337_v53, %v8336_v63  ;;  %v8207_v26 = vadd.f32 %v8206_v48, %v8205_v56  ;;  %v8358_v33 = vrot.slane %v8357_v21, 4 }
 0xe73   :  { %v8146_v45 = vadd.f32 %v8145_v15, %v8144_v44  ;;  %v8297_v49 = vrot.slane %v8296_v47, 2  ;;  %v8166_v61 = vrot.slane %v8165_v4, 2  ;;  %v8317_v25 = vadd.f32 %v8316_v37, %v8315_v11 }
 0xe74   :  { %v8188_v54 = vadd.f32 %v8187_v6, %v8186_v30  ;;  %v8339_v27 = vrot.slane %v8338_v29, 2  ;;  %v8208_v62 = vrot.slane %v8207_v26, 2  ;;  %v8359_v59 = vadd.f32 %v8358_v33, %v8357_v21 }
 0xe75   :  { %v8147_v43 = vrot.slane %v8146_v45, 1  ;;  %v8298_v3 = vadd.f32 %v8297_v49, %v8296_v47  ;;  %v8167_v32 = vadd.f32 %v8166_v61, %v8165_v4  ;;  %v8318_v5 = vrot.slane %v8317_v25, 2 }
 0xe76   :  { %v8189_v19 = vrot.slane %v8188_v54, 1  ;;  %v8340_v60 = vadd.f32 %v8339_v27, %v8338_v29  ;;  %v8209_v0 = vadd.f32 %v8208_v62, %v8207_v26  ;;  %v8360_v41 = vrot.slane %v8359_v59, 2 }
 0xe77   :  { %v8148_v52 = vadd.f32 %v8147_v43, %v8146_v45  ;;  %v8299_v53 = vrot.slane %v8298_v3, 1  ;;  %v8168_v48 = vrot.slane %v8167_v32, 1  ;;  %v8319_v63 = vadd.f32 %v8318_v5, %v8317_v25 }
 0xe78   :  { %v8190_v56 = vadd.f32 %v8189_v19, %v8188_v54  ;;  %v8341_v44 = vrot.slane %v8340_v60, 1  ;;  %v8210_v15 = vrot.slane %v8209_v0, 1  ;;  %v8361_v37 = vadd.f32 %v8360_v41, %v8359_v59 }
 0xe79   :  { %v8212_v30 = vmul.f32 0.0078125, %v8148_v52  ;;  %v8300_v6 = vadd.f32 %v8299_v53, %v8298_v3  ;;  %v8169_v11 = vadd.f32 %v8168_v48, %v8167_v32  ;;  %v8320_v21 = vrot.slane %v8319_v63, 1 }
 0xe7a   :  { %v8214_v33 = vmul.f32 0.0078125, %v8190_v56  ;;  %v8342_v49 = vadd.f32 %v8341_v44, %v8340_v60  ;;  %v8211_v61 = vadd.f32 %v8210_v15, %v8209_v0  ;;  %v8362_v4 = vrot.slane %v8361_v37, 1 }
 0xe7b   :  { %v8364_v47 = vmul.f32 0.0078125, %v8300_v6  ;;  %v8368_v29 = vmul.f32 %v8212_v30, %v8212_v30  ;;  %v8213_v62 = vmul.f32 0.0078125, %v8169_v11  ;;  %v8321_v26 = vadd.f32 %v8320_v21, %v8319_v63 }
 0xe7c   :  { %v8366_v45 = vmul.f32 0.0078125, %v8342_v49  ;;  %v8370_v27 = vmul.f32 %v8214_v33, %v8214_v33  ;;  %v8215_v43 = vmul.f32 0.0078125, %v8211_v61  ;;  %v8363_v25 = vadd.f32 %v8362_v4, %v8361_v37 }
 0xe7d   :  { %v8372_v54 = vsub.f32 %v8364_v47, %v8368_v29  ;;  %v8365_v5 = vmul.f32 0.0078125, %v8321_v26  ;;  %v8369_v19 = vmul.f32 %v8213_v62, %v8213_v62  ;;  %v10806_v26 = vld [vmem:[%s18670_s12 + $0x3f] ss:$8 sm:$0xf] }
 0xe7e   :  { %v8374_v59 = vsub.f32 %v8366_v45, %v8370_v27  ;;  %v8367_v41 = vmul.f32 0.0078125, %v8363_v25  ;;  %v8371_v3 = vmul.f32 %v8215_v43, %v8215_v43 }
 0xe7f   :  { %v8376_v32 = vmax.f32 %v8372_v54, 0.0  ;;  %v8373_v52 = vsub.f32 %v8365_v5, %v8369_v19  ;;  %v18877_v5 = vld [vmem:[#allocation66_spill] sm:$0xff] }
 0xe80   :  { %v8378_v53 = vmax.f32 %v8374_v59, 0.0  ;;  %v8375_v60 = vsub.f32 %v8367_v41, %v8371_v3  ;;  %v18878_v59 = vld [vmem:[#allocation67_spill] sm:$0xff] }
 0xe81   :  { %v8380_v0 = vadd.f32 1e-05, %v8376_v32  ;;  %v8377_v48 = vmax.f32 %v8373_v52, 0.0 }
 0xe82   :  { %v8382_v56 = vadd.f32 1e-05, %v8378_v53  ;;  %v8379_v44 = vmax.f32 %v8375_v60, 0.0 }
 0xe83   :  { %12481 = vrsqrt.f32 %v8380_v0  ;;  %v8381_v63 = vadd.f32 1e-05, %v8377_v48 }
 0xe84   :  { %12483 = vrsqrt.f32 %v8382_v56  ;;  %v8383_v15 = vadd.f32 1e-05, %v8379_v44 }
 0xe85   :  { %12485 = vrsqrt.f32 %v8381_v63 }
 0xe86   :  { %12487 = vrsqrt.f32 %v8383_v15 }
 0xe8d   :  { %v12482_v37 = vpop.eup %12481 }
 0xe8e   :  { %v12484_v6 = vpop.eup %12483 }
 0xe8f   :  { %v12486_v11 = vpop.eup %12485 }
 0xe90   :  { %v12488_v21 = vpop.eup %12487  ;;  %v8392_v49 = vcombine.low %v12482_v37, %v12486_v11 }
 0xe91   :  { %v8393_v61 = vcombine.low %v12484_v6, %v12488_v21  ;;  %v18880_v6 = vld [vmem:[#allocation59_spill] sm:$0xff]  ;;  %v18881_v21 = vld [vmem:[#allocation56_spill] sm:$0xff] }
 0xe92   :  { %v8400_v4 = vrot.slane %v8392_v49, %v18837_v20  ;;  %v18882_v49 = vld [vmem:[#allocation29_spill] sm:$0xff] }
 0xe93   :  { %v8407_v47 = vrot.slane %v8393_v61, %v18837_v20  ;;  %v18883_v61 = vld [vmem:[#allocation31_spill] sm:$0xff] }
 0xe95   :  { %v8408_v29 = vcombine.low %v8400_v4, %v8407_v47  ;;  %v18884_v4 = vld [vmem:[#allocation30_spill] sm:$0xff] }
 0xe97   :  { %v8415_v45 = vrot.slane %v8408_v29, %v18837_v20  ;;  %v18885_v29 = vld [vmem:[#allocation28_spill] sm:$0xff] }
 0xe99   :  { %v8417_v27 = vmul.f32 %v10806_v26, %v8415_v45  ;;  %v18886_v45 = vld [vmem:[#allocation33_spill] sm:$0xff] }
 0xe9b   :  { %v17043_v25 = vrot.slane %v8417_v27, %v18838_v40  ;;  %v17046_v54 = vrot.slane %v8417_v27, %v18839_v57  ;;  %v17049_v19 = vrot.slane %v8417_v27, %v18877_v5  ;;  %v17052_v41 = vrot.slane %v8417_v27, %v18878_v59 }
 0xe9d   :  { %v8439_v3 = vmul.f32 %v17043_v25, %v8212_v30  ;;  %v8440_v32 = vmul.f32 %v17046_v54, %v8213_v62  ;;  %v8441_v52 = vmul.f32 %v17049_v19, %v8214_v33  ;;  %v8442_v53 = vmul.f32 %v17052_v41, %v8215_v43 }
 0xe9e   :  { %v17060_v60 = vmul.f32 %v17043_v25, %v16716_v39  ;;  %v17064_v0 = vmul.f32 %v17046_v54, %v16720_v42  ;;  %v17068_v48 = vmul.f32 %v17049_v19, %v16718_v24  ;;  %v17072_v30 = vmul.f32 %v17052_v41, %v16722_v1 }
 0xe9f   :  { %v8447_v62 = vcombine.low %v8439_v3, %v8440_v32  ;;  %v8448_v33 = vcombine.low %v8441_v52, %v8442_v53  ;;  %v17076_v43 = vmul.f32 %v17043_v25, %v16732_v9  ;;  %v17080_v39 = vmul.f32 %v17046_v54, %v16744_v17  ;;  %v18887_v3 = vld [vmem:[#allocation35_spill] sm:$0xff]  ;;  %v18888_v52 = vld [vmem:[#allocation34_spill] sm:$0xff] }
 0xea0   :  { %v17084_v42 = vmul.f32 %v17049_v19, %v16734_v50  ;;  %v17088_v24 = vmul.f32 %v17052_v41, %v16746_v36  ;;  %v17092_v1 = vmul.f32 %v17043_v25, %v16756_v22  ;;  %v17096_v9 = vmul.f32 %v17046_v54, %v16766_v12 }
 0xea1   :  { %v8455_v56 = vrot.slane %v8447_v62, %v18837_v20  ;;  %v8462_v17 = vrot.slane %v8448_v33, %v18837_v20  ;;  %v17102_v50 = vmul.f32 %v17049_v19, %v16758_v35  ;;  %v17106_v36 = vmul.f32 %v17052_v41, %v16768_v38  ;;  %v18889_v62 = vld [vmem:[#allocation32_spill] sm:$0xff] }
 0xea2   :  { %v17110_v22 = vmul.f32 %v17043_v25, %v16776_v55  ;;  %v17114_v12 = vmul.f32 %v17046_v54, %v16783_v2  ;;  %v17118_v44 = vmul.f32 %v17049_v19, %v16778_v31  ;;  %v17122_v35 = vmul.f32 %v17052_v41, %v16785_v13  ;;  %v10807_v31 = vld [vmem:[%s18670_s12 + $0x70] ss:$8 sm:$0xf] }
 0xea3   :  { %v8463_v63 = vcombine.low %v8455_v56, %v8462_v17  ;;  %v17126_v38 = vmul.f32 %v17043_v25, %v16796_v34  ;;  %v17130_v55 = vmul.f32 %v17046_v54, %v16806_v46  ;;  %v17134_v2 = vmul.f32 %v17049_v19, %v16798_v14  ;;  %v18890_v56 = vld [vmem:[#allocation37_spill] sm:$0xff] }
 0xea4   :  { %v17141_v13 = vmul.f32 %v17052_v41, %v16808_v16  ;;  %v17145_v34 = vmul.f32 %v17043_v25, %v16816_v10  ;;  %v17149_v46 = vmul.f32 %v17046_v54, %v16823_v51  ;;  %v17153_v14 = vmul.f32 %v17049_v19, %v16818_v23 }
 0xea5   :  { %v8470_v15 = vrot.slane %v8463_v63, %v18837_v20  ;;  %v17158_v37 = vmul.f32 %v17052_v41, %v16825_v7  ;;  %v17162_v16 = vmul.f32 %v17043_v25, %v16836_v18  ;;  %v17166_v10 = vmul.f32 %v17046_v54, %v16846_v8  ;;  %v18879_v20 = vld [vmem:[#allocation61_spill] sm:$0xff]  ;;  %v18891_v63 = vld [vmem:[#allocation39_spill] sm:$0xff] }
 0xea6   :  { %v17170_v51 = vmul.f32 %v17049_v19, %v16838_v58  ;;  %v17174_v23 = vmul.f32 %v17052_v41, %v16848_v28  ;;  %v17178_v7 = vmul.f32 %v17043_v25, %v18879_v20  ;;  %v17182_v18 = vmul.f32 %v17046_v54, %v18880_v6  ;;  %v18893_v6 = vld [vmem:[#allocation36_spill] sm:$0xff] }
 0xea7   :  { %v8472_v11 = vsub.f32 %v10807_v31, %v8470_v15  ;;  %v17186_v8 = vmul.f32 %v17049_v19, %v18881_v21  ;;  %v17190_v58 = vmul.f32 %v17052_v41, %v18882_v49  ;;  %v17194_v28 = vmul.f32 %v17043_v25, %v18883_v61  ;;  %v18892_v15 = vld [vmem:[#allocation38_spill] sm:$0xff]  ;;  %v18894_v49 = vld [vmem:[#allocation41_spill] sm:$0xff] }
 0xea8   :  { %v17198_v47 = vmul.f32 %v17046_v54, %v18884_v4  ;;  %v17202_v26 = vmul.f32 %v17049_v19, %v18885_v29  ;;  %v17206_v27 = vmul.f32 %v17052_v41, %v18886_v45  ;;  %v17210_v32 = vmul.f32 %v17043_v25, %v18887_v3  ;;  %v18895_v4 = vld [vmem:[#allocation43_spill] sm:$0xff]  ;;  %v18897_v45 = vld [vmem:[#allocation42_spill] sm:$0xff] }
 0xea9   :  { %v17214_v53 = vmul.f32 %v17046_v54, %v18888_v52  ;;  %v17218_v33 = vmul.f32 %v17049_v19, %v18889_v62  ;;  %v17222_v17 = vmul.f32 %v17052_v41, %v18890_v56  ;;  %v17226_v31 = vmul.f32 %v17043_v25, %v18891_v63  ;;  %v18899_v52 = vld [vmem:[#allocation40_spill] sm:$0xff]  ;;  %v18901_v56 = vld [vmem:[#allocation45_spill] sm:$0xff] }
 0xeaa   :  { %v17230_v20 = vmul.f32 %v17046_v54, %v18892_v15  ;;  %v17234_v21 = vmul.f32 %v17049_v19, %v18893_v6  ;;  %v17238_v61 = vmul.f32 %v17052_v41, %v18894_v49  ;;  %v17242_v29 = vmul.f32 %v17043_v25, %v18895_v4  ;;  %v18903_v15 = vld [vmem:[#allocation47_spill] sm:$0xff]  ;;  %v18905_v49 = vld [vmem:[#allocation46_spill] sm:$0xff] }
 0xeab   :  { %v17246_v3 = vmul.f32 %v17046_v54, %v18897_v45  ;;  %v17250_v62 = vmul.f32 %v17049_v19, %v18899_v52  ;;  %v17254_v63 = vmul.f32 %v17052_v41, %v18901_v56  ;;  %v17258_v6 = vmul.f32 %v17043_v25, %v18903_v15 }
 0xeac   :  { %18896 = vst [vmem:[#allocation61_spill] sm:$0xff] %v17242_v29  ;;  %v17262_v4 = vmul.f32 %v17046_v54, %v18905_v49  ;;  %v18907_v29 = vld [vmem:[#allocation44_spill] sm:$0xff] }
 0xead   :  { %18898 = vst [vmem:[#allocation59_spill] sm:$0xff] %v17246_v3  ;;  %18900 = vst [vmem:[#allocation56_spill] sm:$0xff] %v17250_v62  ;;  %v17266_v45 = vmul.f32 %v17049_v19, %v18907_v29  ;;  %v18909_v3 = vld [vmem:[#allocation49_spill] sm:$0xff]  ;;  %v18911_v62 = vld [vmem:[#allocation51_spill] sm:$0xff] }
 0xeae   :  { %18902 = vst [vmem:[#allocation29_spill] sm:$0xff] %v17254_v63  ;;  %18904 = vst [vmem:[#allocation31_spill] sm:$0xff] %v17258_v6  ;;  %v17270_v52 = vmul.f32 %v17052_v41, %v18909_v3  ;;  %v17274_v56 = vmul.f32 %v17043_v25, %v18911_v62  ;;  %v18913_v63 = vld [vmem:[#allocation50_spill] sm:$0xff]  ;;  %v18915_v6 = vld [vmem:[#allocation48_spill] sm:$0xff] }
 0xeaf   :  { %18906 = vst [vmem:[#allocation30_spill] sm:$0xff] %v17262_v4  ;;  %18908 = vst [vmem:[#allocation28_spill] sm:$0xff] %v17266_v45  ;;  %v17278_v15 = vmul.f32 %v17046_v54, %v18913_v63  ;;  %v17282_v49 = vmul.f32 %v17049_v19, %v18915_v6  ;;  %v18917_v4 = vld [vmem:[#allocation53_spill] sm:$0xff]  ;;  %v18919_v45 = vld [vmem:[#allocation55_spill] sm:$0xff] }
 0xeb0   :  { %18910 = vst [vmem:[#allocation33_spill] sm:$0xff] %v17270_v52  ;;  %18912 = vst [vmem:[#allocation35_spill] sm:$0xff] %v17274_v56  ;;  %v17286_v29 = vmul.f32 %v17052_v41, %v18917_v4  ;;  %v17290_v3 = vmul.f32 %v17043_v25, %v18919_v45  ;;  %v18921_v52 = vld [vmem:[#allocation54_spill] sm:$0xff]  ;;  %v18923_v56 = vld [vmem:[#allocation52_spill] sm:$0xff] }
 0xeb1   :  { %18914 = vst [vmem:[#allocation34_spill] sm:$0xff] %v17278_v15  ;;  %18916 = vst [vmem:[#allocation32_spill] sm:$0xff] %v17282_v49  ;;  %v17294_v62 = vmul.f32 %v17046_v54, %v18921_v52  ;;  %v17298_v63 = vmul.f32 %v17049_v19, %v18923_v56  ;;  %v18925_v15 = vld [vmem:[#allocation58_spill] sm:$0xff]  ;;  %v18926_v49 = vld [vmem:[#allocation57_spill] sm:$0xff] }
 0xeb2   :  { %18918 = vst [vmem:[#allocation37_spill] sm:$0xff] %v17286_v29  ;;  %18920 = vst [vmem:[#allocation39_spill] sm:$0xff] %v17290_v3  ;;  %v17302_v6 = vmul.f32 %v17052_v41, %v18925_v15  ;;  %v17306_v4 = vmul.f32 %v17043_v25, %v18926_v49  ;;  %v18927_v29 = vld [vmem:[#allocation63_spill] sm:$0xff]  ;;  %v18928_v3 = vld [vmem:[#allocation60_spill] sm:$0xff]  ;;  %v17324_v15 = vrot.slane %v8472_v11, %v18839_v57 }
 0xeb3   :  { %18922 = vst [vmem:[#allocation38_spill] sm:$0xff] %v17294_v62  ;;  %18924 = vst [vmem:[#allocation36_spill] sm:$0xff] %v17298_v63  ;;  %v17310_v45 = vmul.f32 %v17046_v54, %v18927_v29  ;;  %v17314_v52 = vmul.f32 %v17049_v19, %v18928_v3  ;;  %v18929_v62 = vld [vmem:[#allocation68_spill] sm:$0xff]  ;;  %v17321_v63 = vrot.slane %v8472_v11, %v18838_v40 }
 0xeb4   :  { %v17318_v56 = vmul.f32 %v17052_v41, %v18929_v62  ;;  %v17327_v25 = vrot.slane %v8472_v11, %v18877_v5  ;;  %v17330_v54 = vrot.slane %v8472_v11, %v18878_v59  ;;  %v8559_v11 = vadd.f32 %v17324_v15, %v17064_v0  ;;  %v18934_v59 = vld [vmem:[#allocation56_spill] sm:$0xff] }
 0xeb5   :  { %v17334_v19 = vadd.f32 %v17321_v63, %v17060_v60  ;;  %v17338_v41 = vadd.f32 %v17321_v63, %v17076_v43  ;;  %v17342_v49 = vadd.f32 %v17321_v63, %v17092_v1  ;;  %v17346_v29 = vadd.f32 %v17321_v63, %v17110_v22  ;;  %v18936_v57 = vld [vmem:[#allocation29_spill] sm:$0xff]  ;;  %v18938_v5 = vld [vmem:[#allocation31_spill] sm:$0xff] }
 0xeb6   :  { %v8560_v3 = vadd.f32 %v17327_v25, %v17068_v48  ;;  %v8561_v60 = vadd.f32 %v17330_v54, %v17072_v30  ;;  %v8563_v43 = vadd.f32 %v17324_v15, %v17080_v39  ;;  %v8564_v1 = vadd.f32 %v17327_v25, %v17084_v42  ;;  %v18940_v40 = vld [vmem:[#allocation30_spill] sm:$0xff] }
 0xeb7   :  { %v8565_v62 = vadd.f32 %v17330_v54, %v17088_v24  ;;  %v8567_v22 = vadd.f32 %v17324_v15, %v17096_v9  ;;  %v17364_v0 = vadd.f32 %v17327_v25, %v17102_v50  ;;  %v17368_v48 = vadd.f32 %v17330_v54, %v17106_v36 }
 0xeb8   :  { %v17372_v30 = vadd.f32 %v17324_v15, %v17114_v12  ;;  %v17376_v39 = vadd.f32 %v17327_v25, %v17118_v44  ;;  %v17380_v42 = vadd.f32 %v17330_v54, %v17122_v35  ;;  %v17384_v24 = vadd.f32 %v17321_v63, %v17126_v38 }
 0xeb9   :  { %v17388_v9 = vadd.f32 %v17324_v15, %v17130_v55  ;;  %v17392_v50 = vadd.f32 %v17327_v25, %v17134_v2  ;;  %v17396_v36 = vadd.f32 %v17330_v54, %v17141_v13  ;;  %v17400_v12 = vadd.f32 %v17321_v63, %v17145_v34 }
 0xeba   :  { %v17404_v44 = vadd.f32 %v17324_v15, %v17149_v46  ;;  %v17408_v35 = vadd.f32 %v17327_v25, %v17153_v14  ;;  %v17412_v38 = vadd.f32 %v17330_v54, %v17158_v37  ;;  %v17416_v55 = vadd.f32 %v17321_v63, %v17162_v16 }
 0xebb   :  { %v17420_v2 = vadd.f32 %v17324_v15, %v17166_v10  ;;  %v17424_v13 = vadd.f32 %v17327_v25, %v17170_v51  ;;  %v17428_v34 = vadd.f32 %v17330_v54, %v17174_v23  ;;  %v17432_v46 = vadd.f32 %v17321_v63, %v17178_v7 }
 0xebc   :  { %v17436_v14 = vadd.f32 %v17324_v15, %v17182_v18  ;;  %v17440_v37 = vadd.f32 %v17327_v25, %v17186_v8  ;;  %v17444_v16 = vadd.f32 %v17330_v54, %v17190_v58  ;;  %v17448_v10 = vadd.f32 %v17321_v63, %v17194_v28 }
 0xebd   :  { %v17452_v51 = vadd.f32 %v17324_v15, %v17198_v47  ;;  %v17456_v23 = vadd.f32 %v17327_v25, %v17202_v26  ;;  %v17460_v7 = vadd.f32 %v17330_v54, %v17206_v27  ;;  %v17464_v18 = vadd.f32 %v17321_v63, %v17210_v32 }
 0xebe   :  { %v17468_v8 = vadd.f32 %v17324_v15, %v17214_v53  ;;  %v17472_v58 = vadd.f32 %v17327_v25, %v17218_v33  ;;  %v17476_v28 = vadd.f32 %v17330_v54, %v17222_v17  ;;  %v17480_v47 = vadd.f32 %v17321_v63, %v17226_v31  ;;  %v18930_v53 = vld [vmem:[#allocation61_spill] sm:$0xff]  ;;  %v18932_v17 = vld [vmem:[#allocation59_spill] sm:$0xff] }
 0xebf   :  { %v17484_v26 = vadd.f32 %v17324_v15, %v17230_v20  ;;  %v17488_v27 = vadd.f32 %v17327_v25, %v17234_v21  ;;  %v17492_v32 = vadd.f32 %v17330_v54, %v17238_v61  ;;  %v17496_v33 = vadd.f32 %v17321_v63, %v18930_v53 }
 0xec0   :  { %v17500_v31 = vadd.f32 %v17324_v15, %v18932_v17  ;;  %v17504_v20 = vadd.f32 %v17327_v25, %v18934_v59  ;;  %v17508_v21 = vadd.f32 %v17330_v54, %v18936_v57  ;;  %v17512_v61 = vadd.f32 %v17321_v63, %v18938_v5 }
 0xec1   :  { %18931 = vst [vmem:[#allocation41_spill] sm:$0xff] %v17496_v33  ;;  %v17516_v53 = vadd.f32 %v17324_v15, %v18940_v40  ;;  %v18942_v33 = vld [vmem:[#allocation28_spill] sm:$0xff]  ;;  %12489 = vtanh.f32 %v17334_v19 }
 0xec2   :  { %18933 = vst [vmem:[#allocation43_spill] sm:$0xff] %v17500_v31  ;;  %18935 = vst [vmem:[#allocation42_spill] sm:$0xff] %v17504_v20  ;;  %v17520_v17 = vadd.f32 %v17327_v25, %v18942_v33  ;;  %v18944_v31 = vld [vmem:[#allocation33_spill] sm:$0xff]  ;;  %v18946_v20 = vld [vmem:[#allocation35_spill] sm:$0xff]  ;;  %12491 = vtanh.f32 %v8559_v11 }
 0xec3   :  { %18937 = vst [vmem:[#allocation40_spill] sm:$0xff] %v17508_v21  ;;  %18939 = vst [vmem:[#allocation45_spill] sm:$0xff] %v17512_v61  ;;  %v17524_v59 = vadd.f32 %v17330_v54, %v18944_v31  ;;  %v17528_v57 = vadd.f32 %v17321_v63, %v18946_v20  ;;  %v18948_v21 = vld [vmem:[#allocation34_spill] sm:$0xff]  ;;  %v18949_v61 = vld [vmem:[#allocation32_spill] sm:$0xff]  ;;  %12493 = vtanh.f32 %v8560_v3 }
 0xec4   :  { %18941 = vst [vmem:[#allocation47_spill] sm:$0xff] %v17516_v53  ;;  %18943 = vst [vmem:[#allocation46_spill] sm:$0xff] %v17520_v17  ;;  %v17532_v5 = vadd.f32 %v17324_v15, %v18948_v21  ;;  %v17536_v40 = vadd.f32 %v17327_v25, %v18949_v61  ;;  %v18950_v53 = vld [vmem:[#allocation37_spill] sm:$0xff]  ;;  %v18951_v17 = vld [vmem:[#allocation39_spill] sm:$0xff]  ;;  %v17556_v61 = vadd.f32 %v17330_v54, %v17302_v6  ;;  %12495 = vtanh.f32 %v8561_v60 }
 0xec5   :  { %18945 = vst [vmem:[#allocation44_spill] sm:$0xff] %v17524_v59  ;;  %18947 = vst [vmem:[#allocation49_spill] sm:$0xff] %v17528_v57  ;;  %v17540_v33 = vadd.f32 %v17330_v54, %v18950_v53  ;;  %v17544_v31 = vadd.f32 %v17321_v63, %v18951_v17  ;;  %v18952_v59 = vld [vmem:[#allocation38_spill] sm:$0xff]  ;;  %v18953_v57 = vld [vmem:[#allocation36_spill] sm:$0xff]  ;;  %v17560_v53 = vadd.f32 %v17321_v63, %v17306_v4  ;;  %12497 = vtanh.f32 %v17338_v41 }
 0xec6   :  { %v17548_v20 = vadd.f32 %v17324_v15, %v18952_v59  ;;  %v17552_v21 = vadd.f32 %v17327_v25, %v18953_v57  ;;  %v17564_v17 = vadd.f32 %v17324_v15, %v17310_v45  ;;  %v17568_v59 = vadd.f32 %v17327_v25, %v17314_v52 }
 0xec7   :  { %v17572_v57 = vadd.f32 %v17330_v54, %v17318_v56  ;;  %12499 = vtanh.f32 %v8563_v43 }
 0xec8   :  { %12501 = vtanh.f32 %v8564_v1 }
 0xec9   :  { %12503 = vtanh.f32 %v8565_v62 }
 0xeca   :  { %12505 = vtanh.f32 %v17342_v49 }
 0xecb   :  { %12507 = vtanh.f32 %v8567_v22  ;;  %v17577_v63 = vpop.eup %12489 }
 0xecc   :  { %12509 = vtanh.f32 %v17364_v0  ;;  %v17580_v6 = vpop.eup %12491 }
 0xecd   :  { %12511 = vtanh.f32 %v17368_v48  ;;  %v17583_v4 = vpop.eup %12493 }
 0xece   :  { %12513 = vtanh.f32 %v17346_v29  ;;  %v17586_v45 = vpop.eup %12495 }
 0xecf   :  { %12515 = vtanh.f32 %v17372_v30  ;;  %v17589_v52 = vpop.eup %12497 }
 0xed0   :  { %12517 = vtanh.f32 %v17376_v39 }
 0xed1   :  { %v17592_v56 = vpop.eup %12499  ;;  %12519 = vtanh.f32 %v17380_v42 }
 0xed2   :  { %v17595_v15 = vpop.eup %12501  ;;  %12521 = vtanh.f32 %v17384_v24 }
 0xed3   :  { %v17598_v25 = vpop.eup %12503  ;;  %12523 = vtanh.f32 %v17388_v9 }
 0xed4   :  { %v17601_v54 = vpop.eup %12505  ;;  %12525 = vtanh.f32 %v17392_v50 }
 0xed5   :  { %v17604_v19 = vpop.eup %12507  ;;  %12527 = vtanh.f32 %v17396_v36 }
 0xed6   :  { %v17607_v41 = vpop.eup %12509  ;;  %12529 = vtanh.f32 %v17400_v12 }
 0xed7   :  { %v17610_v49 = vpop.eup %12511  ;;  %12531 = vtanh.f32 %v17404_v44 }
 0xed8   :  { %v17613_v29 = vpop.eup %12513  ;;  %12533 = vtanh.f32 %v17408_v35 }
 0xed9   :  { %v17616_v11 = vpop.eup %12515  ;;  %12535 = vtanh.f32 %v17412_v38 }
 0xeda   :  { %v17619_v3 = vpop.eup %12517  ;;  %12537 = vtanh.f32 %v17416_v55 }
 0xedb   :  { %v17622_v60 = vpop.eup %12519  ;;  %12539 = vtanh.f32 %v17420_v2 }
 0xedc   :  { %v17625_v43 = vpop.eup %12521  ;;  %12541 = vtanh.f32 %v17424_v13  ;;  %v18954_v13 = vld [vmem:[#allocation41_spill] sm:$0xff] }
 0xedd   :  { %v17628_v1 = vpop.eup %12523  ;;  %12543 = vtanh.f32 %v17428_v34 }
 0xede   :  { %v17631_v62 = vpop.eup %12525  ;;  %12545 = vtanh.f32 %v17432_v46  ;;  %v18955_v46 = vld [vmem:[#allocation43_spill] sm:$0xff] }
 0xedf   :  { %v17634_v22 = vpop.eup %12527  ;;  %12547 = vtanh.f32 %v17436_v14 }
 0xee0   :  { %v17637_v0 = vpop.eup %12529  ;;  %12549 = vtanh.f32 %v17440_v37  ;;  %v18956_v37 = vld [vmem:[#allocation42_spill] sm:$0xff] }
 0xee1   :  { %v17640_v48 = vpop.eup %12531  ;;  %12551 = vtanh.f32 %v17444_v16 }
 0xee2   :  { %v17643_v30 = vpop.eup %12533  ;;  %12553 = vtanh.f32 %v17448_v10  ;;  %v18957_v10 = vld [vmem:[#allocation40_spill] sm:$0xff] }
 0xee3   :  { %v17646_v39 = vpop.eup %12535  ;;  %12555 = vtanh.f32 %v17452_v51 }
 0xee4   :  { %v17649_v42 = vpop.eup %12537  ;;  %12557 = vtanh.f32 %v17456_v23  ;;  %v18958_v23 = vld [vmem:[#allocation45_spill] sm:$0xff] }
 0xee5   :  { %v17652_v24 = vpop.eup %12539  ;;  %12559 = vtanh.f32 %v17460_v7 }
 0xee6   :  { %v17655_v9 = vpop.eup %12541  ;;  %12561 = vtanh.f32 %v17464_v18  ;;  %v18959_v18 = vld [vmem:[#allocation47_spill] sm:$0xff] }
 0xee7   :  { %v17658_v50 = vpop.eup %12543  ;;  %12563 = vtanh.f32 %v17468_v8 }
 0xee8   :  { %v17661_v36 = vpop.eup %12545  ;;  %12565 = vtanh.f32 %v17472_v58  ;;  %v18960_v58 = vld [vmem:[#allocation46_spill] sm:$0xff] }
 0xee9   :  { %v17664_v12 = vpop.eup %12547  ;;  %12567 = vtanh.f32 %v17476_v28 }
 0xeea   :  { %v17667_v44 = vpop.eup %12549  ;;  %12569 = vtanh.f32 %v17480_v47  ;;  %v18961_v47 = vld [vmem:[#allocation44_spill] sm:$0xff] }
 0xeeb   :  { %v17670_v35 = vpop.eup %12551  ;;  %12571 = vtanh.f32 %v17484_v26 }
 0xeec   :  { %v17673_v38 = vpop.eup %12553  ;;  %12573 = vtanh.f32 %v17488_v27  ;;  %v18963_v27 = vld [vmem:[#allocation49_spill] sm:$0xff] }
 0xeed   :  { %v17676_v55 = vpop.eup %12555  ;;  %12575 = vtanh.f32 %v17492_v32 }
 0xeee   :  { %v17679_v2 = vpop.eup %12557  ;;  %12577 = vtanh.f32 %v18954_v13 }
 0xeef   :  { %v17682_v34 = vpop.eup %12559  ;;  %12579 = vtanh.f32 %v18955_v46 }
 0xef0   :  { %v17685_v14 = vpop.eup %12561  ;;  %12581 = vtanh.f32 %v18956_v37 }
 0xef1   :  { %v17688_v16 = vpop.eup %12563  ;;  %12583 = vtanh.f32 %v18957_v10 }
 0xef2   :  { %v17691_v51 = vpop.eup %12565  ;;  %12585 = vtanh.f32 %v18958_v23 }
 0xef3   :  { %v17694_v7 = vpop.eup %12567  ;;  %12587 = vtanh.f32 %v18959_v18 }
 0xef4   :  { %v17697_v8 = vpop.eup %12569  ;;  %12589 = vtanh.f32 %v18960_v58 }
 0xef5   :  { %v17700_v28 = vpop.eup %12571  ;;  %12591 = vtanh.f32 %v18961_v47 }
 0xef6   :  { %v17703_v26 = vpop.eup %12573  ;;  %12593 = vtanh.f32 %v18963_v27 }
 0xef7   :  { %18962 = vst [vmem:[#allocation51_spill] sm:$0xff] %v17703_v26  ;;  %v17706_v32 = vpop.eup %12575  ;;  %12595 = vtanh.f32 %v17532_v5 }
 0xef8   :  { %v17709_v13 = vpop.eup %12577  ;;  %12597 = vtanh.f32 %v17536_v40 }
 0xef9   :  { %v17712_v46 = vpop.eup %12579  ;;  %12599 = vtanh.f32 %v17540_v33 }
 0xefa   :  { %v17715_v37 = vpop.eup %12581  ;;  %12601 = vtanh.f32 %v17544_v31 }
 0xefb   :  { %18964 = vst [vmem:[#allocation50_spill] sm:$0xff] %v17715_v37  ;;  %v17718_v10 = vpop.eup %12583  ;;  %12603 = vtanh.f32 %v17548_v20 }
 0xefc   :  { %18965 = vst [vmem:[#allocation48_spill] sm:$0xff] %v17718_v10  ;;  %v17721_v23 = vpop.eup %12585  ;;  %12605 = vtanh.f32 %v17552_v21 }
 0xefd   :  { %v17724_v5 = vpop.eup %12587  ;;  %12607 = vtanh.f32 %v17556_v61 }
 0xefe   :  { %v17727_v40 = vpop.eup %12589  ;;  %12609 = vtanh.f32 %v17560_v53 }
 0xeff   :  { %18966 = vst [vmem:[#allocation53_spill] sm:$0xff] %v17727_v40  ;;  %v17730_v33 = vpop.eup %12591  ;;  %12611 = vtanh.f32 %v17564_v17 }
 0xf00   :  { %18967 = vst [vmem:[#allocation55_spill] sm:$0xff] %v17730_v33  ;;  %v17733_v31 = vpop.eup %12593  ;;  %12613 = vtanh.f32 %v17568_v59 }
 0xf01   :  { %v17736_v20 = vpop.eup %12595  ;;  %12615 = vtanh.f32 %v17572_v57 }
 0xf02   :  { %v17739_v21 = vpop.eup %12597 }
 0xf03   :  { %18968 = vst [vmem:[#allocation54_spill] sm:$0xff] %v17739_v21  ;;  %v17741_v18 = vpop.eup %12599 }
 0xf04   :  { %18969 = vst [vmem:[#allocation52_spill] sm:$0xff] %v17741_v18  ;;  %v17743_v61 = vpop.eup %12601 }
 0xf05   :  { %v17745_v58 = vpop.eup %12603 }
 0xf06   :  { %v17747_v53 = vpop.eup %12605 }
 0xf07   :  { %18970 = vst [vmem:[#allocation58_spill] sm:$0xff] %v17747_v53  ;;  %v17749_v47 = vpop.eup %12607 }
 0xf08   :  { %18971 = vst [vmem:[#allocation57_spill] sm:$0xff] %v17749_v47  ;;  %v17751_v17 = vpop.eup %12609 }
 0xf09   :  { %v17753_v27 = vpop.eup %12611 }
 0xf0a   :  { %v17755_v59 = vpop.eup %12613 }
 0xf0b   :  { %18972 = vst [vmem:[#allocation63_spill] sm:$0xff] %v17755_v59  ;;  %v17757_v40 = vpop.eup %12615 }
 0xf0c   :  { %18973 = vst [vmem:[#allocation60_spill] sm:$0xff] %v17757_v40 }
 0xf0d   :  { %12985 = dma.done.wait [#allocation5 + $0x2], 28672 }
 0xf0e   :  { %12986 = vsyncadd [#allocation5 + $0x2], 4294938624  ;;  %v17761_v57 = vpack.c.bf16 %v17592_v56, %v17580_v6  ;;  %v8691_v53 = vld [vmem:[#allocation4 + $0x8] sm:$0xff]  ;;  %v8693_v47 = vld [vmem:[#allocation4 + $0x18] sm:$0xff] }
 0xf0f   :  { %v8690_v21 = vld [vmem:[#allocation4] sm:$0xff]  ;;  %8986 = vmatprep.subr.bf16.mxu0 %v8691_v53  ;;  %9212 = vmatprep.subr.bf16.mxu1 %v8693_v47  ;;  %v8692_v18 = vld [vmem:[#allocation4 + $0x10] sm:$0xff]  ;;  %v8697_v40 = vld [vmem:[#allocation4 + $0x38] sm:$0xff] }
 0xf10   :  { %18974 = vst [vmem:[#allocation68_spill] sm:$0xff] %v17761_v57  ;;  %9018 = vmatprep.mubr.bf16.mxu0 %v17761_v57  ;;  %9244 = vmatprep.mubr.bf16.mxu1 %v17761_v57  ;;  %v8698_v33 = vld [vmem:[#allocation4 + $0x40] sm:$0xff]  ;;  %v8700_v59 = vld [vmem:[#allocation4 + $0x50] sm:$0xff]  ;;  %v8699_v37 = vld [vmem:[#allocation4 + $0x48] sm:$0xff] }
 0xf11   :  { %8987 = vmatpush1.bf16.msra.mxu0 %v8690_v21  ;;  %9213 = vmatpush1.bf16.msra.mxu1 %v8692_v18  ;;  %v8705_v6 = vld [vmem:[#allocation4 + $0x78] sm:$0xff]  ;;  %v8707_v56 = vld [vmem:[#allocation4 + $0x88] sm:$0xff]  ;;  %v8704_v57 = vld [vmem:[#allocation4 + $0x70] sm:$0xff] }
 0xf12   :  { %8988 = vmatprep.subr.bf16.mxu0 %v8698_v33  ;;  %9214 = vmatprep.subr.bf16.mxu1 %v8700_v59  ;;  %v8706_v26 = vld [vmem:[#allocation4 + $0x80] sm:$0xff]  ;;  %v8712_v10 = vld [vmem:[#allocation4 + $0xb0] sm:$0xff]  ;;  %v8711_v21 = vld [vmem:[#allocation4 + $0xa8] sm:$0xff] }
 0xf13   :  { %v8714_v53 = vld [vmem:[#allocation4 + $0xc0] sm:$0xff]  ;;  %v8713_v18 = vld [vmem:[#allocation4 + $0xb8] sm:$0xff]  ;;  %v8719_v33 = vld [vmem:[#allocation4 + $0xe8] sm:$0xff] }
 0xf14   :  { %v8721_v47 = vld [vmem:[#allocation4 + $0xf8] sm:$0xff]  ;;  %v8726_v59 = vld [vmem:[#allocation4 + $0x120] sm:$0xff] }
 0xf15   :  { %8989 = vmatpush1.bf16.msra.mxu0 %v8697_v40  ;;  %9215 = vmatpush1.bf16.msra.mxu1 %v8699_v37  ;;  %v8718_v40 = vld [vmem:[#allocation4 + $0xe0] sm:$0xff]  ;;  %v8720_v37 = vld [vmem:[#allocation4 + $0xf0] sm:$0xff] }
 0xf16   :  { %8990 = vmatprep.subr.bf16.mxu0 %v8705_v6  ;;  %9216 = vmatprep.subr.bf16.mxu1 %v8707_v56  ;;  %v8728_v6 = vld [vmem:[#allocation4 + $0x130] sm:$0xff]  ;;  %v8735_v56 = vld [vmem:[#allocation4 + $0x168] sm:$0xff] }
 0xf19   :  { %8991 = vmatpush1.bf16.msra.mxu0 %v8704_v57  ;;  %9217 = vmatpush1.bf16.msra.mxu1 %v8706_v26  ;;  %v8725_v57 = vld [vmem:[#allocation4 + $0x118] sm:$0xff]  ;;  %v8727_v26 = vld [vmem:[#allocation4 + $0x128] sm:$0xff] }
 0xf1a   :  { %8992 = vmatprep.subr.bf16.mxu0 %v8712_v10  ;;  %9218 = vmatprep.subr.bf16.mxu1 %v8714_v53  ;;  %v8733_v10 = vld [vmem:[#allocation4 + $0x158] sm:$0xff]  ;;  %v8732_v53 = vld [vmem:[#allocation4 + $0x150] sm:$0xff] }
 0xf1d   :  { %8993 = vmatpush1.bf16.msra.mxu0 %v8711_v21  ;;  %9219 = vmatpush1.bf16.msra.mxu1 %v8713_v18  ;;  %v8734_v21 = vld [vmem:[#allocation4 + $0x160] sm:$0xff]  ;;  %v8740_v18 = vld [vmem:[#allocation4 + $0x190] sm:$0xff] }
 0xf1e   :  { %8994 = vmatprep.subr.bf16.mxu0 %v8719_v33  ;;  %9220 = vmatprep.subr.bf16.mxu1 %v8721_v47  ;;  %v8742_v33 = vld [vmem:[#allocation4 + $0x1a0] sm:$0xff]  ;;  %v8739_v47 = vld [vmem:[#allocation4 + $0x188] sm:$0xff] }
 0xf21   :  { %8995 = vmatpush1.bf16.msra.mxu0 %v8718_v40  ;;  %9221 = vmatpush1.bf16.msra.mxu1 %v8720_v37  ;;  %v8741_v40 = vld [vmem:[#allocation4 + $0x198] sm:$0xff]  ;;  %v8747_v37 = vld [vmem:[#allocation4 + $0x1c8] sm:$0xff] }
 0xf22   :  { %8996 = vmatprep.subr.bf16.mxu0 %v8726_v59  ;;  %9222 = vmatprep.subr.bf16.mxu1 %v8728_v6  ;;  %v8749_v59 = vld [vmem:[#allocation4 + $0x1d8] sm:$0xff]  ;;  %v8746_v6 = vld [vmem:[#allocation4 + $0x1c0] sm:$0xff] }
 0xf25   :  { %8997 = vmatpush1.bf16.msra.mxu0 %v8725_v57  ;;  %9223 = vmatpush1.bf16.msra.mxu1 %v8727_v26  ;;  %v8748_v57 = vld [vmem:[#allocation4 + $0x1d0] sm:$0xff]  ;;  %v8754_v26 = vld [vmem:[#allocation4 + $0x200] sm:$0xff] }
 0xf26   :  { %8998 = vmatprep.subr.bf16.mxu0 %v8733_v10  ;;  %9224 = vmatprep.subr.bf16.mxu1 %v8735_v56  ;;  %v8756_v10 = vld [vmem:[#allocation4 + $0x210] sm:$0xff]  ;;  %v8753_v56 = vld [vmem:[#allocation4 + $0x1f8] sm:$0xff] }
 0xf29   :  { %8999 = vmatpush1.bf16.msra.mxu0 %v8732_v53  ;;  %9225 = vmatpush1.bf16.msra.mxu1 %v8734_v21  ;;  %v8755_v53 = vld [vmem:[#allocation4 + $0x208] sm:$0xff]  ;;  %v8761_v21 = vld [vmem:[#allocation4 + $0x238] sm:$0xff] }
 0xf2a   :  { %9000 = vmatprep.subr.bf16.mxu0 %v8740_v18  ;;  %9226 = vmatprep.subr.bf16.mxu1 %v8742_v33  ;;  %v8763_v18 = vld [vmem:[#allocation4 + $0x248] sm:$0xff]  ;;  %v8760_v33 = vld [vmem:[#allocation4 + $0x230] sm:$0xff] }
 0xf2d   :  { %9001 = vmatpush1.bf16.msra.mxu0 %v8739_v47  ;;  %9227 = vmatpush1.bf16.msra.mxu1 %v8741_v40  ;;  %v8762_v47 = vld [vmem:[#allocation4 + $0x240] sm:$0xff]  ;;  %v8768_v40 = vld [vmem:[#allocation4 + $0x270] sm:$0xff] }
 0xf2e   :  { %9002 = vmatprep.subr.bf16.mxu0 %v8747_v37  ;;  %9228 = vmatprep.subr.bf16.mxu1 %v8749_v59  ;;  %v8770_v37 = vld [vmem:[#allocation4 + $0x280] sm:$0xff]  ;;  %v8767_v59 = vld [vmem:[#allocation4 + $0x268] sm:$0xff] }
 0xf31   :  { %9003 = vmatpush1.bf16.msra.mxu0 %v8746_v6  ;;  %9229 = vmatpush1.bf16.msra.mxu1 %v8748_v57  ;;  %v8769_v6 = vld [vmem:[#allocation4 + $0x278] sm:$0xff]  ;;  %v8775_v57 = vld [vmem:[#allocation4 + $0x2a8] sm:$0xff] }
 0xf32   :  { %9004 = vmatprep.subr.bf16.mxu0 %v8754_v26  ;;  %9230 = vmatprep.subr.bf16.mxu1 %v8756_v10  ;;  %v8777_v26 = vld [vmem:[#allocation4 + $0x2b8] sm:$0xff]  ;;  %v8774_v10 = vld [vmem:[#allocation4 + $0x2a0] sm:$0xff] }
 0xf35   :  { %9005 = vmatpush1.bf16.msra.mxu0 %v8753_v56  ;;  %9231 = vmatpush1.bf16.msra.mxu1 %v8755_v53  ;;  %v8776_v56 = vld [vmem:[#allocation4 + $0x2b0] sm:$0xff]  ;;  %v8782_v53 = vld [vmem:[#allocation4 + $0x2e0] sm:$0xff] }
 0xf36   :  { %9006 = vmatprep.subr.bf16.mxu0 %v8761_v21  ;;  %9232 = vmatprep.subr.bf16.mxu1 %v8763_v18  ;;  %v8784_v21 = vld [vmem:[#allocation4 + $0x2f0] sm:$0xff]  ;;  %v8781_v18 = vld [vmem:[#allocation4 + $0x2d8] sm:$0xff] }
 0xf39   :  { %9007 = vmatpush1.bf16.msra.mxu0 %v8760_v33  ;;  %9233 = vmatpush1.bf16.msra.mxu1 %v8762_v47  ;;  %v8783_v33 = vld [vmem:[#allocation4 + $0x2e8] sm:$0xff]  ;;  %v8789_v47 = vld [vmem:[#allocation4 + $0x318] sm:$0xff] }
 0xf3a   :  { %9008 = vmatprep.subr.bf16.mxu0 %v8768_v40  ;;  %9234 = vmatprep.subr.bf16.mxu1 %v8770_v37  ;;  %v8791_v40 = vld [vmem:[#allocation4 + $0x328] sm:$0xff]  ;;  %v8788_v37 = vld [vmem:[#allocation4 + $0x310] sm:$0xff] }
 0xf3d   :  { %9009 = vmatpush1.bf16.msra.mxu0 %v8767_v59  ;;  %9235 = vmatpush1.bf16.msra.mxu1 %v8769_v6  ;;  %v8790_v59 = vld [vmem:[#allocation4 + $0x320] sm:$0xff]  ;;  %v8796_v6 = vld [vmem:[#allocation4 + $0x350] sm:$0xff] }
 0xf3e   :  { %9010 = vmatprep.subr.bf16.mxu0 %v8775_v57  ;;  %9236 = vmatprep.subr.bf16.mxu1 %v8777_v26  ;;  %v8798_v57 = vld [vmem:[#allocation4 + $0x360] sm:$0xff]  ;;  %v8795_v26 = vld [vmem:[#allocation4 + $0x348] sm:$0xff] }
 0xf41   :  { %9011 = vmatpush1.bf16.msra.mxu0 %v8774_v10  ;;  %9237 = vmatpush1.bf16.msra.mxu1 %v8776_v56  ;;  %v8797_v10 = vld [vmem:[#allocation4 + $0x358] sm:$0xff]  ;;  %v8803_v56 = vld [vmem:[#allocation4 + $0x388] sm:$0xff] }
 0xf42   :  { %9012 = vmatprep.subr.bf16.mxu0 %v8782_v53  ;;  %9238 = vmatprep.subr.bf16.mxu1 %v8784_v21  ;;  %v8805_v53 = vld [vmem:[#allocation4 + $0x398] sm:$0xff]  ;;  %v17767_v21 = vpack.c.bf16 %v17589_v52, %v17577_v63  ;;  %v8811_v52 = vld [vmem:[#allocation4 + $0x3c8] sm:$0xff] }
 0xf43   :  { %v8809_v63 = vld [vmem:[#allocation4 + $0x3b8] sm:$0xff] }
 0xf45   :  { %9013 = vmatpush1.bf16.msra.mxu0 %v8781_v18  ;;  %9239 = vmatpush1.bf16.msra.mxu1 %v8783_v33  ;;  %v8802_v18 = vld [vmem:[#allocation4 + $0x380] sm:$0xff]  ;;  %v8804_v33 = vld [vmem:[#allocation4 + $0x390] sm:$0xff] }
 0xf46   :  { %9014 = vmatprep.subr.bf16.mxu0 %v8789_v47  ;;  %9240 = vmatprep.subr.bf16.mxu1 %v8791_v40  ;;  %v8810_v47 = vld [vmem:[#allocation4 + $0x3c0] sm:$0xff]  ;;  %v8812_v40 = vld [vmem:[#allocation4 + $0x3d0] sm:$0xff] }
 0xf49   :  { %9015 = vmatpush1.bf16.msra.mxu0 %v8788_v37  ;;  %9241 = vmatpush1.bf16.msra.mxu1 %v8790_v59  ;;  %v17771_v37 = vpack.c.bf16 %v17616_v11, %v17604_v19  ;;  %v8817_v59 = vld [vmem:[#allocation4 + $0x3f8] sm:$0xff]  ;;  %v17779_v19 = vpack.c.bf16 %v17613_v29, %v17601_v54  ;;  %v8816_v11 = vld [vmem:[#allocation4 + $0x3f0] sm:$0xff]  ;;  %v8823_v54 = vld [vmem:[#allocation4 + $0x428] sm:$0xff] }
 0xf4a   :  { %9016 = vmatprep.subr.bf16.mxu0 %v8796_v6  ;;  %9242 = vmatprep.subr.bf16.mxu1 %v8798_v57  ;;  %v8819_v6 = vld [vmem:[#allocation4 + $0x408] sm:$0xff]  ;;  %v8818_v57 = vld [vmem:[#allocation4 + $0x400] sm:$0xff]  ;;  %v8825_v29 = vld [vmem:[#allocation4 + $0x438] sm:$0xff] }
 0xf4d   :  { %9017 = vmatpush1.bf16.msra.mxu0 %v8795_v26  ;;  %9243 = vmatpush1.bf16.msra.mxu1 %v8797_v10  ;;  %v8824_v26 = vld [vmem:[#allocation4 + $0x430] sm:$0xff]  ;;  %v8826_v10 = vld [vmem:[#allocation4 + $0x440] sm:$0xff] }
 0xf4e   :  { %9099 = vmatprep.subr.bf16.mxu0 %v8803_v56  ;;  %9325 = vmatprep.subr.bf16.mxu1 %v8805_v53  ;;  %v17783_v56 = vpack.c.bf16 %v17640_v48, %v17628_v1  ;;  %v8831_v53 = vld [vmem:[#allocation4 + $0x468] sm:$0xff]  ;;  %v17791_v1 = vpack.c.bf16 %v17637_v0, %v17625_v43  ;;  %v8830_v48 = vld [vmem:[#allocation4 + $0x460] sm:$0xff]  ;;  %v8837_v43 = vld [vmem:[#allocation4 + $0x498] sm:$0xff] }
 0xf4f   :  { %v8839_v0 = vld [vmem:[#allocation4 + $0x4a8] sm:$0xff] }
 0xf50   :  { %9019 = vmatmul.mubr.bf16.vlgmr.msra.gmra.mrb[128].mxu0 %v17767_v21  ;;  %9245 = vmatmul.mubr.bf16.vlgmr.msra.gmra.mrb[176].mxu1 %v17767_v21 }
 0xf51   :  { %9100 = vmatpush1.bf16.msra.mxu0 %v8802_v18  ;;  %9326 = vmatpush1.bf16.msra.mxu1 %v8804_v33  ;;  %v8833_v18 = vld [vmem:[#allocation4 + $0x478] sm:$0xff]  ;;  %v8832_v33 = vld [vmem:[#allocation4 + $0x470] sm:$0xff] }
 0xf52   :  { %9101 = vmatprep.subr.bf16.mxu0 %v8810_v47  ;;  %9327 = vmatprep.subr.bf16.mxu1 %v8812_v40  ;;  %v8838_v47 = vld [vmem:[#allocation4 + $0x4a0] sm:$0xff]  ;;  %v8840_v40 = vld [vmem:[#allocation4 + $0x4b0] sm:$0xff] }
 0xf53   :  { %9028 = vmatprep.mubr.bf16.mxu0 %v17771_v37  ;;  %9254 = vmatprep.mubr.bf16.mxu1 %v17771_v37 }
 0xf55   :  { %9102 = vmatpush1.bf16.msra.mxu0 %v8809_v63  ;;  %9328 = vmatpush1.bf16.msra.mxu1 %v8811_v52  ;;  %v17795_v63 = vpack.c.bf16 %v17664_v12, %v17652_v24  ;;  %v8845_v52 = vld [vmem:[#allocation4 + $0x4d8] sm:$0xff]  ;;  %v17803_v24 = vpack.c.bf16 %v17661_v36, %v17649_v42  ;;  %v8844_v12 = vld [vmem:[#allocation4 + $0x4d0] sm:$0xff]  ;;  %v8851_v42 = vld [vmem:[#allocation4 + $0x508] sm:$0xff] }
 0xf56   :  { %9103 = vmatprep.subr.bf16.mxu0 %v8817_v59  ;;  %9329 = vmatprep.subr.bf16.mxu1 %v8819_v6  ;;  %v8847_v59 = vld [vmem:[#allocation4 + $0x4e8] sm:$0xff]  ;;  %v8846_v6 = vld [vmem:[#allocation4 + $0x4e0] sm:$0xff]  ;;  %v8853_v36 = vld [vmem:[#allocation4 + $0x518] sm:$0xff] }
 0xf58   :  { %9029 = vmatmul.mubr.bf16.gmra.mrb[132].mxu0 %v17779_v19  ;;  %9255 = vmatmul.mubr.bf16.gmra.mrb[180].mxu1 %v17779_v19 }
 0xf59   :  { %9104 = vmatpush1.bf16.msra.mxu0 %v8816_v11  ;;  %9330 = vmatpush1.bf16.msra.mxu1 %v8818_v57  ;;  %v8852_v11 = vld [vmem:[#allocation4 + $0x510] sm:$0xff]  ;;  %v8854_v57 = vld [vmem:[#allocation4 + $0x520] sm:$0xff] }
 0xf5a   :  { %9105 = vmatprep.subr.bf16.mxu0 %v8824_v26  ;;  %9331 = vmatprep.subr.bf16.mxu1 %v8826_v10  ;;  %v17807_v26 = vpack.c.bf16 %v17688_v16, %v17676_v55  ;;  %v8859_v10 = vld [vmem:[#allocation4 + $0x548] sm:$0xff]  ;;  %v17815_v55 = vpack.c.bf16 %v17685_v14, %v17673_v38  ;;  %v8858_v16 = vld [vmem:[#allocation4 + $0x540] sm:$0xff]  ;;  %v8865_v38 = vld [vmem:[#allocation4 + $0x578] sm:$0xff] }
 0xf5b   :  { %9038 = vmatprep.mubr.bf16.mxu0 %v17783_v56  ;;  %9264 = vmatprep.mubr.bf16.mxu1 %v17783_v56  ;;  %v8867_v14 = vld [vmem:[#allocation4 + $0x588] sm:$0xff] }
 0xf5d   :  { %9106 = vmatpush1.bf16.msra.mxu0 %v8823_v54  ;;  %9332 = vmatpush1.bf16.msra.mxu1 %v8825_v29  ;;  %v8861_v54 = vld [vmem:[#allocation4 + $0x558] sm:$0xff]  ;;  %v8860_v29 = vld [vmem:[#allocation4 + $0x550] sm:$0xff] }
 0xf5e   :  { %9107 = vmatprep.subr.bf16.mxu0 %v8831_v53  ;;  %9333 = vmatprep.subr.bf16.mxu1 %v8833_v18  ;;  %v8866_v53 = vld [vmem:[#allocation4 + $0x580] sm:$0xff]  ;;  %v8868_v18 = vld [vmem:[#allocation4 + $0x590] sm:$0xff] }
 0xf60   :  { %9039 = vmatmul.mubr.bf16.gmra.mrb[136].mxu0 %v17791_v1  ;;  %9265 = vmatmul.mubr.bf16.gmra.mrb[184].mxu1 %v17791_v1 }
 0xf61   :  { %9108 = vmatpush1.bf16.msra.mxu0 %v8830_v48  ;;  %9334 = vmatpush1.bf16.msra.mxu1 %v8832_v33  ;;  %v17819_v48 = vpack.c.bf16 %v17712_v46, %v17700_v28  ;;  %v8873_v33 = vld [vmem:[#allocation4 + $0x5b8] sm:$0xff]  ;;  %v17827_v28 = vpack.c.bf16 %v17709_v13, %v17697_v8  ;;  %v8872_v46 = vld [vmem:[#allocation4 + $0x5b0] sm:$0xff]  ;;  %v8879_v8 = vld [vmem:[#allocation4 + $0x5e8] sm:$0xff] }
 0xf62   :  { %9109 = vmatprep.subr.bf16.mxu0 %v8838_v47  ;;  %9335 = vmatprep.subr.bf16.mxu1 %v8840_v40  ;;  %v8875_v47 = vld [vmem:[#allocation4 + $0x5c8] sm:$0xff]  ;;  %v8874_v40 = vld [vmem:[#allocation4 + $0x5c0] sm:$0xff]  ;;  %v8881_v13 = vld [vmem:[#allocation4 + $0x5f8] sm:$0xff] }
 0xf63   :  { %9048 = vmatprep.mubr.bf16.mxu0 %v17795_v63  ;;  %9274 = vmatprep.mubr.bf16.mxu1 %v17795_v63 }
 0xf65   :  { %9110 = vmatpush1.bf16.msra.mxu0 %v8837_v43  ;;  %9336 = vmatpush1.bf16.msra.mxu1 %v8839_v0  ;;  %v8880_v43 = vld [vmem:[#allocation4 + $0x5f0] sm:$0xff]  ;;  %v8882_v0 = vld [vmem:[#allocation4 + $0x600] sm:$0xff] }
 0xf66   :  { %9111 = vmatprep.subr.bf16.mxu0 %v8845_v52  ;;  %9337 = vmatprep.subr.bf16.mxu1 %v8847_v59  ;;  %v17831_v52 = vpack.c.bf16 %v17736_v20, %v17724_v5  ;;  %v8887_v59 = vld [vmem:[#allocation4 + $0x628] sm:$0xff]  ;;  %v17839_v5 = vpack.c.bf16 %v17733_v31, %v17721_v23  ;;  %v8886_v20 = vld [vmem:[#allocation4 + $0x620] sm:$0xff]  ;;  %v8893_v23 = vld [vmem:[#allocation4 + $0x658] sm:$0xff] }
 0xf67   :  { %v8895_v31 = vld [vmem:[#allocation4 + $0x668] sm:$0xff] }
 0xf68   :  { %9049 = vmatmul.mubr.bf16.gmra.mrb[140].mxu0 %v17803_v24  ;;  %9275 = vmatmul.mubr.bf16.gmra.mrb[188].mxu1 %v17803_v24 }
 0xf69   :  { %9112 = vmatpush1.bf16.msra.mxu0 %v8844_v12  ;;  %9338 = vmatpush1.bf16.msra.mxu1 %v8846_v6  ;;  %v8889_v12 = vld [vmem:[#allocation4 + $0x638] sm:$0xff]  ;;  %v8888_v6 = vld [vmem:[#allocation4 + $0x630] sm:$0xff] }
 0xf6a   :  { %9113 = vmatprep.subr.bf16.mxu0 %v8852_v11  ;;  %9339 = vmatprep.subr.bf16.mxu1 %v8854_v57  ;;  %v8894_v11 = vld [vmem:[#allocation4 + $0x660] sm:$0xff]  ;;  %v8896_v57 = vld [vmem:[#allocation4 + $0x670] sm:$0xff] }
 0xf6b   :  { %9058 = vmatprep.mubr.bf16.mxu0 %v17807_v26  ;;  %9284 = vmatprep.mubr.bf16.mxu1 %v17807_v26 }
 0xf6d   :  { %9114 = vmatpush1.bf16.msra.mxu0 %v8851_v42  ;;  %9340 = vmatpush1.bf16.msra.mxu1 %v8853_v36  ;;  %v17843_v42 = vpack.c.bf16 %v17753_v27, %v17745_v58  ;;  %v8901_v36 = vld [vmem:[#allocation4 + $0x698] sm:$0xff]  ;;  %v17851_v58 = vpack.c.bf16 %v17751_v17, %v17743_v61  ;;  %v8900_v27 = vld [vmem:[#allocation4 + $0x690] sm:$0xff]  ;;  %v8907_v61 = vld [vmem:[#allocation4 + $0x6c8] sm:$0xff] }
 0xf6e   :  { %9115 = vmatprep.subr.bf16.mxu0 %v8859_v10  ;;  %9341 = vmatprep.subr.bf16.mxu1 %v8861_v54  ;;  %v8903_v10 = vld [vmem:[#allocation4 + $0x6a8] sm:$0xff]  ;;  %v8902_v54 = vld [vmem:[#allocation4 + $0x6a0] sm:$0xff]  ;;  %v8909_v17 = vld [vmem:[#allocation4 + $0x6d8] sm:$0xff] }
 0xf70   :  { %9059 = vmatmul.mubr.bf16.gmra.mrb[144].mxu0 %v17815_v55  ;;  %9285 = vmatmul.mubr.bf16.gmra.mrb[192].mxu1 %v17815_v55 }
 0xf71   :  { %9116 = vmatpush1.bf16.msra.mxu0 %v8858_v16  ;;  %9342 = vmatpush1.bf16.msra.mxu1 %v8860_v29  ;;  %v8908_v16 = vld [vmem:[#allocation4 + $0x6d0] sm:$0xff]  ;;  %v8910_v29 = vld [vmem:[#allocation4 + $0x6e0] sm:$0xff] }
 0xf72   :  { %9117 = vmatprep.subr.bf16.mxu0 %v8866_v53  ;;  %9343 = vmatprep.subr.bf16.mxu1 %v8868_v18  ;;  %v17855_v53 = vpack.c.bf16 %v17598_v25, %v17586_v45  ;;  %v8695_v18 = vld [vmem:[#allocation4 + $0x28] sm:$0xff]  ;;  %v17863_v45 = vpack.c.bf16 %v17595_v15, %v17583_v4  ;;  %v8694_v25 = vld [vmem:[#allocation4 + $0x20] sm:$0xff]  ;;  %v8701_v4 = vld [vmem:[#allocation4 + $0x58] sm:$0xff] }
 0xf73   :  { %9068 = vmatprep.mubr.bf16.mxu0 %v17819_v48  ;;  %9294 = vmatprep.mubr.bf16.mxu1 %v17819_v48  ;;  %v8703_v15 = vld [vmem:[#allocation4 + $0x68] sm:$0xff] }
 0xf75   :  { %9118 = vmatpush1.bf16.msra.mxu0 %v8865_v38  ;;  %9344 = vmatpush1.bf16.msra.mxu1 %v8867_v14  ;;  %v8752_v38 = vld [vmem:[#allocation4 + $0x1f0] sm:$0xff] }
 0xf76   :  { %9119 = vmatprep.subr.bf16.mxu0 %v8873_v33  ;;  %9345 = vmatprep.subr.bf16.mxu1 %v8875_v47  ;;  %v8696_v14 = vld [vmem:[#allocation4 + $0x30] sm:$0xff]  ;;  %v17867_v33 = vpack.c.bf16 %v17622_v60, %v17610_v49  ;;  %v8702_v47 = vld [vmem:[#allocation4 + $0x60] sm:$0xff]  ;;  %v17875_v49 = vpack.c.bf16 %v17619_v3, %v17607_v41  ;;  %v17879_v60 = vpack.c.bf16 %v17646_v39, %v17634_v22  ;;  %v8773_v41 = vld [vmem:[#allocation4 + $0x298] sm:$0xff] }
 0xf77   :  { %v8715_v3 = vld [vmem:[#allocation4 + $0xc8] sm:$0xff]  ;;  %v17887_v22 = vpack.c.bf16 %v17643_v30, %v17631_v62  ;;  %v8717_v39 = vld [vmem:[#allocation4 + $0xd8] sm:$0xff]  ;;  %v8724_v62 = vld [vmem:[#allocation4 + $0x110] sm:$0xff] }
 0xf78   :  { %9069 = vmatmul.mubr.bf16.gmra.mrb[148].mxu0 %v17827_v28  ;;  %9295 = vmatmul.mubr.bf16.gmra.mrb[196].mxu1 %v17827_v28  ;;  %v8729_v30 = vld [vmem:[#allocation4 + $0x138] sm:$0xff] }
 0xf79   :  { %9120 = vmatpush1.bf16.msra.mxu0 %v8872_v46  ;;  %9346 = vmatpush1.bf16.msra.mxu1 %v8874_v40  ;;  %v8759_v46 = vld [vmem:[#allocation4 + $0x228] sm:$0xff]  ;;  %v8709_v40 = vld [vmem:[#allocation4 + $0x98] sm:$0xff] }
 0xf7a   :  { %9121 = vmatprep.subr.bf16.mxu0 %v8880_v43  ;;  %9347 = vmatprep.subr.bf16.mxu1 %v8882_v0  ;;  %v8766_v43 = vld [vmem:[#allocation4 + $0x260] sm:$0xff]  ;;  %v8708_v0 = vld [vmem:[#allocation4 + $0x90] sm:$0xff] }
 0xf7b   :  { %9078 = vmatprep.mubr.bf16.mxu0 %v17831_v52  ;;  %9304 = vmatprep.mubr.bf16.mxu1 %v17831_v52 }
 0xf7d   :  { %9122 = vmatpush1.bf16.msra.mxu0 %v8879_v8  ;;  %9348 = vmatpush1.bf16.msra.mxu1 %v8881_v13  ;;  %v8716_v8 = vld [vmem:[#allocation4 + $0xd0] sm:$0xff]  ;;  %v8710_v13 = vld [vmem:[#allocation4 + $0xa0] sm:$0xff] }
 0xf7e   :  { %9123 = vmatprep.subr.bf16.mxu0 %v8887_v59  ;;  %9349 = vmatprep.subr.bf16.mxu1 %v8889_v12  ;;  %v8723_v59 = vld [vmem:[#allocation4 + $0x108] sm:$0xff]  ;;  %v17891_v12 = vpack.c.bf16 %v17670_v35, %v17658_v50  ;;  %v8737_v50 = vld [vmem:[#allocation4 + $0x178] sm:$0xff]  ;;  %v17899_v35 = vpack.c.bf16 %v17667_v44, %v17655_v9  ;;  %v8794_v9 = vld [vmem:[#allocation4 + $0x340] sm:$0xff] }
 0xf7f   :  { %v8743_v44 = vld [vmem:[#allocation4 + $0x1a8] sm:$0xff] }
 0xf80   :  { %9079 = vmatmul.mubr.bf16.gmra.mrb[152].mxu0 %v17839_v5  ;;  %9305 = vmatmul.mubr.bf16.gmra.mrb[200].mxu1 %v17839_v5 }
 0xf81   :  { %9124 = vmatpush1.bf16.msra.mxu0 %v8886_v20  ;;  %9350 = vmatpush1.bf16.msra.mxu1 %v8888_v6  ;;  %v8722_v20 = vld [vmem:[#allocation4 + $0x100] sm:$0xff] }
 0xf82   :  { %9125 = vmatprep.subr.bf16.mxu0 %v8894_v11  ;;  %9351 = vmatprep.subr.bf16.mxu1 %v8896_v57  ;;  %v8730_v6 = vld [vmem:[#allocation4 + $0x140] sm:$0xff]  ;;  %v8780_v11 = vld [vmem:[#allocation4 + $0x2d0] sm:$0xff]  ;;  %v8787_v57 = vld [vmem:[#allocation4 + $0x308] sm:$0xff] }
 0xf83   :  { %9088 = vmatprep.mubr.bf16.mxu0 %v17843_v42  ;;  %9314 = vmatprep.mubr.bf16.mxu1 %v17843_v42 }
 0xf85   :  { %9126 = vmatpush1.bf16.msra.mxu0 %v8893_v23  ;;  %9352 = vmatpush1.bf16.msra.mxu1 %v8895_v31  ;;  %v17903_v23 = vpack.c.bf16 %v17694_v7, %v17682_v34  ;;  %v8736_v31 = vld [vmem:[#allocation4 + $0x170] sm:$0xff]  ;;  %v17911_v34 = vpack.c.bf16 %v17691_v51, %v17679_v2  ;;  %v8738_v7 = vld [vmem:[#allocation4 + $0x180] sm:$0xff]  ;;  %v8745_v2 = vld [vmem:[#allocation4 + $0x1b8] sm:$0xff] }
 0xf86   :  { %9127 = vmatprep.subr.bf16.mxu0 %v8901_v36  ;;  %9353 = vmatprep.subr.bf16.mxu1 %v8903_v10  ;;  %v8744_v36 = vld [vmem:[#allocation4 + $0x1b0] sm:$0xff]  ;;  %v8731_v10 = vld [vmem:[#allocation4 + $0x148] sm:$0xff]  ;;  %v8757_v51 = vld [vmem:[#allocation4 + $0x218] sm:$0xff] }
 0xf88   :  { %9089 = vmatmul.mubr.bf16.gmra.mrb[156].mxu0 %v17851_v58  ;;  %9315 = vmatmul.mubr.bf16.gmra.mrb[204].mxu1 %v17851_v58 }
 0xf89   :  { %9128 = vmatpush1.bf16.msra.mxu0 %v8900_v27  ;;  %9354 = vmatpush1.bf16.msra.mxu1 %v8902_v54  ;;  %v8751_v27 = vld [vmem:[#allocation4 + $0x1e8] sm:$0xff]  ;;  %v18975_v54 = vld [vmem:[#allocation48_spill] sm:$0xff] }
 0xf8a   :  { %9129 = vmatprep.subr.bf16.mxu0 %v8908_v16  ;;  %9355 = vmatprep.subr.bf16.mxu1 %v8910_v29  ;;  %v17915_v16 = vpack.c.bf16 %v18975_v54, %v17706_v32  ;;  %v8750_v29 = vld [vmem:[#allocation4 + $0x1e0] sm:$0xff]  ;;  %v8765_v32 = vld [vmem:[#allocation4 + $0x258] sm:$0xff] }
 0xf8b   :  { %9131 = vmatprep.mubr.bf16.mxu0 %v17855_v53  ;;  %9357 = vmatprep.mubr.bf16.mxu1 %v17855_v53  ;;  %v8814_v54 = vld [vmem:[#allocation4 + $0x3e0] sm:$0xff] }
 0xf8d   :  { %9130 = vmatpush1.bf16.msra.mxu0 %v8907_v61  ;;  %9356 = vmatpush1.bf16.msra.mxu1 %v8909_v17  ;;  %v8758_v61 = vld [vmem:[#allocation4 + $0x220] sm:$0xff]  ;;  %v8801_v17 = vld [vmem:[#allocation4 + $0x378] sm:$0xff] }
 0xf8e   :  { %9438 = vmatprep.subr.bf16.mxu0 %v8695_v18  ;;  %10925 = vmatprep.subr.bf16.mxu1 %v8752_v38  ;;  %v8864_v18 = vld [vmem:[#allocation4 + $0x570] sm:$0xff]  ;;  %v18976_v38 = vld [vmem:[#allocation51_spill] sm:$0xff] }
 0xf90   :  { %9132 = vmatmul.mubr.bf16.vlgmr.msra.gmra.mrb[128].mxu0 %v17863_v45  ;;  %9358 = vmatmul.mubr.bf16.vlgmr.msra.gmra.mrb[176].mxu1 %v17863_v45 }
 0xf91   :  { %9439 = vmatpush1.bf16.msra.mxu0 %v8694_v25  ;;  %10926 = vmatpush3.bf16.msra.mxu1 %v8696_v14  ;;  %v18977_v25 = vld [vmem:[#allocation50_spill] sm:$0xff] }
 0xf92   :  { %9440 = vmatprep.subr.bf16.mxu0 %v8702_v47  ;;  %9141 = vmatprep.mubr.bf16.mxu0 %v17867_v33  ;;  %v17923_v14 = vpack.c.bf16 %v18977_v25, %v18976_v38  ;;  %v18978_v47 = vld [vmem:[#allocation55_spill] sm:$0xff]  ;;  %v8835_v25 = vld [vmem:[#allocation4 + $0x488] sm:$0xff] }
 0xf93   :  { %9367 = vmatprep.mubr.bf16.mxu1 %v17867_v33  ;;  %10927 = vmatprep.subr.bf16.mxu1 %v8759_v46  ;;  %v18979_v46 = vld [vmem:[#allocation52_spill] sm:$0xff]  ;;  %v8885_v38 = vld [vmem:[#allocation4 + $0x618] sm:$0xff] }
 0xf95   :  { %9441 = vmatpush1.bf16.msra.mxu0 %v8701_v4  ;;  %10928 = vmatpush3.bf16.msra.mxu1 %v8703_v15  ;;  %v17927_v4 = vpack.c.bf16 %v18979_v46, %v18978_v47  ;;  %v8764_v15 = vld [vmem:[#allocation4 + $0x250] sm:$0xff]  ;;  %v8829_v47 = vld [vmem:[#allocation4 + $0x458] sm:$0xff]  ;;  %v8834_v46 = vld [vmem:[#allocation4 + $0x480] sm:$0xff] }
 0xf96   :  { %9442 = vmatprep.subr.bf16.mxu0 %v8709_v40  ;;  %10929 = vmatprep.subr.bf16.mxu1 %v8766_v43  ;;  %v8772_v40 = vld [vmem:[#allocation4 + $0x290] sm:$0xff]  ;;  %v8771_v43 = vld [vmem:[#allocation4 + $0x288] sm:$0xff] }
 0xf98   :  { %9142 = vmatmul.mubr.bf16.gmra.mrb[132].mxu0 %v17875_v49  ;;  %9368 = vmatmul.mubr.bf16.gmra.mrb[180].mxu1 %v17875_v49 }
 0xf99   :  { %9443 = vmatpush1.bf16.msra.mxu0 %v8708_v0  ;;  %9151 = vmatprep.mubr.bf16.mxu0 %v17879_v60  ;;  %v8779_v0 = vld [vmem:[#allocation4 + $0x2c8] sm:$0xff] }
 0xf9a   :  { %9444 = vmatprep.subr.bf16.mxu0 %v8716_v8  ;;  %9377 = vmatprep.mubr.bf16.mxu1 %v17879_v60  ;;  %v18980_v8 = vld [vmem:[#allocation53_spill] sm:$0xff] }
 0xf9b   :  { %10930 = vmatpush3.bf16.msra.mxu1 %v8710_v13  ;;  %v18981_v13 = vld [vmem:[#allocation54_spill] sm:$0xff] }
 0xf9c   :  { %10931 = vmatprep.subr.bf16.mxu1 %v8773_v41  ;;  %v17935_v41 = vpack.c.bf16 %v18981_v13, %v18980_v8  ;;  %v8848_v8 = vld [vmem:[#allocation4 + $0x4f0] sm:$0xff] }
 0xf9d   :  { %9445 = vmatpush1.bf16.msra.mxu0 %v8715_v3  ;;  %v18982_v3 = vld [vmem:[#allocation57_spill] sm:$0xff]  ;;  %v8856_v13 = vld [vmem:[#allocation4 + $0x530] sm:$0xff] }
 0xf9e   :  { %9446 = vmatprep.subr.bf16.mxu0 %v8723_v59  ;;  %v18983_v59 = vld [vmem:[#allocation60_spill] sm:$0xff] }
 0xf9f   :  { %10932 = vmatpush3.bf16.msra.mxu1 %v8717_v39  ;;  %v17939_v39 = vpack.c.bf16 %v18983_v59, %v18982_v3  ;;  %v8906_v3 = vld [vmem:[#allocation4 + $0x6c0] sm:$0xff]  ;;  %v8863_v59 = vld [vmem:[#allocation4 + $0x568] sm:$0xff] }
 0xfa0   :  { %9152 = vmatmul.mubr.bf16.gmra.mrb[136].mxu0 %v17887_v22  ;;  %9378 = vmatmul.mubr.bf16.gmra.mrb[184].mxu1 %v17887_v22 }
 0xfa1   :  { %9447 = vmatpush1.bf16.msra.mxu0 %v8722_v20  ;;  %9161 = vmatprep.mubr.bf16.mxu0 %v17891_v12  ;;  %v8778_v20 = vld [vmem:[#allocation4 + $0x2c0] sm:$0xff] }
 0xfa2   :  { %9448 = vmatprep.subr.bf16.mxu0 %v8730_v6  ;;  %9387 = vmatprep.mubr.bf16.mxu1 %v17891_v12  ;;  %v8786_v6 = vld [vmem:[#allocation4 + $0x300] sm:$0xff] }
 0xfa3   :  { %10933 = vmatprep.subr.bf16.mxu1 %v8780_v11  ;;  %v8785_v11 = vld [vmem:[#allocation4 + $0x2f8] sm:$0xff] }
 0xfa4   :  { %10934 = vmatpush3.bf16.msra.mxu1 %v8724_v62  ;;  %v8793_v62 = vld [vmem:[#allocation4 + $0x338] sm:$0xff] }
 0xfa5   :  { %9449 = vmatpush1.bf16.msra.mxu0 %v8729_v30  ;;  %10935 = vmatprep.subr.bf16.mxu1 %v8787_v57  ;;  %v18984_v30 = vld [vmem:[#allocation58_spill] sm:$0xff]  ;;  %v18985_v57 = vld [vmem:[#allocation63_spill] sm:$0xff] }
 0xfa6   :  { %9450 = vmatprep.subr.bf16.mxu0 %v8737_v50  ;;  %v17947_v50 = vpack.c.bf16 %v18985_v57, %v18984_v30  ;;  %v8877_v30 = vld [vmem:[#allocation4 + $0x5d8] sm:$0xff]  ;;  %v8876_v57 = vld [vmem:[#allocation4 + $0x5d0] sm:$0xff] }
 0xfa8   :  { %9162 = vmatmul.mubr.bf16.gmra.mrb[140].mxu0 %v17899_v35  ;;  %9388 = vmatmul.mubr.bf16.gmra.mrb[188].mxu1 %v17899_v35 }
 0xfa9   :  { %9451 = vmatpush1.bf16.msra.mxu0 %v8736_v31  ;;  %9171 = vmatprep.mubr.bf16.mxu0 %v17903_v23  ;;  %v8792_v31 = vld [vmem:[#allocation4 + $0x330] sm:$0xff] }
 0xfaa   :  { %9452 = vmatprep.subr.bf16.mxu0 %v8744_v36  ;;  %9397 = vmatprep.mubr.bf16.mxu1 %v17903_v23  ;;  %v8800_v36 = vld [vmem:[#allocation4 + $0x370] sm:$0xff] }
 0xfab   :  { %10936 = vmatpush3.bf16.msra.mxu1 %v8731_v10  ;;  %v18986_v10 = vld [vmem:[#allocation68_spill] sm:$0xff] }
 0xfac   :  { %10937 = vmatprep.subr.bf16.mxu1 %v8794_v9  ;;  %v8799_v9 = vld [vmem:[#allocation4 + $0x368] sm:$0xff] }
 0xfad   :  { %9453 = vmatpush1.bf16.msra.mxu0 %v8743_v44  ;;  %v8807_v44 = vld [vmem:[#allocation4 + $0x3a8] sm:$0xff] }
 0xfae   :  { %9454 = vmatprep.subr.bf16.mxu0 %v8751_v27  ;;  %v8806_v27 = vld [vmem:[#allocation4 + $0x3a0] sm:$0xff] }
 0xfaf   :  { %10938 = vmatpush3.bf16.msra.mxu1 %v8738_v7  ;;  %v8808_v7 = vld [vmem:[#allocation4 + $0x3b0] sm:$0xff] }
 0xfb0   :  { %9172 = vmatmul.mubr.bf16.gmra.mrb[144].mxu0 %v17911_v34  ;;  %9398 = vmatmul.mubr.bf16.gmra.mrb[192].mxu1 %v17911_v34 }
 0xfb1   :  { %9455 = vmatpush1.bf16.msra.mxu0 %v8750_v29  ;;  %9181 = vmatprep.mubr.bf16.mxu0 %v17915_v16  ;;  %v8871_v29 = vld [vmem:[#allocation4 + $0x5a8] sm:$0xff] }
 0xfb2   :  { %9456 = vmatprep.subr.bf16.mxu0 %v8758_v61  ;;  %9407 = vmatprep.mubr.bf16.mxu1 %v17915_v16  ;;  %v8813_v61 = vld [vmem:[#allocation4 + $0x3d8] sm:$0xff] }
 0xfb3   :  { %10939 = vmatprep.subr.bf16.mxu1 %v8801_v17  ;;  %v8815_v17 = vld [vmem:[#allocation4 + $0x3e8] sm:$0xff] }
 0xfb4   :  { %10940 = vmatpush3.bf16.msra.mxu1 %v8745_v2  ;;  %v8821_v2 = vld [vmem:[#allocation4 + $0x418] sm:$0xff] }
 0xfb5   :  { %9457 = vmatpush1.bf16.msra.mxu0 %v8757_v51  ;;  %10989 = vmatprep.subr.bf16.mxu1 %v8864_v18  ;;  %v8878_v51 = vld [vmem:[#allocation4 + $0x5e0] sm:$0xff]  ;;  %v8820_v18 = vld [vmem:[#allocation4 + $0x410] sm:$0xff] }
 0xfb6   :  { %9458 = vmatprep.subr.bf16.mxu0 %v8765_v32  ;;  %v8828_v32 = vld [vmem:[#allocation4 + $0x450] sm:$0xff] }
 0xfb8   :  { %9182 = vmatmul.mubr.bf16.gmra.mrb[148].mxu0 %v17923_v14  ;;  %9408 = vmatmul.mubr.bf16.gmra.mrb[196].mxu1 %v17923_v14 }
 0xfb9   :  { %9459 = vmatpush1.bf16.msra.mxu0 %v8764_v15  ;;  %9191 = vmatprep.mubr.bf16.mxu0 %v17927_v4  ;;  %v8842_v15 = vld [vmem:[#allocation4 + $0x4c0] sm:$0xff] }
 0xfba   :  { %9460 = vmatprep.subr.bf16.mxu0 %v8772_v40  ;;  %9417 = vmatprep.mubr.bf16.mxu1 %v17927_v4  ;;  %v8836_v40 = vld [vmem:[#allocation4 + $0x490] sm:$0xff] }
 0xfbd   :  { %9461 = vmatpush1.bf16.msra.mxu0 %v8771_v43  ;;  %v8899_v43 = vld [vmem:[#allocation4 + $0x688] sm:$0xff] }
 0xfbe   :  { %9462 = vmatprep.subr.bf16.mxu0 %v8779_v0  ;;  %v8849_v0 = vld [vmem:[#allocation4 + $0x4f8] sm:$0xff] }
 0xfc0   :  { %9192 = vmatmul.mubr.bf16.gmra.mrb[152].mxu0 %v17935_v41  ;;  %9418 = vmatmul.mubr.bf16.gmra.mrb[200].mxu1 %v17935_v41 }
 0xfc1   :  { %9463 = vmatpush1.bf16.msra.mxu0 %v8778_v20  ;;  %9201 = vmatprep.mubr.bf16.mxu0 %v17939_v39  ;;  %v8850_v20 = vld [vmem:[#allocation4 + $0x500] sm:$0xff] }
 0xfc2   :  { %9464 = vmatprep.subr.bf16.mxu0 %v8786_v6  ;;  %9427 = vmatprep.mubr.bf16.mxu1 %v17939_v39  ;;  %v8862_v6 = vld [vmem:[#allocation4 + $0x560] sm:$0xff] }
 0xfc5   :  { %9465 = vmatpush1.bf16.msra.mxu0 %v8785_v11  ;;  %v8870_v11 = vld [vmem:[#allocation4 + $0x5a0] sm:$0xff] }
 0xfc6   :  { %9466 = vmatprep.subr.bf16.mxu0 %v8793_v62  ;;  %v8857_v62 = vld [vmem:[#allocation4 + $0x538] sm:$0xff] }
 0xfc8   :  { %9202 = vmatmul.mubr.bf16.gmra.mrb[156].mxu0 %v17947_v50  ;;  %9428 = vmatmul.mubr.bf16.gmra.mrb[204].mxu1 %v17947_v50 }
 0xfc9   :  { %9467 = vmatpush1.bf16.msra.mxu0 %v8792_v31  ;;  %9470 = vmatprep.mubr.bf16.mxu0 %v18986_v10  ;;  %v8884_v31 = vld [vmem:[#allocation4 + $0x610] sm:$0xff] }
 0xfca   :  { %9468 = vmatprep.subr.bf16.mxu0 %v8800_v36  ;;  %9696 = vmatprep.mubr.bf16.mxu1 %v18986_v10  ;;  %v8891_v36 = vld [vmem:[#allocation4 + $0x648] sm:$0xff]  ;;  %v8898_v10 = vld [vmem:[#allocation4 + $0x680] sm:$0xff] }
 0xfcd   :  { %9469 = vmatpush1.bf16.msra.mxu0 %v8799_v9  ;;  %v8905_v9 = vld [vmem:[#allocation4 + $0x6b8] sm:$0xff] }
 0xfce   :  { %9551 = vmatprep.subr.bf16.mxu0 %v8807_v44  ;;  %v8912_v44 = vld [vmem:[#allocation4 + $0x6f0] sm:$0xff] }
 0xfd0   :  { %9471 = vmatmul.mubr.bf16.vlgmr.msra.gmra.mrb[160].mxu0 %v17767_v21  ;;  %9697 = vmatmul.mubr.bf16.vlgmr.msra.gmra.mrb[208].mxu1 %v17767_v21  ;;  %v8822_v21 = vld [vmem:[#allocation4 + $0x420] sm:$0xff] }
 0xfd1   :  { %9552 = vmatpush1.bf16.msra.mxu0 %v8806_v27  ;;  %10990 = vmatpush3.bf16.msra.mxu1 %v8808_v7 }
 0xfd2   :  { %9553 = vmatprep.subr.bf16.mxu0 %v8814_v54  ;;  %9480 = vmatprep.mubr.bf16.mxu0 %v17771_v37 }
 0xfd3   :  { %9704 = vmatprep.mubr.bf16.mxu1 %v17771_v37  ;;  %10991 = vmatprep.subr.bf16.mxu1 %v8871_v29  ;;  %v8827_v37 = vld [vmem:[#allocation4 + $0x448] sm:$0xff] }
 0xfd5   :  { %9554 = vmatpush1.bf16.msra.mxu0 %v8813_v61  ;;  %10992 = vmatpush3.bf16.msra.mxu1 %v8815_v17 }
 0xfd6   :  { %9555 = vmatprep.subr.bf16.mxu0 %v8821_v2  ;;  %10993 = vmatprep.subr.bf16.mxu1 %v8878_v51 }
 0xfd8   :  { %9481 = vmatmul.mubr.bf16.gmra.mrb[164].mxu0 %v17779_v19  ;;  %9705 = vmatmul.mubr.bf16.gmra.mrb[212].mxu1 %v17779_v19  ;;  %v8892_v19 = vld [vmem:[#allocation4 + $0x650] sm:$0xff] }
 0xfd9   :  { %9556 = vmatpush1.bf16.msra.mxu0 %v8820_v18  ;;  %9490 = vmatprep.mubr.bf16.mxu0 %v17783_v56 }
 0xfda   :  { %9557 = vmatprep.subr.bf16.mxu0 %v8828_v32  ;;  %9712 = vmatprep.mubr.bf16.mxu1 %v17783_v56  ;;  %v8841_v56 = vld [vmem:[#allocation4 + $0x4b8] sm:$0xff] }
 0xfdb   :  { %10994 = vmatpush3.bf16.msra.mxu1 %v8822_v21 }
 0xfdc   :  { %10995 = vmatprep.subr.bf16.mxu1 %v8885_v38 }
 0xfdd   :  { %9558 = vmatpush1.bf16.msra.mxu0 %v8827_v37 }
 0xfde   :  { %9559 = vmatprep.subr.bf16.mxu0 %v8835_v25 }
 0xfdf   :  { %10996 = vmatpush3.bf16.msra.mxu1 %v8829_v47 }
 0xfe0   :  { %9491 = vmatmul.mubr.bf16.gmra.mrb[168].mxu0 %v17791_v1  ;;  %9713 = vmatmul.mubr.bf16.gmra.mrb[216].mxu1 %v17791_v1  ;;  %v8843_v1 = vld [vmem:[#allocation4 + $0x4c8] sm:$0xff] }
 0xfe1   :  { %9560 = vmatpush1.bf16.msra.mxu0 %v8834_v46  ;;  %9500 = vmatprep.mubr.bf16.mxu0 %v17795_v63 }
 0xfe2   :  { %9561 = vmatprep.subr.bf16.mxu0 %v8842_v15  ;;  %9720 = vmatprep.mubr.bf16.mxu1 %v17795_v63  ;;  %v8855_v63 = vld [vmem:[#allocation4 + $0x528] sm:$0xff] }
 0xfe3   :  { %10997 = vmatprep.subr.bf16.mxu1 %v8892_v19 }
 0xfe4   :  { %10998 = vmatpush3.bf16.msra.mxu1 %v8836_v40 }
 0xfe5   :  { %9562 = vmatpush1.bf16.msra.mxu0 %v8841_v56  ;;  %10999 = vmatprep.subr.bf16.mxu1 %v8899_v43 }
 0xfe6   :  { %9563 = vmatprep.subr.bf16.mxu0 %v8849_v0 }
 0xfe8   :  { %9501 = vmatmul.mubr.bf16.gmra.mrb[172].mxu0 %v17803_v24  ;;  %9721 = vmatmul.mubr.bf16.gmra.mrb[220].mxu1 %v17803_v24  ;;  %v8913_v24 = vld [vmem:[#allocation4 + $0x6f8] sm:$0xff] }
 0xfe9   :  { %9564 = vmatpush1.bf16.msra.mxu0 %v8848_v8  ;;  %9510 = vmatprep.mubr.bf16.mxu0 %v17807_v26 }
 0xfea   :  { %9565 = vmatprep.subr.bf16.mxu0 %v8856_v13  ;;  %9728 = vmatprep.mubr.bf16.mxu1 %v17807_v26  ;;  %v8869_v26 = vld [vmem:[#allocation4 + $0x598] sm:$0xff] }
 0xfeb   :  { %11000 = vmatpush3.bf16.msra.mxu1 %v8843_v1 }
 0xfec   :  { %11001 = vmatprep.subr.bf16.mxu1 %v8906_v3 }
 0xfed   :  { %9566 = vmatpush1.bf16.msra.mxu0 %v8855_v63 }
 0xfee   :  { %9567 = vmatprep.subr.bf16.mxu0 %v8863_v59 }
 0xfef   :  { %11002 = vmatpush3.bf16.msra.mxu1 %v8850_v20 }
 0xff0   :  { %9511 = vmatmul.mubr.bf16.gmra.mrb[176].mxu0 %v17815_v55  ;;  %9729 = vmatmul.mubr.bf16.gmra.mrb[224].mxu1 %v17815_v55  ;;  %v8883_v55 = vld [vmem:[#allocation4 + $0x608] sm:$0xff] }
 0xff1   :  { %9568 = vmatpush1.bf16.msra.mxu0 %v8862_v6  ;;  %9520 = vmatprep.mubr.bf16.mxu0 %v17819_v48 }
 0xff2   :  { %9569 = vmatprep.subr.bf16.mxu0 %v8870_v11  ;;  %9736 = vmatprep.mubr.bf16.mxu1 %v17819_v48  ;;  %v8890_v48 = vld [vmem:[#allocation4 + $0x640] sm:$0xff] }
 0xff3   :  { %11003 = vmatprep.subr.bf16.mxu1 %v8913_v24 }
 0xff4   :  { %11004 = vmatpush3.bf16.msra.mxu1 %v8857_v62 }
 0xff5   :  { %9570 = vmatpush1.bf16.msra.mxu0 %v8869_v26 }
 0xff6   :  { %9571 = vmatprep.subr.bf16.mxu0 %v8877_v30 }
 0xff8   :  { %9521 = vmatmul.mubr.bf16.gmra.mrb[180].mxu0 %v17827_v28  ;;  %9737 = vmatmul.mubr.bf16.gmra.mrb[228].mxu1 %v17827_v28  ;;  %v8897_v28 = vld [vmem:[#allocation4 + $0x678] sm:$0xff] }
 0xff9   :  { %9572 = vmatpush1.bf16.msra.mxu0 %v8876_v57  ;;  %9530 = vmatprep.mubr.bf16.mxu0 %v17831_v52 }
 0xffa   :  { %9573 = vmatprep.subr.bf16.mxu0 %v8884_v31  ;;  %9744 = vmatprep.mubr.bf16.mxu1 %v17831_v52  ;;  %v8904_v52 = vld [vmem:[#allocation4 + $0x6b0] sm:$0xff] }
 0xffd   :  { %9574 = vmatpush1.bf16.msra.mxu0 %v8883_v55 }
 0xffe   :  { %9575 = vmatprep.subr.bf16.mxu0 %v8891_v36 }
0x1000   :  { %9531 = vmatmul.mubr.bf16.gmra.mrb[184].mxu0 %v17839_v5  ;;  %9745 = vmatmul.mubr.bf16.gmra.mrb[232].mxu1 %v17839_v5  ;;  %v8911_v5 = vld [vmem:[#allocation4 + $0x6e8] sm:$0xff] }
0x1001   :  { %9576 = vmatpush1.bf16.msra.mxu0 %v8890_v48  ;;  %9540 = vmatprep.mubr.bf16.mxu0 %v17843_v42 }
0x1002   :  { %9577 = vmatprep.subr.bf16.mxu0 %v8898_v10  ;;  %9752 = vmatprep.mubr.bf16.mxu1 %v17843_v42  ;;  %v10808_v42 = vld [vmem:[%s18670_s12 + $0x71] ss:$8 sm:$0xf] }
0x1005   :  { %9578 = vmatpush1.bf16.msra.mxu0 %v8897_v28 }
0x1006   :  { %9579 = vmatprep.subr.bf16.mxu0 %v8905_v9 }
0x1008   :  { %9541 = vmatmul.mubr.bf16.gmra.mrb[188].mxu0 %v17851_v58  ;;  %9753 = vmatmul.mubr.bf16.gmra.mrb[236].mxu1 %v17851_v58  ;;  %v10809_v58 = vld [vmem:[%s18670_s12 + $0x71] ss:$8 sm:$0xf0] }
0x1009   :  { %9580 = vmatpush1.bf16.msra.mxu0 %v8904_v52  ;;  %9583 = vmatprep.mubr.bf16.mxu0 %v17855_v53 }
0x100a   :  { %9581 = vmatprep.subr.bf16.mxu0 %v8912_v44  ;;  %9793 = vmatprep.mubr.bf16.mxu1 %v17855_v53  ;;  %v18021_v53 = vor.u32 %v10809_v58, %v10808_v42 }
0x100d   :  { %9582 = vmatpush1.bf16.msra.mxu0 %v8911_v5 }
0x1010   :  { %9584 = vmatmul.mubr.bf16.vlgmr.msra.gmra.mrb[160].mxu0 %v17863_v45  ;;  %9794 = vmatmul.mubr.bf16.vlgmr.msra.gmra.mrb[240].mxu1 %v17863_v45  ;;  %v18987_v45 = vld [vmem:[#allocation64_spill] sm:$0xff] }
0x1011   :  { %9593 = vmatprep.mubr.bf16.mxu0 %v17867_v33  ;;  %9801 = vmatprep.mubr.bf16.mxu1 %v17867_v33  ;;  %v18025_v33 = vrot.slane %v18021_v53, %v18987_v45 }
0x1018   :  { %9594 = vmatmul.mubr.bf16.gmra.mrb[164].mxu0 %v17875_v49  ;;  %9802 = vmatmul.mubr.bf16.gmra.mrb[244].mxu1 %v17875_v49  ;;  %v18988_v49 = vld [vmem:[#allocation66_spill] sm:$0xff] }
0x1019   :  { %9603 = vmatprep.mubr.bf16.mxu0 %v17879_v60  ;;  %9809 = vmatprep.mubr.bf16.mxu1 %v17879_v60  ;;  %v18029_v60 = vrot.slane %v18021_v53, %v18988_v49 }
0x1020   :  { %9604 = vmatmul.mubr.bf16.gmra.mrb[168].mxu0 %v17887_v22  ;;  %9810 = vmatmul.mubr.bf16.gmra.mrb[248].mxu1 %v17887_v22  ;;  %v18989_v22 = vld [vmem:[#allocation65_spill] sm:$0xff] }
0x1021   :  { %9613 = vmatprep.mubr.bf16.mxu0 %v17891_v12  ;;  %9817 = vmatprep.mubr.bf16.mxu1 %v17891_v12  ;;  %v18033_v12 = vrot.slane %v18021_v53, %v18989_v22 }
0x1028   :  { %9614 = vmatmul.mubr.bf16.gmra.mrb[172].mxu0 %v17899_v35  ;;  %9818 = vmatmul.mubr.bf16.gmra.mrb[252].mxu1 %v17899_v35  ;;  %v18990_v35 = vld [vmem:[#allocation67_spill] sm:$0xff] }
0x1029   :  { %9623 = vmatprep.mubr.bf16.mxu0 %v17903_v23  ;;  %9825 = vmatprep.mubr.bf16.mxu1 %v17903_v23  ;;  %v18037_v23 = vrot.slane %v18021_v53, %v18990_v35 }
0x1030   :  { %9624 = vmatmul.mubr.bf16.gmra.mrb[176].mxu0 %v17911_v34  ;;  %9826 = vmatmul.mubr.bf16.gmra.mrb[0].mxu1 %v17911_v34 }
0x1031   :  { %9633 = vmatprep.mubr.bf16.mxu0 %v17915_v16  ;;  %9833 = vmatprep.mubr.bf16.mxu1 %v17915_v16 }
0x1038   :  { %9634 = vmatmul.mubr.bf16.gmra.mrb[180].mxu0 %v17923_v14  ;;  %9834 = vmatmul.mubr.bf16.gmra.mrb[4].mxu1 %v17923_v14 }
0x1039   :  { %9643 = vmatprep.mubr.bf16.mxu0 %v17927_v4  ;;  %9841 = vmatprep.mubr.bf16.mxu1 %v17927_v4 }
0x1040   :  { %9644 = vmatmul.mubr.bf16.gmra.mrb[184].mxu0 %v17935_v41  ;;  %9842 = vmatmul.mubr.bf16.gmra.mrb[8].mxu1 %v17935_v41 }
0x1041   :  { %9653 = vmatprep.mubr.bf16.mxu0 %v17939_v39  ;;  %9849 = vmatprep.mubr.bf16.mxu1 %v17939_v39 }
0x1048   :  { %9654 = vmatmul.mubr.bf16.gmra.mrb[188].mxu0 %v17947_v50  ;;  %9850 = vmatmul.mubr.bf16.gmra.mrb[12].mxu1 %v17947_v50 }
0x1063   :  { %v9133_v34 = vpop.f32.mrb[128].mxu0  ;;  %v9359_v16 = vpop.f32.mrb[176].mxu1 }
0x1064   :  { %v11149_v14 = vadd.f32 %v9133_v34, %v18025_v33  ;;  %v11181_v4 = vadd.f32 %v9359_v16, %v18029_v60  ;;  %v9135_v41 = vpop.f32.mrb[129].mxu0  ;;  %v9361_v39 = vpop.f32.mrb[177].mxu1 }
0x1065   :  { %v11150_v50 = vadd.f32 %v9135_v41, %v18033_v12  ;;  %v11182_v27 = vadd.f32 %v9361_v39, %v18037_v23  ;;  %v9137_v7 = vpop.f32.mrb[130].mxu0  ;;  %v9363_v54 = vpop.f32.mrb[178].mxu1 }
0x1066   :  { %v9858_v29 = vmul.f32 0.5, %v11149_v14  ;;  %v9860_v61 = vmul.f32 0.5, %v11181_v4  ;;  %v11151_v17 = vadd.f32 %v9137_v7, %v18025_v33  ;;  %v11183_v2 = vadd.f32 %v9363_v54, %v18029_v60  ;;  %v9139_v51 = vpop.f32.mrb[131].mxu0  ;;  %v9365_v18 = vpop.f32.mrb[179].mxu1 }
0x1067   :  { %v9859_v32 = vmul.f32 0.5, %v11150_v50  ;;  %v9861_v21 = vmul.f32 0.5, %v11182_v27  ;;  %v11152_v38 = vadd.f32 %v9139_v51, %v18033_v12  ;;  %v11184_v37 = vadd.f32 %v9365_v18, %v18037_v23 }
0x1068   :  { %12617 = vtanh.f32 %v9858_v29  ;;  %v9865_v25 = vmul.f32 0.5, %v11151_v17  ;;  %v9867_v47 = vmul.f32 0.5, %v11183_v2 }
0x1069   :  { %12619 = vtanh.f32 %v9860_v61  ;;  %v9866_v46 = vmul.f32 0.5, %v11152_v38  ;;  %v9868_v15 = vmul.f32 0.5, %v11184_v37 }
0x106a   :  { %12621 = vtanh.f32 %v9859_v32 }
0x106b   :  { %12623 = vtanh.f32 %v9861_v21  ;;  %v9143_v19 = vpop.f32.mrb[132].mxu0  ;;  %v9369_v40 = vpop.f32.mrb[180].mxu1 }
0x106c   :  { %12625 = vtanh.f32 %v9865_v25  ;;  %v11153_v56 = vadd.f32 %v9143_v19, %v18025_v33  ;;  %v11185_v43 = vadd.f32 %v9369_v40, %v18029_v60  ;;  %v9145_v0 = vpop.f32.mrb[133].mxu0  ;;  %v9371_v8 = vpop.f32.mrb[181].mxu1 }
0x106d   :  { %12627 = vtanh.f32 %v9867_v47  ;;  %v11154_v13 = vadd.f32 %v9145_v0, %v18033_v12  ;;  %v11186_v1 = vadd.f32 %v9371_v8, %v18037_v23  ;;  %v9147_v3 = vpop.f32.mrb[134].mxu0  ;;  %v9373_v63 = vpop.f32.mrb[182].mxu1 }
0x106e   :  { %12629 = vtanh.f32 %v9866_v46  ;;  %v9872_v59 = vmul.f32 0.5, %v11153_v56  ;;  %v9874_v20 = vmul.f32 0.5, %v11185_v43  ;;  %v11155_v6 = vadd.f32 %v9147_v3, %v18025_v33  ;;  %v9149_v11 = vpop.f32.mrb[135].mxu0  ;;  %v9375_v24 = vpop.f32.mrb[183].mxu1 }
0x106f   :  { %12631 = vtanh.f32 %v9868_v15  ;;  %v9873_v62 = vmul.f32 0.5, %v11154_v13  ;;  %v9875_v26 = vmul.f32 0.5, %v11186_v1  ;;  %v11187_v30 = vadd.f32 %v9373_v63, %v18029_v60 }
0x1070   :  { %12633 = vtanh.f32 %v9872_v59  ;;  %v9879_v57 = vmul.f32 0.5, %v11155_v6  ;;  %v11156_v31 = vadd.f32 %v9149_v11, %v18033_v12  ;;  %v11188_v55 = vadd.f32 %v9375_v24, %v18037_v23 }
0x1071   :  { %12635 = vtanh.f32 %v9874_v20  ;;  %v9881_v36 = vmul.f32 0.5, %v11187_v30 }
0x1072   :  { %v12618_v48 = vpop.eup %12617  ;;  %12637 = vtanh.f32 %v9873_v62  ;;  %v9880_v10 = vmul.f32 0.5, %v11156_v31  ;;  %v9882_v52 = vmul.f32 0.5, %v11188_v55 }
0x1073   :  { %v12620_v28 = vpop.eup %12619  ;;  %v10082_v9 = vadd.f32 1.0, %v12618_v48  ;;  %12639 = vtanh.f32 %v9875_v26  ;;  %v9153_v44 = vpop.f32.mrb[136].mxu0 }
0x1074   :  { %v9379_v5 = vpop.f32.mrb[184].mxu1  ;;  %v12622_v42 = vpop.eup %12621  ;;  %v10084_v58 = vadd.f32 1.0, %v12620_v28  ;;  %12641 = vtanh.f32 %v9879_v57  ;;  %v11157_v45 = vadd.f32 %v9153_v44, %v18025_v33 }
0x1075   :  { %v11189_v49 = vadd.f32 %v9379_v5, %v18029_v60  ;;  %v9155_v22 = vpop.f32.mrb[137].mxu0  ;;  %v9381_v35 = vpop.f32.mrb[185].mxu1  ;;  %v10194_v16 = vmul.f32 0.5, %v10082_v9  ;;  %v10083_v14 = vadd.f32 1.0, %v12622_v42  ;;  %12643 = vtanh.f32 %v9881_v36 }
0x1076   :  { %v12624_v34 = vpop.eup %12623  ;;  %v11158_v4 = vadd.f32 %v9155_v22, %v18033_v12  ;;  %v9157_v41 = vpop.f32.mrb[138].mxu0  ;;  %v10196_v27 = vmul.f32 0.5, %v10084_v58  ;;  %12645 = vtanh.f32 %v9880_v10  ;;  %v9886_v54 = vmul.f32 0.5, %v11157_v45 }
0x1077   :  { %v9383_v39 = vpop.f32.mrb[186].mxu1  ;;  %v12626_v50 = vpop.eup %12625  ;;  %v10085_v7 = vadd.f32 1.0, %v12624_v34  ;;  %10306 = vst [vmem:[%s18672_s14] sm:$0xff] %v10194_v16  ;;  %v10195_v2 = vmul.f32 0.5, %v10083_v14  ;;  %12647 = vtanh.f32 %v9882_v52  ;;  %v9888_v18 = vmul.f32 0.5, %v11189_v49 }
0x1078   :  { %v9159_v29 = vpop.f32.mrb[139].mxu0  ;;  %v9385_v61 = vpop.f32.mrb[187].mxu1  ;;  %v10089_v51 = vadd.f32 1.0, %v12626_v50  ;;  %10308 = vst [vmem:[%s18672_s14 + $0x10] sm:$0xff] %v10196_v27  ;;  %12649 = vtanh.f32 %v9886_v54  ;;  %v9887_v37 = vmul.f32 0.5, %v11158_v4  ;;  %v11190_v15 = vadd.f32 %v9381_v35, %v18037_v23 }
0x1079   :  { %v12628_v17 = vpop.eup %12627  ;;  %v10197_v21 = vmul.f32 0.5, %v10085_v7  ;;  %10307 = vst [vmem:[%s18672_s14 + $0x8] sm:$0xff] %v10195_v2  ;;  %12651 = vtanh.f32 %v9888_v18  ;;  %v11159_v43 = vadd.f32 %v9157_v41, %v18025_v33  ;;  %v11191_v3 = vadd.f32 %v9383_v39, %v18029_v60 }
0x107a   :  { %v12630_v32 = vpop.eup %12629  ;;  %v10091_v38 = vadd.f32 1.0, %v12628_v17  ;;  %v10201_v47 = vmul.f32 0.5, %v10089_v51  ;;  %12653 = vtanh.f32 %v9887_v37  ;;  %v9889_v1 = vmul.f32 0.5, %v11190_v15 }
0x107b   :  { %v12632_v25 = vpop.eup %12631  ;;  %v10090_v46 = vadd.f32 1.0, %v12630_v32  ;;  %10309 = vst [vmem:[%s18672_s14 + $0x18] sm:$0xff] %v10197_v21  ;;  %v9163_v63 = vpop.f32.mrb[140].mxu0  ;;  %v9893_v24 = vmul.f32 0.5, %v11159_v43  ;;  %v11160_v62 = vadd.f32 %v9159_v29, %v18033_v12  ;;  %v9895_v36 = vmul.f32 0.5, %v11191_v3 }
0x107c   :  { %v12634_v19 = vpop.eup %12633  ;;  %v10203_v40 = vmul.f32 0.5, %v10091_v38  ;;  %v10092_v56 = vadd.f32 1.0, %v12632_v25  ;;  %10313 = vst [vmem:[%s18672_s14 + $0x38] sm:$0xff] %v10201_v47  ;;  %v9389_v59 = vpop.f32.mrb[188].mxu1  ;;  %12655 = vtanh.f32 %v9889_v1  ;;  %v11192_v22 = vadd.f32 %v9385_v61, %v18037_v23 }
0x107d   :  { %v12636_v0 = vpop.eup %12635  ;;  %v10202_v8 = vmul.f32 0.5, %v10090_v46  ;;  %v10096_v13 = vadd.f32 1.0, %v12634_v19  ;;  %v9165_v26 = vpop.f32.mrb[141].mxu0  ;;  %12657 = vtanh.f32 %v9893_v24  ;;  %v9894_v44 = vmul.f32 0.5, %v11160_v62 }
0x107e   :  { %v12638_v20 = vpop.eup %12637  ;;  %10315 = vst [vmem:[%s18672_s14 + $0x48] sm:$0xff] %v10203_v40  ;;  %v10204_v6 = vmul.f32 0.5, %v10092_v56  ;;  %v10098_v11 = vadd.f32 1.0, %v12636_v0  ;;  %v9391_v30 = vpop.f32.mrb[189].mxu1  ;;  %12659 = vtanh.f32 %v9895_v36  ;;  %v11161_v14 = vadd.f32 %v9163_v63, %v18025_v33 }
0x107f   :  { %v12640_v57 = vpop.eup %12639  ;;  %10314 = vst [vmem:[%s18672_s14 + $0x40] sm:$0xff] %v10202_v8  ;;  %v10208_v31 = vmul.f32 0.5, %v10096_v13  ;;  %v10097_v55 = vadd.f32 1.0, %v12638_v20  ;;  %v9167_v48 = vpop.f32.mrb[142].mxu0  ;;  %12661 = vtanh.f32 %v9894_v44  ;;  %v9896_v50 = vmul.f32 0.5, %v11192_v22 }
0x1080   :  { %v9393_v10 = vpop.f32.mrb[190].mxu1  ;;  %v12642_v28 = vpop.eup %12641  ;;  %10316 = vst [vmem:[%s18672_s14 + $0x50] sm:$0xff] %v10204_v6  ;;  %v10210_v9 = vmul.f32 0.5, %v10098_v11  ;;  %v10099_v52 = vadd.f32 1.0, %v12640_v57  ;;  %v11193_v27 = vadd.f32 %v9389_v59, %v18029_v60  ;;  %v9900_v61 = vmul.f32 0.5, %v11161_v14 }
0x1081   :  { %v9169_v5 = vpop.f32.mrb[143].mxu0  ;;  %v9395_v42 = vpop.f32.mrb[191].mxu1  ;;  %10320 = vst [vmem:[%s18672_s14 + $0x70] sm:$0xff] %v10208_v31  ;;  %v10209_v45 = vmul.f32 0.5, %v10097_v55  ;;  %v10103_v49 = vadd.f32 1.0, %v12642_v28  ;;  %v11162_v17 = vadd.f32 %v9165_v26, %v18033_v12  ;;  %12663 = vtanh.f32 %v9896_v50 }
0x1082   :  { %v12644_v58 = vpop.eup %12643  ;;  %10322 = vst [vmem:[%s18672_s14 + $0x80] sm:$0xff] %v10210_v9  ;;  %v10211_v34 = vmul.f32 0.5, %v10099_v52  ;;  %v9902_v32 = vmul.f32 0.5, %v11193_v27  ;;  %12665 = vtanh.f32 %v9900_v61  ;;  %v11194_v43 = vadd.f32 %v9391_v30, %v18037_v23 }
0x1083   :  { %v12646_v35 = vpop.eup %12645  ;;  %v10105_v16 = vadd.f32 1.0, %v12644_v58  ;;  %10321 = vst [vmem:[%s18672_s14 + $0x78] sm:$0xff] %v10209_v45  ;;  %v10215_v41 = vmul.f32 0.5, %v10103_v49  ;;  %v9173_v21 = vpop.f32.mrb[144].mxu0  ;;  %v9901_v46 = vmul.f32 0.5, %v11162_v17  ;;  %v11163_v1 = vadd.f32 %v9167_v48, %v18025_v33 }
0x1084   :  { %v12648_v4 = vpop.eup %12647  ;;  %v10104_v39 = vadd.f32 1.0, %v12646_v35  ;;  %10323 = vst [vmem:[%s18672_s14 + $0x88] sm:$0xff] %v10211_v34  ;;  %v9399_v38 = vpop.f32.mrb[192].mxu1  ;;  %12667 = vtanh.f32 %v9902_v32  ;;  %v11195_v3 = vadd.f32 %v9393_v10, %v18029_v60  ;;  %v9903_v11 = vmul.f32 0.5, %v11194_v43 }
0x1085   :  { %v12650_v7 = vpop.eup %12649  ;;  %v10217_v54 = vmul.f32 0.5, %v10105_v16  ;;  %v10106_v29 = vadd.f32 1.0, %v12648_v4  ;;  %10327 = vst [vmem:[%s18672_s14 + $0xa8] sm:$0xff] %v10215_v41  ;;  %v9175_v15 = vpop.f32.mrb[145].mxu0  ;;  %12669 = vtanh.f32 %v9901_v46  ;;  %v11164_v24 = vadd.f32 %v9169_v5, %v18033_v12 }
0x1086   :  { %v12652_v2 = vpop.eup %12651  ;;  %v10216_v51 = vmul.f32 0.5, %v10104_v39  ;;  %v10110_v18 = vadd.f32 1.0, %v12650_v7  ;;  %v9401_v19 = vpop.f32.mrb[193].mxu1  ;;  %v11196_v62 = vadd.f32 %v9395_v42, %v18037_v23  ;;  %v9907_v57 = vmul.f32 0.5, %v11163_v1 }
0x1087   :  { %v12654_v37 = vpop.eup %12653  ;;  %10329 = vst [vmem:[%s18672_s14 + $0xb8] sm:$0xff] %v10217_v54  ;;  %v10218_v25 = vmul.f32 0.5, %v10106_v29  ;;  %v10112_v47 = vadd.f32 1.0, %v12652_v2  ;;  %v9177_v0 = vpop.f32.mrb[146].mxu0  ;;  %v9909_v31 = vmul.f32 0.5, %v11195_v3  ;;  %v11165_v55 = vadd.f32 %v9173_v21, %v18025_v33 }
0x1088   :  { %10328 = vst [vmem:[%s18672_s14 + $0xb0] sm:$0xff] %v10216_v51  ;;  %v10222_v40 = vmul.f32 0.5, %v10110_v18  ;;  %v10111_v56 = vadd.f32 1.0, %v12654_v37  ;;  %v18112_v8 = vpop.f32.mrb[194].mxu1  ;;  %v18119_v63 = vpop.f32.mrb[147].mxu0  ;;  %12671 = vtanh.f32 %v9903_v11  ;;  %v9908_v10 = vmul.f32 0.5, %v11164_v24 }
0x1089   :  { %10330 = vst [vmem:[%s18672_s14 + $0xc0] sm:$0xff] %v10218_v25  ;;  %v10224_v13 = vmul.f32 0.5, %v10112_v47  ;;  %v18121_v59 = vpop.f32.mrb[195].mxu1  ;;  %v12656_v20 = vpop.eup %12655  ;;  %v9910_v28 = vmul.f32 0.5, %v11196_v62  ;;  %12673 = vtanh.f32 %v9907_v57  ;;  %v9914_v5 = vmul.f32 0.5, %v11165_v55 }
0x108a   :  { %10334 = vst [vmem:[%s18672_s14 + $0xe0] sm:$0xff] %v10222_v40  ;;  %v10223_v6 = vmul.f32 0.5, %v10111_v56  ;;  %v12658_v26 = vpop.eup %12657  ;;  %v10113_v30 = vadd.f32 1.0, %v12656_v20  ;;  %12675 = vtanh.f32 %v9909_v31  ;;  %v11197_v45 = vadd.f32 %v9399_v38, %v18029_v60 }
0x108b   :  { %10336 = vst [vmem:[%s18672_s14 + $0xf0] sm:$0xff] %v10224_v13  ;;  %v12660_v36 = vpop.eup %12659  ;;  %v10117_v48 = vadd.f32 1.0, %v12658_v26  ;;  %v9183_v49 = vpop.f32.mrb[148].mxu0  ;;  %12677 = vtanh.f32 %v9908_v10  ;;  %v11166_v34 = vadd.f32 %v9175_v15, %v18033_v12  ;;  %v11198_v16 = vadd.f32 %v9401_v19, %v18037_v23 }
0x108c   :  { %10335 = vst [vmem:[%s18672_s14 + $0xe8] sm:$0xff] %v10223_v6  ;;  %v12662_v9 = vpop.eup %12661  ;;  %v10225_v52 = vmul.f32 0.5, %v10113_v30  ;;  %v10119_v44 = vadd.f32 1.0, %v12660_v36  ;;  %v9409_v22 = vpop.f32.mrb[196].mxu1  ;;  %12679 = vtanh.f32 %v9910_v28  ;;  %v9916_v50 = vmul.f32 0.5, %v11197_v45 }
0x108d   :  { %v10229_v42 = vmul.f32 0.5, %v10117_v48  ;;  %v10118_v58 = vadd.f32 1.0, %v12662_v9  ;;  %v9185_v14 = vpop.f32.mrb[149].mxu0  ;;  %v9411_v4 = vpop.f32.mrb[197].mxu1  ;;  %v11167_v27 = vadd.f32 %v9177_v0, %v18025_v33  ;;  %12681 = vtanh.f32 %v9914_v5 }
0x108e   :  { %10337 = vst [vmem:[%s18672_s14 + $0xf8] sm:$0xff] %v10225_v52  ;;  %v10231_v35 = vmul.f32 0.5, %v10119_v44  ;;  %v12664_v41 = vpop.eup %12663  ;;  %v18145_v7 = vpop.f32.mrb[150].mxu0  ;;  %v9915_v17 = vmul.f32 0.5, %v11166_v34  ;;  %v9917_v2 = vmul.f32 0.5, %v11198_v16  ;;  %12683 = vtanh.f32 %v9916_v50 }
0x108f   :  { %10341 = vst [vmem:[%s18672_s14 + $0x118] sm:$0xff] %v10229_v42  ;;  %v10230_v39 = vmul.f32 0.5, %v10118_v58  ;;  %v18147_v54 = vpop.f32.mrb[198].mxu1  ;;  %v12666_v29 = vpop.eup %12665  ;;  %v10120_v61 = vadd.f32 1.0, %v12664_v41  ;;  %v9921_v38 = vmul.f32 0.5, %v11167_v27  ;;  %v11199_v37 = vadd.f32 %v18112_v8, %v18029_v60 }
0x1090   :  { %10343 = vst [vmem:[%s18672_s14 + $0x128] sm:$0xff] %v10231_v35  ;;  %v18152_v51 = vpop.f32.mrb[151].mxu0  ;;  %v18154_v18 = vpop.f32.mrb[199].mxu1  ;;  %v10124_v21 = vadd.f32 1.0, %v12666_v29  ;;  %12685 = vtanh.f32 %v9915_v17  ;;  %v11168_v15 = vadd.f32 %v18119_v63, %v18033_v12  ;;  %v11200_v8 = vadd.f32 %v18121_v59, %v18037_v23 }
0x1091   :  { %v12668_v32 = vpop.eup %12667  ;;  %10342 = vst [vmem:[%s18672_s14 + $0x120] sm:$0xff] %v10230_v39  ;;  %v10232_v47 = vmul.f32 0.5, %v10120_v61  ;;  %12687 = vtanh.f32 %v9917_v2  ;;  %v9923_v56 = vmul.f32 0.5, %v11199_v37  ;;  %v11169_v3 = vadd.f32 %v9183_v49, %v18025_v33 }
0x1092   :  { %v12670_v25 = vpop.eup %12669  ;;  %v10126_v46 = vadd.f32 1.0, %v12668_v32  ;;  %v10236_v19 = vmul.f32 0.5, %v10124_v21  ;;  %12689 = vtanh.f32 %v9921_v38  ;;  %v9922_v0 = vmul.f32 0.5, %v11168_v15 }
0x1093   :  { %v10125_v40 = vadd.f32 1.0, %v12670_v25  ;;  %10344 = vst [vmem:[%s18672_s14 + $0x130] sm:$0xff] %v10232_v47  ;;  %v12672_v13 = vpop.eup %12671  ;;  %12691 = vtanh.f32 %v9923_v56  ;;  %v11201_v63 = vadd.f32 %v9409_v22, %v18029_v60  ;;  %v18173_v20 = vpop.f32.mrb[152].mxu0  ;;  %v9924_v24 = vmul.f32 0.5, %v11200_v8 }
0x1094   :  { %v10238_v43 = vmul.f32 0.5, %v10126_v46  ;;  %10348 = vst [vmem:[%s18672_s14 + $0x150] sm:$0xff] %v10236_v19  ;;  %v18175_v6 = vpop.f32.mrb[200].mxu1  ;;  %v12674_v11 = vpop.eup %12673  ;;  %v10127_v59 = vadd.f32 1.0, %v12672_v13  ;;  %12693 = vtanh.f32 %v9922_v0  ;;  %v11170_v62 = vadd.f32 %v9185_v14, %v18033_v12 }
0x1095   :  { %v10237_v1 = vmul.f32 0.5, %v10125_v40  ;;  %v18181_v26 = vpop.f32.mrb[153].mxu0  ;;  %v18183_v30 = vpop.f32.mrb[201].mxu1  ;;  %v10131_v31 = vadd.f32 1.0, %v12674_v11  ;;  %v9928_v55 = vmul.f32 0.5, %v11169_v3  ;;  %v9930_v36 = vmul.f32 0.5, %v11201_v63 }
0x1096   :  { %10350 = vst [vmem:[%s18672_s14 + $0x160] sm:$0xff] %v10238_v43  ;;  %v12676_v57 = vpop.eup %12675  ;;  %v11202_v48 = vadd.f32 %v9411_v4, %v18037_v23  ;;  %v18189_v10 = vpop.f32.mrb[154].mxu0  ;;  %v10239_v52 = vmul.f32 0.5, %v10127_v59  ;;  %12695 = vtanh.f32 %v9924_v24  ;;  %v9929_v5 = vmul.f32 0.5, %v11170_v62 }
0x1097   :  { %10349 = vst [vmem:[%s18672_s14 + $0x158] sm:$0xff] %v10237_v1  ;;  %v18191_v28 = vpop.f32.mrb[202].mxu1  ;;  %v12678_v9 = vpop.eup %12677  ;;  %v10133_v44 = vadd.f32 1.0, %v12676_v57  ;;  %v10243_v49 = vmul.f32 0.5, %v10131_v31  ;;  %12697 = vtanh.f32 %v9928_v55  ;;  %v11171_v4 = vadd.f32 %v18145_v7, %v18025_v33 }
0x1098   :  { %v18193_v42 = vpop.f32.mrb[155].mxu0  ;;  %v18195_v58 = vpop.f32.mrb[203].mxu1  ;;  %v10132_v22 = vadd.f32 1.0, %v12678_v9  ;;  %v9931_v35 = vmul.f32 0.5, %v11202_v48  ;;  %10351 = vst [vmem:[%s18672_s14 + $0x168] sm:$0xff] %v10239_v52  ;;  %12699 = vtanh.f32 %v9930_v36  ;;  %v11203_v27 = vadd.f32 %v18147_v54, %v18029_v60 }
0x1099   :  { %v12680_v45 = vpop.eup %12679  ;;  %v10245_v16 = vmul.f32 0.5, %v10133_v44  ;;  %10355 = vst [vmem:[%s18672_s14 + $0x188] sm:$0xff] %v10243_v49  ;;  %12701 = vtanh.f32 %v9929_v5  ;;  %v9935_v7 = vmul.f32 0.5, %v11171_v4  ;;  %v11172_v54 = vadd.f32 %v18152_v51, %v18033_v12 }
0x109a   :  { %v12682_v34 = vpop.eup %12681  ;;  %v10134_v14 = vadd.f32 1.0, %v12680_v45  ;;  %v10244_v39 = vmul.f32 0.5, %v10132_v22  ;;  %12703 = vtanh.f32 %v9931_v35  ;;  %v9937_v38 = vmul.f32 0.5, %v11203_v27 }
0x109b   :  { %v12684_v41 = vpop.eup %12683  ;;  %v10138_v50 = vadd.f32 1.0, %v12682_v34  ;;  %10357 = vst [vmem:[%s18672_s14 + $0x198] sm:$0xff] %v10245_v16  ;;  %v18215_v37 = vpop.f32.mrb[156].mxu0  ;;  %12705 = vtanh.f32 %v9935_v7  ;;  %v11204_v19 = vadd.f32 %v18154_v18, %v18037_v23  ;;  %v9936_v8 = vmul.f32 0.5, %v11172_v54 }
0x109c   :  { %v12686_v29 = vpop.eup %12685  ;;  %v10246_v61 = vmul.f32 0.5, %v10134_v14  ;;  %v10140_v17 = vadd.f32 1.0, %v12684_v41  ;;  %10356 = vst [vmem:[%s18672_s14 + $0x190] sm:$0xff] %v10244_v39  ;;  %v18217_v25 = vpop.f32.mrb[204].mxu1  ;;  %12707 = vtanh.f32 %v9937_v38  ;;  %v11173_v59 = vadd.f32 %v18173_v20, %v18025_v33 }
0x109d   :  { %v12688_v2 = vpop.eup %12687  ;;  %v10250_v32 = vmul.f32 0.5, %v10138_v50  ;;  %v10139_v21 = vadd.f32 1.0, %v12686_v29  ;;  %v18224_v40 = vpop.f32.mrb[157].mxu0  ;;  %v9938_v11 = vmul.f32 0.5, %v11204_v19  ;;  %12709 = vtanh.f32 %v9936_v8 }
0x109e   :  { %v12690_v47 = vpop.eup %12689  ;;  %10358 = vst [vmem:[%s18672_s14 + $0x1a0] sm:$0xff] %v10246_v61  ;;  %v10252_v46 = vmul.f32 0.5, %v10140_v17  ;;  %v10141_v15 = vadd.f32 1.0, %v12688_v2  ;;  %v18226_v56 = vpop.f32.mrb[205].mxu1  ;;  %v11205_v55 = vadd.f32 %v18175_v6, %v18029_v60  ;;  %v9942_v48 = vmul.f32 0.5, %v11173_v59 }
0x109f   :  { %v12692_v51 = vpop.eup %12691  ;;  %10362 = vst [vmem:[%s18672_s14 + $0x1c0] sm:$0xff] %v10250_v32  ;;  %v10251_v43 = vmul.f32 0.5, %v10139_v21  ;;  %v10145_v0 = vadd.f32 1.0, %v12690_v47  ;;  %v18231_v13 = vpop.f32.mrb[158].mxu0  ;;  %12711 = vtanh.f32 %v9938_v11  ;;  %v11174_v9 = vadd.f32 %v18181_v26, %v18033_v12 }
0x10a0   :  { %v18233_v1 = vpop.f32.mrb[206].mxu1  ;;  %v12694_v3 = vpop.eup %12693  ;;  %10364 = vst [vmem:[%s18672_s14 + $0x1d0] sm:$0xff] %v10252_v46  ;;  %v10253_v18 = vmul.f32 0.5, %v10141_v15  ;;  %v10147_v63 = vadd.f32 1.0, %v12692_v51  ;;  %v9944_v45 = vmul.f32 0.5, %v11205_v55  ;;  %v11206_v6 = vadd.f32 %v18183_v30, %v18037_v23 }
0x10a1   :  { %v18240_v24 = vpop.f32.mrb[159].mxu0  ;;  %v18242_v62 = vpop.f32.mrb[207].mxu1  ;;  %10363 = vst [vmem:[%s18672_s14 + $0x1c8] sm:$0xff] %v10251_v43  ;;  %v10257_v57 = vmul.f32 0.5, %v10145_v0  ;;  %v10146_v31 = vadd.f32 1.0, %v12694_v3  ;;  %12713 = vtanh.f32 %v9942_v48  ;;  %v9943_v35 = vmul.f32 0.5, %v11174_v9 }
0x10a2   :  { %v12696_v36 = vpop.eup %12695  ;;  %10365 = vst [vmem:[%s18672_s14 + $0x1d8] sm:$0xff] %v10253_v18  ;;  %v10259_v20 = vmul.f32 0.5, %v10147_v63  ;;  %v11175_v26 = vadd.f32 %v18189_v10, %v18025_v33  ;;  %12715 = vtanh.f32 %v9944_v45  ;;  %v9945_v30 = vmul.f32 0.5, %v11206_v6 }
0x10a3   :  { %v12698_v52 = vpop.eup %12697  ;;  %10369 = vst [vmem:[%s18672_s14 + $0x1f8] sm:$0xff] %v10257_v57  ;;  %v10258_v44 = vmul.f32 0.5, %v10146_v31  ;;  %v10148_v5 = vadd.f32 1.0, %v12696_v36  ;;  %v18267_v4 = vpop.f32.mrb[208].mxu1  ;;  %12717 = vtanh.f32 %v9943_v35  ;;  %v11207_v17 = vadd.f32 %v18191_v28, %v18029_v60 }
0x10a4   :  { %v12700_v49 = vpop.eup %12699  ;;  %10371 = vst [vmem:[%s18672_s14 + $0x208] sm:$0xff] %v10259_v20  ;;  %v10152_v22 = vadd.f32 1.0, %v12698_v52  ;;  %v9949_v27 = vmul.f32 0.5, %v11175_v26  ;;  %v18269_v29 = vpop.f32.mrb[209].mxu1  ;;  %12719 = vtanh.f32 %v9945_v30  ;;  %v11176_v21 = vadd.f32 %v18193_v42, %v18033_v12 }
0x10a5   :  { %v12702_v34 = vpop.eup %12701  ;;  %10370 = vst [vmem:[%s18672_s14 + $0x200] sm:$0xff] %v10258_v44  ;;  %v10260_v16 = vmul.f32 0.5, %v10148_v5  ;;  %v10154_v14 = vadd.f32 1.0, %v12700_v49  ;;  %v18276_v7 = vpop.f32.mrb[210].mxu1  ;;  %v11208_v38 = vadd.f32 %v18195_v58, %v18037_v23  ;;  %v9951_v15 = vmul.f32 0.5, %v11207_v17 }
0x10a6   :  { %v12704_v41 = vpop.eup %12703  ;;  %v10264_v39 = vmul.f32 0.5, %v10152_v22  ;;  %v10153_v50 = vadd.f32 1.0, %v12702_v34  ;;  %12721 = vtanh.f32 %v9949_v27  ;;  %v18285_v54 = vpop.f32.mrb[211].mxu1  ;;  %v11177_v19 = vadd.f32 %v18215_v37, %v18025_v33 }
0x10a7   :  { %10372 = vst [vmem:[%s18672_s14 + $0x210] sm:$0xff] %v10260_v16  ;;  %v10266_v10 = vmul.f32 0.5, %v10154_v14  ;;  %v10155_v61 = vadd.f32 1.0, %v12704_v41  ;;  %v12706_v2 = vpop.eup %12705  ;;  %v9950_v51 = vmul.f32 0.5, %v11176_v21  ;;  %v9952_v58 = vmul.f32 0.5, %v11208_v38 }
0x10a8   :  { %10376 = vst [vmem:[%s18672_s14 + $0x230] sm:$0xff] %v10264_v39  ;;  %v10265_v32 = vmul.f32 0.5, %v10153_v50  ;;  %v12708_v47 = vpop.eup %12707  ;;  %v10159_v46 = vadd.f32 1.0, %v12706_v2  ;;  %v11209_v43 = vadd.f32 %v18217_v25, %v18029_v60  ;;  %12723 = vtanh.f32 %v9951_v15 }
0x10a9   :  { %10378 = vst [vmem:[%s18672_s14 + $0x240] sm:$0xff] %v10266_v10  ;;  %v10267_v28 = vmul.f32 0.5, %v10155_v61  ;;  %v10161_v42 = vadd.f32 1.0, %v12708_v47  ;;  %v12710_v0 = vpop.eup %12709  ;;  %v9956_v3 = vmul.f32 0.5, %v11177_v19  ;;  %v11178_v37 = vadd.f32 %v18224_v40, %v18033_v12 }
0x10aa   :  { %10377 = vst [vmem:[%s18672_s14 + $0x238] sm:$0xff] %v10265_v32  ;;  %v10271_v8 = vmul.f32 0.5, %v10159_v46  ;;  %v12712_v18 = vpop.eup %12711  ;;  %v10160_v11 = vadd.f32 1.0, %v12710_v0  ;;  %12725 = vtanh.f32 %v9950_v51  ;;  %v9958_v59 = vmul.f32 0.5, %v11209_v43 }
0x10ab   :  { %10379 = vst [vmem:[%s18672_s14 + $0x248] sm:$0xff] %v10267_v28  ;;  %v10273_v63 = vmul.f32 0.5, %v10161_v42  ;;  %v10162_v25 = vadd.f32 1.0, %v12712_v18  ;;  %12727 = vtanh.f32 %v9952_v58  ;;  %v9957_v57 = vmul.f32 0.5, %v11178_v37  ;;  %v10947_v55 = vpop.f32.mrb[212].mxu1  ;;  %v12714_v36 = vpop.eup %12713 }
0x10ac   :  { %10383 = vst [vmem:[%s18672_s14 + $0x268] sm:$0xff] %v10271_v8  ;;  %v11210_v31 = vadd.f32 %v18226_v56, %v18037_v23  ;;  %v10272_v40 = vmul.f32 0.5, %v10160_v11  ;;  %12729 = vtanh.f32 %v9956_v3  ;;  %v11179_v20 = vadd.f32 %v18231_v13, %v18025_v33  ;;  %v10948_v9 = vpop.f32.mrb[213].mxu1  ;;  %v12716_v52 = vpop.eup %12715 }
0x10ad   :  { %10385 = vst [vmem:[%s18672_s14 + $0x278] sm:$0xff] %v10273_v63  ;;  %v11211_v48 = vadd.f32 %v18233_v1, %v18029_v60  ;;  %v10274_v44 = vmul.f32 0.5, %v10162_v25  ;;  %v10166_v5 = vadd.f32 1.0, %v12714_v36  ;;  %12731 = vtanh.f32 %v9958_v59  ;;  %v10950_v45 = vpop.f32.mrb[214].mxu1  ;;  %v12718_v6 = vpop.eup %12717 }
0x10ae   :  { %v9959_v56 = vmul.f32 0.5, %v11210_v31  ;;  %10384 = vst [vmem:[%s18672_s14 + $0x270] sm:$0xff] %v10272_v40  ;;  %v10168_v49 = vadd.f32 1.0, %v12716_v52  ;;  %12733 = vtanh.f32 %v9957_v57  ;;  %v9963_v22 = vmul.f32 0.5, %v11179_v20  ;;  %v10951_v33 = vpop.f32.mrb[215].mxu1  ;;  %v12720_v13 = vpop.eup %12719 }
0x10af   :  { %v9965_v35 = vmul.f32 0.5, %v11211_v48  ;;  %10386 = vst [vmem:[%s18672_s14 + $0x280] sm:$0xff] %v10274_v44  ;;  %v10278_v60 = vmul.f32 0.5, %v10166_v5  ;;  %v10167_v1 = vadd.f32 1.0, %v12718_v6  ;;  %v11180_v26 = vadd.f32 %v18240_v24, %v18033_v12 }
0x10b0   :  { %12735 = vtanh.f32 %v9959_v56  ;;  %v12722_v34 = vpop.eup %12721  ;;  %v10280_v16 = vmul.f32 0.5, %v10168_v49  ;;  %v10169_v14 = vadd.f32 1.0, %v12720_v13  ;;  %v11212_v30 = vadd.f32 %v18242_v62, %v18037_v23 }
0x10b1   :  { %12737 = vtanh.f32 %v9963_v22  ;;  %10390 = vst [vmem:[%s18672_s14 + $0x2a0] sm:$0xff] %v10278_v60  ;;  %v10279_v41 = vmul.f32 0.5, %v10167_v1  ;;  %v10173_v39 = vadd.f32 1.0, %v12722_v34  ;;  %v9964_v50 = vmul.f32 0.5, %v11180_v26 }
0x10b2   :  { %12739 = vtanh.f32 %v9965_v35  ;;  %10392 = vst [vmem:[%s18672_s14 + $0x2b0] sm:$0xff] %v10280_v16  ;;  %v10281_v12 = vmul.f32 0.5, %v10169_v14  ;;  %v9966_v24 = vmul.f32 0.5, %v11212_v30  ;;  %v18332_v27 = vadd.f32 %v18269_v29, %v18267_v4  ;;  %v12724_v62 = vpop.eup %12723 }
0x10b3   :  { %v18336_v23 = vadd.f32 %v18285_v54, %v18276_v7  ;;  %10391 = vst [vmem:[%s18672_s14 + $0x2a8] sm:$0xff] %v10279_v41  ;;  %v10285_v10 = vmul.f32 0.5, %v10173_v39  ;;  %12741 = vtanh.f32 %v9964_v50  ;;  %v18341_v61 = vadd.f32 %v10948_v9, %v10947_v55  ;;  %v10953_v2 = vpop.f32.mrb[216].mxu1 }
0x10b4   :  { %v18343_v17 = vadd.f32 %v10951_v33, %v10950_v45  ;;  %v12726_v32 = vpop.eup %12725  ;;  %10393 = vst [vmem:[%s18672_s14 + $0x2b8] sm:$0xff] %v10281_v12  ;;  %v10175_v4 = vadd.f32 1.0, %v12724_v62  ;;  %12743 = vtanh.f32 %v9966_v24  ;;  %v10954_v29 = vpop.f32.mrb[217].mxu1 }
0x10b5   :  { %v12728_v7 = vpop.eup %12727  ;;  %10397 = vst [vmem:[%s18672_s14 + $0x2d8] sm:$0xff] %v10285_v10  ;;  %v10174_v21 = vadd.f32 1.0, %v12726_v32  ;;  %v18351_v38 = vadd.f32 %v10954_v29, %v10953_v2  ;;  %v10956_v54 = vpop.f32.mrb[218].mxu1 }
0x10b6   :  { %v12730_v47 = vpop.eup %12729  ;;  %v10287_v28 = vmul.f32 0.5, %v10175_v4  ;;  %v10176_v46 = vadd.f32 1.0, %v12728_v7  ;;  %v10957_v15 = vpop.f32.mrb[219].mxu1 }
0x10b7   :  { %v12732_v19 = vpop.eup %12731  ;;  %v10286_v42 = vmul.f32 0.5, %v10174_v21  ;;  %v10180_v51 = vadd.f32 1.0, %v12730_v47  ;;  %v18353_v58 = vadd.f32 %v10957_v15, %v10956_v54  ;;  %v18991_v21 = vld [vmem:[#allocation62_spill] sm:$0xff] }
0x10b8   :  { %v12734_v43 = vpop.eup %12733  ;;  %10399 = vst [vmem:[%s18672_s14 + $0x2e8] sm:$0xff] %v10287_v28  ;;  %v10288_v0 = vmul.f32 0.5, %v10176_v46  ;;  %v10182_v8 = vadd.f32 1.0, %v12732_v19  ;;  %v8969_v54 = vsub.s32 4, %v18991_v21  ;;  %v8977_v47 = vsub.s32 6, %v18991_v21 }
0x10b9   :  { %10398 = vst [vmem:[%s18672_s14 + $0x2e0] sm:$0xff] %v10286_v42  ;;  %v10292_v37 = vmul.f32 0.5, %v10180_v51  ;;  %v10181_v18 = vadd.f32 1.0, %v12734_v43  ;;  %v8973_v15 = vsub.s32 5, %v18991_v21 }
0x10ba   :  { %v12736_v3 = vpop.eup %12735  ;;  %10400 = vst [vmem:[%s18672_s14 + $0x2f0] sm:$0xff] %v10288_v0  ;;  %v10294_v11 = vmul.f32 0.5, %v10182_v8  ;;  %v18412_v51 = vrot.slane %v18021_v53, %v8969_v54  ;;  %v18415_v43 = vrot.slane %v18021_v53, %v8977_v47 }
0x10bb   :  { %v12738_v63 = vpop.eup %12737  ;;  %v10183_v59 = vadd.f32 1.0, %v12736_v3  ;;  %10404 = vst [vmem:[%s18672_s14 + $0x310] sm:$0xff] %v10292_v37  ;;  %v10293_v57 = vmul.f32 0.5, %v10181_v18  ;;  %v10959_v55 = vpop.f32.mrb[220].mxu1  ;;  %v18418_v0 = vrot.slane %v18021_v53, %v8973_v15 }
0x10bc   :  { %v12740_v25 = vpop.eup %12739  ;;  %v10187_v31 = vadd.f32 1.0, %v12738_v63  ;;  %10406 = vst [vmem:[%s18672_s14 + $0x320] sm:$0xff] %v10294_v11  ;;  %v10960_v20 = vpop.f32.mrb[221].mxu1  ;;  %v9699_v11 = vadd.f32 %v18332_v27, %v18415_v43 }
0x10bd   :  { %v10295_v36 = vmul.f32 0.5, %v10183_v59  ;;  %v10189_v40 = vadd.f32 1.0, %v12740_v25  ;;  %v12742_v48 = vpop.eup %12741  ;;  %10405 = vst [vmem:[%s18672_s14 + $0x318] sm:$0xff] %v10293_v57  ;;  %v18373_v52 = vadd.f32 %v10960_v20, %v10959_v55  ;;  %v10962_v44 = vpop.f32.mrb[222].mxu1  ;;  %v9702_v55 = vadd.f32 %v18336_v23, %v18415_v43 }
0x10be   :  { %v10299_v9 = vmul.f32 0.5, %v10187_v31  ;;  %v12744_v5 = vpop.eup %12743  ;;  %v10188_v45 = vadd.f32 1.0, %v12742_v48  ;;  %v10963_v6 = vpop.f32.mrb[223].mxu1 }
0x10bf   :  { %10407 = vst [vmem:[%s18672_s14 + $0x328] sm:$0xff] %v10295_v36  ;;  %v10301_v56 = vmul.f32 0.5, %v10189_v40  ;;  %v10190_v49 = vadd.f32 1.0, %v12744_v5  ;;  %v18381_v22 = vadd.f32 %v10963_v6, %v10962_v44 }
0x10c0   :  { %10411 = vst [vmem:[%s18672_s14 + $0x348] sm:$0xff] %v10299_v9  ;;  %v10300_v35 = vmul.f32 0.5, %v10188_v45 }
0x10c1   :  { %10413 = vst [vmem:[%s18672_s14 + $0x358] sm:$0xff] %v10301_v56  ;;  %v10302_v33 = vmul.f32 0.5, %v10190_v49 }
0x10c2   :  { %10412 = vst [vmem:[%s18672_s14 + $0x350] sm:$0xff] %v10300_v35 }
0x10c3   :  { %10414 = vst [vmem:[%s18672_s14 + $0x360] sm:$0xff] %v10302_v33  ;;  %v10965_v13 = vpop.f32.mrb[224].mxu1 }
0x10c4   :  { %v10966_v60 = vpop.f32.mrb[225].mxu1 }
0x10c5   :  { %v18392_v1 = vadd.f32 %v10966_v60, %v10965_v13  ;;  %v10968_v26 = vpop.f32.mrb[226].mxu1 }
0x10c6   :  { %v10969_v34 = vpop.f32.mrb[227].mxu1 }
0x10c7   :  { %v18394_v16 = vadd.f32 %v10969_v34, %v10968_v26  ;;  %v9707_v26 = vadd.f32 %v18341_v61, %v18415_v43  ;;  %v9715_v61 = vadd.f32 %v18351_v38, %v18415_v43 }
0x10cb   :  { %v10971_v14 = vpop.f32.mrb[228].mxu1 }
0x10cc   :  { %v10972_v30 = vpop.f32.mrb[229].mxu1 }
0x10cd   :  { %v18396_v41 = vadd.f32 %v10972_v30, %v10971_v14  ;;  %v10974_v39 = vpop.f32.mrb[230].mxu1 }
0x10ce   :  { %v10975_v50 = vpop.f32.mrb[231].mxu1 }
0x10cf   :  { %v18398_v12 = vadd.f32 %v10975_v50, %v10974_v39  ;;  %v9710_v50 = vadd.f32 %v18343_v17, %v18415_v43 }
0x10d3   :  { %v10977_v24 = vpop.f32.mrb[232].mxu1 }
0x10d4   :  { %v10978_v62 = vpop.f32.mrb[233].mxu1 }
0x10d5   :  { %v18400_v10 = vadd.f32 %v10978_v62, %v10977_v24  ;;  %v10980_v2 = vpop.f32.mrb[234].mxu1 }
0x10d6   :  { %v10981_v32 = vpop.f32.mrb[235].mxu1 }
0x10d7   :  { %v18402_v4 = vadd.f32 %v10981_v32, %v10980_v2 }
0x10db   :  { %v10983_v29 = vpop.f32.mrb[236].mxu1 }
0x10dc   :  { %v10984_v7 = vpop.f32.mrb[237].mxu1 }
0x10dd   :  { %v18406_v28 = vadd.f32 %v10984_v7, %v10983_v29  ;;  %v10986_v46 = vpop.f32.mrb[238].mxu1 }
0x10de   :  { %v10987_v19 = vpop.f32.mrb[239].mxu1 }
0x10df   :  { %v18409_v42 = vadd.f32 %v10987_v19, %v10986_v46 }
0x10e3   :  { %v9585_v8 = vpop.f32.mrb[160].mxu0  ;;  %v11005_v3 = vpop.f32.mrb[240].mxu1 }
0x10e4   :  { %v11213_v37 = vadd.f32 %v9585_v8, %v18412_v51  ;;  %v9587_v18 = vpop.f32.mrb[161].mxu0  ;;  %v11006_v63 = vpop.f32.mrb[241].mxu1  ;;  %v18440_v8 = vadd.f32 %v18353_v58, %v18415_v43 }
0x10e5   :  { %v11214_v59 = vadd.f32 %v9587_v18, %v18418_v0  ;;  %v11007_v25 = vadd.f32 %v11006_v63, %v11005_v3  ;;  %v9589_v57 = vpop.f32.mrb[162].mxu0  ;;  %v11008_v31 = vpop.f32.mrb[242].mxu1  ;;  %v18444_v3 = vadd.f32 %v18373_v52, %v18415_v43  ;;  %v18452_v18 = vadd.f32 %v18392_v1, %v18415_v43 }
0x10e6   :  { %v9862_v36 = vmul.f32 0.5, %v11213_v37  ;;  %v11215_v53 = vadd.f32 %v9589_v57, %v18412_v51  ;;  %v9591_v40 = vpop.f32.mrb[163].mxu0  ;;  %v11009_v20 = vpop.f32.mrb[243].mxu1  ;;  %v18448_v37 = vadd.f32 %v18381_v22, %v18415_v43  ;;  %v18456_v52 = vadd.f32 %v18394_v16, %v18415_v43 }
0x10e7   :  { %v9863_v48 = vmul.f32 0.5, %v11214_v59  ;;  %v9796_v9 = vadd.f32 %v11007_v25, %v9699_v11  ;;  %v11216_v44 = vadd.f32 %v9591_v40, %v18418_v0  ;;  %v11010_v5 = vadd.f32 %v11009_v20, %v11008_v31 }
0x10e8   :  { %12745 = vtanh.f32 %v9862_v36  ;;  %v9869_v27 = vmul.f32 0.5, %v11215_v53 }
0x10e9   :  { %12747 = vtanh.f32 %v9863_v48  ;;  %v9864_v56 = vmul.f32 0.5, %v9796_v9  ;;  %v9870_v45 = vmul.f32 0.5, %v11216_v44  ;;  %v9799_v6 = vadd.f32 %v11010_v5, %v9702_v55 }
0x10ea   :  { %12749 = vtanh.f32 %v9869_v27 }
0x10eb   :  { %12751 = vtanh.f32 %v9864_v56  ;;  %v9871_v49 = vmul.f32 0.5, %v9799_v6  ;;  %v9595_v23 = vpop.f32.mrb[164].mxu0  ;;  %v11011_v35 = vpop.f32.mrb[244].mxu1 }
0x10ec   :  { %12753 = vtanh.f32 %v9870_v45  ;;  %v11217_v33 = vadd.f32 %v9595_v23, %v18412_v51  ;;  %v9597_v13 = vpop.f32.mrb[165].mxu0  ;;  %v11012_v60 = vpop.f32.mrb[245].mxu1 }
0x10ed   :  { %12755 = vtanh.f32 %v9871_v49  ;;  %v11218_v34 = vadd.f32 %v9597_v13, %v18418_v0  ;;  %v11013_v14 = vadd.f32 %v11012_v60, %v11011_v35  ;;  %v9599_v30 = vpop.f32.mrb[166].mxu0  ;;  %v11014_v39 = vpop.f32.mrb[246].mxu1 }
0x10ee   :  { %v9876_v24 = vmul.f32 0.5, %v11217_v33  ;;  %v11219_v62 = vadd.f32 %v9599_v30, %v18412_v51  ;;  %v9601_v2 = vpop.f32.mrb[167].mxu0  ;;  %v11015_v32 = vpop.f32.mrb[247].mxu1 }
0x10ef   :  { %v9877_v29 = vmul.f32 0.5, %v11218_v34  ;;  %v9804_v7 = vadd.f32 %v11013_v14, %v9707_v26  ;;  %v11220_v21 = vadd.f32 %v9601_v2, %v18418_v0  ;;  %v11016_v54 = vadd.f32 %v11015_v32, %v11014_v39 }
0x10f0   :  { %12757 = vtanh.f32 %v9876_v24  ;;  %v9883_v47 = vmul.f32 0.5, %v11219_v62 }
0x10f1   :  { %12759 = vtanh.f32 %v9877_v29  ;;  %v9878_v46 = vmul.f32 0.5, %v9804_v7  ;;  %v9884_v15 = vmul.f32 0.5, %v11220_v21  ;;  %v9807_v19 = vadd.f32 %v11016_v54, %v9710_v50 }
0x10f2   :  { %v12746_v17 = vpop.eup %12745  ;;  %12761 = vtanh.f32 %v9883_v47  ;;  %v18473_v50 = vadd.f32 %v18396_v41, %v18415_v43  ;;  %v18480_v29 = vadd.f32 %v18398_v12, %v18415_v43 }
0x10f3   :  { %v12748_v38 = vpop.eup %12747  ;;  %v10086_v63 = vadd.f32 1.0, %v12746_v17  ;;  %12763 = vtanh.f32 %v9878_v46  ;;  %v9885_v11 = vmul.f32 0.5, %v9807_v19  ;;  %v9605_v59 = vpop.f32.mrb[168].mxu0 }
0x10f4   :  { %v11017_v58 = vpop.f32.mrb[248].mxu1  ;;  %v12750_v25 = vpop.eup %12749  ;;  %v10087_v57 = vadd.f32 1.0, %v12748_v38  ;;  %12765 = vtanh.f32 %v9884_v15  ;;  %v11221_v22 = vadd.f32 %v9605_v59, %v18412_v51 }
0x10f5   :  { %v9607_v31 = vpop.f32.mrb[169].mxu0  ;;  %v11018_v55 = vpop.f32.mrb[249].mxu1  ;;  %v10198_v53 = vmul.f32 0.5, %v10086_v63  ;;  %v10093_v1 = vadd.f32 1.0, %v12750_v25  ;;  %12767 = vtanh.f32 %v9885_v11 }
0x10f6   :  { %v12752_v36 = vpop.eup %12751  ;;  %v11222_v40 = vadd.f32 %v9607_v31, %v18418_v0  ;;  %v9609_v20 = vpop.f32.mrb[170].mxu0  ;;  %v10199_v44 = vmul.f32 0.5, %v10087_v57  ;;  %v9890_v27 = vmul.f32 0.5, %v11221_v22  ;;  %v11019_v16 = vadd.f32 %v11018_v55, %v11017_v58 }
0x10f7   :  { %v11020_v48 = vpop.f32.mrb[250].mxu1  ;;  %v12754_v9 = vpop.eup %12753  ;;  %v10088_v5 = vadd.f32 1.0, %v12752_v36  ;;  %10310 = vst [vmem:[%s18672_s14 + $0x20] sm:$0xff] %v10198_v53  ;;  %v10205_v49 = vmul.f32 0.5, %v10093_v1  ;;  %v11223_v33 = vadd.f32 %v9609_v20, %v18412_v51 }
0x10f8   :  { %v9611_v56 = vpop.f32.mrb[171].mxu0  ;;  %v11021_v45 = vpop.f32.mrb[251].mxu1  ;;  %v10094_v23 = vadd.f32 1.0, %v12754_v9  ;;  %v9891_v35 = vmul.f32 0.5, %v11222_v40  ;;  %10311 = vst [vmem:[%s18672_s14 + $0x28] sm:$0xff] %v10199_v44  ;;  %12769 = vtanh.f32 %v9890_v27  ;;  %v9812_v26 = vadd.f32 %v11019_v16, %v9715_v61 }
0x10f9   :  { %v12756_v6 = vpop.eup %12755  ;;  %v10200_v13 = vmul.f32 0.5, %v10088_v5  ;;  %10317 = vst [vmem:[%s18672_s14 + $0x58] sm:$0xff] %v10205_v49  ;;  %v9897_v14 = vmul.f32 0.5, %v11223_v33  ;;  %v11224_v30 = vadd.f32 %v9611_v56, %v18418_v0  ;;  %v11022_v2 = vadd.f32 %v11021_v45, %v11020_v48 }
0x10fa   :  { %v10095_v60 = vadd.f32 1.0, %v12756_v6  ;;  %v10206_v34 = vmul.f32 0.5, %v10094_v23  ;;  %12771 = vtanh.f32 %v9891_v35  ;;  %v12758_v39 = vpop.eup %12757  ;;  %v9892_v62 = vmul.f32 0.5, %v9812_v26 }
0x10fb   :  { %10312 = vst [vmem:[%s18672_s14 + $0x30] sm:$0xff] %v10200_v13  ;;  %v12760_v32 = vpop.eup %12759  ;;  %v10100_v7 = vadd.f32 1.0, %v12758_v39  ;;  %12773 = vtanh.f32 %v9897_v14  ;;  %v9898_v41 = vmul.f32 0.5, %v11224_v30  ;;  %v9615_v21 = vpop.f32.mrb[172].mxu0  ;;  %v9815_v46 = vadd.f32 %v11022_v2, %v18440_v8 }
0x10fc   :  { %v10207_v24 = vmul.f32 0.5, %v10095_v60  ;;  %10318 = vst [vmem:[%s18672_s14 + $0x60] sm:$0xff] %v10206_v34  ;;  %v11023_v54 = vpop.f32.mrb[252].mxu1  ;;  %v12762_v61 = vpop.eup %12761  ;;  %v10101_v47 = vadd.f32 1.0, %v12760_v32  ;;  %12775 = vtanh.f32 %v9892_v62  ;;  %v11225_v12 = vadd.f32 %v9615_v21, %v18412_v51 }
0x10fd   :  { %v9617_v15 = vpop.f32.mrb[173].mxu0  ;;  %v11024_v19 = vpop.f32.mrb[253].mxu1  ;;  %v10212_v38 = vmul.f32 0.5, %v10100_v7  ;;  %v10107_v63 = vadd.f32 1.0, %v12762_v61  ;;  %12777 = vtanh.f32 %v9898_v41  ;;  %v9899_v31 = vmul.f32 0.5, %v9815_v46 }
0x10fe   :  { %10319 = vst [vmem:[%s18672_s14 + $0x68] sm:$0xff] %v10207_v24  ;;  %v12764_v17 = vpop.eup %12763  ;;  %v11226_v11 = vadd.f32 %v9617_v15, %v18418_v0  ;;  %v9619_v59 = vpop.f32.mrb[174].mxu0  ;;  %v10213_v57 = vmul.f32 0.5, %v10101_v47  ;;  %v9904_v55 = vmul.f32 0.5, %v11225_v12  ;;  %v11025_v48 = vadd.f32 %v11024_v19, %v11023_v54 }
0x10ff   :  { %v11026_v58 = vpop.f32.mrb[254].mxu1  ;;  %v12766_v25 = vpop.eup %12765  ;;  %v10102_v22 = vadd.f32 1.0, %v12764_v17  ;;  %10324 = vst [vmem:[%s18672_s14 + $0x90] sm:$0xff] %v10212_v38  ;;  %v10219_v1 = vmul.f32 0.5, %v10107_v63  ;;  %12779 = vtanh.f32 %v9899_v31  ;;  %v11227_v5 = vadd.f32 %v9619_v59, %v18412_v51 }
0x1100   :  { %v9621_v36 = vpop.f32.mrb[175].mxu0  ;;  %v11027_v53 = vpop.f32.mrb[255].mxu1  ;;  %v10108_v40 = vadd.f32 1.0, %v12766_v25  ;;  %v9905_v20 = vmul.f32 0.5, %v11226_v11  ;;  %10325 = vst [vmem:[%s18672_s14 + $0x98] sm:$0xff] %v10213_v57  ;;  %12781 = vtanh.f32 %v9904_v55  ;;  %v9820_v16 = vadd.f32 %v11025_v48, %v18444_v3 }
0x1101   :  { %v12768_v8 = vpop.eup %12767  ;;  %v10214_v9 = vmul.f32 0.5, %v10102_v22  ;;  %10331 = vst [vmem:[%s18672_s14 + $0xc8] sm:$0xff] %v10219_v1  ;;  %v11228_v56 = vadd.f32 %v9621_v36, %v18418_v0  ;;  %v9911_v49 = vmul.f32 0.5, %v11227_v5  ;;  %v11028_v23 = vadd.f32 %v11027_v53, %v11026_v58 }
0x1102   :  { %v10109_v44 = vadd.f32 1.0, %v12768_v8  ;;  %v10220_v27 = vmul.f32 0.5, %v10108_v40  ;;  %v12770_v45 = vpop.eup %12769  ;;  %12783 = vtanh.f32 %v9905_v20  ;;  %v18508_v33 = vadd.f32 %v18400_v10, %v18415_v43 }
0x1103   :  { %10326 = vst [vmem:[%s18672_s14 + $0xa0] sm:$0xff] %v10214_v9  ;;  %v10114_v3 = vadd.f32 1.0, %v12770_v45  ;;  %v9906_v13 = vmul.f32 0.5, %v9820_v16  ;;  %v9912_v60 = vmul.f32 0.5, %v11228_v56  ;;  %v9625_v26 = vpop.f32.mrb[176].mxu0  ;;  %v11029_v34 = vpop.f32.mrb[0].mxu1  ;;  %12785 = vtanh.f32 %v9911_v49 }
0x1104   :  { %v10221_v6 = vmul.f32 0.5, %v10109_v44  ;;  %v12772_v35 = vpop.eup %12771  ;;  %10332 = vst [vmem:[%s18672_s14 + $0xd0] sm:$0xff] %v10220_v27  ;;  %v9823_v30 = vadd.f32 %v11028_v23, %v18448_v37  ;;  %v11229_v10 = vadd.f32 %v9625_v26, %v18412_v51  ;;  %v9627_v39 = vpop.f32.mrb[177].mxu0  ;;  %v18533_v8 = vadd.f32 %v18402_v4, %v18415_v43 }
0x1105   :  { %v10115_v14 = vadd.f32 1.0, %v12772_v35  ;;  %v11030_v24 = vpop.f32.mrb[1].mxu1  ;;  %v12774_v62 = vpop.eup %12773  ;;  %v10226_v2 = vmul.f32 0.5, %v10114_v3  ;;  %12787 = vtanh.f32 %v9906_v13  ;;  %v11230_v32 = vadd.f32 %v9627_v39, %v18418_v0 }
0x1106   :  { %10333 = vst [vmem:[%s18672_s14 + $0xd8] sm:$0xff] %v10221_v6  ;;  %v11031_v7 = vadd.f32 %v11030_v24, %v11029_v34  ;;  %v9629_v41 = vpop.f32.mrb[178].mxu0  ;;  %v11032_v21 = vpop.f32.mrb[2].mxu1  ;;  %v10121_v47 = vadd.f32 1.0, %v12774_v62  ;;  %12789 = vtanh.f32 %v9912_v60  ;;  %v9913_v46 = vmul.f32 0.5, %v9823_v30 }
0x1107   :  { %v12776_v54 = vpop.eup %12775  ;;  %v10227_v61 = vmul.f32 0.5, %v10115_v14  ;;  %v9631_v12 = vpop.f32.mrb[179].mxu0  ;;  %10338 = vst [vmem:[%s18672_s14 + $0x100] sm:$0xff] %v10226_v2  ;;  %v9918_v17 = vmul.f32 0.5, %v11229_v10  ;;  %v9919_v38 = vmul.f32 0.5, %v11230_v32  ;;  %v11231_v58 = vadd.f32 %v9629_v41, %v18412_v51 }
0x1108   :  { %v11033_v15 = vpop.f32.mrb[3].mxu1  ;;  %v12778_v37 = vpop.eup %12777  ;;  %v10116_v19 = vadd.f32 1.0, %v12776_v54  ;;  %v9828_v63 = vadd.f32 %v11031_v7, %v18452_v18  ;;  %v10233_v11 = vmul.f32 0.5, %v10121_v47  ;;  %12791 = vtanh.f32 %v9913_v46 }
0x1109   :  { %10339 = vst [vmem:[%s18672_s14 + $0x108] sm:$0xff] %v10227_v61  ;;  %v10122_v59 = vadd.f32 1.0, %v12778_v37  ;;  %12793 = vtanh.f32 %v9918_v17  ;;  %v11232_v22 = vadd.f32 %v9631_v12, %v18418_v0  ;;  %v12780_v31 = vpop.eup %12779  ;;  %v9925_v55 = vmul.f32 0.5, %v11231_v58 }
0x110a   :  { %v10228_v25 = vmul.f32 0.5, %v10116_v19  ;;  %v9920_v57 = vmul.f32 0.5, %v9828_v63  ;;  %10345 = vst [vmem:[%s18672_s14 + $0x138] sm:$0xff] %v10233_v11  ;;  %12795 = vtanh.f32 %v9919_v38  ;;  %v11034_v36 = vadd.f32 %v11033_v15, %v11032_v21  ;;  %v12782_v53 = vpop.eup %12781 }
0x110b   :  { %v10234_v18 = vmul.f32 0.5, %v10122_v59  ;;  %v10123_v1 = vadd.f32 1.0, %v12780_v31  ;;  %v9926_v40 = vmul.f32 0.5, %v11232_v22  ;;  %v9635_v20 = vpop.f32.mrb[180].mxu0  ;;  %v11035_v48 = vpop.f32.mrb[4].mxu1  ;;  %v10128_v44 = vadd.f32 1.0, %v12782_v53 }
0x110c   :  { %10340 = vst [vmem:[%s18672_s14 + $0x110] sm:$0xff] %v10228_v25  ;;  %12797 = vtanh.f32 %v9920_v57  ;;  %v12784_v9 = vpop.eup %12783  ;;  %v9831_v5 = vadd.f32 %v11034_v36, %v18456_v52  ;;  %v11233_v4 = vadd.f32 %v9635_v20, %v18412_v51  ;;  %v9637_v27 = vpop.f32.mrb[181].mxu0  ;;  %v18561_v11 = vadd.f32 %v18406_v28, %v18415_v43 }
0x110d   :  { %10346 = vst [vmem:[%s18672_s14 + $0x140] sm:$0xff] %v10234_v18  ;;  %12799 = vtanh.f32 %v9925_v55  ;;  %v11036_v16 = vpop.f32.mrb[5].mxu1  ;;  %v10235_v56 = vmul.f32 0.5, %v10123_v1  ;;  %v10129_v45 = vadd.f32 1.0, %v12784_v9  ;;  %v11234_v6 = vadd.f32 %v9637_v27, %v18418_v0  ;;  %v9639_v49 = vpop.f32.mrb[182].mxu0 }
0x110e   :  { %12801 = vtanh.f32 %v9926_v40  ;;  %v11038_v23 = vpop.f32.mrb[6].mxu1  ;;  %v12786_v35 = vpop.eup %12785  ;;  %v10240_v3 = vmul.f32 0.5, %v10128_v44  ;;  %v9927_v13 = vmul.f32 0.5, %v9831_v5  ;;  %v9932_v60 = vmul.f32 0.5, %v11233_v4 }
0x110f   :  { %v11037_v26 = vadd.f32 %v11036_v16, %v11035_v48  ;;  %v9641_v34 = vpop.f32.mrb[183].mxu0  ;;  %v11039_v14 = vpop.f32.mrb[7].mxu1  ;;  %10347 = vst [vmem:[%s18672_s14 + $0x148] sm:$0xff] %v10235_v56  ;;  %v10241_v52 = vmul.f32 0.5, %v10129_v45  ;;  %v10135_v10 = vadd.f32 1.0, %v12786_v35  ;;  %v9933_v39 = vmul.f32 0.5, %v11234_v6 }
0x1110   :  { %v12788_v30 = vpop.eup %12787  ;;  %v11235_v24 = vadd.f32 %v9639_v49, %v18412_v51  ;;  %10352 = vst [vmem:[%s18672_s14 + $0x170] sm:$0xff] %v10240_v3  ;;  %12803 = vtanh.f32 %v9927_v13  ;;  %v11236_v7 = vadd.f32 %v9641_v34, %v18418_v0  ;;  %v11040_v19 = vadd.f32 %v11039_v14, %v11038_v23 }
0x1111   :  { %v12790_v62 = vpop.eup %12789  ;;  %v10130_v2 = vadd.f32 1.0, %v12788_v30  ;;  %v9836_v32 = vadd.f32 %v11037_v26, %v18473_v50  ;;  %10353 = vst [vmem:[%s18672_s14 + $0x178] sm:$0xff] %v10241_v52  ;;  %v10247_v41 = vmul.f32 0.5, %v10135_v10  ;;  %12805 = vtanh.f32 %v9932_v60 }
0x1112   :  { %v10136_v21 = vadd.f32 1.0, %v12790_v62  ;;  %v9939_v54 = vmul.f32 0.5, %v11235_v24  ;;  %v12792_v61 = vpop.eup %12791  ;;  %12807 = vtanh.f32 %v9933_v39  ;;  %v9940_v12 = vmul.f32 0.5, %v11236_v7 }
0x1113   :  { %v10242_v47 = vmul.f32 0.5, %v10130_v2  ;;  %v9934_v46 = vmul.f32 0.5, %v9836_v32  ;;  %v12794_v15 = vpop.eup %12793  ;;  %10359 = vst [vmem:[%s18672_s14 + $0x1a8] sm:$0xff] %v10247_v41  ;;  %v10137_v37 = vadd.f32 1.0, %v12792_v61  ;;  %v9645_v17 = vpop.f32.mrb[184].mxu0  ;;  %v9839_v28 = vadd.f32 %v11040_v19, %v18480_v29 }
0x1114   :  { %v10248_v50 = vmul.f32 0.5, %v10136_v21  ;;  %12809 = vtanh.f32 %v9939_v54  ;;  %v11041_v38 = vpop.f32.mrb[8].mxu1  ;;  %v12796_v63 = vpop.eup %12795  ;;  %v10142_v59 = vadd.f32 1.0, %v12794_v15  ;;  %v11237_v58 = vadd.f32 %v9645_v17, %v18412_v51 }
0x1115   :  { %10354 = vst [vmem:[%s18672_s14 + $0x180] sm:$0xff] %v10242_v47  ;;  %12811 = vtanh.f32 %v9934_v46  ;;  %v9647_v25 = vpop.f32.mrb[185].mxu0  ;;  %v11042_v57 = vpop.f32.mrb[9].mxu1  ;;  %v10249_v31 = vmul.f32 0.5, %v10137_v37  ;;  %v10143_v18 = vadd.f32 1.0, %v12796_v63  ;;  %v9941_v16 = vmul.f32 0.5, %v9839_v28 }
0x1116   :  { %v12798_v22 = vpop.eup %12797  ;;  %10360 = vst [vmem:[%s18672_s14 + $0x1b0] sm:$0xff] %v10248_v50  ;;  %12813 = vtanh.f32 %v9940_v12  ;;  %v9649_v55 = vpop.f32.mrb[186].mxu0  ;;  %v10254_v1 = vmul.f32 0.5, %v10142_v59  ;;  %v9946_v20 = vmul.f32 0.5, %v11237_v58  ;;  %v11238_v48 = vadd.f32 %v9647_v25, %v18418_v0 }
0x1117   :  { %v11044_v36 = vpop.f32.mrb[10].mxu1  ;;  %v12800_v53 = vpop.eup %12799  ;;  %v10144_v40 = vadd.f32 1.0, %v12798_v22  ;;  %10361 = vst [vmem:[%s18672_s14 + $0x1b8] sm:$0xff] %v10249_v31  ;;  %v10255_v4 = vmul.f32 0.5, %v10143_v18  ;;  %v11043_v56 = vadd.f32 %v11042_v57, %v11041_v38  ;;  %v11239_v35 = vadd.f32 %v9649_v55, %v18412_v51 }
0x1118   :  { %v9651_v9 = vpop.f32.mrb[187].mxu0  ;;  %v11045_v44 = vpop.f32.mrb[11].mxu1  ;;  %v10149_v27 = vadd.f32 1.0, %v12800_v53  ;;  %10366 = vst [vmem:[%s18672_s14 + $0x1e0] sm:$0xff] %v10254_v1  ;;  %12815 = vtanh.f32 %v9946_v20  ;;  %v9947_v6 = vmul.f32 0.5, %v11238_v48  ;;  %v9758_v14 = vadd.f32 %v18409_v42, %v18415_v43 }
0x1119   :  { %v12802_v5 = vpop.eup %12801  ;;  %v10256_v29 = vmul.f32 0.5, %v10144_v40  ;;  %10367 = vst [vmem:[%s18672_s14 + $0x1e8] sm:$0xff] %v10255_v4  ;;  %12817 = vtanh.f32 %v9941_v16  ;;  %v9844_v23 = vadd.f32 %v11043_v56, %v18508_v33  ;;  %v11240_v60 = vadd.f32 %v9651_v9, %v18418_v0 }
0x111a   :  { %v10150_v45 = vadd.f32 1.0, %v12802_v5  ;;  %v10261_v49 = vmul.f32 0.5, %v10149_v27  ;;  %v12804_v3 = vpop.eup %12803  ;;  %12819 = vtanh.f32 %v9947_v6  ;;  %v11046_v26 = vadd.f32 %v11045_v44, %v11044_v36 }
0x111b   :  { %10368 = vst [vmem:[%s18672_s14 + $0x1f0] sm:$0xff] %v10256_v29  ;;  %v12806_v34 = vpop.eup %12805  ;;  %v10151_v33 = vadd.f32 1.0, %v12804_v3  ;;  %v9948_v30 = vmul.f32 0.5, %v9844_v23  ;;  %v9953_v52 = vmul.f32 0.5, %v11239_v35  ;;  %v9655_v10 = vpop.f32.mrb[188].mxu0  ;;  %v9954_v2 = vmul.f32 0.5, %v11240_v60 }
0x111c   :  { %v10262_v13 = vmul.f32 0.5, %v10150_v45  ;;  %10373 = vst [vmem:[%s18672_s14 + $0x218] sm:$0xff] %v10261_v49  ;;  %v11047_v39 = vpop.f32.mrb[12].mxu1  ;;  %v12808_v24 = vpop.eup %12807  ;;  %v10156_v62 = vadd.f32 1.0, %v12806_v34  ;;  %v9847_v32 = vadd.f32 %v11046_v26, %v18533_v8  ;;  %v11241_v42 = vadd.f32 %v9655_v10, %v18412_v51 }
0x111d   :  { %v9657_v43 = vpop.f32.mrb[189].mxu0  ;;  %v11048_v7 = vpop.f32.mrb[13].mxu1  ;;  %v10263_v21 = vmul.f32 0.5, %v10151_v33  ;;  %v10157_v54 = vadd.f32 1.0, %v12808_v24  ;;  %12821 = vtanh.f32 %v9948_v30 }
0x111e   :  { %10374 = vst [vmem:[%s18672_s14 + $0x220] sm:$0xff] %v10262_v13  ;;  %v12810_v41 = vpop.eup %12809  ;;  %v11242_v61 = vadd.f32 %v9657_v43, %v18418_v0  ;;  %v9659_v47 = vpop.f32.mrb[190].mxu0  ;;  %v10268_v15 = vmul.f32 0.5, %v10156_v62  ;;  %12823 = vtanh.f32 %v9953_v52  ;;  %v9955_v37 = vmul.f32 0.5, %v9847_v32 }
0x111f   :  { %v11050_v46 = vpop.f32.mrb[14].mxu1  ;;  %v12812_v12 = vpop.eup %12811  ;;  %v10163_v50 = vadd.f32 1.0, %v12810_v41  ;;  %10375 = vst [vmem:[%s18672_s14 + $0x228] sm:$0xff] %v10263_v21  ;;  %v10269_v38 = vmul.f32 0.5, %v10157_v54  ;;  %12825 = vtanh.f32 %v9954_v2  ;;  %v9960_v59 = vmul.f32 0.5, %v11241_v42 }
0x1120   :  { %v9661_v19 = vpop.f32.mrb[191].mxu0  ;;  %v11051_v17 = vpop.f32.mrb[15].mxu1  ;;  %v10158_v63 = vadd.f32 1.0, %v12812_v12  ;;  %10380 = vst [vmem:[%s18672_s14 + $0x250] sm:$0xff] %v10268_v15  ;;  %12827 = vtanh.f32 %v9955_v37  ;;  %v9961_v57 = vmul.f32 0.5, %v11242_v61  ;;  %v11049_v31 = vadd.f32 %v11048_v7, %v11047_v39 }
0x1121   :  { %v12814_v8 = vpop.eup %12813  ;;  %v10275_v58 = vmul.f32 0.5, %v10163_v50  ;;  %10381 = vst [vmem:[%s18672_s14 + $0x258] sm:$0xff] %v10269_v38  ;;  %12829 = vtanh.f32 %v9960_v59  ;;  %v11243_v18 = vadd.f32 %v9659_v47, %v18412_v51  ;;  %v11244_v36 = vadd.f32 %v9661_v19, %v18418_v0 }
0x1122   :  { %v10164_v25 = vadd.f32 1.0, %v12814_v8  ;;  %v10270_v22 = vmul.f32 0.5, %v10158_v63  ;;  %v12816_v28 = vpop.eup %12815  ;;  %12831 = vtanh.f32 %v9961_v57  ;;  %v11052_v53 = vadd.f32 %v11051_v17, %v11050_v46 }
0x1123   :  { %10387 = vst [vmem:[%s18672_s14 + $0x288] sm:$0xff] %v10275_v58  ;;  %v12818_v1 = vpop.eup %12817  ;;  %v10170_v40 = vadd.f32 1.0, %v12816_v28  ;;  %v9852_v20 = vadd.f32 %v11049_v31, %v18561_v11  ;;  %v9967_v48 = vmul.f32 0.5, %v11243_v18  ;;  %v9968_v44 = vmul.f32 0.5, %v11244_v36 }
0x1124   :  { %v10276_v55 = vmul.f32 0.5, %v10164_v25  ;;  %10382 = vst [vmem:[%s18672_s14 + $0x260] sm:$0xff] %v10270_v22  ;;  %v12820_v51 = vpop.eup %12819  ;;  %v10165_v9 = vadd.f32 1.0, %v12818_v1  ;;  %v9855_v5 = vadd.f32 %v11052_v53, %v9758_v14 }
0x1125   :  { %v10282_v4 = vmul.f32 0.5, %v10170_v40  ;;  %v10171_v0 = vadd.f32 1.0, %v12820_v51  ;;  %v9962_v27 = vmul.f32 0.5, %v9852_v20  ;;  %12833 = vtanh.f32 %v9967_v48 }
0x1126   :  { %10388 = vst [vmem:[%s18672_s14 + $0x290] sm:$0xff] %v10276_v55  ;;  %v10277_v16 = vmul.f32 0.5, %v10165_v9  ;;  %12835 = vtanh.f32 %v9968_v44  ;;  %v9969_v56 = vmul.f32 0.5, %v9855_v5 }
0x1127   :  { %v12822_v29 = vpop.eup %12821  ;;  %10394 = vst [vmem:[%s18672_s14 + $0x2c0] sm:$0xff] %v10282_v4  ;;  %v10283_v11 = vmul.f32 0.5, %v10171_v0  ;;  %12837 = vtanh.f32 %v9962_v27 }
0x1128   :  { %v12824_v45 = vpop.eup %12823  ;;  %10389 = vst [vmem:[%s18672_s14 + $0x298] sm:$0xff] %v10277_v16  ;;  %v10172_v6 = vadd.f32 1.0, %v12822_v29  ;;  %12839 = vtanh.f32 %v9969_v56 }
0x1129   :  { %v12826_v49 = vpop.eup %12825  ;;  %10395 = vst [vmem:[%s18672_s14 + $0x2c8] sm:$0xff] %v10283_v11  ;;  %v10177_v23 = vadd.f32 1.0, %v12824_v45 }
0x112a   :  { %v12828_v35 = vpop.eup %12827  ;;  %v10284_v3 = vmul.f32 0.5, %v10172_v6  ;;  %v10178_v13 = vadd.f32 1.0, %v12826_v49 }
0x112b   :  { %v12830_v60 = vpop.eup %12829  ;;  %v10289_v26 = vmul.f32 0.5, %v10177_v23  ;;  %v10179_v34 = vadd.f32 1.0, %v12828_v35 }
0x112c   :  { %v12832_v14 = vpop.eup %12831  ;;  %10396 = vst [vmem:[%s18672_s14 + $0x2d0] sm:$0xff] %v10284_v3  ;;  %v10290_v33 = vmul.f32 0.5, %v10178_v13  ;;  %v10184_v30 = vadd.f32 1.0, %v12830_v60 }
0x112d   :  { %10401 = vst [vmem:[%s18672_s14 + $0x2f8] sm:$0xff] %v10289_v26  ;;  %v10291_v52 = vmul.f32 0.5, %v10179_v34  ;;  %v10185_v10 = vadd.f32 1.0, %v12832_v14 }
0x112e   :  { %10402 = vst [vmem:[%s18672_s14 + $0x300] sm:$0xff] %v10290_v33  ;;  %v10296_v39 = vmul.f32 0.5, %v10184_v30 }
0x112f   :  { %v12834_v24 = vpop.eup %12833  ;;  %10403 = vst [vmem:[%s18672_s14 + $0x308] sm:$0xff] %v10291_v52  ;;  %v10297_v62 = vmul.f32 0.5, %v10185_v10 }
0x1130   :  { %v12836_v2 = vpop.eup %12835  ;;  %10408 = vst [vmem:[%s18672_s14 + $0x330] sm:$0xff] %v10296_v39  ;;  %v10191_v32 = vadd.f32 1.0, %v12834_v24 }
0x1131   :  { %v12838_v42 = vpop.eup %12837  ;;  %10409 = vst [vmem:[%s18672_s14 + $0x338] sm:$0xff] %v10297_v62  ;;  %v10192_v43 = vadd.f32 1.0, %v12836_v2 }
0x1132   :  { %v12840_v7 = vpop.eup %12839  ;;  %v10186_v41 = vadd.f32 1.0, %v12838_v42  ;;  %v10303_v21 = vmul.f32 0.5, %v10191_v32 }
0x1133   :  { %v10304_v54 = vmul.f32 0.5, %v10192_v43  ;;  %v10193_v61 = vadd.f32 1.0, %v12840_v7 }
0x1134   :  { %v10298_v47 = vmul.f32 0.5, %v10186_v41  ;;  %10415 = vst [vmem:[%s18672_s14 + $0x368] sm:$0xff] %v10303_v21 }
0x1135   :  { %10416 = vst [vmem:[%s18672_s14 + $0x370] sm:$0xff] %v10304_v54  ;;  %v10305_v46 = vmul.f32 0.5, %v10193_v61 }
0x1136   :  { %10410 = vst [vmem:[%s18672_s14 + $0x340] sm:$0xff] %v10298_v47 }
0x1137   :  { %10417 = vst [vmem:[%s18672_s14 + $0x378] sm:$0xff] %v10305_v46 }
0x1138   :  { %10426 = vsyncpa [#allocation7], 1 }
0x1139   :  { %10427 = vsyncpa [#allocation9], 1 }
0x113a   :  { %10428 = vsyncpa [#allocation12], 1 }
0x113b   :  { %10429 = vsyncpa [#allocation15], 1 }
0x113c   :  { %10430 = vsyncmov [#allocation5] }
0x113f   :  { %s10431_s16 = vpop.sfrf %10430 }
0x1140   :  { %p10810_p6 = scmp.ne.s32.totalorder %s10431_s16, 0 }
0x1142   :  { %10435 = shalt.err (%p10810_p6)  }
0x1143   :  { %10437 = vsyncmov [#allocation5 + $0x1] }
0x1146   :  { %s10438_s6 = vpop.sfrf %10437 }
0x1147   :  { %p10811_p7 = scmp.ne.s32.totalorder %s10438_s6, 0 }
0x1149   :  { %10442 = shalt.err (%p10811_p7)  }
0x114a   :  { %10444 = vsyncmov [#allocation5 + $0x2] }
0x114d   :  { %s10445_s2 = vpop.sfrf %10444 }
0x114e   :  { %p10812_p8 = scmp.ne.s32.totalorder %s10445_s2, 0 }
0x1150   :  { %10449 = shalt.err (%p10812_p8)  }

</bundles_post_ra>
